<compile_context>
chip_gen: v6e
topology: v6e:2x2x1
jax: 0.10.0
libtpu: 0.0.40
codegen_flags: <defaults>
</compile_context>

<pallas_src>
import jax
import jax.numpy as jnp
from jax.experimental import pallas as pl
from jax.experimental.pallas import tpu as pltpu

NEG_SLOPE = 0.2
PADL = 8   # left spatial pad of the conv2/conv3 scratch -> sublane-aligned interior


def _lrelu(x):
    return jnp.where(x >= 0.0, x, NEG_SLOPE * x)


def _vmem_spec():
    return pl.BlockSpec(memory_space=pltpu.MemorySpace.VMEM)


def _make_kernel(B, H1, W1, C1, C2):
    H2, W2 = H1 // 2, W1 // 2
    H3, W3 = H2 // 2, W2 // 2
    M2 = B * H2 * W2
    M3 = B * H3 * W3
    Wp2 = W2 + PADL + 1
    Wp3 = W3 + PADL + 1

    def kernel(xc_ref, w1_ref, b1_ref, w2_ref, b2_ref, w3_ref, b3_ref,
               lw1_ref, lb1_ref, lw2_ref, lb2_ref,
               o_ref,
               xp2_ref, xp3_ref, s2_ref):
        f32 = jnp.float32

        # ---- stage 1: Conv2d(Cin,32,5,1,2) + LeakyReLU(0.2), W-pair packed ----
        # xc_ref rows hold the 5x5xCin patches of TWO adjacent W pixels (K=150),
        # w1_ref is the matching block-diagonal (150, 64) weight, so a single dot
        # yields a lane-dense (B*H1*W1/2, 2*C1) activation.
        a1 = _lrelu(jnp.dot(xc_ref[...], w1_ref[...],
                            preferred_element_type=f32) + b1_ref[...])
        # AvgPool2d(2,2): W-step = lane-half add (pair packed in lanes),
        # H-step = add the two W2-column half-rows of each h-pair.
        pw = a1[:, :C1] + a1[:, C1:]                        # (B*H1*W2, C1)
        z1 = pw.reshape(B * H2, 2 * W2, C1)
        p1 = (z1[:, :W2, :] + z1[:, W2:, :]) * 0.25         # (B*H2, W2, C1)

        # ---- stage 2: Conv2d(32,64,3,1,1) + LeakyReLU(0.2) + AvgPool2d(2,2) ---
        # Zero only the halo strips (no full-buffer memset); interior written once
        # at a sublane-aligned offset (PADL=8) -> unmasked stores.
        xp2_ref[:, 0:1, :, :] = jnp.zeros((B, 1, Wp2, C1), f32)
        xp2_ref[:, H2 + 1:H2 + 2, :, :] = jnp.zeros((B, 1, Wp2, C1), f32)
        xp2_ref[:, :, PADL - 1:PADL, :] = jnp.zeros((B, H2 + 2, 1, C1), f32)
        xp2_ref[:, :, PADL + W2:PADL + W2 + 1, :] = jnp.zeros((B, H2 + 2, 1, C1), f32)
        xp2_ref[:, 1:1 + H2, PADL:PADL + W2, :] = p1.reshape(B, H2, W2, C1)

        # Fuse the 9 taps into K (K = 9*C1 = 288): one lane-concat of the shifted
        # windows, then a single MXU dot (no per-tap accumulator round trips).
        cols2 = [
            xp2_ref[:, i:i + H2, PADL - 1 + j:PADL - 1 + j + W2, :].reshape(M2, C1)
            for i in range(3) for j in range(3)
        ]
        col2 = jnp.concatenate(cols2, axis=-1)              # (M2, 288)
        a2 = _lrelu(jnp.dot(col2, w2_ref[...],
                            preferred_element_type=f32) + b2_ref[...])
        s2_ref[...] = a2                                    # (M2, C2)

        # AvgPool2d(2,2): W-pairs are adjacent rows -> two stride-2 sublane loads;
        # H-pairs are W3-row blocks.
        # TODO(synk): lane-pack W pairs (2*C2 = 128 lanes) to replace this strided
        # gather with a lane-half add.
        even = s2_ref[pl.ds(0, M2 // 2, stride=2), :]
        odd = s2_ref[pl.ds(1, M2 // 2, stride=2), :]
        z2 = (even + odd).reshape(B * H3, 2 * W3, C2)
        p2 = (z2[:, :W3, :] + z2[:, W3:, :]) * 0.25         # (B*H3, W3, C2)

        # ---- stage 3: Conv2d(64,64,3,1,1) + LeakyReLU(0.2) --------------------
        xp3_ref[:, 0:1, :, :] = jnp.zeros((B, 1, Wp3, C2), f32)
        xp3_ref[:, H3 + 1:H3 + 2, :, :] = jnp.zeros((B, 1, Wp3, C2), f32)
        xp3_ref[:, :, PADL - 1:PADL, :] = jnp.zeros((B, H3 + 2, 1, C2), f32)
        xp3_ref[:, :, PADL + W3:PADL + W3 + 1, :] = jnp.zeros((B, H3 + 2, 1, C2), f32)
        xp3_ref[:, 1:1 + H3, PADL:PADL + W3, :] = p2.reshape(B, H3, W3, C2)

        cols3 = [
            xp3_ref[:, i:i + H3, PADL - 1 + j:PADL - 1 + j + W3, :].reshape(M3, C2)
            for i in range(3) for j in range(3)
        ]
        col3 = jnp.concatenate(cols3, axis=-1)              # (M3, 576)
        a3 = _lrelu(jnp.dot(col3, w3_ref[...],
                            preferred_element_type=f32) + b3_ref[...])

        # ---- head: AdaptiveAvgPool2d(1) + view + Linear(64,256) + Linear(256,out)
        feat = a3.reshape(B, H3 * W3, C2).sum(axis=1) * (1.0 / (H3 * W3))   # (B, C2)
        h = jnp.dot(feat, lw1_ref[...], preferred_element_type=f32) + lb1_ref[...]
        o_ref[...] = jnp.dot(h, lw2_ref[...], preferred_element_type=f32) + lb2_ref[...]

    return kernel


def tiny_encoder_forward(x_nchw, p):
    """Fused TinyEncoder forward.  `x_nchw` follows the PyTorch NCHW convention."""
    x = jnp.transpose(x_nchw, (0, 2, 3, 1)).astype(jnp.float32)      # -> NHWC
    B, H, W, Cin = x.shape
    # Spatial dims must be multiples of 32 so every in-kernel reshape/slice keeps
    # its second-minor extent (W/2, W/4, ...) a multiple of the 8-sublane tile
    # (true for the module default input_size=128 and for the test size 32).
    assert H % 32 == 0 and W % 32 == 0, (H, W)

    C1 = p["w1"].shape[-1]          # 32
    C2 = p["w2"].shape[-1]          # 64
    out_dim = p["lw2"].shape[-1]
    assert p["w1"].shape[2] == Cin and p["w3"].shape[-1] == C2

    # ---- wrapper-side layout plumbing (XLA): conv1 im2col, W-pair packed ----
    k1 = p["w1"].shape[0]                                   # 5
    pad1 = k1 // 2
    xpad = jnp.pad(x, ((0, 0), (pad1, pad1), (pad1, pad1), (0, 0)))
    patches = [xpad[:, i:i + H, j:j + W, :] for i in range(k1) for j in range(k1)]
    K1 = k1 * k1 * Cin                                      # 75
    xcol = jnp.concatenate(patches, axis=-1).reshape(B * H * W, K1)
    xcol2 = xcol.reshape(B * H * W // 2, 2 * K1)            # pack adjacent W pixels

    w1col = p["w1"].reshape(K1, C1)
    w1p = jnp.zeros((2 * K1, 2 * C1), jnp.float32)
    w1p = w1p.at[:K1, :C1].set(w1col).at[K1:, C1:].set(w1col)   # block-diagonal
    b1p = jnp.concatenate([p["b1"], p["b1"]]).reshape(1, 2 * C1)

    w2col = p["w2"].reshape(9 * C1, C2)                     # (288, 64), tap-major K
    w3col = p["w3"].reshape(9 * C2, C2)                     # (576, 64)

    H2, W2, H3, W3 = H // 2, W // 2, H // 4, W // 4
    kernel = _make_kernel(B, H, W, C1, C2)

    scratch = [
        pltpu.VMEM((B, H2 + 2, W2 + PADL + 1, C1), jnp.float32),  # padded conv2 input
        pltpu.VMEM((B, H3 + 2, W3 + PADL + 1, C2), jnp.float32),  # padded conv3 input
        pltpu.VMEM((B * H2 * W2, C2), jnp.float32),               # conv2 output slab
    ]

    # TODO(synk): at the module default input_size=128 / larger batch, strip-tile
    # B*H rows with a halo'd "parallel" grid (or pltpu.emit_pipeline) so the
    # working set fits v7x's 64 MiB VMEM and both TensorCores are engaged.
    # TODO(synk): cast matmul operands to bf16 (f32 accumulation) on v6e/v7x for
    # ~3x MXU throughput once the error budget vs. the f32 reference allows it.
    return pl.pallas_call(
        kernel,
        out_shape=jax.ShapeDtypeStruct((B, out_dim), jnp.float32),
        in_specs=[_vmem_spec()] * 11,
        out_specs=_vmem_spec(),
        scratch_shapes=scratch,
        compiler_params=pltpu.CompilerParams(vmem_limit_bytes=64 * 1024 * 1024),
    )(xcol2, w1p, b1p, w2col, p["b2"].reshape(1, C2),
      w3col, p["b3"].reshape(1, C2),
      p["lw1"], p["lb1"].reshape(1, -1), p["lw2"], p["lb2"].reshape(1, -1))


# ---------------- pure-JAX reference (independent of the kernel) ----------------

def reference_forward(x_nchw, p):
    hp = jax.lax.Precision.HIGHEST

    def conv(x, w, b):
        out = jax.lax.conv_general_dilated(
            x, w, window_strides=(1, 1), padding="SAME",
            dimension_numbers=("NCHW", "HWIO", "NCHW"), precision=hp)
        return out + b.reshape(1, -1, 1, 1)

    def lrelu(x):
        return jnp.where(x >= 0, x, NEG_SLOPE * x)

    def pool(x):
        B, C, H, W = x.shape
        return x.reshape(B, C, H // 2, 2, W // 2, 2).mean(axis=(3, 5))

    y = pool(lrelu(conv(x_nchw, p["w1"], p["b1"])))
    y = pool(lrelu(conv(y, p["w2"], p["b2"])))
    y = lrelu(conv(y, p["w3"], p["b3"]))
    y = y.mean(axis=(2, 3))
    y = jnp.dot(y, p["lw1"], precision=hp) + p["lb1"]
    y = jnp.dot(y, p["lw2"], precision=hp) + p["lb2"]
    return y


# ---------------- setup / run ----------------

def init_params(key, in_channels=3, out_channels=3, channels=64):
    ks = jax.random.split(key, 10)
    n = lambda k, s, sc: (jax.random.normal(k, s, dtype=jnp.float32) * sc)
    return {
        "w1": n(ks[0], (5, 5, in_channels, 32), 0.05),
        "b1": n(ks[1], (32,), 0.05),
        "w2": n(ks[2], (3, 3, 32, channels), 0.05),
        "b2": n(ks[3], (channels,), 0.05),
        "w3": n(ks[4], (3, 3, channels, channels), 0.05),
        "b3": n(ks[5], (channels,), 0.05),
        "lw1": n(ks[6], (channels, 256), 0.05),
        "lb1": n(ks[7], (256,), 0.05),
        "lw2": n(ks[8], (256, out_channels), 0.05),
        "lb2": n(ks[9], (256 * 0 + out_channels,), 0.05),
    }


if __name__ == "__main__":
    key = jax.random.PRNGKey(0)
    kx, kp = jax.random.split(key)

    B, Cin, S = 2, 3, 32                  # small input_size analogue (default is 128)
    x = jax.random.normal(kx, (B, Cin, S, S), dtype=jnp.float32)   # NCHW, like PyTorch
    params = init_params(kp, in_channels=Cin, out_channels=3, channels=64)

    fwd = jax.jit(tiny_encoder_forward)
    out = jax.block_until_ready(fwd(x, params))
    ref = jax.block_until_ready(reference_forward(x, params))

    assert out.shape == (B, 3), out.shape
    assert jnp.allclose(out, ref, rtol=1e-3, atol=1e-3), (out, ref)
    print("KERNEL_OK")
</pallas_src>

<mosaic_0001>
module attributes {stable_mosaic.version = 11 : i64} {
  func.func @kernel(%arg0: memref<1024x150xf32, #tpu.memory_space<vmem>>, %arg1: memref<150x64xf32, #tpu.memory_space<vmem>>, %arg2: memref<1x64xf32, #tpu.memory_space<vmem>>, %arg3: memref<288x64xf32, #tpu.memory_space<vmem>>, %arg4: memref<1x64xf32, #tpu.memory_space<vmem>>, %arg5: memref<576x64xf32, #tpu.memory_space<vmem>>, %arg6: memref<1x64xf32, #tpu.memory_space<vmem>>, %arg7: memref<64x256xf32, #tpu.memory_space<vmem>>, %arg8: memref<1x256xf32, #tpu.memory_space<vmem>>, %arg9: memref<256x3xf32, #tpu.memory_space<vmem>>, %arg10: memref<1x3xf32, #tpu.memory_space<vmem>>, %arg11: memref<2x3xf32, #tpu.memory_space<vmem>>, %arg12: memref<2x18x25x32xf32, #tpu.memory_space<vmem>>, %arg13: memref<2x10x17x64xf32, #tpu.memory_space<vmem>>, %arg14: memref<512x64xf32, #tpu.memory_space<vmem>>) attributes {dimension_semantics = [], scalar_prefetch = 0 : i64, scratch_operands = 3 : i64, tpu.core_type = #tpu.core_type<tc>} {
    %c0 = arith.constant 0 : index
    %c0_0 = arith.constant 0 : index
    %0 = vector.load %arg0[%c0, %c0_0] : memref<1024x150xf32, #tpu.memory_space<vmem>>, vector<1024x150xf32>
    %c0_1 = arith.constant 0 : index
    %c0_2 = arith.constant 0 : index
    %1 = vector.load %arg1[%c0_1, %c0_2] : memref<150x64xf32, #tpu.memory_space<vmem>>, vector<150x64xf32>
    %cst = arith.constant dense<0.000000e+00> : vector<1024x64xf32>
    %2 = tpu.matmul %0, %1, %cst {dimension_numbers = #tpu.dot_dimension_numbers<[1], [0], [0], [1], [0, 0, 1, 1], [], []>} : vector<1024x150xf32>, vector<150x64xf32>, vector<1024x64xf32> -> vector<1024x64xf32>
    %c0_3 = arith.constant 0 : index
    %c0_4 = arith.constant 0 : index
    %3 = vector.load %arg2[%c0_3, %c0_4] : memref<1x64xf32, #tpu.memory_space<vmem>>, vector<1x64xf32>
    %4 = vector.broadcast %3 : vector<1x64xf32> to vector<1024x64xf32>
    %5 = arith.addf %2, %4 : vector<1024x64xf32>
    %cst_5 = arith.constant 0.000000e+00 : f32
    %6 = vector.broadcast %cst_5 : f32 to vector<1024x64xf32>
    %7 = arith.cmpf oge, %5, %6 : vector<1024x64xf32>
    %cst_6 = arith.constant 2.000000e-01 : f32
    %8 = vector.broadcast %cst_6 : f32 to vector<1024x64xf32>
    %9 = arith.mulf %8, %5 : vector<1024x64xf32>
    %10 = arith.select %7, %5, %9 : vector<1024x64xi1>, vector<1024x64xf32>
    %11 = vector.extract_strided_slice %10 {offsets = [0, 0], sizes = [1024, 32], strides = [1, 1]} : vector<1024x64xf32> to vector<1024x32xf32>
    %12 = vector.extract_strided_slice %10 {offsets = [0, 32], sizes = [1024, 32], strides = [1, 1]} : vector<1024x64xf32> to vector<1024x32xf32>
    %13 = arith.addf %11, %12 : vector<1024x32xf32>
    %14 = vector.shape_cast %13 : vector<1024x32xf32> to vector<32x32x32xf32>
    %15 = vector.extract_strided_slice %14 {offsets = [0, 0, 0], sizes = [32, 16, 32], strides = [1, 1, 1]} : vector<32x32x32xf32> to vector<32x16x32xf32>
    %16 = vector.extract_strided_slice %14 {offsets = [0, 16, 0], sizes = [32, 16, 32], strides = [1, 1, 1]} : vector<32x32x32xf32> to vector<32x16x32xf32>
    %17 = arith.addf %15, %16 : vector<32x16x32xf32>
    %cst_7 = arith.constant 2.500000e-01 : f32
    %18 = vector.broadcast %cst_7 : f32 to vector<32x16x32xf32>
    %19 = arith.mulf %17, %18 : vector<32x16x32xf32>
    %cst_8 = arith.constant 0.000000e+00 : f32
    %20 = vector.broadcast %cst_8 : f32 to vector<2x1x25x32xf32>
    %c0_9 = arith.constant 0 : index
    %c0_10 = arith.constant 0 : index
    %c0_11 = arith.constant 0 : index
    %c0_12 = arith.constant 0 : index
    %21 = vector.load %arg12[%c0_9, %c0_10, %c0_11, %c0_12] : memref<2x18x25x32xf32, #tpu.memory_space<vmem>>, vector<2x1x25x32xf32>
    tpu.vector_store %arg12[%c0_9, %c0_10, %c0_11, %c0_12], %20 {strides = array<i32>} : memref<2x18x25x32xf32, #tpu.memory_space<vmem>>, vector<2x1x25x32xf32>,
    %cst_13 = arith.constant 0.000000e+00 : f32
    %22 = vector.broadcast %cst_13 : f32 to vector<2x1x25x32xf32>
    %c0_14 = arith.constant 0 : index
    %c17 = arith.constant 17 : index
    %c0_15 = arith.constant 0 : index
    %c0_16 = arith.constant 0 : index
    %23 = vector.load %arg12[%c0_14, %c17, %c0_15, %c0_16] : memref<2x18x25x32xf32, #tpu.memory_space<vmem>>, vector<2x1x25x32xf32>
    tpu.vector_store %arg12[%c0_14, %c17, %c0_15, %c0_16], %22 {strides = array<i32>} : memref<2x18x25x32xf32, #tpu.memory_space<vmem>>, vector<2x1x25x32xf32>,
    %cst_17 = arith.constant 0.000000e+00 : f32
    %24 = vector.broadcast %cst_17 : f32 to vector<2x18x1x32xf32>
    %c0_18 = arith.constant 0 : index
    %c0_19 = arith.constant 0 : index
    %c7 = arith.constant 7 : index
    %c0_20 = arith.constant 0 : index
    %25 = vector.load %arg12[%c0_18, %c0_19, %c7, %c0_20] : memref<2x18x25x32xf32, #tpu.memory_space<vmem>>, vector<2x18x1x32xf32>
    tpu.vector_store %arg12[%c0_18, %c0_19, %c7, %c0_20], %24 {strides = array<i32>} : memref<2x18x25x32xf32, #tpu.memory_space<vmem>>, vector<2x18x1x32xf32>,
    %cst_21 = arith.constant 0.000000e+00 : f32
    %26 = vector.broadcast %cst_21 : f32 to vector<2x18x1x32xf32>
    %c0_22 = arith.constant 0 : index
    %c0_23 = arith.constant 0 : index
    %c24 = arith.constant 24 : index
    %c0_24 = arith.constant 0 : index
    %27 = vector.load %arg12[%c0_22, %c0_23, %c24, %c0_24] : memref<2x18x25x32xf32, #tpu.memory_space<vmem>>, vector<2x18x1x32xf32>
    tpu.vector_store %arg12[%c0_22, %c0_23, %c24, %c0_24], %26 {strides = array<i32>} : memref<2x18x25x32xf32, #tpu.memory_space<vmem>>, vector<2x18x1x32xf32>,
    %28 = vector.shape_cast %19 : vector<32x16x32xf32> to vector<2x16x16x32xf32>
    %c0_25 = arith.constant 0 : index
    %c1 = arith.constant 1 : index
    %c8 = arith.constant 8 : index
    %c0_26 = arith.constant 0 : index
    %29 = vector.load %arg12[%c0_25, %c1, %c8, %c0_26] : memref<2x18x25x32xf32, #tpu.memory_space<vmem>>, vector<2x16x16x32xf32>
    tpu.vector_store %arg12[%c0_25, %c1, %c8, %c0_26], %28 {strides = array<i32>} : memref<2x18x25x32xf32, #tpu.memory_space<vmem>>, vector<2x16x16x32xf32>,
    %c0_27 = arith.constant 0 : index
    %c0_28 = arith.constant 0 : index
    %c7_29 = arith.constant 7 : index
    %c0_30 = arith.constant 0 : index
    %30 = vector.load %arg12[%c0_27, %c0_28, %c7_29, %c0_30] : memref<2x18x25x32xf32, #tpu.memory_space<vmem>>, vector<2x16x16x32xf32>
    %31 = vector.shape_cast %30 : vector<2x16x16x32xf32> to vector<512x32xf32>
    %c0_31 = arith.constant 0 : index
    %c0_32 = arith.constant 0 : index
    %c8_33 = arith.constant 8 : index
    %c0_34 = arith.constant 0 : index
    %32 = vector.load %arg12[%c0_31, %c0_32, %c8_33, %c0_34] : memref<2x18x25x32xf32, #tpu.memory_space<vmem>>, vector<2x16x16x32xf32>
    %33 = vector.shape_cast %32 : vector<2x16x16x32xf32> to vector<512x32xf32>
    %c0_35 = arith.constant 0 : index
    %c0_36 = arith.constant 0 : index
    %c9 = arith.constant 9 : index
    %c0_37 = arith.constant 0 : index
    %34 = vector.load %arg12[%c0_35, %c0_36, %c9, %c0_37] : memref<2x18x25x32xf32, #tpu.memory_space<vmem>>, vector<2x16x16x32xf32>
    %35 = vector.shape_cast %34 : vector<2x16x16x32xf32> to vector<512x32xf32>
    %c0_38 = arith.constant 0 : index
    %c1_39 = arith.constant 1 : index
    %c7_40 = arith.constant 7 : index
    %c0_41 = arith.constant 0 : index
    %36 = vector.load %arg12[%c0_38, %c1_39, %c7_40, %c0_41] : memref<2x18x25x32xf32, #tpu.memory_space<vmem>>, vector<2x16x16x32xf32>
    %37 = vector.shape_cast %36 : vector<2x16x16x32xf32> to vector<512x32xf32>
    %c0_42 = arith.constant 0 : index
    %c1_43 = arith.constant 1 : index
    %c8_44 = arith.constant 8 : index
    %c0_45 = arith.constant 0 : index
    %38 = vector.load %arg12[%c0_42, %c1_43, %c8_44, %c0_45] : memref<2x18x25x32xf32, #tpu.memory_space<vmem>>, vector<2x16x16x32xf32>
    %39 = vector.shape_cast %38 : vector<2x16x16x32xf32> to vector<512x32xf32>
    %c0_46 = arith.constant 0 : index
    %c1_47 = arith.constant 1 : index
    %c9_48 = arith.constant 9 : index
    %c0_49 = arith.constant 0 : index
    %40 = vector.load %arg12[%c0_46, %c1_47, %c9_48, %c0_49] : memref<2x18x25x32xf32, #tpu.memory_space<vmem>>, vector<2x16x16x32xf32>
    %41 = vector.shape_cast %40 : vector<2x16x16x32xf32> to vector<512x32xf32>
    %c0_50 = arith.constant 0 : index
    %c2 = arith.constant 2 : index
    %c7_51 = arith.constant 7 : index
    %c0_52 = arith.constant 0 : index
    %42 = vector.load %arg12[%c0_50, %c2, %c7_51, %c0_52] : memref<2x18x25x32xf32, #tpu.memory_space<vmem>>, vector<2x16x16x32xf32>
    %43 = vector.shape_cast %42 : vector<2x16x16x32xf32> to vector<512x32xf32>
    %c0_53 = arith.constant 0 : index
    %c2_54 = arith.constant 2 : index
    %c8_55 = arith.constant 8 : index
    %c0_56 = arith.constant 0 : index
    %44 = vector.load %arg12[%c0_53, %c2_54, %c8_55, %c0_56] : memref<2x18x25x32xf32, #tpu.memory_space<vmem>>, vector<2x16x16x32xf32>
    %45 = vector.shape_cast %44 : vector<2x16x16x32xf32> to vector<512x32xf32>
    %c0_57 = arith.constant 0 : index
    %c2_58 = arith.constant 2 : index
    %c9_59 = arith.constant 9 : index
    %c0_60 = arith.constant 0 : index
    %46 = vector.load %arg12[%c0_57, %c2_58, %c9_59, %c0_60] : memref<2x18x25x32xf32, #tpu.memory_space<vmem>>, vector<2x16x16x32xf32>
    %47 = vector.shape_cast %46 : vector<2x16x16x32xf32> to vector<512x32xf32>
    %48 = tpu.concatenate %31, %33, %35, %37, %39, %41, %43, %45, %47 in 1 : vector<512x32xf32>, vector<512x32xf32>, vector<512x32xf32>, vector<512x32xf32>, vector<512x32xf32>, vector<512x32xf32>, vector<512x32xf32>, vector<512x32xf32>, vector<512x32xf32> -> vector<512x288xf32>
    %c0_61 = arith.constant 0 : index
    %c0_62 = arith.constant 0 : index
    %49 = vector.load %arg3[%c0_61, %c0_62] : memref<288x64xf32, #tpu.memory_space<vmem>>, vector<288x64xf32>
    %cst_63 = arith.constant dense<0.000000e+00> : vector<512x64xf32>
    %50 = tpu.matmul %48, %49, %cst_63 {dimension_numbers = #tpu.dot_dimension_numbers<[1], [0], [0], [1], [0, 0, 1, 1], [], []>} : vector<512x288xf32>, vector<288x64xf32>, vector<512x64xf32> -> vector<512x64xf32>
    %c0_64 = arith.constant 0 : index
    %c0_65 = arith.constant 0 : index
    %51 = vector.load %arg4[%c0_64, %c0_65] : memref<1x64xf32, #tpu.memory_space<vmem>>, vector<1x64xf32>
    %52 = vector.broadcast %51 : vector<1x64xf32> to vector<512x64xf32>
    %53 = arith.addf %50, %52 : vector<512x64xf32>
    %cst_66 = arith.constant 0.000000e+00 : f32
    %54 = vector.broadcast %cst_66 : f32 to vector<512x64xf32>
    %55 = arith.cmpf oge, %53, %54 : vector<512x64xf32>
    %cst_67 = arith.constant 2.000000e-01 : f32
    %56 = vector.broadcast %cst_67 : f32 to vector<512x64xf32>
    %57 = arith.mulf %56, %53 : vector<512x64xf32>
    %58 = arith.select %55, %53, %57 : vector<512x64xi1>, vector<512x64xf32>
    %c0_68 = arith.constant 0 : index
    %c0_69 = arith.constant 0 : index
    %59 = vector.load %arg14[%c0_68, %c0_69] : memref<512x64xf32, #tpu.memory_space<vmem>>, vector<512x64xf32>
    tpu.vector_store %arg14[%c0_68, %c0_69], %58 {strides = array<i32>} : memref<512x64xf32, #tpu.memory_space<vmem>>, vector<512x64xf32>,
    %c0_70 = arith.constant 0 : index
    %c0_71 = arith.constant 0 : index
    %60 = tpu.strided_load %arg14[%c0_70, %c0_71] {strides = array<i32: 2, 1>} : memref<512x64xf32, #tpu.memory_space<vmem>>, vector<256x64xf32>
    %c1_72 = arith.constant 1 : index
    %c0_73 = arith.constant 0 : index
    %61 = tpu.strided_load %arg14[%c1_72, %c0_73] {strides = array<i32: 2, 1>} : memref<512x64xf32, #tpu.memory_space<vmem>>, vector<256x64xf32>
    %62 = arith.addf %60, %61 : vector<256x64xf32>
    %63 = vector.shape_cast %62 : vector<256x64xf32> to vector<16x16x64xf32>
    %64 = vector.extract_strided_slice %63 {offsets = [0, 0, 0], sizes = [16, 8, 64], strides = [1, 1, 1]} : vector<16x16x64xf32> to vector<16x8x64xf32>
    %65 = vector.extract_strided_slice %63 {offsets = [0, 8, 0], sizes = [16, 8, 64], strides = [1, 1, 1]} : vector<16x16x64xf32> to vector<16x8x64xf32>
    %66 = arith.addf %64, %65 : vector<16x8x64xf32>
    %cst_74 = arith.constant 2.500000e-01 : f32
    %67 = vector.broadcast %cst_74 : f32 to vector<16x8x64xf32>
    %68 = arith.mulf %66, %67 : vector<16x8x64xf32>
    %cst_75 = arith.constant 0.000000e+00 : f32
    %69 = vector.broadcast %cst_75 : f32 to vector<2x1x17x64xf32>
    %c0_76 = arith.constant 0 : index
    %c0_77 = arith.constant 0 : index
    %c0_78 = arith.constant 0 : index
    %c0_79 = arith.constant 0 : index
    %70 = vector.load %arg13[%c0_76, %c0_77, %c0_78, %c0_79] : memref<2x10x17x64xf32, #tpu.memory_space<vmem>>, vector<2x1x17x64xf32>
    tpu.vector_store %arg13[%c0_76, %c0_77, %c0_78, %c0_79], %69 {strides = array<i32>} : memref<2x10x17x64xf32, #tpu.memory_space<vmem>>, vector<2x1x17x64xf32>,
    %cst_80 = arith.constant 0.000000e+00 : f32
    %71 = vector.broadcast %cst_80 : f32 to vector<2x1x17x64xf32>
    %c0_81 = arith.constant 0 : index
    %c9_82 = arith.constant 9 : index
    %c0_83 = arith.constant 0 : index
    %c0_84 = arith.constant 0 : index
    %72 = vector.load %arg13[%c0_81, %c9_82, %c0_83, %c0_84] : memref<2x10x17x64xf32, #tpu.memory_space<vmem>>, vector<2x1x17x64xf32>
    tpu.vector_store %arg13[%c0_81, %c9_82, %c0_83, %c0_84], %71 {strides = array<i32>} : memref<2x10x17x64xf32, #tpu.memory_space<vmem>>, vector<2x1x17x64xf32>,
    %cst_85 = arith.constant 0.000000e+00 : f32
    %73 = vector.broadcast %cst_85 : f32 to vector<2x10x1x64xf32>
    %c0_86 = arith.constant 0 : index
    %c0_87 = arith.constant 0 : index
    %c7_88 = arith.constant 7 : index
    %c0_89 = arith.constant 0 : index
    %74 = vector.load %arg13[%c0_86, %c0_87, %c7_88, %c0_89] : memref<2x10x17x64xf32, #tpu.memory_space<vmem>>, vector<2x10x1x64xf32>
    tpu.vector_store %arg13[%c0_86, %c0_87, %c7_88, %c0_89], %73 {strides = array<i32>} : memref<2x10x17x64xf32, #tpu.memory_space<vmem>>, vector<2x10x1x64xf32>,
    %cst_90 = arith.constant 0.000000e+00 : f32
    %75 = vector.broadcast %cst_90 : f32 to vector<2x10x1x64xf32>
    %c0_91 = arith.constant 0 : index
    %c0_92 = arith.constant 0 : index
    %c16 = arith.constant 16 : index
    %c0_93 = arith.constant 0 : index
    %76 = vector.load %arg13[%c0_91, %c0_92, %c16, %c0_93] : memref<2x10x17x64xf32, #tpu.memory_space<vmem>>, vector<2x10x1x64xf32>
    tpu.vector_store %arg13[%c0_91, %c0_92, %c16, %c0_93], %75 {strides = array<i32>} : memref<2x10x17x64xf32, #tpu.memory_space<vmem>>, vector<2x10x1x64xf32>,
    %77 = vector.shape_cast %68 : vector<16x8x64xf32> to vector<2x8x8x64xf32>
    %c0_94 = arith.constant 0 : index
    %c1_95 = arith.constant 1 : index
    %c8_96 = arith.constant 8 : index
    %c0_97 = arith.constant 0 : index
    %78 = vector.load %arg13[%c0_94, %c1_95, %c8_96, %c0_97] : memref<2x10x17x64xf32, #tpu.memory_space<vmem>>, vector<2x8x8x64xf32>
    tpu.vector_store %arg13[%c0_94, %c1_95, %c8_96, %c0_97], %77 {strides = array<i32>} : memref<2x10x17x64xf32, #tpu.memory_space<vmem>>, vector<2x8x8x64xf32>,
    %c0_98 = arith.constant 0 : index
    %c0_99 = arith.constant 0 : index
    %c7_100 = arith.constant 7 : index
    %c0_101 = arith.constant 0 : index
    %79 = vector.load %arg13[%c0_98, %c0_99, %c7_100, %c0_101] : memref<2x10x17x64xf32, #tpu.memory_space<vmem>>, vector<2x8x8x64xf32>
    %80 = vector.shape_cast %79 : vector<2x8x8x64xf32> to vector<128x64xf32>
    %c0_102 = arith.constant 0 : index
    %c0_103 = arith.constant 0 : index
    %c8_104 = arith.constant 8 : index
    %c0_105 = arith.constant 0 : index
    %81 = vector.load %arg13[%c0_102, %c0_103, %c8_104, %c0_105] : memref<2x10x17x64xf32, #tpu.memory_space<vmem>>, vector<2x8x8x64xf32>
    %82 = vector.shape_cast %81 : vector<2x8x8x64xf32> to vector<128x64xf32>
    %c0_106 = arith.constant 0 : index
    %c0_107 = arith.constant 0 : index
    %c9_108 = arith.constant 9 : index
    %c0_109 = arith.constant 0 : index
    %83 = vector.load %arg13[%c0_106, %c0_107, %c9_108, %c0_109] : memref<2x10x17x64xf32, #tpu.memory_space<vmem>>, vector<2x8x8x64xf32>
    %84 = vector.shape_cast %83 : vector<2x8x8x64xf32> to vector<128x64xf32>
    %c0_110 = arith.constant 0 : index
    %c1_111 = arith.constant 1 : index
    %c7_112 = arith.constant 7 : index
    %c0_113 = arith.constant 0 : index
    %85 = vector.load %arg13[%c0_110, %c1_111, %c7_112, %c0_113] : memref<2x10x17x64xf32, #tpu.memory_space<vmem>>, vector<2x8x8x64xf32>
    %86 = vector.shape_cast %85 : vector<2x8x8x64xf32> to vector<128x64xf32>
    %c0_114 = arith.constant 0 : index
    %c1_115 = arith.constant 1 : index
    %c8_116 = arith.constant 8 : index
    %c0_117 = arith.constant 0 : index
    %87 = vector.load %arg13[%c0_114, %c1_115, %c8_116, %c0_117] : memref<2x10x17x64xf32, #tpu.memory_space<vmem>>, vector<2x8x8x64xf32>
    %88 = vector.shape_cast %87 : vector<2x8x8x64xf32> to vector<128x64xf32>
    %c0_118 = arith.constant 0 : index
    %c1_119 = arith.constant 1 : index
    %c9_120 = arith.constant 9 : index
    %c0_121 = arith.constant 0 : index
    %89 = vector.load %arg13[%c0_118, %c1_119, %c9_120, %c0_121] : memref<2x10x17x64xf32, #tpu.memory_space<vmem>>, vector<2x8x8x64xf32>
    %90 = vector.shape_cast %89 : vector<2x8x8x64xf32> to vector<128x64xf32>
    %c0_122 = arith.constant 0 : index
    %c2_123 = arith.constant 2 : index
    %c7_124 = arith.constant 7 : index
    %c0_125 = arith.constant 0 : index
    %91 = vector.load %arg13[%c0_122, %c2_123, %c7_124, %c0_125] : memref<2x10x17x64xf32, #tpu.memory_space<vmem>>, vector<2x8x8x64xf32>
    %92 = vector.shape_cast %91 : vector<2x8x8x64xf32> to vector<128x64xf32>
    %c0_126 = arith.constant 0 : index
    %c2_127 = arith.constant 2 : index
    %c8_128 = arith.constant 8 : index
    %c0_129 = arith.constant 0 : index
    %93 = vector.load %arg13[%c0_126, %c2_127, %c8_128, %c0_129] : memref<2x10x17x64xf32, #tpu.memory_space<vmem>>, vector<2x8x8x64xf32>
    %94 = vector.shape_cast %93 : vector<2x8x8x64xf32> to vector<128x64xf32>
    %c0_130 = arith.constant 0 : index
    %c2_131 = arith.constant 2 : index
    %c9_132 = arith.constant 9 : index
    %c0_133 = arith.constant 0 : index
    %95 = vector.load %arg13[%c0_130, %c2_131, %c9_132, %c0_133] : memref<2x10x17x64xf32, #tpu.memory_space<vmem>>, vector<2x8x8x64xf32>
    %96 = vector.shape_cast %95 : vector<2x8x8x64xf32> to vector<128x64xf32>
    %97 = tpu.concatenate %80, %82, %84, %86, %88, %90, %92, %94, %96 in 1 : vector<128x64xf32>, vector<128x64xf32>, vector<128x64xf32>, vector<128x64xf32>, vector<128x64xf32>, vector<128x64xf32>, vector<128x64xf32>, vector<128x64xf32>, vector<128x64xf32> -> vector<128x576xf32>
    %c0_134 = arith.constant 0 : index
    %c0_135 = arith.constant 0 : index
    %98 = vector.load %arg5[%c0_134, %c0_135] : memref<576x64xf32, #tpu.memory_space<vmem>>, vector<576x64xf32>
    %cst_136 = arith.constant dense<0.000000e+00> : vector<128x64xf32>
    %99 = tpu.matmul %97, %98, %cst_136 {dimension_numbers = #tpu.dot_dimension_numbers<[1], [0], [0], [1], [0, 0, 1, 1], [], []>} : vector<128x576xf32>, vector<576x64xf32>, vector<128x64xf32> -> vector<128x64xf32>
    %c0_137 = arith.constant 0 : index
    %c0_138 = arith.constant 0 : index
    %100 = vector.load %arg6[%c0_137, %c0_138] : memref<1x64xf32, #tpu.memory_space<vmem>>, vector<1x64xf32>
    %101 = vector.broadcast %100 : vector<1x64xf32> to vector<128x64xf32>
    %102 = arith.addf %99, %101 : vector<128x64xf32>
    %cst_139 = arith.constant 0.000000e+00 : f32
    %103 = vector.broadcast %cst_139 : f32 to vector<128x64xf32>
    %104 = arith.cmpf oge, %102, %103 : vector<128x64xf32>
    %cst_140 = arith.constant 2.000000e-01 : f32
    %105 = vector.broadcast %cst_140 : f32 to vector<128x64xf32>
    %106 = arith.mulf %105, %102 : vector<128x64xf32>
    %107 = arith.select %104, %102, %106 : vector<128x64xi1>, vector<128x64xf32>
    %108 = vector.shape_cast %107 : vector<128x64xf32> to vector<2x64x64xf32>
    %cst_141 = arith.constant dense<0.000000e+00> : vector<2x64xf32>
    %109 = vector.multi_reduction <add>, %108, %cst_141 [1] : vector<2x64x64xf32> to vector<2x64xf32>
    %cst_142 = arith.constant 1.562500e-02 : f32
    %110 = vector.broadcast %cst_142 : f32 to vector<2x64xf32>
    %111 = arith.mulf %109, %110 : vector<2x64xf32>
    %c0_143 = arith.constant 0 : index
    %c0_144 = arith.constant 0 : index
    %112 = vector.load %arg7[%c0_143, %c0_144] : memref<64x256xf32, #tpu.memory_space<vmem>>, vector<64x256xf32>
    %cst_145 = arith.constant dense<0.000000e+00> : vector<2x256xf32>
    %113 = tpu.matmul %111, %112, %cst_145 {dimension_numbers = #tpu.dot_dimension_numbers<[1], [0], [0], [1], [0, 0, 1, 1], [], []>} : vector<2x64xf32>, vector<64x256xf32>, vector<2x256xf32> -> vector<2x256xf32>
    %c0_146 = arith.constant 0 : index
    %c0_147 = arith.constant 0 : index
    %114 = vector.load %arg8[%c0_146, %c0_147] : memref<1x256xf32, #tpu.memory_space<vmem>>, vector<1x256xf32>
    %115 = vector.broadcast %114 : vector<1x256xf32> to vector<2x256xf32>
    %116 = arith.addf %113, %115 : vector<2x256xf32>
    %c0_148 = arith.constant 0 : index
    %c0_149 = arith.constant 0 : index
    %117 = vector.load %arg9[%c0_148, %c0_149] : memref<256x3xf32, #tpu.memory_space<vmem>>, vector<256x3xf32>
    %cst_150 = arith.constant dense<0.000000e+00> : vector<2x3xf32>
    %118 = tpu.matmul %116, %117, %cst_150 {dimension_numbers = #tpu.dot_dimension_numbers<[1], [0], [0], [1], [0, 0, 1, 1], [], []>} : vector<2x256xf32>, vector<256x3xf32>, vector<2x3xf32> -> vector<2x3xf32>
    %c0_151 = arith.constant 0 : index
    %c0_152 = arith.constant 0 : index
    %119 = vector.load %arg10[%c0_151, %c0_152] : memref<1x3xf32, #tpu.memory_space<vmem>>, vector<1x3xf32>
    %120 = vector.broadcast %119 : vector<1x3xf32> to vector<2x3xf32>
    %121 = arith.addf %118, %120 : vector<2x3xf32>
    %c0_153 = arith.constant 0 : index
    %c0_154 = arith.constant 0 : index
    %122 = vector.load %arg11[%c0_153, %c0_154] : memref<2x3xf32, #tpu.memory_space<vmem>>, vector<2x3xf32>
    tpu.vector_store %arg11[%c0_153, %c0_154], %121 {strides = array<i32>} : memref<2x3xf32, #tpu.memory_space<vmem>>, vector<2x3xf32>,
    return
  }
}

</mosaic_0001>

<bundles_post_ra>
// kernel: tiny_encoder_forward.1
= control target key start
LH: loop header
LB: loop body
LE: loop exit
PB: predicated region body
PF: predicated region fallthrough
CT: control target
= control target key end

     0   :  { %v15168_v1 = vmov 0.0   ;;  %vm321_vm0 = vcmask 179200   ;;  %s15156_s0 = inlined_call_operand.vmem [shape: f32[1024,150], index: 0, kind: input, shape index: {}]   ;;  %s15157_s1 = inlined_call_operand.vmem [shape: f32[150,64], index: 1, kind: input, shape index: {}]   ;;  %s15158_s2 = inlined_call_operand.vmem [shape: f32[1,64], index: 2, kind: input, shape index: {}]   ;;  %s15159_s3 = inlined_call_operand.vmem [shape: f32[288,64], index: 3, kind: input, shape index: {}]   ;;  %s15160_s4 = inlined_call_operand.vmem [shape: f32[1,64], index: 4, kind: input, shape index: {}]   ;;  %s15161_s5 = inlined_call_operand.vmem [shape: f32[576,64], index: 5, kind: input, shape index: {}]   ;;  %s15162_s6 = inlined_call_operand.vmem [shape: f32[1,64], index: 6, kind: input, shape index: {}]   ;;  %s15163_s7 = inlined_call_operand.vmem [shape: f32[64,256], index: 7, kind: input, shape index: {}]   ;;  %s15164_s8 = inlined_call_operand.vmem [shape: f32[1,256], index: 8, kind: input, shape index: {}]   ;;  %s15165_s9 = inlined_call_operand.vmem [shape: f32[256,3], index: 9, kind: input, shape index: {}]   ;;  %s15166_s10 = inlined_call_operand.vmem [shape: f32[1,3], index: 10, kind: input, shape index: {}]   ;;  %s15167_s11 = inlined_call_operand.hbm [shape: f32[2,3], index: 11, kind: output, shape index: {}]  }
   0x1   :  { %v310_v0 = vld [vmem:[%s15157_s1 + $0x78] sm:$0xff]  ;;  %710 = vmatprep.subr.mxu0 %v15168_v1  ;;  %v309_v2 = vld [vmem:[%s15157_s1 + $0x70] sm:$0xff]  ;;  %5457 = vmatprep.subr.mxu1 %v15168_v1  ;;  %v308_v3 = vld [vmem:[%s15157_s1 + $0x68] sm:$0xff] }
   0x2   :  { %711 = vmatpush1.msra.mxu0 %v310_v0  ;;  %v307_v4 = vld [vmem:[%s15157_s1 + $0x60] sm:$0xff]  ;;  %v40_v5 = vld [vmem:[%s15156_s0 + $0x8] sm:$0xff]  ;;  %v306_v6 = vld [vmem:[%s15157_s1 + $0x58] sm:$0xff] }
   0x3   :  { %712 = vmatprep.subr.mxu0 %v15168_v1  ;;  %8096 = vmatprep.mubr.msk.f32.mxu0 %vm321_vm0, %v40_v5  ;;  %v305_v7 = vld [vmem:[%s15157_s1 + $0x50] sm:$0xff]  ;;  %v304_v8 = vld [vmem:[%s15157_s1 + $0x48] sm:$0xff]  ;;  %v303_v9 = vld [vmem:[%s15157_s1 + $0x40] sm:$0xff] }
   0x4   :  { %713 = vmatpush1.msra.mxu0 %v309_v2  ;;  %v302_v10 = vld [vmem:[%s15157_s1 + $0x38] sm:$0xff]  ;;  %v301_v11 = vld [vmem:[%s15157_s1 + $0x30] sm:$0xff]  ;;  %v300_v12 = vld [vmem:[%s15157_s1 + $0x28] sm:$0xff] }
   0x5   :  { %714 = vmatprep.subr.mxu0 %v15168_v1  ;;  %v299_v13 = vld [vmem:[%s15157_s1 + $0x20] sm:$0xff]  ;;  %v298_v14 = vld [vmem:[%s15157_s1 + $0x18] sm:$0xff]  ;;  %v297_v15 = vld [vmem:[%s15157_s1 + $0x10] sm:$0xff] }
   0x6   :  { %715 = vmatpush1.msra.mxu0 %v308_v3 }
   0x7   :  { %716 = vmatprep.subr.mxu0 %v15168_v1 }
   0x8   :  { %717 = vmatpush1.msra.mxu0 %v307_v4 }
   0x9   :  { %718 = vmatprep.subr.mxu0 %v15168_v1 }
   0xa   :  { %719 = vmatpush1.msra.mxu0 %v306_v6 }
   0xb   :  { %720 = vmatprep.subr.mxu0 %v15168_v1 }
   0xc   :  { %721 = vmatpush1.msra.mxu0 %v305_v7 }
   0xd   :  { %722 = vmatprep.subr.mxu0 %v15168_v1 }
   0xe   :  { %723 = vmatpush1.msra.mxu0 %v304_v8 }
   0xf   :  { %724 = vmatprep.subr.mxu0 %v15168_v1 }
  0x10   :  { %725 = vmatpush1.msra.mxu0 %v303_v9 }
  0x11   :  { %726 = vmatprep.subr.mxu0 %v15168_v1 }
  0x12   :  { %727 = vmatpush1.msra.mxu0 %v302_v10 }
  0x13   :  { %728 = vmatprep.subr.mxu0 %v15168_v1 }
  0x14   :  { %729 = vmatpush1.msra.mxu0 %v301_v11 }
  0x15   :  { %730 = vmatprep.subr.mxu0 %v15168_v1 }
  0x16   :  { %731 = vmatpush1.msra.mxu0 %v300_v12 }
  0x17   :  { %732 = vmatprep.subr.mxu0 %v15168_v1 }
  0x18   :  { %733 = vmatpush1.msra.mxu0 %v299_v13 }
  0x19   :  { %734 = vmatprep.subr.mxu0 %v15168_v1 }
  0x1a   :  { %735 = vmatpush1.msra.mxu0 %v298_v14 }
  0x1b   :  { %16 = vsyncpa [#allocation6], 0  ;;  %736 = vmatprep.subr.mxu0 %v15168_v1  ;;  %v296_v16 = vld [vmem:[%s15157_s1 + $0x8] sm:$0xff]  ;;  %v295_v17 = vld [vmem:[%s15157_s1] sm:$0xff]  ;;  %vm706_vm1 = vcmask 1045504   ;;  %vm2567_vm3 = vcmask 261120  }
  0x1c   :  { %737 = vmatpush1.msra.mxu0 %v297_v15  ;;  %v313_v18 = vld [vmem:[%s15157_s1 + $0x90] sm:$0x3f]  ;;  %v312_v19 = vld [vmem:[%s15157_s1 + $0x88] sm:$0xff]  ;;  %v311_v20 = vld [vmem:[%s15157_s1 + $0x80] sm:$0xff]  ;;  %2568 = vst.msk [vmem:[#allocation2] sm:$0xff] %vm2567_vm3, %v15168_v1  ;;  %s9896_s23 = smov 96  }
  0x1d   :  { %738 = vmatprep.subr.mxu0 %v15168_v1  ;;  %v39_v21 = vld [vmem:[%s15156_s0] sm:$0xff]  ;;  %v42_v22 = vld [vmem:[%s15156_s0 + $0x18] sm:$0xff]  ;;  %v41_v23 = vld [vmem:[%s15156_s0 + $0x10] sm:$0xff]  ;;  %2569 = vst.msk [vmem:[#allocation2 + $0x8] sm:$0xff] %vm2567_vm3, %v15168_v1  ;;  %vm2571_vm4 = vcmask 253952   ;;  %s9897_s16 = smov 32  }
  0x1e   :  { %739 = vmatpush1.msra.mxu0 %v296_v16  ;;  %v44_v24 = vld [vmem:[%s15156_s0 + $0x28] sm:$0xff]  ;;  %v43_v25 = vld [vmem:[%s15156_s0 + $0x20] sm:$0xff]  ;;  %v46_v26 = vld [vmem:[%s15156_s0 + $0x38] sm:$0xff]  ;;  %2570 = vst.msk [vmem:[#allocation2 + $0x10] sm:$0xff] %vm2567_vm3, %v15168_v1  ;;  %s9898_s19 = smov 64   ;;  %s9899_s22 = smov [#allocation5]  }
  0x1f   :  { %740 = vmatprep.subr.mxu0 %v15168_v1  ;;  %v45_v27 = vld [vmem:[%s15156_s0 + $0x30] sm:$0xff]  ;;  %v48_v28 = vld [vmem:[%s15156_s0 + $0x48] sm:$0xff]  ;;  %v47_v29 = vld [vmem:[%s15156_s0 + $0x40] sm:$0xff]  ;;  %2573 = vst.msk [vmem:[#allocation2 + $0x240] sm:$0xff] %vm2567_vm3, %v15168_v1 }
  0x20   :  { %741 = vmatpush1.msra.mxu0 %v295_v17  ;;  %v50_v30 = vld [vmem:[%s15156_s0 + $0x58] sm:$0xff]  ;;  %v49_v31 = vld [vmem:[%s15156_s0 + $0x50] sm:$0xff]  ;;  %v52_v32 = vld [vmem:[%s15156_s0 + $0x68] sm:$0xff]  ;;  %2574 = vst.msk [vmem:[#allocation2 + $0x248] sm:$0xff] %vm2567_vm3, %v15168_v1 }
  0x21   :  { %768 = vmatprep.subr.mxu0 %v15168_v1  ;;  %v51_v33 = vld [vmem:[%s15156_s0 + $0x60] sm:$0xff]  ;;  %v54_v34 = vld [vmem:[%s15156_s0 + $0x78] sm:$0xff]  ;;  %v53_v35 = vld [vmem:[%s15156_s0 + $0x70] sm:$0xff]  ;;  %2575 = vst.msk [vmem:[#allocation2 + $0x250] sm:$0xff] %vm2567_vm3, %v15168_v1 }
  0x22   :  { %8095 = vmatpush2.msk.msra.mxu0 %vm706_vm1, %v313_v18  ;;  %v56_v36 = vld [vmem:[%s15156_s0 + $0x88] sm:$0xff]  ;;  %v55_v37 = vld [vmem:[%s15156_s0 + $0x80] sm:$0xff]  ;;  %v58_v38 = vld [vmem:[%s15156_s0 + $0x98] sm:$0xff]  ;;  %2578 = vst.msk [vmem:[#allocation2 + $0x220] sm:$0xff] %vm2567_vm3, %v15168_v1 }
  0x23   :  { %770 = vmatprep.subr.mxu0 %v15168_v1  ;;  %v57_v39 = vld [vmem:[%s15156_s0 + $0x90] sm:$0xff]  ;;  %v60_v40 = vld [vmem:[%s15156_s0 + $0xa8] sm:$0xff]  ;;  %v59_v41 = vld [vmem:[%s15156_s0 + $0xa0] sm:$0xff]  ;;  %2579 = vst.msk [vmem:[#allocation2 + $0x228] sm:$0xff] %vm2567_vm3, %v15168_v1 }
  0x24   :  { %771 = vmatpush2.msra.mxu0 %v312_v19  ;;  %v62_v42 = vld [vmem:[%s15156_s0 + $0xb8] sm:$0xff]  ;;  %v61_v43 = vld [vmem:[%s15156_s0 + $0xb0] sm:$0xff]  ;;  %v64_v44 = vld [vmem:[%s15156_s0 + $0xc8] sm:$0xff]  ;;  %2580 = vst.msk [vmem:[#allocation2 + $0x230] sm:$0xff] %vm2567_vm3, %v15168_v1 }
  0x25   :  { %772 = vmatprep.subr.mxu0 %v15168_v1  ;;  %v63_v45 = vld [vmem:[%s15156_s0 + $0xc0] sm:$0xff]  ;;  %v66_v46 = vld [vmem:[%s15156_s0 + $0xd8] sm:$0xff]  ;;  %v65_v47 = vld [vmem:[%s15156_s0 + $0xd0] sm:$0xff]  ;;  %2582 = vst.msk [vmem:[#allocation2 + $0x460] sm:$0xff] %vm2567_vm3, %v15168_v1 }
  0x26   :  { %773 = vmatpush2.msra.mxu0 %v311_v20  ;;  %v68_v48 = vld [vmem:[%s15156_s0 + $0xe8] sm:$0xff]  ;;  %v67_v49 = vld [vmem:[%s15156_s0 + $0xe0] sm:$0xff]  ;;  %v70_v50 = vld [vmem:[%s15156_s0 + $0xf8] sm:$0xff]  ;;  %2583 = vst.msk [vmem:[#allocation2 + $0x468] sm:$0xff] %vm2567_vm3, %v15168_v1 }
  0x27   :  { %775 = vmatmul.mubr.f32.vlgmr.msra.gmra.mxu0 %v39_v21  ;;  %v69_v51 = vld [vmem:[%s15156_s0 + $0xf0] sm:$0xff]  ;;  %v72_v52 = vld [vmem:[%s15156_s0 + $0x108] sm:$0xff]  ;;  %v71_v53 = vld [vmem:[%s15156_s0 + $0x100] sm:$0xff]  ;;  %2584 = vst.msk [vmem:[#allocation2 + $0x470] sm:$0xff] %vm2567_vm3, %v15168_v1 }
  0x28   :  { %8097 = vmatprep.mubr.msk.f32.mxu0 %vm321_vm0, %v42_v22  ;;  %v74_v54 = vld [vmem:[%s15156_s0 + $0x118] sm:$0xff]  ;;  %v73_v55 = vld [vmem:[%s15156_s0 + $0x110] sm:$0xff]  ;;  %v76_v56 = vld [vmem:[%s15156_s0 + $0x128] sm:$0xff]  ;;  %2623 = vst.msk [vmem:[#allocation2 + $0x38] sm:$0x1] %vm2571_vm4, %v15168_v1 }
  0x29   :  { %v75_v57 = vld [vmem:[%s15156_s0 + $0x120] sm:$0xff]  ;;  %v78_v58 = vld [vmem:[%s15156_s0 + $0x138] sm:$0xff]  ;;  %v77_v59 = vld [vmem:[%s15156_s0 + $0x130] sm:$0xff]  ;;  %2572 = vst.msk [vmem:[#allocation2 + $0x18] sm:$0x1] %vm2571_vm4, %v15168_v1 }
  0x2a   :  { %v80_v60 = vld [vmem:[%s15156_s0 + $0x148] sm:$0xff]  ;;  %v79_v61 = vld [vmem:[%s15156_s0 + $0x140] sm:$0xff]  ;;  %v82_v62 = vld [vmem:[%s15156_s0 + $0x158] sm:$0xff]  ;;  %2576 = vst.msk [vmem:[#allocation2 + $0x258] sm:$0x1] %vm2571_vm4, %v15168_v1 }
  0x2b   :  { %780 = vmatmul.mubr.f32.gmra.mxu0 %v41_v23  ;;  %v81_v63 = vld [vmem:[%s15156_s0 + $0x150] sm:$0xff]  ;;  %v84_v0 = vld [vmem:[%s15156_s0 + $0x168] sm:$0xff]  ;;  %v83_v2 = vld [vmem:[%s15156_s0 + $0x160] sm:$0xff]  ;;  %2581 = vst.msk [vmem:[#allocation2 + $0x238] sm:$0x1] %vm2571_vm4, %v15168_v1 }
  0x2c   :  { %8098 = vmatprep.mubr.msk.f32.mxu0 %vm321_vm0, %v44_v24  ;;  %v86_v3 = vld [vmem:[%s15156_s0 + $0x178] sm:$0xff]  ;;  %v85_v4 = vld [vmem:[%s15156_s0 + $0x170] sm:$0xff]  ;;  %v88_v5 = vld [vmem:[%s15156_s0 + $0x188] sm:$0xff]  ;;  %2585 = vst.msk [vmem:[#allocation2 + $0x478] sm:$0x1] %vm2571_vm4, %v15168_v1 }
  0x2d   :  { %v87_v6 = vld [vmem:[%s15156_s0 + $0x180] sm:$0xff]  ;;  %v90_v7 = vld [vmem:[%s15156_s0 + $0x198] sm:$0xff]  ;;  %v89_v8 = vld [vmem:[%s15156_s0 + $0x190] sm:$0xff]  ;;  %2586 = vst.msk [vmem:[#allocation2 + $0x7] sm:$0x1] %vm2571_vm4, %v15168_v1 }
  0x2e   :  { %v92_v9 = vld [vmem:[%s15156_s0 + $0x1a8] sm:$0xff]  ;;  %v91_v10 = vld [vmem:[%s15156_s0 + $0x1a0] sm:$0xff]  ;;  %v94_v11 = vld [vmem:[%s15156_s0 + $0x1b8] sm:$0xff]  ;;  %2587 = vst.msk [vmem:[#allocation2 + $0x27] sm:$0x1] %vm2571_vm4, %v15168_v1 }
  0x2f   :  { %785 = vmatmul.mubr.f32.gmra.mxu0 %v43_v25  ;;  %v93_v12 = vld [vmem:[%s15156_s0 + $0x1b0] sm:$0xff]  ;;  %v96_v13 = vld [vmem:[%s15156_s0 + $0x1c8] sm:$0xff]  ;;  %v95_v14 = vld [vmem:[%s15156_s0 + $0x1c0] sm:$0xff]  ;;  %2588 = vst.msk [vmem:[#allocation2 + $0x47] sm:$0x1] %vm2571_vm4, %v15168_v1 }
  0x30   :  { %8099 = vmatprep.mubr.msk.f32.mxu0 %vm321_vm0, %v46_v26  ;;  %v98_v15 = vld [vmem:[%s15156_s0 + $0x1d8] sm:$0xff]  ;;  %v97_v16 = vld [vmem:[%s15156_s0 + $0x1d0] sm:$0xff]  ;;  %v100_v17 = vld [vmem:[%s15156_s0 + $0x1e8] sm:$0xff]  ;;  %2589 = vst.msk [vmem:[#allocation2 + $0x67] sm:$0x1] %vm2571_vm4, %v15168_v1 }
  0x31   :  { %v99_v18 = vld [vmem:[%s15156_s0 + $0x1e0] sm:$0xff]  ;;  %v102_v19 = vld [vmem:[%s15156_s0 + $0x1f8] sm:$0xff]  ;;  %v101_v20 = vld [vmem:[%s15156_s0 + $0x1f0] sm:$0xff]  ;;  %2590 = vst.msk [vmem:[#allocation2 + $0x87] sm:$0x1] %vm2571_vm4, %v15168_v1 }
  0x32   :  { %v104_v21 = vld [vmem:[%s15156_s0 + $0x208] sm:$0xff]  ;;  %v103_v22 = vld [vmem:[%s15156_s0 + $0x200] sm:$0xff]  ;;  %v106_v23 = vld [vmem:[%s15156_s0 + $0x218] sm:$0xff]  ;;  %2591 = vst.msk [vmem:[#allocation2 + $0xa7] sm:$0x1] %vm2571_vm4, %v15168_v1 }
  0x33   :  { %790 = vmatmul.mubr.f32.gmra.mxu0 %v45_v27  ;;  %v105_v24 = vld [vmem:[%s15156_s0 + $0x210] sm:$0xff]  ;;  %v108_v25 = vld [vmem:[%s15156_s0 + $0x228] sm:$0xff]  ;;  %v107_v26 = vld [vmem:[%s15156_s0 + $0x220] sm:$0xff]  ;;  %2592 = vst.msk [vmem:[#allocation2 + $0xc7] sm:$0x1] %vm2571_vm4, %v15168_v1 }
  0x34   :  { %8100 = vmatprep.mubr.msk.f32.mxu0 %vm321_vm0, %v48_v28  ;;  %v110_v27 = vld [vmem:[%s15156_s0 + $0x238] sm:$0xff]  ;;  %v109_v28 = vld [vmem:[%s15156_s0 + $0x230] sm:$0xff]  ;;  %2593 = vst.msk [vmem:[#allocation2 + $0xe7] sm:$0x1] %vm2571_vm4, %v15168_v1  ;;  %2594 = vst.msk [vmem:[#allocation2 + $0x107] sm:$0x1] %vm2571_vm4, %v15168_v1 }
  0x35   :  { %2595 = vst.msk [vmem:[#allocation2 + $0x127] sm:$0x1] %vm2571_vm4, %v15168_v1  ;;  %2596 = vst.msk [vmem:[#allocation2 + $0x147] sm:$0x1] %vm2571_vm4, %v15168_v1 }
  0x36   :  { %2597 = vst.msk [vmem:[#allocation2 + $0x167] sm:$0x1] %vm2571_vm4, %v15168_v1  ;;  %2598 = vst.msk [vmem:[#allocation2 + $0x187] sm:$0x1] %vm2571_vm4, %v15168_v1 }
  0x37   :  { %795 = vmatmul.mubr.f32.gmra.mxu0 %v47_v29  ;;  %v112_v29 = vld [vmem:[%s15156_s0 + $0x248] sm:$0xff]  ;;  %2599 = vst.msk [vmem:[#allocation2 + $0x1a7] sm:$0x1] %vm2571_vm4, %v15168_v1  ;;  %2600 = vst.msk [vmem:[#allocation2 + $0x1c7] sm:$0x1] %vm2571_vm4, %v15168_v1 }
  0x38   :  { %8101 = vmatprep.mubr.msk.f32.mxu0 %vm321_vm0, %v50_v30  ;;  %v111_v30 = vld [vmem:[%s15156_s0 + $0x240] sm:$0xff]  ;;  %2601 = vst.msk [vmem:[#allocation2 + $0x1e7] sm:$0x1] %vm2571_vm4, %v15168_v1  ;;  %2602 = vst.msk [vmem:[#allocation2 + $0x207] sm:$0x1] %vm2571_vm4, %v15168_v1 }
  0x39   :  { %2603 = vst.msk [vmem:[#allocation2 + $0x227] sm:$0x1] %vm2571_vm4, %v15168_v1  ;;  %2604 = vst.msk [vmem:[#allocation2 + $0x247] sm:$0x1] %vm2571_vm4, %v15168_v1 }
  0x3a   :  { %2605 = vst.msk [vmem:[#allocation2 + $0x267] sm:$0x1] %vm2571_vm4, %v15168_v1  ;;  %2606 = vst.msk [vmem:[#allocation2 + $0x287] sm:$0x1] %vm2571_vm4, %v15168_v1 }
  0x3b   :  { %800 = vmatmul.mubr.f32.gmra.mxu0 %v49_v31  ;;  %v114_v31 = vld [vmem:[%s15156_s0 + $0x258] sm:$0xff]  ;;  %2607 = vst.msk [vmem:[#allocation2 + $0x2a7] sm:$0x1] %vm2571_vm4, %v15168_v1  ;;  %2608 = vst.msk [vmem:[#allocation2 + $0x2c7] sm:$0x1] %vm2571_vm4, %v15168_v1 }
  0x3c   :  { %8102 = vmatprep.mubr.msk.f32.mxu0 %vm321_vm0, %v52_v32  ;;  %v113_v32 = vld [vmem:[%s15156_s0 + $0x250] sm:$0xff]  ;;  %2609 = vst.msk [vmem:[#allocation2 + $0x2e7] sm:$0x1] %vm2571_vm4, %v15168_v1  ;;  %2610 = vst.msk [vmem:[#allocation2 + $0x307] sm:$0x1] %vm2571_vm4, %v15168_v1 }
  0x3d   :  { %2611 = vst.msk [vmem:[#allocation2 + $0x327] sm:$0x1] %vm2571_vm4, %v15168_v1  ;;  %2612 = vst.msk [vmem:[#allocation2 + $0x347] sm:$0x1] %vm2571_vm4, %v15168_v1 }
  0x3e   :  { %2613 = vst.msk [vmem:[#allocation2 + $0x367] sm:$0x1] %vm2571_vm4, %v15168_v1  ;;  %2614 = vst.msk [vmem:[#allocation2 + $0x387] sm:$0x1] %vm2571_vm4, %v15168_v1 }
  0x3f   :  { %805 = vmatmul.mubr.f32.gmra.mxu0 %v51_v33  ;;  %v116_v33 = vld [vmem:[%s15156_s0 + $0x268] sm:$0xff]  ;;  %2615 = vst.msk [vmem:[#allocation2 + $0x3a7] sm:$0x1] %vm2571_vm4, %v15168_v1  ;;  %2616 = vst.msk [vmem:[#allocation2 + $0x3c7] sm:$0x1] %vm2571_vm4, %v15168_v1 }
  0x40   :  { %8103 = vmatprep.mubr.msk.f32.mxu0 %vm321_vm0, %v54_v34  ;;  %v115_v34 = vld [vmem:[%s15156_s0 + $0x260] sm:$0xff]  ;;  %2617 = vst.msk [vmem:[#allocation2 + $0x3e7] sm:$0x1] %vm2571_vm4, %v15168_v1  ;;  %2618 = vst.msk [vmem:[#allocation2 + $0x407] sm:$0x1] %vm2571_vm4, %v15168_v1 }
  0x41   :  { %2619 = vst.msk [vmem:[#allocation2 + $0x427] sm:$0x1] %vm2571_vm4, %v15168_v1  ;;  %2620 = vst.msk [vmem:[#allocation2 + $0x447] sm:$0x1] %vm2571_vm4, %v15168_v1 }
  0x42   :  { %2621 = vst.msk [vmem:[#allocation2 + $0x467] sm:$0x1] %vm2571_vm4, %v15168_v1  ;;  %2624 = vst.msk [vmem:[#allocation2 + $0x58] sm:$0x1] %vm2571_vm4, %v15168_v1 }
  0x43   :  { %810 = vmatmul.mubr.f32.gmra.mxu0 %v53_v35  ;;  %v118_v35 = vld [vmem:[%s15156_s0 + $0x278] sm:$0xff]  ;;  %2625 = vst.msk [vmem:[#allocation2 + $0x78] sm:$0x1] %vm2571_vm4, %v15168_v1  ;;  %2626 = vst.msk [vmem:[#allocation2 + $0x98] sm:$0x1] %vm2571_vm4, %v15168_v1 }
  0x44   :  { %8104 = vmatprep.mubr.msk.f32.mxu0 %vm321_vm0, %v56_v36  ;;  %v117_v36 = vld [vmem:[%s15156_s0 + $0x270] sm:$0xff]  ;;  %2627 = vst.msk [vmem:[#allocation2 + $0xb8] sm:$0x1] %vm2571_vm4, %v15168_v1  ;;  %2628 = vst.msk [vmem:[#allocation2 + $0xd8] sm:$0x1] %vm2571_vm4, %v15168_v1 }
  0x45   :  { %2629 = vst.msk [vmem:[#allocation2 + $0xf8] sm:$0x1] %vm2571_vm4, %v15168_v1  ;;  %2630 = vst.msk [vmem:[#allocation2 + $0x118] sm:$0x1] %vm2571_vm4, %v15168_v1 }
  0x46   :  { %2631 = vst.msk [vmem:[#allocation2 + $0x138] sm:$0x1] %vm2571_vm4, %v15168_v1  ;;  %2632 = vst.msk [vmem:[#allocation2 + $0x158] sm:$0x1] %vm2571_vm4, %v15168_v1 }
  0x47   :  { %815 = vmatmul.mubr.f32.gmra.mxu0 %v55_v37  ;;  %v120_v37 = vld [vmem:[%s15156_s0 + $0x288] sm:$0xff]  ;;  %2633 = vst.msk [vmem:[#allocation2 + $0x178] sm:$0x1] %vm2571_vm4, %v15168_v1  ;;  %2634 = vst.msk [vmem:[#allocation2 + $0x198] sm:$0x1] %vm2571_vm4, %v15168_v1 }
  0x48   :  { %8105 = vmatprep.mubr.msk.f32.mxu0 %vm321_vm0, %v58_v38  ;;  %v119_v38 = vld [vmem:[%s15156_s0 + $0x280] sm:$0xff]  ;;  %2635 = vst.msk [vmem:[#allocation2 + $0x1b8] sm:$0x1] %vm2571_vm4, %v15168_v1  ;;  %2636 = vst.msk [vmem:[#allocation2 + $0x1d8] sm:$0x1] %vm2571_vm4, %v15168_v1 }
  0x49   :  { %2637 = vst.msk [vmem:[#allocation2 + $0x1f8] sm:$0x1] %vm2571_vm4, %v15168_v1  ;;  %2638 = vst.msk [vmem:[#allocation2 + $0x218] sm:$0x1] %vm2571_vm4, %v15168_v1 }
  0x4a   :  { %2641 = vst.msk [vmem:[#allocation2 + $0x278] sm:$0x1] %vm2571_vm4, %v15168_v1  ;;  %2642 = vst.msk [vmem:[#allocation2 + $0x298] sm:$0x1] %vm2571_vm4, %v15168_v1 }
  0x4b   :  { %820 = vmatmul.mubr.f32.gmra.mxu0 %v57_v39  ;;  %v122_v39 = vld [vmem:[%s15156_s0 + $0x298] sm:$0xff]  ;;  %2643 = vst.msk [vmem:[#allocation2 + $0x2b8] sm:$0x1] %vm2571_vm4, %v15168_v1  ;;  %2644 = vst.msk [vmem:[#allocation2 + $0x2d8] sm:$0x1] %vm2571_vm4, %v15168_v1 }
  0x4c   :  { %8106 = vmatprep.mubr.msk.f32.mxu0 %vm321_vm0, %v60_v40  ;;  %v121_v40 = vld [vmem:[%s15156_s0 + $0x290] sm:$0xff]  ;;  %2645 = vst.msk [vmem:[#allocation2 + $0x2f8] sm:$0x1] %vm2571_vm4, %v15168_v1  ;;  %2646 = vst.msk [vmem:[#allocation2 + $0x318] sm:$0x1] %vm2571_vm4, %v15168_v1 }
  0x4d   :  { %2647 = vst.msk [vmem:[#allocation2 + $0x338] sm:$0x1] %vm2571_vm4, %v15168_v1  ;;  %2648 = vst.msk [vmem:[#allocation2 + $0x358] sm:$0x1] %vm2571_vm4, %v15168_v1 }
  0x4e   :  { %2649 = vst.msk [vmem:[#allocation2 + $0x378] sm:$0x1] %vm2571_vm4, %v15168_v1  ;;  %2650 = vst.msk [vmem:[#allocation2 + $0x398] sm:$0x1] %vm2571_vm4, %v15168_v1 }
  0x4f   :  { %825 = vmatmul.mubr.f32.gmra.mxu0 %v59_v41  ;;  %v124_v41 = vld [vmem:[%s15156_s0 + $0x2a8] sm:$0xff]  ;;  %2651 = vst.msk [vmem:[#allocation2 + $0x3b8] sm:$0x1] %vm2571_vm4, %v15168_v1  ;;  %2652 = vst.msk [vmem:[#allocation2 + $0x3d8] sm:$0x1] %vm2571_vm4, %v15168_v1 }
  0x50   :  { %8107 = vmatprep.mubr.msk.f32.mxu0 %vm321_vm0, %v62_v42  ;;  %v123_v42 = vld [vmem:[%s15156_s0 + $0x2a0] sm:$0xff]  ;;  %2653 = vst.msk [vmem:[#allocation2 + $0x3f8] sm:$0x1] %vm2571_vm4, %v15168_v1  ;;  %2654 = vst.msk [vmem:[#allocation2 + $0x418] sm:$0x1] %vm2571_vm4, %v15168_v1 }
  0x51   :  { %2655 = vst.msk [vmem:[#allocation2 + $0x438] sm:$0x1] %vm2571_vm4, %v15168_v1  ;;  %2656 = vst.msk [vmem:[#allocation2 + $0x458] sm:$0x1] %vm2571_vm4, %v15168_v1 }
  0x52   :  { %2622 = vst.msk [vmem:[#allocation2 + $0x18] sm:$0x1] %vm2571_vm4, %v15168_v1  ;;  %2639 = vst.msk [vmem:[#allocation2 + $0x238] sm:$0x1] %vm2571_vm4, %v15168_v1 }
  0x53   :  { %830 = vmatmul.mubr.f32.gmra.mxu0 %v61_v43  ;;  %v126_v43 = vld [vmem:[%s15156_s0 + $0x2b8] sm:$0xff]  ;;  %2640 = vst.msk [vmem:[#allocation2 + $0x258] sm:$0x1] %vm2571_vm4, %v15168_v1  ;;  %2657 = vst.msk [vmem:[#allocation2 + $0x478] sm:$0x1] %vm2571_vm4, %v15168_v1 }
  0x54   :  { %8108 = vmatprep.mubr.msk.f32.mxu0 %vm321_vm0, %v64_v44  ;;  %v125_v44 = vld [vmem:[%s15156_s0 + $0x2b0] sm:$0xff] }
  0x57   :  { %835 = vmatmul.mubr.f32.gmra.mxu0 %v63_v45  ;;  %v128_v45 = vld [vmem:[%s15156_s0 + $0x2c8] sm:$0xff] }
  0x58   :  { %8109 = vmatprep.mubr.msk.f32.mxu0 %vm321_vm0, %v66_v46  ;;  %v127_v46 = vld [vmem:[%s15156_s0 + $0x2c0] sm:$0xff] }
  0x5b   :  { %840 = vmatmul.mubr.f32.gmra.mxu0 %v65_v47  ;;  %v130_v47 = vld [vmem:[%s15156_s0 + $0x2d8] sm:$0xff] }
  0x5c   :  { %8110 = vmatprep.mubr.msk.f32.mxu0 %vm321_vm0, %v68_v48  ;;  %v129_v48 = vld [vmem:[%s15156_s0 + $0x2d0] sm:$0xff] }
  0x5f   :  { %845 = vmatmul.mubr.f32.gmra.mxu0 %v67_v49  ;;  %v132_v49 = vld [vmem:[%s15156_s0 + $0x2e8] sm:$0xff] }
  0x60   :  { %8111 = vmatprep.mubr.msk.f32.mxu0 %vm321_vm0, %v70_v50  ;;  %v131_v50 = vld [vmem:[%s15156_s0 + $0x2e0] sm:$0xff] }
  0x63   :  { %850 = vmatmul.mubr.f32.gmra.mxu0 %v69_v51  ;;  %v134_v51 = vld [vmem:[%s15156_s0 + $0x2f8] sm:$0xff] }
  0x64   :  { %8112 = vmatprep.mubr.msk.f32.mxu0 %vm321_vm0, %v72_v52  ;;  %v133_v52 = vld [vmem:[%s15156_s0 + $0x2f0] sm:$0xff] }
  0x67   :  { %855 = vmatmul.mubr.f32.gmra.mxu0 %v71_v53  ;;  %v136_v53 = vld [vmem:[%s15156_s0 + $0x308] sm:$0xff] }
  0x68   :  { %8113 = vmatprep.mubr.msk.f32.mxu0 %vm321_vm0, %v74_v54  ;;  %v135_v54 = vld [vmem:[%s15156_s0 + $0x300] sm:$0xff] }
  0x6b   :  { %860 = vmatmul.mubr.f32.gmra.mxu0 %v73_v55  ;;  %v10383_v55 = vld [vmem:[%s15158_s2] ss:$0 sm:$0xff] }
  0x6c   :  { %8114 = vmatprep.mubr.msk.f32.mxu0 %vm321_vm0, %v76_v56  ;;  %v138_v56 = vld [vmem:[%s15156_s0 + $0x318] sm:$0xff] }
  0x6f   :  { %865 = vmatmul.mubr.f32.gmra.mxu0 %v75_v57 }
  0x70   :  { %8115 = vmatprep.mubr.msk.f32.mxu0 %vm321_vm0, %v78_v58 }
  0x73   :  { %870 = vmatmul.mubr.f32.gmra.mxu0 %v77_v59  ;;  %v137_v59 = vld [vmem:[%s15156_s0 + $0x310] sm:$0xff] }
  0x74   :  { %8116 = vmatprep.mubr.msk.f32.mxu0 %vm321_vm0, %v80_v60 }
  0x77   :  { %875 = vmatmul.mubr.f32.gmra.mxu0 %v79_v61  ;;  %v140_v61 = vld [vmem:[%s15156_s0 + $0x328] sm:$0xff] }
  0x78   :  { %8117 = vmatprep.mubr.msk.f32.mxu0 %vm321_vm0, %v82_v62 }
  0x7b   :  { %880 = vmatmul.mubr.f32.gmra.mxu0 %v81_v63 }
  0x7c   :  { %8118 = vmatprep.mubr.msk.f32.mxu0 %vm321_vm0, %v84_v0 }
  0x7f   :  { %885 = vmatmul.mubr.f32.gmra.mxu0 %v83_v2 }
  0x80   :  { %8119 = vmatprep.mubr.msk.f32.mxu0 %vm321_vm0, %v86_v3  ;;  %v10430_v3 = vld [vmem:[%s15156_s0 + $0x320] sm:$0xff] }
  0x83   :  { %890 = vmatmul.mubr.f32.gmra.mxu0 %v85_v4 }
  0x84   :  { %8120 = vmatprep.mubr.msk.f32.mxu0 %vm321_vm0, %v88_v5  ;;  %v10437_v5 = vld [vmem:[%s15156_s0 + $0x338] sm:$0xff] }
  0x87   :  { %895 = vmatmul.mubr.f32.gmra.mxu0 %v87_v6 }
  0x88   :  { %8121 = vmatprep.mubr.msk.f32.mxu0 %vm321_vm0, %v90_v7 }
  0x8b   :  { %900 = vmatmul.mubr.f32.gmra.mxu0 %v89_v8 }
  0x8c   :  { %8122 = vmatprep.mubr.msk.f32.mxu0 %vm321_vm0, %v92_v9 }
  0x8f   :  { %905 = vmatmul.mubr.f32.gmra.mxu0 %v91_v10  ;;  %v141_v10 = vld [vmem:[%s15156_s0 + $0x330] sm:$0xff] }
  0x90   :  { %8123 = vmatprep.mubr.msk.f32.mxu0 %vm321_vm0, %v94_v11 }
  0x93   :  { %910 = vmatmul.mubr.f32.gmra.mxu0 %v93_v12  ;;  %v144_v12 = vld [vmem:[%s15156_s0 + $0x348] sm:$0xff] }
  0x94   :  { %8124 = vmatprep.mubr.msk.f32.mxu0 %vm321_vm0, %v96_v13 }
  0x97   :  { %915 = vmatmul.mubr.f32.gmra.mxu0 %v95_v14 }
  0x98   :  { %8125 = vmatprep.mubr.msk.f32.mxu0 %vm321_vm0, %v98_v15 }
  0x9b   :  { %920 = vmatmul.mubr.f32.gmra.mxu0 %v97_v16 }
  0x9c   :  { %8126 = vmatprep.mubr.msk.f32.mxu0 %vm321_vm0, %v100_v17  ;;  %v143_v17 = vld [vmem:[%s15156_s0 + $0x340] sm:$0xff] }
  0x9f   :  { %925 = vmatmul.mubr.f32.gmra.mxu0 %v99_v18 }
  0xa0   :  { %8127 = vmatprep.mubr.msk.f32.mxu0 %vm321_vm0, %v102_v19  ;;  %v146_v19 = vld [vmem:[%s15156_s0 + $0x358] sm:$0xff] }
  0xa3   :  { %930 = vmatmul.mubr.f32.gmra.mxu0 %v101_v20 }
  0xa4   :  { %8128 = vmatprep.mubr.msk.f32.mxu0 %vm321_vm0, %v104_v21 }
  0xa7   :  { %935 = vmatmul.mubr.f32.gmra.mxu0 %v103_v22 }
  0xa8   :  { %8129 = vmatprep.mubr.msk.f32.mxu0 %vm321_vm0, %v106_v23 }
  0xab   :  { %940 = vmatmul.mubr.f32.gmra.mxu0 %v105_v24  ;;  %v145_v24 = vld [vmem:[%s15156_s0 + $0x350] sm:$0xff] }
  0xac   :  { %8130 = vmatprep.mubr.msk.f32.mxu0 %vm321_vm0, %v108_v25 }
  0xaf   :  { %945 = vmatmul.mubr.f32.gmra.mxu0 %v107_v26  ;;  %v148_v26 = vld [vmem:[%s15156_s0 + $0x368] sm:$0xff] }
  0xb0   :  { %8131 = vmatprep.mubr.msk.f32.mxu0 %vm321_vm0, %v110_v27 }
  0xb3   :  { %950 = vmatmul.mubr.f32.gmra.mxu0 %v109_v28 }
  0xb4   :  { %8132 = vmatprep.mubr.msk.f32.mxu0 %vm321_vm0, %v112_v29 }
  0xb7   :  { %955 = vmatmul.mubr.f32.gmra.mxu0 %v111_v30 }
  0xb8   :  { %8133 = vmatprep.mubr.msk.f32.mxu0 %vm321_vm0, %v114_v31  ;;  %v147_v31 = vld [vmem:[%s15156_s0 + $0x360] sm:$0xff] }
  0xbb   :  { %960 = vmatmul.mubr.f32.gmra.mxu0 %v113_v32 }
  0xbc   :  { %8134 = vmatprep.mubr.msk.f32.mxu0 %vm321_vm0, %v116_v33  ;;  %v150_v33 = vld [vmem:[%s15156_s0 + $0x378] sm:$0xff] }
  0xbf   :  { %965 = vmatmul.mubr.f32.gmra.mxu0 %v115_v34 }
  0xc0   :  { %8135 = vmatprep.mubr.msk.f32.mxu0 %vm321_vm0, %v118_v35 }
  0xc3   :  { %970 = vmatmul.mubr.f32.gmra.mxu0 %v117_v36 }
  0xc4   :  { %8136 = vmatprep.mubr.msk.f32.mxu0 %vm321_vm0, %v120_v37 }
  0xc7   :  { %975 = vmatmul.mubr.f32.gmra.mxu0 %v119_v38  ;;  %v149_v38 = vld [vmem:[%s15156_s0 + $0x370] sm:$0xff] }
  0xc8   :  { %8137 = vmatprep.mubr.msk.f32.mxu0 %vm321_vm0, %v122_v39 }
  0xcb   :  { %980 = vmatmul.mubr.f32.gmra.mxu0 %v121_v40  ;;  %v152_v40 = vld [vmem:[%s15156_s0 + $0x388] sm:$0xff] }
  0xcc   :  { %8138 = vmatprep.mubr.msk.f32.mxu0 %vm321_vm0, %v124_v41 }
  0xcf   :  { %985 = vmatmul.mubr.f32.gmra.mxu0 %v123_v42 }
  0xd0   :  { %8139 = vmatprep.mubr.msk.f32.mxu0 %vm321_vm0, %v126_v43 }
  0xd3   :  { %990 = vmatmul.mubr.f32.gmra.mxu0 %v125_v44 }
  0xd4   :  { %8140 = vmatprep.mubr.msk.f32.mxu0 %vm321_vm0, %v128_v45  ;;  %v151_v45 = vld [vmem:[%s15156_s0 + $0x380] sm:$0xff] }
  0xd7   :  { %995 = vmatmul.mubr.f32.gmra.mxu0 %v127_v46 }
  0xd8   :  { %8141 = vmatprep.mubr.msk.f32.mxu0 %vm321_vm0, %v130_v47  ;;  %v154_v47 = vld [vmem:[%s15156_s0 + $0x398] sm:$0xff] }
  0xdb   :  { %1000 = vmatmul.mubr.f32.gmra.mxu0 %v129_v48 }
  0xdc   :  { %8142 = vmatprep.mubr.msk.f32.mxu0 %vm321_vm0, %v132_v49 }
  0xdf   :  { %1005 = vmatmul.mubr.f32.gmra.mxu0 %v131_v50 }
  0xe0   :  { %8143 = vmatprep.mubr.msk.f32.mxu0 %vm321_vm0, %v134_v51 }
  0xe3   :  { %1010 = vmatmul.mubr.f32.gmra.mxu0 %v133_v52  ;;  %v153_v52 = vld [vmem:[%s15156_s0 + $0x390] sm:$0xff] }
  0xe4   :  { %8144 = vmatprep.mubr.msk.f32.mxu0 %vm321_vm0, %v136_v53 }
  0xe7   :  { %v776_v57 = vpop.f32.mrf.mxu0  ;;  %1015 = vmatmul.mubr.f32.gmra.mxu0 %v135_v54  ;;  %v156_v54 = vld [vmem:[%s15156_s0 + $0x3a8] sm:$0xff] }
  0xe8   :  { %v777_v58 = vadd.f32 %v10383_v55, %v776_v57  ;;  %8145 = vmatprep.mubr.msk.f32.mxu0 %vm321_vm0, %v138_v56 }
  0xe9   :  { %v778_v60 = vpop.f32.mrf.mxu0 }
  0xea   :  { %vm1415_vm2 = vcmp.ge.f32.partialorder %v777_v58, 0.0  ;;  %v1543_v62 = vmul.f32 0.2, %v777_v58  ;;  %v155_v60 = vld [vmem:[%s15156_s0 + $0x3a0] sm:$0xff] }
  0xeb   :  { %v781_v63 = vpop.f32.mrf.mxu0  ;;  %1020 = vmatmul.mubr.f32.gmra.mxu0 %v137_v59 }
  0xec   :  { %v10421_v0 = vadd.f32 %v10383_v55, %v781_v63  ;;  %v10424_v2 = vsel %vm1415_vm2, %v777_v58, %v1543_v62  ;;  %8146 = vmatprep.mubr.msk.f32.mxu0 %vm321_vm0, %v140_v61  ;;  %v158_v62 = vld [vmem:[%s15156_s0 + $0x3b8] sm:$0xff] }
  0xed   :  { %v783_v4 = vpop.f32.mrf.mxu0  ;;  %1927 = vrot.lane.b32.xlu0 %v10424_v2, %s9896_s23 }
  0xee   :  { %v10440_v6 = vmul.f32 0.2, %v10421_v0  ;;  %vm1416_vm5 = vcmp.ge.f32.partialorder %v10421_v0, 0.0 }
  0xef   :  { %v786_v7 = vpop.f32.mrf.mxu0  ;;  %1025 = vmatmul.mubr.f32.gmra.mxu0 %v10430_v3 }
  0xf0   :  { %v787_v8 = vadd.f32 %v10383_v55, %v786_v7  ;;  %v10601_v9 = vsel %vm1416_vm5, %v10421_v0, %v10440_v6  ;;  %8147 = vmatprep.mubr.msk.f32.mxu0 %vm321_vm0, %v10437_v5  ;;  %v157_v5 = vld [vmem:[%s15156_s0 + $0x3b0] sm:$0xff]  ;;  %v160_v7 = vld [vmem:[%s15156_s0 + $0x3c8] sm:$0xff] }
  0xf1   :  { %v788_v11 = vpop.f32.mrf.mxu0  ;;  %1929 = vrot.lane.b32.xlu0 %v10601_v9, %s9896_s23 }
  0xf2   :  { %vm1417_vm6 = vcmp.ge.f32.partialorder %v787_v8, 0.0  ;;  %v1545_v13 = vmul.f32 0.2, %v787_v8 }
  0xf3   :  { %v791_v14 = vpop.f32.mrf.mxu0  ;;  %1030 = vmatmul.mubr.f32.gmra.mxu0 %v141_v10 }
  0xf4   :  { %v792_v15 = vadd.f32 %v10383_v55, %v791_v14  ;;  %v10614_v16 = vsel %vm1417_vm6, %v787_v8, %v1545_v13  ;;  %8148 = vmatprep.mubr.msk.f32.mxu0 %vm321_vm0, %v144_v12  ;;  %v159_v13 = vld [vmem:[%s15156_s0 + $0x3c0] sm:$0xff] }
  0xf5   :  { %v793_v18 = vpop.f32.mrf.mxu0  ;;  %1931 = vrot.lane.b32.xlu1 %v10614_v16, %s9896_s23 }
  0xf6   :  { %v1546_v20 = vmul.f32 0.2, %v792_v15  ;;  %vm1418_vm7 = vcmp.ge.f32.partialorder %v792_v15, 0.0 }
  0xf7   :  { %v796_v21 = vpop.f32.mrf.mxu0  ;;  %1035 = vmatmul.mubr.f32.gmra.mxu0 %v143_v17 }
  0xf8   :  { %v797_v22 = vadd.f32 %v10383_v55, %v796_v21  ;;  %v10626_v23 = vsel %vm1418_vm7, %v792_v15, %v1546_v20  ;;  %8149 = vmatprep.mubr.msk.f32.mxu0 %vm321_vm0, %v146_v19  ;;  %v162_v15 = vld [vmem:[%s15156_s0 + $0x3d8] sm:$0xff]  ;;  %v161_v21 = vld [vmem:[%s15156_s0 + $0x3d0] sm:$0xff] }
  0xf9   :  { %v798_v25 = vpop.f32.mrf.mxu0  ;;  %1933 = vrot.lane.b32.xlu1 %v10626_v23, %s9896_s23 }
  0xfa   :  { %v1547_v27 = vmul.f32 0.2, %v797_v22  ;;  %vm1419_vm8 = vcmp.ge.f32.partialorder %v797_v22, 0.0 }
  0xfb   :  { %v801_v28 = vpop.f32.mrf.mxu0  ;;  %1040 = vmatmul.mubr.f32.gmra.mxu0 %v145_v24  ;;  %v164_v24 = vld [vmem:[%s15156_s0 + $0x3e8] sm:$0xff] }
  0xfc   :  { %v802_v29 = vadd.f32 %v10383_v55, %v801_v28  ;;  %v10638_v30 = vsel %vm1419_vm8, %v797_v22, %v1547_v27  ;;  %8150 = vmatprep.mubr.msk.f32.mxu0 %vm321_vm0, %v148_v26 }
  0xfd   :  { %v803_v32 = vpop.f32.mrf.mxu0  ;;  %1935 = vrot.lane.b32.xlu0 %v10638_v30, %s9896_s23 }
  0xfe   :  { %v1548_v34 = vmul.f32 0.2, %v802_v29  ;;  %vm1420_vm9 = vcmp.ge.f32.partialorder %v802_v29, 0.0  ;;  %v166_v32 = vld [vmem:[%s15156_s0 + $0x3f8] sm:$0xff] }
  0xff   :  { %v806_v35 = vpop.f32.mrf.mxu0  ;;  %1045 = vmatmul.mubr.f32.gmra.mxu0 %v147_v31 }
 0x100   :  { %v807_v36 = vadd.f32 %v10383_v55, %v806_v35  ;;  %v10650_v37 = vsel %vm1420_vm9, %v802_v29, %v1548_v34  ;;  %8151 = vmatprep.mubr.msk.f32.mxu0 %vm321_vm0, %v150_v33  ;;  %v163_v29 = vld [vmem:[%s15156_s0 + $0x3e0] sm:$0xff] }
 0x101   :  { %v808_v39 = vpop.f32.mrf.mxu0  ;;  %1937 = vrot.lane.b32.xlu0 %v10650_v37, %s9896_s23 }
 0x102   :  { %v1549_v41 = vmul.f32 0.2, %v807_v36  ;;  %vm1421_vm10 = vcmp.ge.f32.partialorder %v807_v36, 0.0 }
 0x103   :  { %v811_v42 = vpop.f32.mrf.mxu0  ;;  %1050 = vmatmul.mubr.f32.gmra.mxu0 %v149_v38  ;;  %v165_v38 = vld [vmem:[%s15156_s0 + $0x3f0] sm:$0xff] }
 0x104   :  { %v812_v43 = vadd.f32 %v10383_v55, %v811_v42  ;;  %v10662_v44 = vsel %vm1421_vm10, %v807_v36, %v1549_v41  ;;  %8152 = vmatprep.mubr.msk.f32.mxu0 %vm321_vm0, %v152_v40  ;;  %v168_v40 = vld [vmem:[%s15156_s0 + $0x408] sm:$0xff] }
 0x105   :  { %v813_v46 = vpop.f32.mrf.mxu0  ;;  %1939 = vrot.lane.b32.xlu1 %v10662_v44, %s9896_s23 }
 0x106   :  { %v1550_v48 = vmul.f32 0.2, %v812_v43  ;;  %vm1422_vm11 = vcmp.ge.f32.partialorder %v812_v43, 0.0  ;;  %v167_v46 = vld [vmem:[%s15156_s0 + $0x400] sm:$0xff] }
 0x107   :  { %v816_v49 = vpop.f32.mrf.mxu0  ;;  %1055 = vmatmul.mubr.f32.gmra.mxu0 %v151_v45 }
 0x108   :  { %v817_v50 = vadd.f32 %v10383_v55, %v816_v49  ;;  %v10674_v51 = vsel %vm1422_vm11, %v812_v43, %v1550_v48  ;;  %8153 = vmatprep.mubr.msk.f32.mxu0 %vm321_vm0, %v154_v47  ;;  %v170_v48 = vld [vmem:[%s15156_s0 + $0x418] sm:$0xff] }
 0x109   :  { %v818_v53 = vpop.f32.mrf.mxu0  ;;  %1941 = vrot.lane.b32.xlu1 %v10674_v51, %s9896_s23 }
 0x10a   :  { %v1551_v56 = vmul.f32 0.2, %v817_v50  ;;  %vm1423_vm12 = vcmp.ge.f32.partialorder %v817_v50, 0.0 }
 0x10b   :  { %v821_v57 = vpop.f32.mrf.mxu0  ;;  %1060 = vmatmul.mubr.f32.gmra.mxu0 %v153_v52 }
 0x10c   :  { %v822_v58 = vadd.f32 %v10383_v55, %v821_v57  ;;  %v10686_v59 = vsel %vm1423_vm12, %v817_v50, %v1551_v56  ;;  %8154 = vmatprep.mubr.msk.f32.mxu0 %vm321_vm0, %v156_v54  ;;  %v169_v54 = vld [vmem:[%s15156_s0 + $0x410] sm:$0xff]  ;;  %v172_v57 = vld [vmem:[%s15156_s0 + $0x428] sm:$0xff] }
 0x10d   :  { %v823_v61 = vpop.f32.mrf.mxu0  ;;  %1943 = vrot.lane.b32.xlu0 %v10686_v59, %s9896_s23 }
 0x10e   :  { %v1552_v63 = vmul.f32 0.2, %v822_v58  ;;  %vm1424_vm13 = vcmp.ge.f32.partialorder %v822_v58, 0.0 }
 0x10f   :  { %v826_v0 = vpop.f32.mrf.mxu0  ;;  %1065 = vmatmul.mubr.f32.gmra.mxu0 %v155_v60 }
 0x110   :  { %v827_v3 = vadd.f32 %v10383_v55, %v826_v0  ;;  %v10698_v4 = vsel %vm1424_vm13, %v822_v58, %v1552_v63  ;;  %8155 = vmatprep.mubr.msk.f32.mxu0 %vm321_vm0, %v158_v62  ;;  %v171_v63 = vld [vmem:[%s15156_s0 + $0x420] sm:$0xff] }
 0x111   :  { %v828_v6 = vpop.f32.mrf.mxu0  ;;  %1945 = vrot.lane.b32.xlu0 %v10698_v4, %s9896_s23 }
 0x112   :  { %v1553_v8 = vmul.f32 0.2, %v827_v3  ;;  %vm1425_vm14 = vcmp.ge.f32.partialorder %v827_v3, 0.0 }
 0x113   :  { %v831_v10 = vpop.f32.mrf.mxu0  ;;  %1070 = vmatmul.mubr.f32.gmra.mxu0 %v157_v5 }
 0x114   :  { %v832_v11 = vadd.f32 %v10383_v55, %v831_v10  ;;  %v10710_v12 = vsel %vm1425_vm14, %v827_v3, %v1553_v8  ;;  %8156 = vmatprep.mubr.msk.f32.mxu0 %vm321_vm0, %v160_v7  ;;  %v174_v3 = vld [vmem:[%s15156_s0 + $0x438] sm:$0xff]  ;;  %v173_v10 = vld [vmem:[%s15156_s0 + $0x430] sm:$0xff] }
 0x115   :  { %v833_v14 = vpop.f32.mrf.mxu0  ;;  %1947 = vrot.lane.b32.xlu1 %v10710_v12, %s9896_s23 }
 0x116   :  { %v1554_v17 = vmul.f32 0.2, %v832_v11  ;;  %vm1426_vm15 = vcmp.ge.f32.partialorder %v832_v11, 0.0 }
 0x117   :  { %v836_v18 = vpop.f32.mrf.mxu0  ;;  %1075 = vmatmul.mubr.f32.gmra.mxu0 %v159_v13  ;;  %v176_v13 = vld [vmem:[%s15156_s0 + $0x448] sm:$0xff] }
 0x118   :  { %v837_v19 = vadd.f32 %v10383_v55, %v836_v18  ;;  %v10722_v20 = vsel %vm1426_vm15, %v832_v11, %v1554_v17  ;;  %8157 = vmatprep.mubr.msk.f32.mxu0 %vm321_vm0, %v162_v15 }
 0x119   :  { %v838_v22 = vpop.f32.mrf.mxu0  ;;  %1949 = vrot.lane.b32.xlu1 %v10722_v20, %s9896_s23 }
 0x11a   :  { %v1555_v25 = vmul.f32 0.2, %v837_v19  ;;  %vm1427_vm1 = vcmp.ge.f32.partialorder %v837_v19, 0.0  ;;  %v178_v22 = vld [vmem:[%s15156_s0 + $0x458] sm:$0xff] }
 0x11b   :  { %v841_v26 = vpop.f32.mrf.mxu0  ;;  %1080 = vmatmul.mubr.f32.gmra.mxu0 %v161_v21 }
 0x11c   :  { %v842_v27 = vadd.f32 %v10383_v55, %v841_v26  ;;  %v10734_v28 = vsel %vm1427_vm1, %v837_v19, %v1555_v25  ;;  %8158 = vmatprep.mubr.msk.f32.mxu0 %vm321_vm0, %v164_v24  ;;  %v175_v19 = vld [vmem:[%s15156_s0 + $0x440] sm:$0xff] }
 0x11d   :  { %v843_v31 = vpop.f32.mrf.mxu0  ;;  %1951 = vrot.lane.b32.xlu0 %v10734_v28, %s9896_s23 }
 0x11e   :  { %v1556_v33 = vmul.f32 0.2, %v842_v27  ;;  %vm1428_vm2 = vcmp.ge.f32.partialorder %v842_v27, 0.0 }
 0x11f   :  { %v846_v34 = vpop.f32.mrf.mxu0  ;;  %1085 = vmatmul.mubr.f32.gmra.mxu0 %v163_v29  ;;  %v177_v29 = vld [vmem:[%s15156_s0 + $0x450] sm:$0xff] }
 0x120   :  { %v847_v35 = vadd.f32 %v10383_v55, %v846_v34  ;;  %v10746_v36 = vsel %vm1428_vm2, %v842_v27, %v1556_v33  ;;  %8159 = vmatprep.mubr.msk.f32.mxu0 %vm321_vm0, %v166_v32  ;;  %v180_v32 = vld [vmem:[%s15156_s0 + $0x468] sm:$0xff] }
 0x121   :  { %v848_v39 = vpop.f32.mrf.mxu0  ;;  %1953 = vrot.lane.b32.xlu0 %v10746_v36, %s9896_s23 }
 0x122   :  { %v1557_v41 = vmul.f32 0.2, %v847_v35  ;;  %vm1429_vm4 = vcmp.ge.f32.partialorder %v847_v35, 0.0  ;;  %v179_v39 = vld [vmem:[%s15156_s0 + $0x460] sm:$0xff] }
 0x123   :  { %v851_v42 = vpop.f32.mrf.mxu0  ;;  %1090 = vmatmul.mubr.f32.gmra.mxu0 %v165_v38 }
 0x124   :  { %v852_v43 = vadd.f32 %v10383_v55, %v851_v42  ;;  %v10758_v45 = vsel %vm1429_vm4, %v847_v35, %v1557_v41  ;;  %8160 = vmatprep.mubr.msk.f32.mxu0 %vm321_vm0, %v168_v40  ;;  %v182_v41 = vld [vmem:[%s15156_s0 + $0x478] sm:$0xff] }
 0x125   :  { %v853_v47 = vpop.f32.mrf.mxu0  ;;  %1955 = vrot.lane.b32.xlu1 %v10758_v45, %s9896_s23 }
 0x126   :  { %v1558_v49 = vmul.f32 0.2, %v852_v43  ;;  %vm1430_vm5 = vcmp.ge.f32.partialorder %v852_v43, 0.0 }
 0x127   :  { %v856_v50 = vpop.f32.mrf.mxu0  ;;  %1095 = vmatmul.mubr.f32.gmra.mxu0 %v167_v46 }
 0x128   :  { %v857_v52 = vadd.f32 %v10383_v55, %v856_v50  ;;  %v10770_v53 = vsel %vm1430_vm5, %v852_v43, %v1558_v49  ;;  %8161 = vmatprep.mubr.msk.f32.mxu0 %vm321_vm0, %v170_v48  ;;  %v181_v48 = vld [vmem:[%s15156_s0 + $0x470] sm:$0xff]  ;;  %v184_v50 = vld [vmem:[%s15156_s0 + $0x488] sm:$0xff] }
 0x129   :  { %v858_v56 = vpop.f32.mrf.mxu0  ;;  %1957 = vrot.lane.b32.xlu1 %v10770_v53, %s9896_s23 }
 0x12a   :  { %v1559_v58 = vmul.f32 0.2, %v857_v52  ;;  %vm1431_vm6 = vcmp.ge.f32.partialorder %v857_v52, 0.0 }
 0x12b   :  { %v861_v60 = vpop.f32.mrf.mxu0  ;;  %1100 = vmatmul.mubr.f32.gmra.mxu0 %v169_v54  ;;  %v5237_v54 = vld [vmem:[%s15159_s3 + $0x78] sm:$0xff] }
 0x12c   :  { %v862_v61 = vadd.f32 %v10383_v55, %v861_v60  ;;  %v10782_v62 = vsel %vm1431_vm6, %v857_v52, %v1559_v58  ;;  %8162 = vmatprep.mubr.msk.f32.mxu0 %vm321_vm0, %v172_v57  ;;  %5458 = vmatpush1.msra.mxu1 %v5237_v54  ;;  %v183_v60 = vld [vmem:[%s15156_s0 + $0x480] sm:$0xff] }
 0x12d   :  { %v863_v0 = vpop.f32.mrf.mxu0  ;;  %1959 = vrot.lane.b32.xlu0 %v10782_v62, %s9896_s23  ;;  %5459 = vmatprep.subr.mxu1 %v15168_v1  ;;  %v191_v54 = vld [vmem:[%s15156_s0 + $0x4c0] sm:$0xff] }
 0x12e   :  { %v1560_v5 = vmul.f32 0.2, %v862_v61  ;;  %vm1432_vm7 = vcmp.ge.f32.partialorder %v862_v61, 0.0  ;;  %v186_v0 = vld [vmem:[%s15156_s0 + $0x498] sm:$0xff] }
 0x12f   :  { %v866_v6 = vpop.f32.mrf.mxu0  ;;  %1105 = vmatmul.mubr.f32.gmra.mxu0 %v171_v63 }
 0x130   :  { %v867_v7 = vadd.f32 %v10383_v55, %v866_v6  ;;  %v10794_v8 = vsel %vm1432_vm7, %v862_v61, %v1560_v5  ;;  %8163 = vmatprep.mubr.msk.f32.mxu0 %vm321_vm0, %v174_v3  ;;  %v5236_v61 = vld [vmem:[%s15159_s3 + $0x70] sm:$0xff]  ;;  %v5235_v3 = vld [vmem:[%s15159_s3 + $0x68] sm:$0xff] }
 0x131   :  { %v868_v11 = vpop.f32.mrf.mxu0  ;;  %1961 = vrot.lane.b32.xlu0 %v10794_v8, %s9896_s23  ;;  %5460 = vmatpush1.msra.mxu1 %v5236_v61  ;;  %v5227_v61 = vld [vmem:[%s15159_s3 + $0x28] sm:$0xff] }
 0x132   :  { %v1561_v14 = vmul.f32 0.2, %v867_v7  ;;  %vm1433_vm8 = vcmp.ge.f32.partialorder %v867_v7, 0.0  ;;  %5461 = vmatprep.subr.mxu1 %v15168_v1  ;;  %v185_v11 = vld [vmem:[%s15156_s0 + $0x490] sm:$0xff] }
 0x133   :  { %v871_v15 = vpop.f32.mrf.mxu0  ;;  %1110 = vmatmul.mubr.f32.gmra.mxu0 %v173_v10  ;;  %5462 = vmatpush1.msra.mxu1 %v5235_v3 }
 0x134   :  { %v872_v17 = vadd.f32 %v10383_v55, %v871_v15  ;;  %v10806_v18 = vsel %vm1433_vm8, %v867_v7, %v1561_v14  ;;  %8164 = vmatprep.mubr.msk.f32.mxu0 %vm321_vm0, %v176_v13  ;;  %5463 = vmatprep.subr.mxu1 %v15168_v1  ;;  %v5234_v13 = vld [vmem:[%s15159_s3 + $0x60] sm:$0xff]  ;;  %v188_v15 = vld [vmem:[%s15156_s0 + $0x4a8] sm:$0xff] }
 0x135   :  { %v873_v21 = vpop.f32.mrf.mxu0  ;;  %1963 = vrot.lane.b32.xlu1 %v10806_v18, %s9896_s23  ;;  %5464 = vmatpush1.msra.mxu1 %v5234_v13  ;;  %v196_v13 = vld [vmem:[%s15156_s0 + $0x4e8] sm:$0xff] }
 0x136   :  { %v1562_v24 = vmul.f32 0.2, %v872_v17  ;;  %vm1434_vm9 = vcmp.ge.f32.partialorder %v872_v17, 0.0  ;;  %5465 = vmatprep.subr.mxu1 %v15168_v1 }
 0x137   :  { %v876_v25 = vpop.f32.mrf.mxu0  ;;  %1115 = vmatmul.mubr.f32.gmra.mxu0 %v175_v19  ;;  %v5233_v19 = vld [vmem:[%s15159_s3 + $0x58] sm:$0xff] }
 0x138   :  { %v877_v26 = vadd.f32 %v10383_v55, %v876_v25  ;;  %v10818_v27 = vsel %vm1434_vm9, %v872_v17, %v1562_v24  ;;  %8165 = vmatprep.mubr.msk.f32.mxu0 %vm321_vm0, %v178_v22  ;;  %5466 = vmatpush1.msra.mxu1 %v5233_v19  ;;  %v187_v25 = vld [vmem:[%s15156_s0 + $0x4a0] sm:$0xff] }
 0x139   :  { %v878_v31 = vpop.f32.mrf.mxu0  ;;  %1965 = vrot.lane.b32.xlu1 %v10818_v27, %s9896_s23  ;;  %5467 = vmatprep.subr.mxu1 %v15168_v1 }
 0x13a   :  { %v1563_v33 = vmul.f32 0.2, %v877_v26  ;;  %vm1435_vm10 = vcmp.ge.f32.partialorder %v877_v26, 0.0  ;;  %v190_v31 = vld [vmem:[%s15156_s0 + $0x4b8] sm:$0xff] }
 0x13b   :  { %v881_v34 = vpop.f32.mrf.mxu0  ;;  %1120 = vmatmul.mubr.f32.gmra.mxu0 %v177_v29 }
 0x13c   :  { %v882_v35 = vadd.f32 %v10383_v55, %v881_v34  ;;  %v10830_v38 = vsel %vm1435_vm10, %v877_v26, %v1563_v33  ;;  %8166 = vmatprep.mubr.msk.f32.mxu0 %vm321_vm0, %v180_v32  ;;  %v5232_v26 = vld [vmem:[%s15159_s3 + $0x50] sm:$0xff]  ;;  %v5231_v33 = vld [vmem:[%s15159_s3 + $0x48] sm:$0xff] }
 0x13d   :  { %v883_v40 = vpop.f32.mrf.mxu0  ;;  %1967 = vrot.lane.b32.xlu0 %v10830_v38, %s9896_s23  ;;  %5468 = vmatpush1.msra.mxu1 %v5232_v26 }
 0x13e   :  { %v1564_v42 = vmul.f32 0.2, %v882_v35  ;;  %vm1436_vm11 = vcmp.ge.f32.partialorder %v882_v35, 0.0  ;;  %5469 = vmatprep.subr.mxu1 %v15168_v1  ;;  %v189_v40 = vld [vmem:[%s15156_s0 + $0x4b0] sm:$0xff] }
 0x13f   :  { %v886_v43 = vpop.f32.mrf.mxu0  ;;  %1125 = vmatmul.mubr.f32.gmra.mxu0 %v179_v39  ;;  %5470 = vmatpush1.msra.mxu1 %v5231_v33 }
 0x140   :  { %v887_v46 = vadd.f32 %v10383_v55, %v886_v43  ;;  %v10842_v47 = vsel %vm1436_vm11, %v882_v35, %v1564_v42  ;;  %8167 = vmatprep.mubr.msk.f32.mxu0 %vm321_vm0, %v182_v41  ;;  %5471 = vmatprep.subr.mxu1 %v15168_v1  ;;  %v5230_v41 = vld [vmem:[%s15159_s3 + $0x40] sm:$0xff]  ;;  %v192_v43 = vld [vmem:[%s15156_s0 + $0x4c8] sm:$0xff] }
 0x141   :  { %v888_v49 = vpop.f32.mrf.mxu0  ;;  %1969 = vrot.lane.b32.xlu0 %v10842_v47, %s9896_s23  ;;  %5472 = vmatpush1.msra.mxu1 %v5230_v41  ;;  %v5222_v41 = vld [vmem:[%s15159_s3] sm:$0xff] }
 0x142   :  { %v1565_v52 = vmul.f32 0.2, %v887_v46  ;;  %vm1437_vm12 = vcmp.ge.f32.partialorder %v887_v46, 0.0  ;;  %5473 = vmatprep.subr.mxu1 %v15168_v1 }
 0x143   :  { %v891_v56 = vpop.f32.mrf.mxu0  ;;  %1130 = vmatmul.mubr.f32.gmra.mxu0 %v181_v48  ;;  %v5229_v48 = vld [vmem:[%s15159_s3 + $0x38] sm:$0xff] }
 0x144   :  { %v892_v57 = vadd.f32 %v10383_v55, %v891_v56  ;;  %v10857_v58 = vsel %vm1437_vm12, %v887_v46, %v1565_v52  ;;  %8168 = vmatprep.mubr.msk.f32.mxu0 %vm321_vm0, %v184_v50  ;;  %5474 = vmatpush1.msra.mxu1 %v5229_v48  ;;  %v5228_v56 = vld [vmem:[%s15159_s3 + $0x30] sm:$0xff] }
 0x145   :  { %v893_v63 = vpop.f32.mrf.mxu0  ;;  %1971 = vrot.lane.b32.xlu1 %v10857_v58, %s9896_s23  ;;  %5475 = vmatprep.subr.mxu1 %v15168_v1 }
 0x146   :  { %v1566_v5 = vmul.f32 0.2, %v892_v57  ;;  %vm1438_vm13 = vcmp.ge.f32.partialorder %v892_v57, 0.0  ;;  %5476 = vmatpush1.msra.mxu1 %v5228_v56 }
 0x147   :  { %v896_v6 = vpop.f32.mrf.mxu0  ;;  %1135 = vmatmul.mubr.f32.gmra.mxu0 %v183_v60  ;;  %v194_v60 = vld [vmem:[%s15156_s0 + $0x4d8] sm:$0xff]  ;;  %5477 = vmatprep.subr.mxu1 %v15168_v1 }
 0x148   :  { %v897_v7 = vadd.f32 %v10383_v55, %v896_v6  ;;  %v10877_v10 = vsel %vm1438_vm13, %v892_v57, %v1566_v5  ;;  %8169 = vmatprep.mubr.msk.f32.mxu0 %vm321_vm0, %v186_v0  ;;  %5478 = vmatpush1.msra.mxu1 %v5227_v61  ;;  %v193_v6 = vld [vmem:[%s15156_s0 + $0x4d0] sm:$0xff]  ;;  %vm4900_vm13 = vcmask 523264  }
 0x149   :  { %v898_v14 = vpop.f32.mrf.mxu0  ;;  %1973 = vrot.lane.b32.xlu1 %v10877_v10, %s9896_s23  ;;  %5479 = vmatprep.subr.mxu1 %v15168_v1  ;;  %6674 = vst.msk [vmem:[#allocation3] sm:$0xff] %vm4900_vm13, %v15168_v1  ;;  %6675 = vst.msk [vmem:[#allocation3 + $0x8] sm:$0xff] %vm4900_vm13, %v15168_v1 }
 0x14a   :  { %v1567_v17 = vmul.f32 0.2, %v897_v7  ;;  %vm1439_vm14 = vcmp.ge.f32.partialorder %v897_v7, 0.0  ;;  %6678 = vst.msk [vmem:[#allocation3 + $0xf0] sm:$0xff] %vm4900_vm13, %v15168_v1  ;;  %6679 = vst.msk [vmem:[#allocation3 + $0xf8] sm:$0xff] %vm4900_vm13, %v15168_v1 }
 0x14b   :  { %v901_v21 = vpop.f32.mrf.mxu0  ;;  %1140 = vmatmul.mubr.f32.gmra.mxu0 %v185_v11  ;;  %6682 = vst.msk [vmem:[#allocation3 + $0xd8] sm:$0xff] %vm4900_vm13, %v15168_v1  ;;  %6683 = vst.msk [vmem:[#allocation3 + $0xe0] sm:$0xff] %vm4900_vm13, %v15168_v1 }
 0x14c   :  { %v902_v22 = vadd.f32 %v10383_v55, %v901_v21  ;;  %v10897_v24 = vsel %vm1439_vm14, %v897_v7, %v1567_v17  ;;  %8170 = vmatprep.mubr.msk.f32.mxu0 %vm321_vm0, %v188_v15  ;;  %v5226_v7 = vld [vmem:[%s15159_s3 + $0x20] sm:$0xff]  ;;  %v5225_v15 = vld [vmem:[%s15159_s3 + $0x18] sm:$0xff]  ;;  %6685 = vst.msk [vmem:[#allocation3 + $0x1c8] sm:$0xff] %vm4900_vm13, %v15168_v1  ;;  %6686 = vst.msk [vmem:[#allocation3 + $0x1d0] sm:$0xff] %vm4900_vm13, %v15168_v1 }
 0x14d   :  { %v903_v29 = vpop.f32.mrf.mxu0  ;;  %1975 = vrot.lane.b32.xlu0 %v10897_v24, %s9896_s23  ;;  %5480 = vmatpush1.msra.mxu1 %v5226_v7 }
 0x14e   :  { %v1568_v32 = vmul.f32 0.2, %v902_v22  ;;  %vm1440_vm15 = vcmp.ge.f32.partialorder %v902_v22, 0.0  ;;  %5481 = vmatprep.subr.mxu1 %v15168_v1  ;;  %v198_v29 = vld [vmem:[%s15156_s0 + $0x4f8] sm:$0xff] }
 0x14f   :  { %v906_v34 = vpop.f32.mrf.mxu0  ;;  %1145 = vmatmul.mubr.f32.gmra.mxu0 %v187_v25  ;;  %5482 = vmatpush1.msra.mxu1 %v5225_v15  ;;  %v5224_v25 = vld [vmem:[%s15159_s3 + $0x10] sm:$0xff] }
 0x150   :  { %v907_v35 = vadd.f32 %v10383_v55, %v906_v34  ;;  %v10917_v39 = vsel %vm1440_vm15, %v902_v22, %v1568_v32  ;;  %8171 = vmatprep.mubr.msk.f32.mxu0 %vm321_vm0, %v190_v31  ;;  %v195_v22 = vld [vmem:[%s15156_s0 + $0x4e0] sm:$0xff]  ;;  %5483 = vmatprep.subr.mxu1 %v15168_v1  ;;  %v5223_v32 = vld [vmem:[%s15159_s3 + $0x8] sm:$0xff] }
 0x151   :  { %v908_v42 = vpop.f32.mrf.mxu0  ;;  %1977 = vrot.lane.b32.xlu0 %v10917_v39, %s9896_s23  ;;  %5484 = vmatpush1.msra.mxu1 %v5224_v25 }
 0x152   :  { %v1569_v46 = vmul.f32 0.2, %v907_v35  ;;  %vm1441_vm1 = vcmp.ge.f32.partialorder %v907_v35, 0.0  ;;  %5485 = vmatprep.subr.mxu1 %v15168_v1 }
 0x153   :  { %v911_v49 = vpop.f32.mrf.mxu0  ;;  %1150 = vmatmul.mubr.f32.gmra.mxu0 %v189_v40  ;;  %5486 = vmatpush1.msra.mxu1 %v5223_v32  ;;  %v197_v40 = vld [vmem:[%s15156_s0 + $0x4f0] sm:$0xff] }
 0x154   :  { %v912_v50 = vadd.f32 %v10383_v55, %v911_v49  ;;  %v10937_v52 = vsel %vm1441_vm1, %v907_v35, %v1569_v46  ;;  %8172 = vmatprep.mubr.msk.f32.mxu0 %vm321_vm0, %v192_v43  ;;  %5487 = vmatprep.subr.mxu1 %v15168_v1  ;;  %v200_v43 = vld [vmem:[%s15156_s0 + $0x508] sm:$0xff]  ;;  %v5253_v49 = vld [vmem:[%s15159_s3 + $0xf8] sm:$0xff] }
 0x155   :  { %v913_v57 = vpop.f32.mrf.mxu0  ;;  %1979 = vrot.lane.b32.xlu1 %v10937_v52, %s9896_s23  ;;  %5488 = vmatpush1.msra.mxu1 %v5222_v41 }
 0x156   :  { %v1570_v63 = vmul.f32 0.2, %v912_v50  ;;  %vm1442_vm2 = vcmp.ge.f32.partialorder %v912_v50, 0.0  ;;  %5489 = vmatprep.subr.mxu1 %v15168_v1  ;;  %v199_v57 = vld [vmem:[%s15156_s0 + $0x500] sm:$0xff] }
 0x157   :  { %v916_v0 = vpop.f32.mrf.mxu0  ;;  %1155 = vmatmul.mubr.f32.gmra.mxu0 %v191_v54  ;;  %5490 = vmatpush2.msra.mxu1 %v5253_v49 }
 0x158   :  { %v917_v3 = vadd.f32 %v10383_v55, %v916_v0  ;;  %v10957_v5 = vsel %vm1442_vm2, %v912_v50, %v1570_v63  ;;  %8173 = vmatprep.mubr.msk.f32.mxu0 %vm321_vm0, %v194_v60  ;;  %5491 = vmatprep.subr.mxu1 %v15168_v1  ;;  %v5252_v60 = vld [vmem:[%s15159_s3 + $0xf0] sm:$0xff]  ;;  %v202_v63 = vld [vmem:[%s15156_s0 + $0x518] sm:$0xff]  ;;  %v5251_v0 = vld [vmem:[%s15159_s3 + $0xe8] sm:$0xff] }
 0x159   :  { %v918_v11 = vpop.f32.mrf.mxu0  ;;  %1981 = vrot.lane.b32.xlu1 %v10957_v5, %s9896_s23  ;;  %5492 = vmatpush2.msra.mxu1 %v5252_v60 }
 0x15a   :  { %v1571_v14 = vmul.f32 0.2, %v917_v3  ;;  %vm1443_vm4 = vcmp.ge.f32.partialorder %v917_v3, 0.0  ;;  %5493 = vmatprep.subr.mxu1 %v15168_v1 }
 0x15b   :  { %v921_v17 = vpop.f32.mrf.mxu0  ;;  %1160 = vmatmul.mubr.f32.gmra.mxu0 %v193_v6  ;;  %5494 = vmatpush2.msra.mxu1 %v5251_v0  ;;  %v5246_v0 = vld [vmem:[%s15159_s3 + $0xc0] sm:$0xff] }
 0x15c   :  { %v922_v19 = vadd.f32 %v10383_v55, %v921_v17  ;;  %v10977_v21 = vsel %vm1443_vm4, %v917_v3, %v1571_v14  ;;  %8174 = vmatprep.mubr.msk.f32.mxu0 %vm321_vm0, %v196_v13  ;;  %5495 = vmatprep.subr.mxu1 %v15168_v1 }
 0x15d   :  { %v923_v26 = vpop.f32.mrf.mxu0  ;;  %1983 = vrot.lane.b32.xlu0 %v10977_v21, %s9896_s23 }
 0x15e   :  { %v1572_v31 = vmul.f32 0.2, %v922_v19  ;;  %vm1444_vm5 = vcmp.ge.f32.partialorder %v922_v19, 0.0  ;;  %v5249_v26 = vld [vmem:[%s15159_s3 + $0xd8] sm:$0xff] }
 0x15f   :  { %v926_v33 = vpop.f32.mrf.mxu0  ;;  %1165 = vmatmul.mubr.f32.gmra.mxu0 %v195_v22  ;;  %v1928_v48 = vpop.permute.xlu0 %1927 }
 0x160   :  { %v927_v34 = vadd.f32 %v10383_v55, %v926_v33  ;;  %v10997_v35 = vsel %vm1444_vm5, %v922_v19, %v1572_v31  ;;  %8175 = vmatprep.mubr.msk.f32.mxu0 %vm321_vm0, %v198_v29  ;;  %v2311_v6 = vadd.f32 %v1928_v48, %v10424_v2  ;;  %v201_v19 = vld [vmem:[%s15156_s0 + $0x510] sm:$0xff]  ;;  %v5250_v2 = vld [vmem:[%s15159_s3 + $0xe0] sm:$0xff] }
 0x161   :  { %v928_v42 = vpop.f32.mrf.mxu0  ;;  %1985 = vrot.lane.b32.xlu0 %v10997_v35, %s9896_s23  ;;  %5496 = vmatpush2.msra.mxu1 %v5250_v2 }
 0x162   :  { %v1573_v46 = vmul.f32 0.2, %v927_v34  ;;  %vm1445_vm6 = vcmp.ge.f32.partialorder %v927_v34, 0.0  ;;  %5497 = vmatprep.subr.mxu1 %v15168_v1 }
 0x163   :  { %v931_v50 = vpop.f32.mrf.mxu0  ;;  %1170 = vmatmul.mubr.f32.gmra.mxu0 %v197_v40  ;;  %v1930_v13 = vpop.permute.xlu0 %1929  ;;  %5498 = vmatpush2.msra.mxu1 %v5249_v26  ;;  %v5243_v26 = vld [vmem:[%s15159_s3 + $0xa8] sm:$0xff] }
 0x164   :  { %v932_v54 = vadd.f32 %v10383_v55, %v931_v50  ;;  %v11017_v56 = vsel %vm1445_vm6, %v927_v34, %v1573_v46  ;;  %8176 = vmatprep.mubr.msk.f32.mxu0 %vm321_vm0, %v200_v43  ;;  %v2312_v29 = vadd.f32 %v1930_v13, %v10601_v9  ;;  %v11062_v34 = vld [vmem:[%s15158_s2] ss:$0 sm:$0xff]  ;;  %5499 = vmatprep.subr.mxu1 %v15168_v1  ;;  %v5248_v43 = vld [vmem:[%s15159_s3 + $0xd0] sm:$0xff]  ;;  %v5247_v50 = vld [vmem:[%s15159_s3 + $0xc8] sm:$0xff] }
 0x165   :  { %v933_v61 = vpop.f32.mrf.mxu0  ;;  %1987 = vrot.lane.b32.xlu1 %v11017_v56, %s9896_s23  ;;  %v203_v9 = vld [vmem:[%s15156_s0 + $0x520] sm:$0xff]  ;;  %5500 = vmatpush2.msra.mxu1 %v5248_v43  ;;  %v5245_v13 = vld [vmem:[%s15159_s3 + $0xb8] sm:$0xff] }
 0x166   :  { %v1574_v3 = vmul.f32 0.2, %v932_v54  ;;  %vm1446_vm7 = vcmp.ge.f32.partialorder %v932_v54, 0.0  ;;  %5501 = vmatprep.subr.mxu1 %v15168_v1 }
 0x167   :  { %v936_v7 = vpop.f32.mrf.mxu0  ;;  %v1932_v11 = vpop.permute.xlu1 %1931  ;;  %1175 = vmatmul.mubr.f32.gmra.mxu0 %v199_v57  ;;  %5502 = vmatpush2.msra.mxu1 %v5247_v50  ;;  %v212_v50 = vld [vmem:[%s15156_s0 + $0x568] sm:$0xff] }
 0x168   :  { %v937_v14 = vadd.f32 %v10383_v55, %v936_v7  ;;  %v2313_v15 = vadd.f32 %v1932_v11, %v10614_v16  ;;  %v11039_v17 = vsel %vm1446_vm7, %v932_v54, %v1574_v3  ;;  %8177 = vmatprep.mubr.msk.f32.mxu0 %vm321_vm0, %v202_v63  ;;  %v204_v55 = vld [vmem:[%s15156_s0 + $0x528] sm:$0xff]  ;;  %v205_v63 = vld [vmem:[%s15156_s0 + $0x530] sm:$0xff]  ;;  %5503 = vmatprep.subr.mxu1 %v15168_v1 }
 0x169   :  { %v938_v22 = vpop.f32.mrf.mxu0  ;;  %1989 = vrot.lane.b32.xlu1 %v11039_v17, %s9896_s23  ;;  %5504 = vmatpush2.msra.mxu1 %v5246_v0 }
 0x16a   :  { %v1575_v16 = vmul.f32 0.2, %v937_v14  ;;  %v2439_v25 = vadd.f32 %v2313_v15, %v2311_v6  ;;  %vm1447_vm8 = vcmp.ge.f32.partialorder %v937_v14, 0.0  ;;  %v208_v6 = vld [vmem:[%s15156_s0 + $0x548] sm:$0xff]  ;;  %5505 = vmatprep.subr.mxu1 %v15168_v1  ;;  %v5244_v15 = vld [vmem:[%s15159_s3 + $0xb0] sm:$0xff]  ;;  %v207_v22 = vld [vmem:[%s15156_s0 + $0x540] sm:$0xff] }
 0x16b   :  { %v941_v31 = vpop.f32.mrf.mxu0  ;;  %v1934_v32 = vpop.permute.xlu1 %1933  ;;  %1180 = vmatmul.mubr.f32.gmra.mxu0 %v201_v19  ;;  %5506 = vmatpush2.msra.mxu1 %v5245_v13 }
 0x16c   :  { %v2503_v33 = vmul.f32 0.25, %v2439_v25  ;;  %v942_v40 = vadd.f32 %v11062_v34, %v941_v31  ;;  %v2314_v41 = vadd.f32 %v1934_v32, %v10626_v23  ;;  %v11066_v42 = vsel %vm1447_vm8, %v937_v14, %v1575_v16  ;;  %8178 = vmatprep.mubr.msk.f32.mxu0 %vm321_vm0, %v204_v55  ;;  %v206_v23 = vld [vmem:[%s15156_s0 + $0x538] sm:$0xff]  ;;  %5507 = vmatprep.subr.mxu1 %v15168_v1 }
 0x16d   :  { %v943_v46 = vpop.f32.mrf.mxu0  ;;  %1991 = vrot.lane.b32.xlu0 %v11066_v42, %s9896_s23  ;;  %v210_v16 = vld [vmem:[%s15156_s0 + $0x558] sm:$0xff]  ;;  %5508 = vmatpush2.msra.mxu1 %v5244_v15  ;;  %v5240_v15 = vld [vmem:[%s15159_s3 + $0x90] sm:$0xff] }
 0x16e   :  { %2659 = vst.msk [vmem:[#allocation2 + $0x28] sm:$0xff] %vm2567_vm3, %v2503_v33  ;;  %v1576_v48 = vmul.f32 0.2, %v942_v40  ;;  %v2440_v49 = vadd.f32 %v2314_v41, %v2312_v29  ;;  %vm1448_vm9 = vcmp.ge.f32.partialorder %v942_v40, 0.0  ;;  %5509 = vmatprep.subr.mxu1 %v15168_v1  ;;  %v2787_v33 = vld [vmem:[#allocation2 + $0x8] sm:$0xff] }
 0x16f   :  { %v946_v54 = vpop.f32.mrf.mxu0  ;;  %1185 = vmatmul.mubr.f32.gmra.mxu0 %v203_v9  ;;  %v1936_v11 = vpop.permute.xlu0 %1935  ;;  %5510 = vmatpush2.msra.mxu1 %v5243_v26  ;;  %v5239_v26 = vld [vmem:[%s15159_s3 + $0x88] sm:$0xff] }
 0x170   :  { %v2504_v57 = vmul.f32 0.25, %v2440_v49  ;;  %v947_v60 = vadd.f32 %v11062_v34, %v946_v54  ;;  %v11087_v61 = vsel %vm1448_vm9, %v942_v40, %v1576_v48  ;;  %8179 = vmatprep.mubr.msk.f32.mxu0 %vm321_vm0, %v206_v23  ;;  %v2315_v29 = vadd.f32 %v1936_v11, %v10638_v30  ;;  %v2788_v40 = vld [vmem:[#allocation2 + $0x10] sm:$0xff]  ;;  %5511 = vmatprep.subr.mxu1 %v15168_v1  ;;  %v5242_v30 = vld [vmem:[%s15159_s3 + $0xa0] sm:$0xff] }
 0x171   :  { %v948_v3 = vpop.f32.mrf.mxu0  ;;  %1993 = vrot.lane.b32.xlu0 %v11087_v61, %s9896_s23  ;;  %v209_v23 = vld [vmem:[%s15156_s0 + $0x550] sm:$0xff]  ;;  %5512 = vmatpush2.msra.mxu1 %v5242_v30 }
 0x172   :  { %2660 = vst.msk [vmem:[#allocation2 + $0x30] sm:$0xff] %vm2567_vm3, %v2504_v57  ;;  %v1577_v7 = vmul.f32 0.2, %v947_v60  ;;  %vm1449_vm10 = vcmp.ge.f32.partialorder %v947_v60, 0.0  ;;  %5513 = vmatprep.subr.mxu1 %v15168_v1 }
 0x173   :  { %v951_v14 = vpop.f32.mrf.mxu0  ;;  %1190 = vmatmul.mubr.f32.gmra.mxu0 %v205_v63  ;;  %v1938_v41 = vpop.permute.xlu0 %1937 }
 0x174   :  { %v952_v19 = vadd.f32 %v11062_v34, %v951_v14  ;;  %v11111_v2 = vsel %vm1449_vm10, %v947_v60, %v1577_v7  ;;  %8180 = vmatprep.mubr.msk.f32.mxu0 %vm321_vm0, %v208_v6  ;;  %v2316_v63 = vadd.f32 %v1938_v41, %v10650_v37  ;;  %v5241_v7 = vld [vmem:[%s15159_s3 + $0x98] sm:$0xff]  ;;  %v211_v37 = vld [vmem:[%s15156_s0 + $0x560] sm:$0xff] }
 0x175   :  { %v953_v55 = vpop.f32.mrf.mxu0  ;;  %1995 = vrot.lane.b32.xlu1 %v11111_v2, %s9896_s23  ;;  %5514 = vmatpush2.msra.mxu1 %v5241_v7 }
 0x176   :  { %v1578_v25 = vmul.f32 0.2, %v952_v19  ;;  %vm1450_vm11 = vcmp.ge.f32.partialorder %v952_v19, 0.0  ;;  %5515 = vmatprep.subr.mxu1 %v15168_v1 }
 0x177   :  { %v956_v31 = vpop.f32.mrf.mxu0  ;;  %v1940_v32 = vpop.permute.xlu1 %1939  ;;  %1195 = vmatmul.mubr.f32.gmra.mxu0 %v207_v22  ;;  %5516 = vmatpush2.msra.mxu1 %v5240_v15 }
 0x178   :  { %v957_v9 = vadd.f32 %v11062_v34, %v956_v31  ;;  %v2317_v43 = vadd.f32 %v1940_v32, %v10662_v44  ;;  %v11130_v46 = vsel %vm1450_vm11, %v952_v19, %v1578_v25  ;;  %8181 = vmatprep.mubr.msk.f32.mxu0 %vm321_vm0, %v210_v16  ;;  %v213_v32 = vld [vmem:[%s15156_s0 + $0x570] sm:$0xff]  ;;  %5517 = vmatprep.subr.mxu1 %v15168_v1 }
 0x179   :  { %v958_v48 = vpop.f32.mrf.mxu0  ;;  %1997 = vrot.lane.b32.xlu1 %v11130_v46, %s9896_s23  ;;  %v11142_v49 = vld [vmem:[#allocation2 + $0x29] sm:$0xff]  ;;  %v11144_v44 = vld [vmem:[#allocation2 + $0x31] sm:$0xff]  ;;  %5518 = vmatpush2.msra.mxu1 %v5239_v26 }
 0x17a   :  { %v2441_v54 = vadd.f32 %v2317_v43, %v2315_v29  ;;  %v8744_v57 = vpack.i.bf16 %v2787_v33, %v11142_v49  ;;  %v8749_v60 = vpack.i.bf16 %v2788_v40, %v11144_v44  ;;  %v1579_v0 = vmul.f32 0.2, %v957_v9  ;;  %v216_v40 = vld [vmem:[%s15156_s0 + $0x588] sm:$0xff]  ;;  %v5238_v43 = vld [vmem:[%s15159_s3 + $0x80] sm:$0xff]  ;;  %5519 = vmatprep.subr.mxu1 %v15168_v1 }
 0x17b   :  { %v961_v3 = vpop.f32.mrf.mxu0  ;;  %v1942_v6 = vpop.permute.xlu1 %1941  ;;  %1200 = vmatmul.mubr.f32.gmra.mxu0 %v209_v23  ;;  %vm1451_vm12 = vcmp.ge.f32.partialorder %v957_v9, 0.0  ;;  %v2851_v48 = vld [vmem:[#allocation2 + $0x9] sm:$0xff]  ;;  %5520 = vmatpush2.msra.mxu1 %v5238_v43 }
 0x17c   :  { %v2505_v11 = vmul.f32 0.25, %v2441_v54  ;;  %v962_v13 = vadd.f32 %v11062_v34, %v961_v3  ;;  %v2318_v14 = vadd.f32 %v1942_v6, %v10674_v51  ;;  %8745 = vrot.lane.b32.xlu0 %v8744_v57, %s9897_s16  ;;  %8182 = vmatprep.mubr.msk.f32.mxu0 %vm321_vm0, %v212_v50  ;;  %v214_v51 = vld [vmem:[%s15156_s0 + $0x578] sm:$0xff]  ;;  %v11172_v25 = vsel %vm1451_vm12, %v957_v9, %v1579_v0  ;;  %v215_v57 = vld [vmem:[%s15156_s0 + $0x580] sm:$0xff] }
 0x17d   :  { %v963_v19 = vpop.f32.mrf.mxu0  ;;  %8750 = vrot.lane.b32.xlu1 %v8749_v60, %s9897_s16  ;;  %v218_v60 = vld [vmem:[%s15156_s0 + $0x598] sm:$0xff]  ;;  %v2915_v0 = vld [vmem:[#allocation2 + $0x27] sm:$0xff] }
 0x17e   :  { %2661 = vst.msk [vmem:[#allocation2 + $0x48] sm:$0xff] %vm2567_vm3, %v2505_v11  ;;  %v2442_v22 = vadd.f32 %v2318_v14, %v2316_v63  ;;  %v1580_v55 = vmul.f32 0.2, %v962_v13  ;;  %vm1452_vm14 = vcmp.ge.f32.partialorder %v962_v13, 0.0 }
 0x17f   :  { %v966_v16 = vpop.f32.mrf.mxu0  ;;  %1205 = vmatmul.mubr.f32.gmra.mxu0 %v211_v37  ;;  %v1944_v9 = vpop.permute.xlu0 %1943  ;;  %v2852_v37 = vld [vmem:[#allocation2 + $0x11] sm:$0xff] }
 0x180   :  { %v2506_v29 = vmul.f32 0.25, %v2442_v22  ;;  %v967_v31 = vadd.f32 %v11062_v34, %v966_v16  ;;  %1999 = vrot.lane.b32.xlu0 %v11172_v25, %s9896_s23  ;;  %8183 = vmatprep.mubr.msk.f32.mxu0 %vm321_vm0, %v214_v51  ;;  %v11208_v23 = vsel %vm1452_vm14, %v962_v13, %v1580_v55  ;;  %v2319_v15 = vadd.f32 %v1944_v9, %v10686_v59  ;;  %v217_v55 = vld [vmem:[%s15156_s0 + $0x590] sm:$0xff]  ;;  %v220_v59 = vld [vmem:[%s15156_s0 + $0x5a8] sm:$0xff] }
 0x181   :  { %v968_v33 = vpop.f32.mrf.mxu0 }
 0x182   :  { %2662 = vst.msk [vmem:[#allocation2 + $0x50] sm:$0xff] %vm2567_vm3, %v2506_v29  ;;  %v1581_v41 = vmul.f32 0.2, %v967_v31  ;;  %vm1453_vm15 = vcmp.ge.f32.partialorder %v967_v31, 0.0 }
 0x183   :  { %v971_v30 = vpop.f32.mrf.mxu0  ;;  %1210 = vmatmul.mubr.f32.gmra.mxu0 %v213_v32  ;;  %v1946_v19 = vpop.permute.xlu0 %1945 }
 0x184   :  { %2001 = vrot.lane.b32.xlu0 %v11208_v23, %s9896_s23  ;;  %v972_v50 = vadd.f32 %v11062_v34, %v971_v30  ;;  %v11214_v54 = vsel %vm1453_vm15, %v967_v31, %v1581_v41  ;;  %8184 = vmatprep.mubr.msk.f32.mxu0 %vm321_vm0, %v216_v40  ;;  %v2320_v31 = vadd.f32 %v1946_v19, %v10698_v4  ;;  %v219_v4 = vld [vmem:[%s15156_s0 + $0x5a0] sm:$0xff] }
 0x185   :  { %2003 = vrot.lane.b32.xlu1 %v11214_v54, %s9896_s23  ;;  %v973_v63 = vpop.f32.mrf.mxu0  ;;  %v11225_v3 = vld [vmem:[#allocation2 + $0x48] sm:$0xff] }
 0x186   :  { %v11227_v6 = vld [vmem:[#allocation2 + $0x47] sm:$0xff]  ;;  %v8759_v7 = vpack.i.bf16 %v2915_v0, %v11225_v3  ;;  %v1582_v51 = vmul.f32 0.2, %v972_v50  ;;  %vm1454_vm1 = vcmp.ge.f32.partialorder %v972_v50, 0.0 }
 0x187   :  { %v8754_v11 = vpack.i.bf16 %v2851_v48, %v11227_v6  ;;  %v1948_v13 = vpop.permute.xlu1 %1947  ;;  %v976_v14 = vpop.f32.mrf.mxu0  ;;  %1215 = vmatmul.mubr.f32.gmra.mxu0 %v215_v57 }
 0x188   :  { %v2321_v22 = vadd.f32 %v1948_v13, %v10710_v12  ;;  %8760 = vrot.lane.b32.xlu0 %v8759_v7, %s9896_s23  ;;  %8185 = vmatprep.mubr.msk.f32.mxu0 %vm321_vm0, %v218_v60  ;;  %v11250_v43 = vsel %vm1454_vm1, %v972_v50, %v1582_v51  ;;  %v2789_v60 = vld [vmem:[#allocation2 + $0x28] sm:$0xff] }
 0x189   :  { %8755 = vrot.lane.b32.xlu1 %v8754_v11, %s9898_s19  ;;  %v978_v16 = vpop.f32.mrf.mxu0  ;;  %v11239_v26 = vld [vmem:[#allocation2 + $0x4f] sm:$0xff]  ;;  %v977_v11 = vadd.f32 %v11062_v34, %v976_v14 }
 0x18a   :  { %v2443_v12 = vadd.f32 %v2321_v22, %v2319_v15  ;;  %v8764_v29 = vpack.i.bf16 %v2852_v37, %v11239_v26  ;;  %v11246_v40 = vld [vmem:[#allocation2 + $0x49] sm:$0xff]  ;;  %v11270_v51 = vld [vmem:[#allocation2 + $0x51] sm:$0xff] }
 0x18b   :  { %v1950_v32 = vpop.permute.xlu1 %1949  ;;  %v981_v33 = vpop.f32.mrf.mxu0  ;;  %1220 = vmatmul.mubr.f32.gmra.mxu0 %v217_v55  ;;  %v11253_v48 = vld [vmem:[#allocation2 + $0x50] sm:$0xff]  ;;  %v8774_v0 = vpack.i.bf16 %v2789_v60, %v11246_v40  ;;  %v224_v16 = vld [vmem:[%s15156_s0 + $0x5c8] sm:$0xff]  ;;  %vm1455_vm5 = vcmp.ge.f32.partialorder %v977_v11, 0.0 }
 0x18c   :  { %v2507_v41 = vmul.f32 0.25, %v2443_v12  ;;  %v2322_v9 = vadd.f32 %v1950_v32, %v10722_v20  ;;  %8765 = vrot.lane.b32.xlu0 %v8764_v29, %s9898_s19  ;;  %v982_v30 = vadd.f32 %v11062_v34, %v981_v33  ;;  %8186 = vmatprep.mubr.msk.f32.mxu0 %vm321_vm0, %v220_v59  ;;  %v222_v20 = vld [vmem:[%s15156_s0 + $0x5b8] sm:$0xff]  ;;  %v2916_v7 = vld [vmem:[#allocation2 + $0x2f] sm:$0xff]  ;;  %v1583_v29 = vmul.f32 0.2, %v977_v11 }
 0x18d   :  { %2005 = vrot.lane.b32.xlu1 %v11250_v43, %s9896_s23  ;;  %v983_v57 = vpop.f32.mrf.mxu0  ;;  %v8769_v13 = vpack.i.bf16 %v2916_v7, %v11253_v48  ;;  %v221_v22 = vld [vmem:[%s15156_s0 + $0x5b0] sm:$0xff] }
 0x18e   :  { %2663 = vst.msk [vmem:[#allocation2 + $0x68] sm:$0xff] %vm2567_vm3, %v2507_v41  ;;  %v2444_v50 = vadd.f32 %v2322_v9, %v2320_v31  ;;  %v1584_v63 = vmul.f32 0.2, %v982_v30  ;;  %vm1456_vm2 = vcmp.ge.f32.partialorder %v982_v30, 0.0  ;;  %v2790_v12 = vld [vmem:[#allocation2 + $0x30] sm:$0xff]  ;;  %v223_v41 = vld [vmem:[%s15156_s0 + $0x5c0] sm:$0xff]  ;;  %v11296_v60 = vsel %vm1455_vm5, %v977_v11, %v1583_v29 }
 0x18f   :  { %v986_v37 = vpop.f32.mrf.mxu0  ;;  %1225 = vmatmul.mubr.f32.gmra.mxu0 %v219_v4  ;;  %v1952_v31 = vpop.permute.xlu0 %1951  ;;  %v8779_v32 = vpack.i.bf16 %v2790_v12, %v11270_v51  ;;  %v226_v4 = vld [vmem:[%s15156_s0 + $0x5d8] sm:$0xff]  ;;  %v225_v11 = vld [vmem:[%s15156_s0 + $0x5d0] sm:$0xff] }
 0x190   :  { %v2508_v15 = vmul.f32 0.25, %v2444_v50  ;;  %8775 = vrot.lane.b32.xlu0 %v8774_v0, %s9897_s16  ;;  %v987_v19 = vadd.f32 %v11062_v34, %v986_v37  ;;  %8187 = vmatprep.mubr.msk.f32.mxu0 %vm321_vm0, %v222_v20  ;;  %v11277_v14 = vsel %vm1456_vm2, %v982_v30, %v1584_v63  ;;  %v2323_v63 = vadd.f32 %v1952_v31, %v10734_v28 }
 0x191   :  { %8770 = vrot.lane.b32.xlu1 %v8769_v13, %s9896_s23  ;;  %v988_v55 = vpop.f32.mrf.mxu0 }
 0x192   :  { %2664 = vst.msk [vmem:[#allocation2 + $0x70] sm:$0xff] %vm2567_vm3, %v2508_v15  ;;  %v1585_v59 = vmul.f32 0.2, %v987_v19  ;;  %vm1457_vm4 = vcmp.ge.f32.partialorder %v987_v19, 0.0 }
 0x193   :  { %v991_v33 = vpop.f32.mrf.mxu0  ;;  %1230 = vmatmul.mubr.f32.gmra.mxu0 %v221_v22  ;;  %v1954_v37 = vpop.permute.xlu0 %1953 }
 0x194   :  { %2009 = vrot.lane.b32.xlu0 %v11277_v14, %s9896_s23  ;;  %8188 = vmatprep.mubr.msk.f32.mxu0 %vm321_vm0, %v224_v16  ;;  %v11291_v9 = vsel %vm1457_vm4, %v987_v19, %v1585_v59  ;;  %v992_v7 = vadd.f32 %v11062_v34, %v991_v33  ;;  %v2324_v12 = vadd.f32 %v1954_v37, %v10746_v36  ;;  %v230_v36 = vld [vmem:[%s15156_s0 + $0x5f8] sm:$0xff] }
 0x195   :  { %8780 = vrot.lane.b32.xlu1 %v8779_v32, %s9897_s16  ;;  %v993_v30 = vpop.f32.mrf.mxu0  ;;  %v11298_v20 = vld [vmem:[#allocation2 + $0x68] sm:$0xff] }
 0x196   :  { %v11305_v13 = vld [vmem:[#allocation2 + $0x67] sm:$0xff]  ;;  %v8789_v19 = vpack.i.bf16 %v11227_v6, %v11298_v20  ;;  %v1586_v31 = vmul.f32 0.2, %v992_v7  ;;  %vm1458_vm6 = vcmp.ge.f32.partialorder %v992_v7, 0.0 }
 0x197   :  { %v1956_v57 = vpop.permute.xlu1 %1955  ;;  %v996_v50 = vpop.f32.mrf.mxu0  ;;  %1235 = vmatmul.mubr.f32.gmra.mxu0 %v223_v41  ;;  %v8784_v55 = vpack.i.bf16 %v11142_v49, %v11305_v13  ;;  %v227_v6 = vld [vmem:[%s15156_s0 + $0x5e0] sm:$0xff] }
 0x198   :  { %v2325_v0 = vadd.f32 %v1956_v57, %v10758_v45  ;;  %2011 = vrot.lane.b32.xlu0 %v11291_v9, %s9896_s23  ;;  %8189 = vmatprep.mubr.msk.f32.mxu0 %vm321_vm0, %v226_v4  ;;  %v228_v45 = vld [vmem:[%s15156_s0 + $0x5e8] sm:$0xff] }
 0x199   :  { %2007 = vrot.lane.b32.xlu1 %v11296_v60, %s9896_s23  ;;  %v998_v28 = vpop.f32.mrf.mxu0  ;;  %v11320_v16 = vld [vmem:[#allocation2 + $0x6f] sm:$0xff] }
 0x19a   :  { %v2445_v15 = vadd.f32 %v2325_v0, %v2323_v63  ;;  %v8794_v41 = vpack.i.bf16 %v11144_v44, %v11320_v16  ;;  %v11337_v30 = vld [vmem:[#allocation2 + $0x69] sm:$0xff]  ;;  %v11340_v63 = vsel %vm1458_vm6, %v992_v7, %v1586_v31 }
 0x19b   :  { %v1958_v22 = vpop.permute.xlu1 %1957  ;;  %v1001_v59 = vpop.f32.mrf.mxu0  ;;  %1240 = vmatmul.mubr.f32.gmra.mxu0 %v225_v11  ;;  %v11342_v0 = vld [vmem:[#allocation2 + $0x70] sm:$0xff]  ;;  %v232_v7 = vld [vmem:[%s15156_s0 + $0x608] sm:$0xff] }
 0x19c   :  { %v2509_v29 = vmul.f32 0.25, %v2445_v15  ;;  %v2326_v32 = vadd.f32 %v1958_v22, %v10770_v53  ;;  %8790 = vrot.lane.b32.xlu0 %v8789_v19, %s9896_s23  ;;  %8190 = vmatprep.mubr.msk.f32.mxu0 %vm321_vm0, %v228_v45  ;;  %v1002_v49 = vadd.f32 %v11062_v34, %v1001_v59  ;;  %v229_v11 = vld [vmem:[%s15156_s0 + $0x5f0] sm:$0xff]  ;;  %v8804_v45 = vpack.i.bf16 %v11225_v3, %v11337_v30 }
 0x19d   :  { %8785 = vrot.lane.b32.xlu1 %v8784_v55, %s9898_s19  ;;  %v1003_v33 = vpop.f32.mrf.mxu0  ;;  %v997_v15 = vadd.f32 %v11062_v34, %v996_v50  ;;  %v8799_v22 = vpack.i.bf16 %v11239_v26, %v11342_v0  ;;  %v11361_v59 = vld [vmem:[#allocation2 + $0x71] sm:$0xff] }
 0x19e   :  { %2665 = vst.msk [vmem:[#allocation2 + $0x88] sm:$0xff] %vm2567_vm3, %v2509_v29  ;;  %v2446_v53 = vadd.f32 %v2326_v32, %v2324_v12  ;;  %v1588_v44 = vmul.f32 0.2, %v1002_v49  ;;  %vm1460_vm7 = vcmp.ge.f32.partialorder %v1002_v49, 0.0  ;;  %v231_v12 = vld [vmem:[%s15156_s0 + $0x600] sm:$0xff]  ;;  %v234_v26 = vld [vmem:[%s15156_s0 + $0x618] sm:$0xff] }
 0x19f   :  { %v1006_v4 = vpop.f32.mrf.mxu0  ;;  %1245 = vmatmul.mubr.f32.gmra.mxu0 %v227_v6  ;;  %v1960_v19 = vpop.permute.xlu0 %1959  ;;  %v1587_v31 = vmul.f32 0.2, %v997_v15  ;;  %v8809_v6 = vpack.i.bf16 %v11253_v48, %v11361_v59  ;;  %vm1459_vm9 = vcmp.ge.f32.partialorder %v997_v15, 0.0 }
 0x1a0   :  { %v2510_v57 = vmul.f32 0.25, %v2446_v53  ;;  %8795 = vrot.lane.b32.xlu0 %v8794_v41, %s9898_s19  ;;  %8191 = vmatprep.mubr.msk.f32.mxu0 %vm321_vm0, %v230_v36  ;;  %v1007_v37 = vadd.f32 %v11062_v34, %v1006_v4  ;;  %v11368_v50 = vsel %vm1460_vm7, %v1002_v49, %v1588_v44  ;;  %v2327_v36 = vadd.f32 %v1960_v19, %v10782_v62  ;;  %v233_v49 = vld [vmem:[%s15156_s0 + $0x610] sm:$0xff]  ;;  %v236_v62 = vld [vmem:[%s15156_s0 + $0x628] sm:$0xff] }
 0x1a1   :  { %2013 = vrot.lane.b32.xlu1 %v11340_v63, %s9896_s23  ;;  %v1008_v28 = vpop.f32.mrf.mxu0 }
 0x1a2   :  { %2666 = vst.msk [vmem:[#allocation2 + $0x90] sm:$0xff] %vm2567_vm3, %v2510_v57  ;;  %v1589_v3 = vmul.f32 0.2, %v1007_v37  ;;  %vm1461_vm8 = vcmp.ge.f32.partialorder %v1007_v37, 0.0 }
 0x1a3   :  { %v1011_v55 = vpop.f32.mrf.mxu0  ;;  %1250 = vmatmul.mubr.f32.gmra.mxu0 %v229_v11  ;;  %v1962_v41 = vpop.permute.xlu0 %1961  ;;  %v11391_v11 = vsel %vm1459_vm9, %v997_v15, %v1587_v31  ;;  %v235_v15 = vld [vmem:[%s15156_s0 + $0x620] sm:$0xff] }
 0x1a4   :  { %8805 = vrot.lane.b32.xlu0 %v8804_v45, %s9897_s16  ;;  %8192 = vmatprep.mubr.msk.f32.mxu0 %vm321_vm0, %v232_v7  ;;  %v11386_v48 = vsel %vm1461_vm8, %v1007_v37, %v1589_v3  ;;  %v2328_v7 = vadd.f32 %v1962_v41, %v10794_v8  ;;  %v1012_v37 = vadd.f32 %v11062_v34, %v1011_v55 }
 0x1a5   :  { %8800 = vrot.lane.b32.xlu1 %v8799_v22, %s9896_s23  ;;  %v1013_v29 = vpop.f32.mrf.mxu0  ;;  %v11393_v44 = vld [vmem:[#allocation2 + $0x88] sm:$0xff] }
 0x1a6   :  { %v11400_v22 = vld [vmem:[#allocation2 + $0x87] sm:$0xff]  ;;  %v8819_v55 = vpack.i.bf16 %v11305_v13, %v11393_v44  ;;  %vm1462_vm10 = vcmp.ge.f32.partialorder %v1012_v37, 0.0 }
 0x1a7   :  { %v1964_v32 = vpop.permute.xlu1 %1963  ;;  %v11375_v33 = vpop.f32.mrf.mxu0  ;;  %1255 = vmatmul.mubr.f32.gmra.mxu0 %v231_v12  ;;  %v8814_v3 = vpack.i.bf16 %v11246_v40, %v11400_v22 }
 0x1a8   :  { %v2329_v53 = vadd.f32 %v1964_v32, %v10806_v18  ;;  %2017 = vrot.lane.b32.xlu0 %v11368_v50, %s9896_s23  ;;  %8193 = vmatprep.mubr.msk.f32.mxu0 %vm321_vm0, %v234_v26  ;;  %v1590_v32 = vmul.f32 0.2, %v1012_v37 }
 0x1a9   :  { %8810 = vrot.lane.b32.xlu1 %v8809_v6, %s9897_s16  ;;  %v1018_v4 = vpop.f32.mrf.mxu0  ;;  %v11416_v29 = vld [vmem:[#allocation2 + $0x8f] sm:$0xff] }
 0x1aa   :  { %v2447_v18 = vadd.f32 %v2329_v53, %v2327_v36  ;;  %v237_v6 = vld [vmem:[%s15156_s0 + $0x630] sm:$0xff]  ;;  %v240_v36 = vld [vmem:[%s15156_s0 + $0x648] sm:$0xff]  ;;  %v8824_v53 = vpack.i.bf16 %v11270_v51, %v11416_v29 }
 0x1ab   :  { %v1966_v57 = vpop.permute.xlu1 %1965  ;;  %v1021_v28 = vpop.f32.mrf.mxu0  ;;  %1260 = vmatmul.mubr.f32.gmra.mxu0 %v233_v49  ;;  %v11431_v41 = vld [vmem:[#allocation2 + $0x89] sm:$0xff] }
 0x1ac   :  { %v2511_v45 = vmul.f32 0.25, %v2447_v18  ;;  %v2330_v19 = vadd.f32 %v1966_v57, %v10818_v27  ;;  %2019 = vrot.lane.b32.xlu0 %v11386_v48, %s9896_s23  ;;  %8194 = vmatprep.mubr.msk.f32.mxu0 %vm321_vm0, %v236_v62  ;;  %v238_v27 = vld [vmem:[%s15156_s0 + $0x638] sm:$0xff]  ;;  %v1022_v13 = vadd.f32 %v11062_v34, %v1021_v28  ;;  %v11434_v62 = vsel %vm1462_vm10, %v1012_v37, %v1590_v32  ;;  %v11436_v18 = vld [vmem:[#allocation2 + $0x90] sm:$0xff]  ;;  %v239_v57 = vld [vmem:[%s15156_s0 + $0x640] sm:$0xff] }
 0x1ad   :  { %2015 = vrot.lane.b32.xlu1 %v11391_v11, %s9896_s23  ;;  %v1023_v8 = vpop.f32.mrf.mxu0 }
 0x1ae   :  { %2667 = vst.msk [vmem:[#allocation2 + $0xa8] sm:$0xff] %vm2567_vm3, %v2511_v45  ;;  %v2448_v12 = vadd.f32 %v2330_v19, %v2328_v7  ;;  %v1592_v51 = vmul.f32 0.2, %v1022_v13  ;;  %v242_v45 = vld [vmem:[%s15156_s0 + $0x658] sm:$0xff]  ;;  %v8834_v19 = vpack.i.bf16 %v11298_v20, %v11431_v41  ;;  %vm1464_vm11 = vcmp.ge.f32.partialorder %v1022_v13, 0.0  ;;  %v241_v20 = vld [vmem:[%s15156_s0 + $0x650] sm:$0xff] }
 0x1af   :  { %v1026_v26 = vpop.f32.mrf.mxu0  ;;  %1265 = vmatmul.mubr.f32.gmra.mxu0 %v235_v15  ;;  %v1968_v49 = vpop.permute.xlu0 %1967  ;;  %v8829_v15 = vpack.i.bf16 %v11320_v16, %v11436_v18 }
 0x1b0   :  { %v2512_v31 = vmul.f32 0.25, %v2448_v12  ;;  %8820 = vrot.lane.b32.xlu0 %v8819_v55, %s9896_s23  ;;  %8195 = vmatprep.mubr.msk.f32.mxu0 %vm321_vm0, %v238_v27  ;;  %v1027_v28 = vadd.f32 %v11062_v34, %v1026_v26  ;;  %v2331_v27 = vadd.f32 %v1968_v49, %v10830_v38  ;;  %v1017_v12 = vadd.f32 %v11062_v34, %v11375_v33 }
 0x1b1   :  { %8815 = vrot.lane.b32.xlu1 %v8814_v3, %s9898_s19  ;;  %v1028_v40 = vpop.f32.mrf.mxu0  ;;  %v11459_v3 = vld [vmem:[#allocation2 + $0x91] sm:$0xff]  ;;  %v11466_v38 = vsel %vm1464_vm11, %v1022_v13, %v1592_v51 }
 0x1b2   :  { %2668 = vst.msk [vmem:[#allocation2 + $0xb0] sm:$0xff] %vm2567_vm3, %v2512_v31  ;;  %v1593_v26 = vmul.f32 0.2, %v1027_v28  ;;  %vm1465_vm12 = vcmp.ge.f32.partialorder %v1027_v28, 0.0  ;;  %vm1463_vm14 = vcmp.ge.f32.partialorder %v1017_v12, 0.0 }
 0x1b3   :  { %v1031_v4 = vpop.f32.mrf.mxu0  ;;  %1270 = vmatmul.mubr.f32.gmra.mxu0 %v237_v6  ;;  %v1970_v16 = vpop.permute.xlu0 %1969  ;;  %v8839_v6 = vpack.i.bf16 %v11342_v0, %v11459_v3 }
 0x1b4   :  { %8825 = vrot.lane.b32.xlu0 %v8824_v53, %s9898_s19  ;;  %8196 = vmatprep.mubr.msk.f32.mxu0 %vm321_vm0, %v240_v36  ;;  %v1591_v36 = vmul.f32 0.2, %v1017_v12  ;;  %v2332_v53 = vadd.f32 %v1970_v16, %v10842_v47  ;;  %v11482_v0 = vsel %vm1465_vm12, %v1027_v28, %v1593_v26  ;;  %v246_v47 = vld [vmem:[%s15156_s0 + $0x678] sm:$0xff]  ;;  %v1032_v28 = vadd.f32 %v11062_v34, %v1031_v4 }
 0x1b5   :  { %2021 = vrot.lane.b32.xlu1 %v11434_v62, %s9896_s23  ;;  %v1033_v7 = vpop.f32.mrf.mxu0 }
 0x1b6   :  { %v11488_v7 = vld [vmem:[#allocation2 + $0xa8] sm:$0xff]  ;;  %vm1466_vm15 = vcmp.ge.f32.partialorder %v1032_v28, 0.0 }
 0x1b7   :  { %v1972_v37 = vpop.permute.xlu1 %1971  ;;  %v11452_v8 = vpop.f32.mrf.mxu0  ;;  %1275 = vmatmul.mubr.f32.gmra.mxu0 %v239_v57  ;;  %v243_v57 = vld [vmem:[%s15156_s0 + $0x660] sm:$0xff]  ;;  %v8849_v4 = vpack.i.bf16 %v11400_v22, %v11488_v7 }
 0x1b8   :  { %v2333_v55 = vadd.f32 %v1972_v37, %v10857_v58  ;;  %8835 = vrot.lane.b32.xlu0 %v8834_v19, %s9897_s16  ;;  %8197 = vmatprep.mubr.msk.f32.mxu0 %vm321_vm0, %v242_v45  ;;  %v244_v58 = vld [vmem:[%s15156_s0 + $0x668] sm:$0xff]  ;;  %v11493_v37 = vsel %vm1463_vm14, %v1017_v12, %v1591_v36  ;;  %vm4965_vm14 = vcmask 785408  }
 0x1b9   :  { %8830 = vrot.lane.b32.xlu1 %v8829_v15, %s9896_s23  ;;  %v1038_v31 = vpop.f32.mrf.mxu0  ;;  %v11495_v15 = vld [vmem:[#allocation2 + $0xa7] sm:$0xff]  ;;  %v11511_v26 = vld [vmem:[#allocation2 + $0xaf] sm:$0xff] }
 0x1ba   :  { %v2449_v33 = vadd.f32 %v2333_v55, %v2331_v27  ;;  %v245_v27 = vld [vmem:[%s15156_s0 + $0x670] sm:$0xff]  ;;  %v8844_v16 = vpack.i.bf16 %v11337_v30, %v11495_v15 }
 0x1bb   :  { %v1974_v32 = vpop.permute.xlu1 %1973  ;;  %v1041_v40 = vpop.f32.mrf.mxu0  ;;  %1280 = vmatmul.mubr.f32.gmra.mxu0 %v241_v20  ;;  %v248_v20 = vld [vmem:[%s15156_s0 + $0x688] sm:$0xff] }
 0x1bc   :  { %v2513_v49 = vmul.f32 0.25, %v2449_v33  ;;  %v2334_v13 = vadd.f32 %v1974_v32, %v10877_v10  ;;  %2025 = vrot.lane.b32.xlu0 %v11466_v38, %s9896_s23  ;;  %8198 = vmatprep.mubr.msk.f32.mxu0 %vm321_vm0, %v244_v58  ;;  %v1594_v58 = vmul.f32 0.2, %v1032_v28  ;;  %v247_v33 = vld [vmem:[%s15156_s0 + $0x680] sm:$0xff]  ;;  %v1042_v22 = vadd.f32 %v11062_v34, %v1041_v40  ;;  %v250_v32 = vld [vmem:[%s15156_s0 + $0x698] sm:$0xff] }
 0x1bd   :  { %8840 = vrot.lane.b32.xlu1 %v8839_v6, %s9897_s16  ;;  %v1043_v51 = vpop.f32.mrf.mxu0  ;;  %v8854_v6 = vpack.i.bf16 %v11361_v59, %v11511_v26  ;;  %v249_v59 = vld [vmem:[%s15156_s0 + $0x690] sm:$0xff] }
 0x1be   :  { %2669 = vst.msk [vmem:[#allocation2 + $0xc8] sm:$0xff] %vm2567_vm3, %v2513_v49  ;;  %v2450_v10 = vadd.f32 %v2334_v13, %v2332_v53  ;;  %v11527_v53 = vld [vmem:[#allocation2 + $0xa9] sm:$0xff]  ;;  %v11534_v40 = vsel %vm1466_vm15, %v1032_v28, %v1594_v58  ;;  %vm1468_vm1 = vcmp.ge.f32.partialorder %v1042_v22, 0.0 }
 0x1bf   :  { %v1046_v45 = vpop.f32.mrf.mxu0  ;;  %1285 = vmatmul.mubr.f32.gmra.mxu0 %v243_v57  ;;  %v1976_v12 = vpop.permute.xlu0 %1975  ;;  %v11536_v51 = vld [vmem:[#allocation2 + $0xb0] sm:$0xff] }
 0x1c0   :  { %v2514_v19 = vmul.f32 0.25, %v2450_v10  ;;  %2027 = vrot.lane.b32.xlu0 %v11482_v0, %s9896_s23  ;;  %8199 = vmatprep.mubr.msk.f32.mxu0 %vm321_vm0, %v246_v47  ;;  %v2335_v13 = vadd.f32 %v1976_v12, %v10897_v24  ;;  %v1596_v10 = vmul.f32 0.2, %v1042_v22  ;;  %v1047_v24 = vadd.f32 %v11062_v34, %v1046_v45 }
 0x1c1   :  { %2023 = vrot.lane.b32.xlu1 %v11493_v37, %s9896_s23  ;;  %v1048_v55 = vpop.f32.mrf.mxu0  ;;  %v1037_v45 = vadd.f32 %v11062_v34, %v11452_v8 }
 0x1c2   :  { %2670 = vst.msk [vmem:[#allocation2 + $0xd0] sm:$0xff] %vm2567_vm3, %v2514_v19  ;;  %v252_v19 = vld [vmem:[%s15156_s0 + $0x6a8] sm:$0xff]  ;;  %vm1469_vm2 = vcmp.ge.f32.partialorder %v1047_v24, 0.0 }
 0x1c3   :  { %v11513_v31 = vpop.f32.mrf.mxu0  ;;  %1290 = vmatmul.mubr.f32.gmra.mxu0 %v245_v27  ;;  %v1978_v47 = vpop.permute.xlu0 %1977  ;;  %v8864_v27 = vpack.i.bf16 %v11393_v44, %v11527_v53  ;;  %v251_v44 = vld [vmem:[%s15156_s0 + $0x6a0] sm:$0xff]  ;;  %vm1467_vm4 = vcmp.ge.f32.partialorder %v1037_v45, 0.0 }
 0x1c4   :  { %8850 = vrot.lane.b32.xlu0 %v8849_v4, %s9896_s23  ;;  %8200 = vmatprep.mubr.msk.f32.mxu0 %vm321_vm0, %v248_v20  ;;  %v8859_v20 = vpack.i.bf16 %v11416_v29, %v11536_v51  ;;  %v2336_v12 = vadd.f32 %v1978_v47, %v10917_v39  ;;  %v1597_v29 = vmul.f32 0.2, %v1047_v24  ;;  %v11564_v39 = vsel %vm1468_vm1, %v1042_v22, %v1596_v10  ;;  %v253_v22 = vld [vmem:[%s15156_s0 + $0x6b0] sm:$0xff] }
 0x1c5   :  { %8845 = vrot.lane.b32.xlu1 %v8844_v16, %s9898_s19  ;;  %v1053_v30 = vpop.f32.mrf.mxu0  ;;  %v11585_v10 = vld [vmem:[#allocation2 + $0xc8] sm:$0xff] }
 0x1c7   :  { %v1980_v36 = vpop.permute.xlu1 %1979  ;;  %v11529_v49 = vpop.f32.mrf.mxu0  ;;  %1295 = vmatmul.mubr.f32.gmra.mxu0 %v247_v33  ;;  %v11557_v33 = vld [vmem:[#allocation2 + $0xb1] sm:$0xff] }
 0x1c8   :  { %v2337_v57 = vadd.f32 %v1980_v36, %v10937_v52  ;;  %8855 = vrot.lane.b32.xlu0 %v8854_v6, %s9898_s19  ;;  %8201 = vmatprep.mubr.msk.f32.mxu0 %vm321_vm0, %v250_v32  ;;  %v8869_v32 = vpack.i.bf16 %v11436_v18, %v11557_v33  ;;  %v1595_v36 = vmul.f32 0.2, %v1037_v45  ;;  %v256_v18 = vld [vmem:[%s15156_s0 + $0x6c8] sm:$0xff] }
 0x1c9   :  { %2029 = vrot.lane.b32.xlu1 %v11534_v40, %s9896_s23  ;;  %v1058_v52 = vpop.f32.mrf.mxu0 }
 0x1ca   :  { %v2451_v28 = vadd.f32 %v2337_v57, %v2335_v13  ;;  %v11579_v57 = vsel %vm1469_vm2, %v1047_v24, %v1597_v29  ;;  %v1052_v24 = vadd.f32 %v11062_v34, %v11513_v31  ;;  %v8879_v31 = vpack.i.bf16 %v11495_v15, %v11585_v10  ;;  %v257_v15 = vld [vmem:[%s15156_s0 + $0x6d0] sm:$0xff] }
 0x1cb   :  { %v1982_v55 = vpop.permute.xlu1 %1981  ;;  %v1061_v4 = vpop.f32.mrf.mxu0  ;;  %1300 = vmatmul.mubr.f32.gmra.mxu0 %v249_v59 }
 0x1cc   :  { %v2515_v16 = vmul.f32 0.25, %v2451_v28  ;;  %v2338_v58 = vadd.f32 %v1982_v55, %v10957_v5  ;;  %8865 = vrot.lane.b32.xlu0 %v8864_v27, %s9897_s16  ;;  %8202 = vmatprep.mubr.msk.f32.mxu0 %vm321_vm0, %v252_v19  ;;  %v254_v5 = vld [vmem:[%s15156_s0 + $0x6b8] sm:$0xff]  ;;  %v11593_v19 = vsel %vm1467_vm4, %v1037_v45, %v1595_v36  ;;  %v11595_v28 = vld [vmem:[#allocation2 + $0xc7] sm:$0xff]  ;;  %v1598_v29 = vmul.f32 0.2, %v1052_v24 }
 0x1cd   :  { %8860 = vrot.lane.b32.xlu1 %v8859_v20, %s9896_s23  ;;  %v1063_v30 = vpop.f32.mrf.mxu0  ;;  %v255_v27 = vld [vmem:[%s15156_s0 + $0x6c0] sm:$0xff]  ;;  %v258_v20 = vld [vmem:[%s15156_s0 + $0x6d8] sm:$0xff]  ;;  %v8874_v45 = vpack.i.bf16 %v11431_v41, %v11595_v28  ;;  %vm1470_vm5 = vcmp.ge.f32.partialorder %v1052_v24, 0.0  ;;  %v1062_v41 = vadd.f32 %v11062_v34, %v1061_v4 }
 0x1ce   :  { %2671 = vst.msk [vmem:[#allocation2 + $0xe8] sm:$0xff] %vm2567_vm3, %v2515_v16  ;;  %v2452_v8 = vadd.f32 %v2338_v58, %v2336_v12  ;;  %v11610_v16 = vld [vmem:[#allocation2 + $0xcf] sm:$0xff]  ;;  %v11635_v4 = vsel %vm1470_vm5, %v1052_v24, %v1598_v29 }
 0x1cf   :  { %v1066_v6 = vpop.f32.mrf.mxu0  ;;  %1305 = vmatmul.mubr.f32.gmra.mxu0 %v251_v44  ;;  %v1984_v47 = vpop.permute.xlu0 %1983  ;;  %vm1472_vm6 = vcmp.ge.f32.partialorder %v1062_v41, 0.0  ;;  %v11664_v29 = vld [vmem:[#allocation2 + $0xd1] sm:$0xff] }
 0x1d0   :  { %v2516_v13 = vmul.f32 0.25, %v2452_v8  ;;  %2033 = vrot.lane.b32.xlu0 %v11564_v39, %s9896_s23  ;;  %8203 = vmatprep.mubr.msk.f32.mxu0 %vm321_vm0, %v254_v5  ;;  %v2339_v44 = vadd.f32 %v1984_v47, %v10977_v21  ;;  %v260_v21 = vld [vmem:[%s15156_s0 + $0x6e8] sm:$0xff]  ;;  %v11637_v47 = vld [vmem:[#allocation2 + $0xd0] sm:$0xff] }
 0x1d1   :  { %8870 = vrot.lane.b32.xlu1 %v8869_v32, %s9897_s16  ;;  %v1068_v59 = vpop.f32.mrf.mxu0  ;;  %v8884_v32 = vpack.i.bf16 %v11459_v3, %v11610_v16  ;;  %v259_v3 = vld [vmem:[%s15156_s0 + $0x6e0] sm:$0xff] }
 0x1d2   :  { %2672 = vst.msk [vmem:[#allocation2 + $0xf0] sm:$0xff] %vm2567_vm3, %v2516_v13  ;;  %v11628_v13 = vld [vmem:[#allocation2 + $0xc9] sm:$0xff] }
 0x1d3   :  { %v11587_v52 = vpop.f32.mrf.mxu0  ;;  %1310 = vmatmul.mubr.f32.gmra.mxu0 %v253_v22  ;;  %v1986_v5 = vpop.permute.xlu0 %1985 }
 0x1d4   :  { %2035 = vrot.lane.b32.xlu0 %v11579_v57, %s9896_s23  ;;  %8204 = vmatprep.mubr.msk.f32.mxu0 %vm321_vm0, %v256_v18  ;;  %v2340_v59 = vadd.f32 %v1986_v5, %v10997_v35  ;;  %v11648_v35 = vld [vmem:[%s15158_s2] ss:$0 sm:$0xff] }
 0x1d5   :  { %2031 = vrot.lane.b32.xlu1 %v11593_v19, %s9896_s23  ;;  %v1073_v55 = vpop.f32.mrf.mxu0 }
 0x1d6   :  { %v262_v55 = vld [vmem:[%s15156_s0 + $0x6f8] sm:$0xff] }
 0x1d7   :  { %v1988_v12 = vpop.permute.xlu1 %1987  ;;  %v11612_v58 = vpop.f32.mrf.mxu0  ;;  %1315 = vmatmul.mubr.f32.gmra.mxu0 %v255_v27  ;;  %v1600_v27 = vmul.f32 0.2, %v1062_v41 }
 0x1d8   :  { %v2341_v30 = vadd.f32 %v1988_v12, %v11017_v56  ;;  %8880 = vrot.lane.b32.xlu0 %v8879_v31, %s9896_s23  ;;  %8205 = vmatprep.mubr.msk.f32.mxu0 %vm321_vm0, %v258_v20  ;;  %v8894_v31 = vpack.i.bf16 %v11488_v7, %v11628_v13  ;;  %v1057_v12 = vadd.f32 %v11648_v35, %v11529_v49  ;;  %v261_v7 = vld [vmem:[%s15156_s0 + $0x6f0] sm:$0xff] }
 0x1d9   :  { %8875 = vrot.lane.b32.xlu1 %v8874_v45, %s9898_s19  ;;  %v1078_v8 = vpop.f32.mrf.mxu0  ;;  %v8889_v45 = vpack.i.bf16 %v11511_v26, %v11637_v47 }
 0x1da   :  { %v2453_v56 = vadd.f32 %v2341_v30, %v2339_v44  ;;  %v11671_v30 = vsel %vm1472_vm6, %v1062_v41, %v1600_v27  ;;  %v1599_v5 = vmul.f32 0.2, %v1057_v12  ;;  %vm1471_vm8 = vcmp.ge.f32.partialorder %v1057_v12, 0.0  ;;  %v263_v41 = vld [vmem:[%s15156_s0 + $0x700] sm:$0xff] }
 0x1db   :  { %v1990_v36 = vpop.permute.xlu1 %1989  ;;  %v11630_v22 = vpop.f32.mrf.mxu0  ;;  %1320 = vmatmul.mubr.f32.gmra.mxu0 %v257_v15  ;;  %v264_v15 = vld [vmem:[%s15156_s0 + $0x708] sm:$0xff] }
 0x1dc   :  { %v2517_v18 = vmul.f32 0.25, %v2453_v56  ;;  %v2342_v34 = vadd.f32 %v1990_v36, %v11039_v17  ;;  %8885 = vrot.lane.b32.xlu0 %v8884_v32, %s9898_s19  ;;  %8206 = vmatprep.mubr.msk.f32.mxu0 %vm321_vm0, %v260_v21  ;;  %v1067_v17 = vadd.f32 %v11648_v35, %v1066_v6  ;;  %v8899_v21 = vpack.i.bf16 %v11536_v51, %v11664_v29  ;;  %v266_v51 = vld [vmem:[%s15156_s0 + $0x718] sm:$0xff] }
 0x1dd   :  { %2037 = vrot.lane.b32.xlu1 %v11635_v4, %s9896_s23  ;;  %v1083_v24 = vpop.f32.mrf.mxu0 }
 0x1de   :  { %2673 = vst.msk [vmem:[#allocation2 + $0x108] sm:$0xff] %vm2567_vm3, %v2517_v18  ;;  %v2454_v20 = vadd.f32 %v2342_v34, %v2340_v59  ;;  %v1601_v49 = vmul.f32 0.2, %v1067_v17  ;;  %vm1473_vm7 = vcmp.ge.f32.partialorder %v1067_v17, 0.0  ;;  %v11693_v18 = vsel %vm1471_vm8, %v1057_v12, %v1599_v5  ;;  %v11695_v34 = vld [vmem:[#allocation2 + $0xe8] sm:$0xff] }
 0x1df   :  { %v11661_v44 = vpop.f32.mrf.mxu0  ;;  %1325 = vmatmul.mubr.f32.gmra.mxu0 %v259_v3  ;;  %v1992_v8 = vpop.permute.xlu0 %1991 }
 0x1e0   :  { %v2518_v6 = vmul.f32 0.25, %v2454_v20  ;;  %8895 = vrot.lane.b32.xlu0 %v8894_v31, %s9897_s16  ;;  %8207 = vmatprep.mubr.msk.f32.mxu0 %vm321_vm0, %v262_v55  ;;  %v11688_v32 = vsel %vm1473_vm7, %v1067_v17, %v1601_v49  ;;  %v2343_v27 = vadd.f32 %v1992_v8, %v11066_v42  ;;  %v1072_v17 = vadd.f32 %v11648_v35, %v11587_v52  ;;  %v11705_v55 = vld [vmem:[#allocation2 + $0xe7] sm:$0xff]  ;;  %v265_v20 = vld [vmem:[%s15156_s0 + $0x710] sm:$0xff] }
 0x1e1   :  { %8890 = vrot.lane.b32.xlu1 %v8889_v45, %s9896_s23  ;;  %v1088_v26 = vpop.f32.mrf.mxu0  ;;  %v8909_v52 = vpack.i.bf16 %v11595_v28, %v11695_v34  ;;  %v267_v28 = vld [vmem:[%s15156_s0 + $0x720] sm:$0xff] }
 0x1e2   :  { %2674 = vst.msk [vmem:[#allocation2 + $0x110] sm:$0xff] %vm2567_vm3, %v2518_v6  ;;  %v8904_v6 = vpack.i.bf16 %v11527_v53, %v11705_v55  ;;  %v1602_v5 = vmul.f32 0.2, %v1072_v17  ;;  %vm1474_vm9 = vcmp.ge.f32.partialorder %v1072_v17, 0.0  ;;  %v1082_v53 = vadd.f32 %v11648_v35, %v11630_v22 }
 0x1e3   :  { %v11679_v56 = vpop.f32.mrf.mxu0  ;;  %1330 = vmatmul.mubr.f32.gmra.mxu0 %v261_v7  ;;  %v1994_v31 = vpop.permute.xlu0 %1993  ;;  %v11720_v7 = vld [vmem:[#allocation2 + $0xef] sm:$0xff] }
 0x1e4   :  { %2041 = vrot.lane.b32.xlu0 %v11671_v30, %s9896_s23  ;;  %8208 = vmatprep.mubr.msk.f32.mxu0 %vm321_vm0, %v264_v15  ;;  %v2344_v26 = vadd.f32 %v1994_v31, %v11087_v61  ;;  %v270_v61 = vld [vmem:[%s15156_s0 + $0x738] sm:$0xff]  ;;  %v11747_v22 = vsel %vm1474_vm9, %v1072_v17, %v1602_v5  ;;  %v1087_v31 = vadd.f32 %v11648_v35, %v11661_v44  ;;  %v272_v17 = vld [vmem:[%s15156_s0 + $0x748] sm:$0xff]  ;;  %vm1476_vm10 = vcmp.ge.f32.partialorder %v1082_v53, 0.0 }
 0x1e5   :  { %8900 = vrot.lane.b32.xlu1 %v8899_v21, %s9897_s16  ;;  %v1093_v36 = vpop.f32.mrf.mxu0  ;;  %v1077_v44 = vadd.f32 %v11648_v35, %v11612_v58  ;;  %v274_v58 = vld [vmem:[%s15156_s0 + $0x758] sm:$0xff] }
 0x1e6   :  { %v8914_v36 = vpack.i.bf16 %v11557_v33, %v11720_v7  ;;  %v1604_v33 = vmul.f32 0.2, %v1082_v53  ;;  %vm1477_vm11 = vcmp.ge.f32.partialorder %v1087_v31, 0.0 }
 0x1e7   :  { %v1996_v59 = vpop.permute.xlu1 %1995  ;;  %v11697_v3 = vpop.f32.mrf.mxu0  ;;  %1335 = vmatmul.mubr.f32.gmra.mxu0 %v263_v41  ;;  %vm1475_vm12 = vcmp.ge.f32.partialorder %v1077_v44, 0.0 }
 0x1e8   :  { %v2345_v24 = vadd.f32 %v1996_v59, %v11111_v2  ;;  %2043 = vrot.lane.b32.xlu0 %v11688_v32, %s9896_s23  ;;  %8209 = vmatprep.mubr.msk.f32.mxu0 %vm321_vm0, %v266_v51  ;;  %v268_v2 = vld [vmem:[%s15156_s0 + $0x728] sm:$0xff] }
 0x1e9   :  { %2039 = vrot.lane.b32.xlu1 %v11693_v18, %s9896_s23  ;;  %v1098_v42 = vpop.f32.mrf.mxu0  ;;  %v11742_v51 = vld [vmem:[#allocation2 + $0xe9] sm:$0xff] }
 0x1ea   :  { %v2455_v12 = vadd.f32 %v2345_v24, %v2343_v27  ;;  %v11749_v24 = vld [vmem:[#allocation2 + $0xf0] sm:$0xff] }
 0x1eb   :  { %v1998_v45 = vpop.permute.xlu1 %1997  ;;  %v11722_v49 = vpop.f32.mrf.mxu0  ;;  %1340 = vmatmul.mubr.f32.gmra.mxu0 %v265_v20  ;;  %v269_v20 = vld [vmem:[%s15156_s0 + $0x730] sm:$0xff] }
 0x1ec   :  { %v2519_v15 = vmul.f32 0.25, %v2455_v12  ;;  %v2346_v8 = vadd.f32 %v1998_v45, %v11130_v46  ;;  %8910 = vrot.lane.b32.xlu0 %v8909_v52, %s9896_s23  ;;  %8210 = vmatprep.mubr.msk.f32.mxu0 %vm321_vm0, %v268_v2  ;;  %v8924_v12 = vpack.i.bf16 %v11585_v10, %v11742_v51  ;;  %v8919_v45 = vpack.i.bf16 %v11610_v16, %v11749_v24  ;;  %v271_v10 = vld [vmem:[%s15156_s0 + $0x740] sm:$0xff] }
 0x1ed   :  { %8905 = vrot.lane.b32.xlu1 %v8904_v6, %s9898_s19  ;;  %v1103_v21 = vpop.f32.mrf.mxu0  ;;  %v11781_v16 = vsel %vm1476_vm10, %v1082_v53, %v1604_v33  ;;  %v276_v33 = vld [vmem:[%s15156_s0 + $0x768] sm:$0xff] }
 0x1ee   :  { %2675 = vst.msk [vmem:[#allocation2 + $0x128] sm:$0xff] %vm2567_vm3, %v2519_v15  ;;  %v2456_v46 = vadd.f32 %v2346_v8, %v2344_v26  ;;  %v11738_v41 = vpop.permute.xlu0 %8745  ;;  %v11774_v26 = vld [vmem:[#allocation2 + $0xf1] sm:$0xff]  ;;  %v1605_v15 = vmul.f32 0.2, %v1087_v31  ;;  %15188 = vst [vmem:[#allocation8_spill] sm:$0xff] %v11781_v16 }
 0x1ef   :  { %v11744_v59 = vpop.f32.mrf.mxu0  ;;  %1345 = vmatmul.mubr.f32.gmra.mxu0 %v267_v28  ;;  %v11765_v52 = vpop.permute.xlu1 %8750  ;;  %v8929_v21 = vpack.i.bf16 %v11637_v47, %v11774_v26  ;;  %v8748_v47 = vunpack.i.h.bf16 %v11738_v41 }
 0x1f0   :  { %v2520_v27 = vmul.f32 0.25, %v2456_v46  ;;  %8915 = vrot.lane.b32.xlu0 %v8914_v36, %s9898_s19  ;;  %8211 = vmatprep.mubr.msk.f32.mxu0 %vm321_vm0, %v270_v61  ;;  %v1603_v46 = vmul.f32 0.2, %v1077_v44 }
 0x1f1   :  { %2045 = vrot.lane.b32.xlu1 %v11747_v22, %s9896_s23  ;;  %v1108_v42 = vpop.f32.mrf.mxu0 }
 0x1f2   :  { %2676 = vst.msk [vmem:[#allocation2 + $0x130] sm:$0xff] %vm2567_vm3, %v2520_v27  ;;  %v2000_v2 = vpop.permute.xlu0 %1999  ;;  %v273_v27 = vld [vmem:[%s15156_s0 + $0x750] sm:$0xff] }
 0x1f3   :  { %v11769_v6 = vpop.f32.mrf.mxu0  ;;  %1350 = vmatmul.mubr.f32.gmra.mxu0 %v269_v20  ;;  %v2347_v36 = vadd.f32 %v2000_v2, %v11172_v25  ;;  %v8747_v20 = vunpack.i.l.bf16 %v11738_v41  ;;  %v11802_v25 = vsel %vm1477_vm11, %v1087_v31, %v1605_v15  ;;  %v1092_v2 = vadd.f32 %v11648_v35, %v11679_v56  ;;  %v275_v56 = vld [vmem:[%s15156_s0 + $0x760] sm:$0xff] }
 0x1f4   :  { %8925 = vrot.lane.b32.xlu0 %v8924_v12, %s9897_s16  ;;  %8212 = vmatprep.mubr.msk.f32.mxu0 %vm321_vm0, %v272_v17  ;;  %v2723_v12 = vld [vmem:[#allocation2 + $0x7] sm:$0xff] }
 0x1f5   :  { %8920 = vrot.lane.b32.xlu1 %v8919_v45, %s9896_s23  ;;  %v1113_v5 = vpop.f32.mrf.mxu0  ;;  %vm1478_vm15 = vcmp.ge.f32.partialorder %v1092_v2, 0.0 }
 0x1f6   :  { %v2002_v8 = vpop.permute.xlu0 %2001 }
 0x1f7   :  { %v2004_v28 = vpop.permute.xlu1 %2003  ;;  %v11788_v61 = vpop.f32.mrf.mxu0  ;;  %1355 = vmatmul.mubr.f32.gmra.mxu0 %v271_v10  ;;  %v11809_v10 = vld [vmem:[#allocation2 + $0x108] sm:$0xff] }
 0x1f8   :  { %v2349_v53 = vadd.f32 %v2004_v28, %v11214_v54  ;;  %2049 = vrot.lane.b32.xlu0 %v11781_v16, %s9896_s23  ;;  %8213 = vmatprep.mubr.msk.f32.mxu0 %vm321_vm0, %v274_v58  ;;  %v11816_v58 = vsel %vm1475_vm12, %v1077_v44, %v1603_v46  ;;  %v2979_v28 = vld [vmem:[#allocation2 + $0x28] sm:$0xff]  ;;  %v1606_v46 = vmul.f32 0.2, %v1092_v2 }
 0x1f9   :  { %8930 = vrot.lane.b32.xlu1 %v8929_v21, %s9897_s16  ;;  %v1118_v54 = vpop.f32.mrf.mxu0  ;;  %15189 = vst [vmem:[#allocation9_spill] sm:$0xff] %v11816_v58  ;;  %v11818_v21 = vld [vmem:[#allocation2 + $0x107] sm:$0xff] }
 0x1fa   :  { %v2457_v42 = vadd.f32 %v2349_v53, %v2347_v36  ;;  %v8761_v17 = vpop.permute.xlu0 %8760  ;;  %v4836_v54 = vsel %vm2567_vm3, %v2723_v12, %v8748_v47  ;;  %v8934_v47 = vpack.i.bf16 %v11628_v13, %v11818_v21  ;;  %v11838_v12 = vld [vmem:[#allocation2 + $0x10f] sm:$0xff] }
 0x1fb   :  { %v8756_v45 = vpop.permute.xlu1 %8755  ;;  %v11811_v41 = vpop.f32.mrf.mxu0  ;;  %1360 = vmatmul.mubr.f32.gmra.mxu0 %v273_v27  ;;  %v8763_v36 = vunpack.i.h.bf16 %v8761_v17  ;;  %v8762_v53 = vunpack.i.l.bf16 %v8761_v17  ;;  %v5030_v27 = vsel %vm2567_vm3, %v2979_v28, %v8747_v20  ;;  %v8752_v17 = vunpack.i.l.bf16 %v11765_v52 }
 0x1fc   :  { %v2521_v31 = vmul.f32 0.25, %v2457_v42  ;;  %v8758_v15 = vunpack.i.h.bf16 %v8756_v45  ;;  %v8757_v5 = vunpack.i.l.bf16 %v8756_v45  ;;  %2051 = vrot.lane.b32.xlu0 %v11802_v25, %s9896_s23  ;;  %8214 = vmatprep.mubr.msk.f32.mxu0 %vm321_vm0, %v276_v33  ;;  %v8939_v33 = vpack.i.bf16 %v11705_v55, %v11809_v10  ;;  %v278_v55 = vld [vmem:[%s15156_s0 + $0x778] sm:$0xff] }
 0x1fd   :  { %2047 = vrot.lane.b32.xlu1 %v11816_v58, %s9896_s23  ;;  %v1123_v44 = vpop.f32.mrf.mxu0 }
 0x1fe   :  { %2677 = vst.msk [vmem:[#allocation2 + $0x148] sm:$0xff] %vm2567_vm3, %v2521_v31  ;;  %v8766_v42 = vpop.permute.xlu0 %8765  ;;  %v5094_v45 = vsel %vm4900_vm13, %v5030_v27, %v8757_v5  ;;  %v4901_v1 = vsel %vm4900_vm13, %v4836_v54, %v8758_v15  ;;  %v8753_v15 = vunpack.i.h.bf16 %v11765_v52  ;;  %v2348_v5 = vadd.f32 %v2002_v8, %v11208_v23  ;;  %v11867_v44 = vld [vmem:[#allocation2 + $0x109] sm:$0xff] }
 0x1ff   :  { %v2006_v16 = vpop.permute.xlu1 %2005  ;;  %v5158_v58 = vsel %vm4965_vm14, %v5094_v45, %v8762_v53  ;;  %v4966_v20 = vsel %vm4965_vm14, %v4901_v1, %v8763_v36  ;;  %v11840_v31 = vpop.f32.mrf.mxu0  ;;  %1365 = vmatmul.mubr.f32.gmra.mxu0 %v275_v56  ;;  %v277_v1 = vld [vmem:[%s15156_s0 + $0x770] sm:$0xff]  ;;  %v8768_v13 = vunpack.i.h.bf16 %v8766_v42  ;;  %v8767_v56 = vunpack.i.l.bf16 %v8766_v42 }
 0x200   :  { %v2350_v28 = vadd.f32 %v2006_v16, %v11250_v43  ;;  %8940 = vrot.lane.b32.xlu0 %v8939_v33, %s9896_s23  ;;  %5521 = vmatprep.mubr.f32.mxu1 %v5158_v58  ;;  %v1097_v52 = vadd.f32 %v11648_v35, %v11697_v3  ;;  %v2724_v36 = vld [vmem:[#allocation2 + $0xf] sm:$0xff]  ;;  %v8944_v58 = vpack.i.bf16 %v11664_v29, %v11838_v12 }
 0x201   :  { %8935 = vrot.lane.b32.xlu1 %v8934_v47, %s9898_s19  ;;  %5522 = vmatmul.mubr.f32.vlgmr.msra.gmra.mxu1 %v4966_v20  ;;  %v1128_v23 = vpop.f32.mrf.mxu0  ;;  %v280_v43 = vld [vmem:[%s15156_s0 + $0x788] sm:$0xff]  ;;  %v2980_v53 = vld [vmem:[#allocation2 + $0x30] sm:$0xff]  ;;  %v11864_v54 = vsel %vm1478_vm15, %v1092_v2, %v1606_v46  ;;  %v4837_v29 = vsel %vm2567_vm3, %v2724_v36, %v8753_v15  ;;  %v279_v2 = vld [vmem:[%s15156_s0 + $0x780] sm:$0xff]  ;;  %v8954_v36 = vpack.i.bf16 %v11695_v34, %v11867_v44 }
 0x202   :  { %v2458_v16 = vadd.f32 %v2350_v28, %v2348_v5  ;;  %v11858_v8 = vpop.permute.xlu0 %8775  ;;  %8215 = vmatprep.mubr.msk.f32.mxu0 %vm321_vm0, %v278_v55  ;;  %v5031_v3 = vsel %vm2567_vm3, %v2980_v53, %v8752_v17  ;;  %v11873_v20 = vld [vmem:[#allocation2 + $0x110] sm:$0xff]  ;;  %v1607_v46 = vmul.f32 0.2, %v1097_v52  ;;  %v4902_v55 = vsel %vm4900_vm13, %v4837_v29, %v8768_v13  ;;  %v282_v13 = vld [vmem:[%s15156_s0 + $0x798] sm:$0xff] }
 0x203   :  { %v8771_v27 = vpop.permute.xlu1 %8770  ;;  %v11869_v42 = vpop.f32.mrf.mxu0  ;;  %1370 = vmatmul.mubr.f32.gmra.mxu0 %v277_v1  ;;  %v5095_v17 = vsel %vm4900_vm13, %v5031_v3, %v8767_v56  ;;  %v1107_v5 = vadd.f32 %v11648_v35, %v11744_v59  ;;  %vm1479_vm1 = vcmp.ge.f32.partialorder %v1097_v52, 0.0  ;;  %v8949_v59 = vpack.i.bf16 %v11720_v7, %v11873_v20  ;;  %v11904_v34 = vld [vmem:[#allocation2 + $0x111] sm:$0xff] }
 0x204   :  { %v2522_v33 = vmul.f32 0.25, %v2458_v16  ;;  %v8773_v45 = vunpack.i.h.bf16 %v8771_v27  ;;  %v8772_v47 = vunpack.i.l.bf16 %v8771_v27  ;;  %8945 = vrot.lane.b32.xlu0 %v8944_v58, %s9898_s19  ;;  %8216 = vmatprep.mubr.msk.f32.mxu0 %vm321_vm0, %v280_v43  ;;  %v1102_v16 = vadd.f32 %v11648_v35, %v11722_v49  ;;  %v281_v58 = vld [vmem:[%s15156_s0 + $0x790] sm:$0xff]  ;;  %v284_v49 = vld [vmem:[%s15156_s0 + $0x7a8] sm:$0xff] }
 0x205   :  { %2053 = vrot.lane.b32.xlu1 %v11864_v54, %s9896_s23  ;;  %v1133_v15 = vpop.f32.mrf.mxu0  ;;  %v1609_v53 = vmul.f32 0.2, %v1107_v5  ;;  %v11911_v7 = vsel %vm1479_vm1, %v1097_v52, %v1607_v46  ;;  %vm1481_vm2 = vcmp.ge.f32.partialorder %v1107_v5, 0.0  ;;  %v283_v46 = vld [vmem:[%s15156_s0 + $0x7a0] sm:$0xff] }
 0x206   :  { %2678 = vst.msk [vmem:[#allocation2 + $0x150] sm:$0xff] %vm2567_vm3, %v2522_v33  ;;  %v11886_v28 = vpop.permute.xlu0 %2009  ;;  %v5159_v1 = vsel %vm4965_vm14, %v5095_v17, %v8772_v47  ;;  %v4967_v23 = vsel %vm4965_vm14, %v4902_v55, %v8773_v45  ;;  %v8959_v47 = vpack.i.bf16 %v11749_v24, %v11904_v34  ;;  %v1608_v52 = vmul.f32 0.2, %v1102_v16  ;;  %v286_v55 = vld [vmem:[%s15156_s0 + $0x7b8] sm:$0xff] }
 0x207   :  { %v11895_v56 = vpop.permute.xlu1 %8780  ;;  %5526 = vmatprep.mubr.f32.mxu1 %v5159_v1  ;;  %v11899_v43 = vpop.f32.mrf.mxu0  ;;  %1375 = vmatmul.mubr.f32.gmra.mxu0 %v279_v2  ;;  %v8777_v17 = vunpack.i.l.bf16 %v11858_v8  ;;  %vm1480_vm4 = vcmp.ge.f32.partialorder %v1102_v16, 0.0  ;;  %v11933_v24 = vsel %vm1481_vm2, %v1107_v5, %v1609_v53 }
 0x208   :  { %8955 = vrot.lane.b32.xlu0 %v8954_v36, %s9897_s16  ;;  %5527 = vmatmul.mubr.f32.gmra.mxu1 %v4967_v23  ;;  %v1112_v36 = vadd.f32 %v11648_v35, %v11769_v6  ;;  %v285_v6 = vld [vmem:[%s15156_s0 + $0x7b0] sm:$0xff] }
 0x209   :  { %8950 = vrot.lane.b32.xlu1 %v8949_v59, %s9896_s23  ;;  %v1138_v27 = vpop.f32.mrf.mxu0  ;;  %8217 = vmatprep.mubr.msk.f32.mxu0 %vm321_vm0, %v282_v13  ;;  %v11940_v13 = vld [vmem:[#allocation2 + $0x128] sm:$0xff] }
 0x20a   :  { %v2012_v3 = vpop.permute.xlu0 %2011  ;;  %v11947_v27 = vsel %vm1480_vm4, %v1102_v16, %v1608_v52  ;;  %v1610_v52 = vmul.f32 0.2, %v1112_v36  ;;  %vm1482_vm5 = vcmp.ge.f32.partialorder %v1112_v36, 0.0 }
 0x20b   :  { %v2353_v33 = vadd.f32 %v2012_v3, %v11291_v9  ;;  %v2008_v45 = vpop.permute.xlu1 %2007  ;;  %v11920_v29 = vpop.f32.mrf.mxu0  ;;  %1380 = vmatmul.mubr.f32.gmra.mxu0 %v281_v58  ;;  %v8778_v9 = vunpack.i.h.bf16 %v11858_v8  ;;  %v2725_v8 = vld [vmem:[#allocation2 + $0x27] sm:$0xff]  ;;  %15190 = vst [vmem:[#allocation10_spill] sm:$0xff] %v11947_v27 }
 0x20c   :  { %v2351_v2 = vadd.f32 %v2008_v45, %v11296_v60  ;;  %2055 = vrot.lane.b32.xlu0 %v11911_v7, %s9896_s23  ;;  %8218 = vmatprep.mubr.msk.f32.mxu0 %vm321_vm0, %v284_v49  ;;  %v2981_v49 = vld [vmem:[#allocation2 + $0x48] sm:$0xff] }
 0x20d   :  { %8960 = vrot.lane.b32.xlu1 %v8959_v47, %s9897_s16  ;;  %v1143_v60 = vpop.f32.mrf.mxu0  ;;  %v11949_v3 = vld [vmem:[#allocation2 + $0x127] sm:$0xff]  ;;  %v5032_v47 = vsel %vm2567_vm3, %v2981_v49, %v8777_v17 }
 0x20e   :  { %v2459_v15 = vadd.f32 %v2353_v33, %v2351_v2  ;;  %v8791_v1 = vpop.permute.xlu0 %8790  ;;  %v4838_v2 = vsel %vm2567_vm3, %v2725_v8, %v8778_v9  ;;  %v8969_v60 = vpack.i.bf16 %v11818_v21, %v11940_v13  ;;  %v8964_v9 = vpack.i.bf16 %v11742_v51, %v11949_v3  ;;  %v11969_v8 = vld [vmem:[#allocation2 + $0x12f] sm:$0xff]  ;;  %v287_v51 = vld [vmem:[%s15156_s0 + $0x7c0] sm:$0xff] }
 0x20f   :  { %v8786_v23 = vpop.permute.xlu1 %8785  ;;  %v11942_v59 = vpop.f32.mrf.mxu0  ;;  %1385 = vmatmul.mubr.f32.gmra.mxu0 %v283_v46  ;;  %v8793_v33 = vunpack.i.h.bf16 %v8791_v1  ;;  %v8792_v45 = vunpack.i.l.bf16 %v8791_v1  ;;  %v8782_v1 = vunpack.i.l.bf16 %v11895_v56  ;;  %v288_v21 = vld [vmem:[%s15156_s0 + $0x7c8] sm:$0xff] }
 0x210   :  { %v2523_v58 = vmul.f32 0.25, %v2459_v15  ;;  %v8788_v5 = vunpack.i.h.bf16 %v8786_v23  ;;  %v8787_v53 = vunpack.i.l.bf16 %v8786_v23  ;;  %2059 = vrot.lane.b32.xlu0 %v11933_v24, %s9896_s23  ;;  %8219 = vmatprep.mubr.msk.f32.mxu0 %vm321_vm0, %v286_v55 }
 0x211   :  { %2057 = vrot.lane.b32.xlu1 %v11947_v27, %s9896_s23  ;;  %v1148_v16 = vpop.f32.mrf.mxu0 }
 0x212   :  { %2679 = vst.msk [vmem:[#allocation2 + $0x168] sm:$0xff] %vm2567_vm3, %v2523_v58  ;;  %v8796_v46 = vpop.permute.xlu0 %8795  ;;  %v5096_v55 = vsel %vm4900_vm13, %v5032_v47, %v8787_v53  ;;  %v4903_v15 = vsel %vm4900_vm13, %v4838_v2, %v8788_v5  ;;  %v2352_v5 = vadd.f32 %v11886_v28, %v11277_v14  ;;  %v8783_v53 = vunpack.i.h.bf16 %v11895_v56  ;;  %v2982_v47 = vld [vmem:[#allocation2 + $0x50] sm:$0xff] }
 0x213   :  { %v2014_v23 = vpop.permute.xlu1 %2013  ;;  %v5160_v27 = vsel %vm4965_vm14, %v5096_v55, %v8792_v45  ;;  %v4968_v17 = vsel %vm4965_vm14, %v4903_v15, %v8793_v33  ;;  %v11971_v58 = vpop.f32.mrf.mxu0  ;;  %1390 = vmatmul.mubr.f32.gmra.mxu0 %v285_v6  ;;  %v8798_v6 = vunpack.i.h.bf16 %v8796_v46  ;;  %v8797_v33 = vunpack.i.l.bf16 %v8796_v46  ;;  %v11999_v46 = vld [vmem:[#allocation2 + $0x129] sm:$0xff] }
 0x214   :  { %v2354_v49 = vadd.f32 %v2014_v23, %v11340_v63  ;;  %8970 = vrot.lane.b32.xlu0 %v8969_v60, %s9896_s23  ;;  %5531 = vmatprep.mubr.f32.mxu1 %v5160_v27  ;;  %v1122_v14 = vadd.f32 %v11648_v35, %v11811_v41  ;;  %v290_v63 = vld [vmem:[%s15156_s0 + $0x7d8] sm:$0xff]  ;;  %v8974_v27 = vpack.i.bf16 %v11774_v26, %v11969_v8  ;;  %v2726_v60 = vld [vmem:[#allocation2 + $0x2f] sm:$0xff] }
 0x215   :  { %8965 = vrot.lane.b32.xlu1 %v8964_v9, %s9898_s19  ;;  %5532 = vmatmul.mubr.f32.gmra.mxu1 %v4968_v17  ;;  %v1153_v28 = vpop.f32.mrf.mxu0  ;;  %v11996_v16 = vsel %vm1482_vm5, %v1112_v36, %v1610_v52  ;;  %v5033_v41 = vsel %vm2567_vm3, %v2982_v47, %v8782_v1  ;;  %v4839_v26 = vsel %vm2567_vm3, %v2726_v60, %v8783_v53  ;;  %v12005_v17 = vld [vmem:[#allocation2 + $0x130] sm:$0xff]  ;;  %v291_v47 = vld [vmem:[%s15156_s0 + $0x7e0] sm:$0xff] }
 0x216   :  { %v2460_v56 = vadd.f32 %v2354_v49, %v2352_v5  ;;  %v11990_v45 = vpop.permute.xlu0 %8805  ;;  %8220 = vmatprep.mubr.msk.f32.mxu0 %vm321_vm0, %v288_v21  ;;  %v289_v36 = vld [vmem:[%s15156_s0 + $0x7d0] sm:$0xff]  ;;  %v1612_v52 = vmul.f32 0.2, %v1122_v14  ;;  %v5097_v1 = vsel %vm4900_vm13, %v5033_v41, %v8797_v33  ;;  %v4904_v21 = vsel %vm4900_vm13, %v4839_v26, %v8798_v6  ;;  %v292_v6 = vld [vmem:[%s15156_s0 + $0x7e8] sm:$0xff] }
 0x217   :  { %v8801_v2 = vpop.permute.xlu1 %8800  ;;  %v12001_v55 = vpop.f32.mrf.mxu0  ;;  %1395 = vmatmul.mubr.f32.gmra.mxu0 %v287_v51  ;;  %v1127_v5 = vadd.f32 %v11648_v35, %v11840_v31  ;;  %vm1484_vm6 = vcmp.ge.f32.partialorder %v1122_v14, 0.0  ;;  %v8984_v28 = vpack.i.bf16 %v11809_v10, %v11999_v46  ;;  %v8979_v31 = vpack.i.bf16 %v11838_v12, %v12005_v17  ;;  %v12036_v10 = vld [vmem:[#allocation2 + $0x131] sm:$0xff] }
 0x218   :  { %v2524_v15 = vmul.f32 0.25, %v2460_v56  ;;  %v8803_v23 = vunpack.i.h.bf16 %v8801_v2  ;;  %v8802_v9 = vunpack.i.l.bf16 %v8801_v2  ;;  %8975 = vrot.lane.b32.xlu0 %v8974_v27, %s9898_s19  ;;  %8221 = vmatprep.mubr.msk.f32.mxu0 %vm321_vm0, %v290_v63  ;;  %v1117_v27 = vadd.f32 %v11648_v35, %v11788_v61  ;;  %v294_v61 = vld [vmem:[%s15156_s0 + $0x7f8] sm:$0xff] }
 0x219   :  { %2061 = vrot.lane.b32.xlu1 %v11996_v16, %s9896_s23  ;;  %v1158_v53 = vpop.f32.mrf.mxu0  ;;  %v1613_v2 = vmul.f32 0.2, %v1127_v5  ;;  %v12043_v12 = vsel %vm1484_vm6, %v1122_v14, %v1612_v52  ;;  %vm1485_vm7 = vcmp.ge.f32.partialorder %v1127_v5, 0.0  ;;  %v293_v52 = vld [vmem:[%s15156_s0 + $0x7f0] sm:$0xff] }
 0x21a   :  { %2680 = vst.msk [vmem:[#allocation2 + $0x170] sm:$0xff] %vm2567_vm3, %v2524_v15  ;;  %v12018_v49 = vpop.permute.xlu0 %2017  ;;  %v5161_v51 = vsel %vm4965_vm14, %v5097_v1, %v8802_v9  ;;  %v4969_v63 = vsel %vm4965_vm14, %v4904_v21, %v8803_v23  ;;  %v8989_v9 = vpack.i.bf16 %v11873_v20, %v12036_v10  ;;  %v1611_v14 = vmul.f32 0.2, %v1117_v27 }
 0x21b   :  { %v12027_v33 = vpop.permute.xlu1 %8810  ;;  %5536 = vmatprep.mubr.f32.mxu1 %v5161_v51  ;;  %v12031_v56 = vpop.f32.mrf.mxu0  ;;  %1400 = vmatmul.mubr.f32.gmra.mxu0 %v289_v36  ;;  %vm1483_vm8 = vcmp.ge.f32.partialorder %v1117_v27, 0.0  ;;  %v8807_v20 = vunpack.i.l.bf16 %v11990_v45  ;;  %v12065_v1 = vsel %vm1485_vm7, %v1127_v5, %v1613_v2  ;;  %v2983_v2 = vld [vmem:[#allocation2 + $0x68] sm:$0xff] }
 0x21c   :  { %8985 = vrot.lane.b32.xlu0 %v8984_v28, %s9897_s16  ;;  %5537 = vmatmul.mubr.f32.gmra.mxu1 %v4969_v63  ;;  %v1132_v28 = vadd.f32 %v11648_v35, %v11869_v42  ;;  %v12069_v63 = vld [vmem:[#allocation2 + $0x148] sm:$0xff]  ;;  %v12078_v5 = vsel %vm1483_vm8, %v1117_v27, %v1611_v14 }
 0x21d   :  { %8980 = vrot.lane.b32.xlu1 %v8979_v31, %s9896_s23  ;;  %v1163_v41 = vpop.f32.mrf.mxu0  ;;  %8222 = vmatprep.mubr.msk.f32.mxu0 %vm321_vm0, %v292_v6  ;;  %v12071_v6 = vld [vmem:[#allocation2 + $0x147] sm:$0xff] }
 0x21e   :  { %v2020_v60 = vpop.permute.xlu0 %2019  ;;  %v8994_v14 = vpack.i.bf16 %v11867_v44, %v12071_v6 }
 0x21f   :  { %v2357_v15 = vadd.f32 %v2020_v60, %v11386_v48  ;;  %v2016_v23 = vpop.permute.xlu1 %2015  ;;  %v12052_v26 = vpop.f32.mrf.mxu0  ;;  %1405 = vmatmul.mubr.f32.gmra.mxu0 %v291_v47  ;;  %v8808_v48 = vunpack.i.h.bf16 %v11990_v45 }
 0x220   :  { %v2355_v36 = vadd.f32 %v2016_v23, %v11391_v11  ;;  %2065 = vrot.lane.b32.xlu0 %v12043_v12, %s9896_s23  ;;  %8223 = vmatprep.mubr.msk.f32.mxu0 %vm321_vm0, %v294_v61  ;;  %v2727_v61 = vld [vmem:[#allocation2 + $0x47] sm:$0xff]  ;;  %vm1486_vm0 = vcmp.ge.f32.partialorder %v1132_v28, 0.0 }
 0x221   :  { %8990 = vrot.lane.b32.xlu1 %v8989_v9, %s9897_s16  ;;  %v1168_v11 = vpop.f32.mrf.mxu0  ;;  %v4840_v23 = vsel %vm2567_vm3, %v2727_v61, %v8808_v48 }
 0x222   :  { %v2461_v21 = vadd.f32 %v2357_v15, %v2355_v36  ;;  %v8821_v53 = vpop.permute.xlu0 %8820  ;;  %v5034_v15 = vsel %vm2567_vm3, %v2983_v2, %v8807_v20 }
 0x223   :  { %v8816_v51 = vpop.permute.xlu1 %8815  ;;  %v12073_v31 = vpop.f32.mrf.mxu0  ;;  %1410 = vmatmul.mubr.f32.gmra.mxu0 %v293_v52  ;;  %v8823_v60 = vunpack.i.h.bf16 %v8821_v53  ;;  %v8822_v42 = vunpack.i.l.bf16 %v8821_v53  ;;  %v8999_v52 = vpack.i.bf16 %v11949_v3, %v12069_v63  ;;  %v1614_v53 = vmul.f32 0.2, %v1132_v28 }
 0x224   :  { %v2525_v45 = vmul.f32 0.25, %v2461_v21  ;;  %v8818_v47 = vunpack.i.h.bf16 %v8816_v51  ;;  %v8817_v41 = vunpack.i.l.bf16 %v8816_v51  ;;  %2067 = vrot.lane.b32.xlu0 %v12065_v1, %s9896_s23  ;;  %v8812_v21 = vunpack.i.l.bf16 %v12027_v33 }
 0x225   :  { %2063 = vrot.lane.b32.xlu1 %v12078_v5, %s9896_s23  ;;  %v1173_v9 = vpop.f32.mrf.mxu0  ;;  %v2356_v3 = vadd.f32 %v12018_v49, %v11368_v50  ;;  %v2984_v49 = vld [vmem:[#allocation2 + $0x70] sm:$0xff] }
 0x226   :  { %2681 = vst.msk [vmem:[#allocation2 + $0x188] sm:$0xff] %vm2567_vm3, %v2525_v45  ;;  %v8826_v36 = vpop.permute.xlu0 %8825  ;;  %v5098_v27 = vsel %vm4900_vm13, %v5034_v15, %v8817_v41  ;;  %v4905_v11 = vsel %vm4900_vm13, %v4840_v23, %v8818_v47  ;;  %v12094_v45 = vld [vmem:[#allocation2 + $0x14f] sm:$0xff]  ;;  %v8813_v41 = vunpack.i.h.bf16 %v12027_v33  ;;  %v12110_v33 = vsel %vm1486_vm0, %v1132_v28, %v1614_v53 }
 0x227   :  { %v2022_v20 = vpop.permute.xlu1 %2021  ;;  %v5162_v48 = vsel %vm4965_vm14, %v5098_v27, %v8822_v42  ;;  %v4970_v51 = vsel %vm4965_vm14, %v4905_v11, %v8823_v60  ;;  %v12096_v2 = vpop.f32.mrf.mxu0  ;;  %v8828_v47 = vunpack.i.h.bf16 %v8826_v36  ;;  %v8827_v61 = vunpack.i.l.bf16 %v8826_v36  ;;  %v12113_v36 = vld [vmem:[#allocation2 + $0x149] sm:$0xff] }
 0x228   :  { %v2358_v44 = vadd.f32 %v2022_v20, %v11434_v62  ;;  %9000 = vrot.lane.b32.xlu0 %v8999_v52, %s9896_s23  ;;  %5541 = vmatprep.mubr.f32.mxu1 %v5162_v48  ;;  %v1142_v60 = vadd.f32 %v11648_v35, %v11920_v29  ;;  %v9004_v50 = vpack.i.bf16 %v11904_v34, %v12094_v45  ;;  %v2728_v52 = vld [vmem:[#allocation2 + $0x4f] sm:$0xff] }
 0x229   :  { %8995 = vrot.lane.b32.xlu1 %v8994_v14, %s9898_s19  ;;  %5542 = vmatmul.mubr.f32.gmra.mxu1 %v4970_v51  ;;  %v1178_v42 = vpop.f32.mrf.mxu0  ;;  %v5035_v9 = vsel %vm2567_vm3, %v2984_v49, %v8812_v21  ;;  %v4841_v20 = vsel %vm2567_vm3, %v2728_v52, %v8813_v41  ;;  %v12119_v48 = vld [vmem:[#allocation2 + $0x150] sm:$0xff]  ;;  %v1147_v53 = vadd.f32 %v11648_v35, %v11942_v59 }
 0x22a   :  { %v2462_v15 = vadd.f32 %v2358_v44, %v2356_v3  ;;  %v12106_v23 = vpop.permute.xlu0 %8835  ;;  %v1616_v34 = vmul.f32 0.2, %v1142_v60  ;;  %v5099_v28 = vsel %vm4900_vm13, %v5035_v9, %v8827_v61  ;;  %v4906_v21 = vsel %vm4900_vm13, %v4841_v20, %v8828_v47 }
 0x22b   :  { %v8831_v62 = vpop.permute.xlu1 %8830  ;;  %v12115_v27 = vpop.f32.mrf.mxu0  ;;  %vm1488_vm9 = vcmp.ge.f32.partialorder %v1142_v60, 0.0  ;;  %v9014_v44 = vpack.i.bf16 %v11940_v13, %v12113_v36  ;;  %v9009_v47 = vpack.i.bf16 %v11969_v8, %v12119_v48  ;;  %v1137_v61 = vadd.f32 %v11648_v35, %v11899_v43 }
 0x22c   :  { %v2526_v14 = vmul.f32 0.25, %v2462_v15  ;;  %v8833_v29 = vunpack.i.h.bf16 %v8831_v62  ;;  %v8832_v11 = vunpack.i.l.bf16 %v8831_v62  ;;  %9005 = vrot.lane.b32.xlu0 %v9004_v50, %s9898_s19  ;;  %v12143_v50 = vld [vmem:[#allocation2 + $0x151] sm:$0xff]  ;;  %v1617_v13 = vmul.f32 0.2, %v1147_v53 }
 0x22d   :  { %2069 = vrot.lane.b32.xlu1 %v12110_v33, %s9896_s23  ;;  %v1183_v51 = vpop.f32.mrf.mxu0  ;;  %v12146_v49 = vsel %vm1488_vm9, %v1142_v60, %v1616_v34  ;;  %vm1489_vm10 = vcmp.ge.f32.partialorder %v1147_v53, 0.0  ;;  %vm1487_vm11 = vcmp.ge.f32.partialorder %v1137_v61, 0.0  ;;  %v8838_v60 = vunpack.i.h.bf16 %v12106_v23 }
 0x22e   :  { %2682 = vst.msk [vmem:[#allocation2 + $0x190] sm:$0xff] %vm2567_vm3, %v2526_v14  ;;  %v12128_v3 = vpop.permute.xlu0 %2025  ;;  %v5163_v41 = vsel %vm4965_vm14, %v5099_v28, %v8832_v11  ;;  %v4971_v42 = vsel %vm4965_vm14, %v4906_v21, %v8833_v29  ;;  %15191 = vst [vmem:[#allocation11_spill] sm:$0xff] %v12146_v49  ;;  %v9019_v14 = vpack.i.bf16 %v12005_v17, %v12143_v50  ;;  %v1615_v29 = vmul.f32 0.2, %v1137_v61 }
 0x22f   :  { %v12134_v15 = vpop.permute.xlu1 %8840  ;;  %5546 = vmatprep.mubr.f32.mxu1 %v5163_v41  ;;  %v12138_v59 = vpop.f32.mrf.mxu0  ;;  %v8837_v20 = vunpack.i.l.bf16 %v12106_v23  ;;  %v1152_v21 = vadd.f32 %v11648_v35, %v11971_v58 }
 0x230   :  { %9015 = vrot.lane.b32.xlu0 %v9014_v44, %s9897_s16  ;;  %5547 = vmatmul.mubr.f32.gmra.mxu1 %v4971_v42  ;;  %v12170_v23 = vsel %vm1487_vm11, %v1137_v61, %v1615_v29 }
 0x231   :  { %9010 = vrot.lane.b32.xlu1 %v9009_v47, %s9896_s23  ;;  %v1188_v62 = vpop.f32.mrf.mxu0  ;;  %vm1490_vm12 = vcmp.ge.f32.partialorder %v1152_v21, 0.0 }
 0x232   :  { %v2028_v9 = vpop.permute.xlu0 %2027  ;;  %v2729_v62 = vld [vmem:[#allocation2 + $0x67] sm:$0xff] }
 0x233   :  { %v2361_v8 = vadd.f32 %v2028_v9, %v11482_v0  ;;  %v2024_v52 = vpop.permute.xlu1 %2023  ;;  %v12151_v43 = vpop.f32.mrf.mxu0  ;;  %v12159_v0 = vsel %vm1489_vm10, %v1147_v53, %v1617_v13  ;;  %v2985_v53 = vld [vmem:[#allocation2 + $0x88] sm:$0xff] }
 0x234   :  { %v2359_v11 = vadd.f32 %v2024_v52, %v11493_v37  ;;  %2073 = vrot.lane.b32.xlu0 %v12146_v49, %s9896_s23  ;;  %v12163_v37 = vld [vmem:[#allocation2 + $0x168] sm:$0xff]  ;;  %v4842_v52 = vsel %vm2567_vm3, %v2729_v62, %v8838_v60 }
 0x235   :  { %9020 = vrot.lane.b32.xlu1 %v9019_v14, %s9897_s16  ;;  %v1193_v34 = vpop.f32.mrf.mxu0  ;;  %v12172_v13 = vld [vmem:[#allocation2 + $0x167] sm:$0xff]  ;;  %v9029_v61 = vpack.i.bf16 %v12071_v6, %v12163_v37  ;;  %v2360_v6 = vadd.f32 %v12128_v3, %v11466_v38  ;;  %v2986_v3 = vld [vmem:[#allocation2 + $0x90] sm:$0xff] }
 0x236   :  { %v2463_v28 = vadd.f32 %v2361_v8, %v2359_v11  ;;  %v8851_v17 = vpop.permute.xlu0 %8850  ;;  %v5036_v8 = vsel %vm2567_vm3, %v2985_v53, %v8837_v20  ;;  %v1618_v11 = vmul.f32 0.2, %v1152_v21  ;;  %v9024_v60 = vpack.i.bf16 %v11999_v46, %v12172_v13 }
 0x237   :  { %v8846_v51 = vpop.permute.xlu1 %8845  ;;  %v12165_v41 = vpop.f32.mrf.mxu0  ;;  %v8853_v9 = vunpack.i.h.bf16 %v8851_v17  ;;  %v8852_v58 = vunpack.i.l.bf16 %v8851_v17  ;;  %v8842_v17 = vunpack.i.l.bf16 %v12134_v15  ;;  %v1162_v46 = vadd.f32 %v11648_v35, %v12031_v56 }
 0x238   :  { %v2527_v44 = vmul.f32 0.25, %v2463_v28  ;;  %v8848_v42 = vunpack.i.h.bf16 %v8846_v51  ;;  %v8847_v47 = vunpack.i.l.bf16 %v8846_v51  ;;  %2075 = vrot.lane.b32.xlu0 %v12159_v0, %s9896_s23 }
 0x239   :  { %2071 = vrot.lane.b32.xlu1 %v12170_v23, %s9896_s23  ;;  %v1198_v14 = vpop.f32.mrf.mxu0  ;;  %vm1492_vm15 = vcmp.ge.f32.partialorder %v1162_v46, 0.0 }
 0x23a   :  { %2683 = vst.msk [vmem:[#allocation2 + $0x1a8] sm:$0xff] %vm2567_vm3, %v2527_v44  ;;  %v8856_v34 = vpop.permute.xlu0 %8855  ;;  %v5100_v29 = vsel %vm4900_vm13, %v5036_v8, %v8847_v47  ;;  %v4907_v28 = vsel %vm4900_vm13, %v4842_v52, %v8848_v42  ;;  %v12188_v44 = vld [vmem:[#allocation2 + $0x16f] sm:$0xff]  ;;  %v8843_v47 = vunpack.i.h.bf16 %v12134_v15  ;;  %v12204_v15 = vsel %vm1490_vm12, %v1152_v21, %v1618_v11 }
 0x23b   :  { %v2030_v51 = vpop.permute.xlu1 %2029  ;;  %v5164_v49 = vsel %vm4965_vm14, %v5100_v29, %v8852_v58  ;;  %v4972_v20 = vsel %vm4965_vm14, %v4907_v28, %v8853_v9  ;;  %v12190_v53 = vpop.f32.mrf.mxu0  ;;  %v8858_v62 = vunpack.i.h.bf16 %v8856_v34  ;;  %v8857_v58 = vunpack.i.l.bf16 %v8856_v34  ;;  %v12207_v14 = vld [vmem:[#allocation2 + $0x169] sm:$0xff] }
 0x23c   :  { %v2362_v42 = vadd.f32 %v2030_v51, %v11534_v40  ;;  %9030 = vrot.lane.b32.xlu0 %v9029_v61, %s9896_s23  ;;  %5551 = vmatprep.mubr.f32.mxu1 %v5164_v49  ;;  %v9034_v38 = vpack.i.bf16 %v12036_v10, %v12188_v44  ;;  %v5037_v49 = vsel %vm2567_vm3, %v2986_v3, %v8842_v17  ;;  %v2730_v34 = vld [vmem:[#allocation2 + $0x6f] sm:$0xff]  ;;  %v1620_v10 = vmul.f32 0.2, %v1162_v46  ;;  %v12222_v17 = vld [vmem:[%s15158_s2] ss:$0 sm:$0xff] }
 0x23d   :  { %9025 = vrot.lane.b32.xlu1 %v9024_v60, %s9898_s19  ;;  %5552 = vmatmul.mubr.f32.gmra.mxu1 %v4972_v20  ;;  %v1203_v9 = vpop.f32.mrf.mxu0  ;;  %v4843_v28 = vsel %vm2567_vm3, %v2730_v34, %v8843_v47  ;;  %v12213_v51 = vld [vmem:[#allocation2 + $0x170] sm:$0xff]  ;;  %v5101_v21 = vsel %vm4900_vm13, %v5037_v49, %v8857_v58  ;;  %v1167_v60 = vadd.f32 %v12222_v17, %v12052_v26 }
 0x23e   :  { %v2464_v8 = vadd.f32 %v2362_v42, %v2360_v6  ;;  %v12200_v52 = vpop.permute.xlu0 %8865  ;;  %v4908_v11 = vsel %vm4900_vm13, %v4843_v28, %v8858_v62  ;;  %v9044_v42 = vpack.i.bf16 %v12069_v63, %v12207_v14  ;;  %v9039_v9 = vpack.i.bf16 %v12094_v45, %v12213_v51 }
 0x23f   :  { %v8861_v40 = vpop.permute.xlu1 %8860  ;;  %v12209_v61 = vpop.f32.mrf.mxu0  ;;  %v1621_v63 = vmul.f32 0.2, %v1167_v60  ;;  %v12245_v3 = vsel %vm1492_vm15, %v1162_v46, %v1620_v10  ;;  %vm1493_vm1 = vcmp.ge.f32.partialorder %v1167_v60, 0.0  ;;  %v8868_v46 = vunpack.i.h.bf16 %v12200_v52 }
 0x240   :  { %v2528_v29 = vmul.f32 0.25, %v2464_v8  ;;  %v8863_v35 = vunpack.i.h.bf16 %v8861_v40  ;;  %v8862_v56 = vunpack.i.l.bf16 %v8861_v40  ;;  %9035 = vrot.lane.b32.xlu0 %v9034_v38, %s9898_s19  ;;  %v1157_v8 = vadd.f32 %v12222_v17, %v12001_v55  ;;  %v12242_v38 = vld [vmem:[#allocation2 + $0x171] sm:$0xff]  ;;  %15192 = vst [vmem:[#allocation12_spill] sm:$0xff] %v12245_v3 }
 0x241   :  { %2077 = vrot.lane.b32.xlu1 %v12204_v15, %s9896_s23  ;;  %v1208_v20 = vpop.f32.mrf.mxu0  ;;  %v8867_v28 = vunpack.i.l.bf16 %v12200_v52 }
 0x242   :  { %2684 = vst.msk [vmem:[#allocation2 + $0x1b0] sm:$0xff] %vm2567_vm3, %v2528_v29  ;;  %v12227_v6 = vpop.permute.xlu0 %2033  ;;  %v5165_v47 = vsel %vm4965_vm14, %v5101_v21, %v8862_v56  ;;  %v4973_v62 = vsel %vm4965_vm14, %v4908_v11, %v8863_v35  ;;  %v9049_v29 = vpack.i.bf16 %v12119_v48, %v12242_v38  ;;  %v1619_v35 = vmul.f32 0.2, %v1157_v8 }
 0x243   :  { %v12233_v58 = vpop.permute.xlu1 %8870  ;;  %5556 = vmatprep.mubr.f32.mxu1 %v5165_v47  ;;  %v12237_v26 = vpop.f32.mrf.mxu0  ;;  %vm1491_vm2 = vcmp.ge.f32.partialorder %v1157_v8, 0.0  ;;  %v1172_v11 = vadd.f32 %v12222_v17, %v12073_v31 }
 0x244   :  { %9045 = vrot.lane.b32.xlu0 %v9044_v42, %s9897_s16  ;;  %5557 = vmatmul.mubr.f32.gmra.mxu1 %v4973_v62  ;;  %v12269_v52 = vsel %vm1491_vm2, %v1157_v8, %v1619_v35 }
 0x245   :  { %9040 = vrot.lane.b32.xlu1 %v9039_v9, %s9896_s23  ;;  %v1213_v40 = vpop.f32.mrf.mxu0  ;;  %vm1494_vm4 = vcmp.ge.f32.partialorder %v1172_v11, 0.0 }
 0x246   :  { %v2036_v49 = vpop.permute.xlu0 %2035  ;;  %v2731_v40 = vld [vmem:[#allocation2 + $0x87] sm:$0xff] }
 0x247   :  { %v2365_v45 = vadd.f32 %v2036_v49, %v11579_v57  ;;  %v2032_v34 = vpop.permute.xlu1 %2031  ;;  %v12250_v55 = vpop.f32.mrf.mxu0  ;;  %v12258_v57 = vsel %vm1493_vm1, %v1167_v60, %v1621_v63  ;;  %v2987_v60 = vld [vmem:[#allocation2 + $0xa8] sm:$0xff] }
 0x248   :  { %v2363_v56 = vadd.f32 %v2032_v34, %v11593_v19  ;;  %2081 = vrot.lane.b32.xlu0 %v12245_v3, %s9896_s23  ;;  %v12262_v19 = vld [vmem:[#allocation2 + $0x188] sm:$0xff]  ;;  %v4844_v34 = vsel %vm2567_vm3, %v2731_v40, %v8868_v46 }
 0x249   :  { %9050 = vrot.lane.b32.xlu1 %v9049_v29, %s9897_s16  ;;  %v1218_v10 = vpop.f32.mrf.mxu0  ;;  %v12271_v63 = vld [vmem:[#allocation2 + $0x187] sm:$0xff]  ;;  %v9059_v8 = vpack.i.bf16 %v12172_v13, %v12262_v19  ;;  %v2364_v13 = vadd.f32 %v12227_v6, %v11564_v39  ;;  %v2988_v6 = vld [vmem:[#allocation2 + $0xb0] sm:$0xff] }
 0x24a   :  { %v2465_v21 = vadd.f32 %v2365_v45, %v2363_v56  ;;  %v8881_v48 = vpop.permute.xlu0 %8880  ;;  %v5038_v45 = vsel %vm2567_vm3, %v2987_v60, %v8867_v28  ;;  %v1622_v56 = vmul.f32 0.2, %v1172_v11  ;;  %v9054_v46 = vpack.i.bf16 %v12113_v36, %v12271_v63 }
 0x24b   :  { %v8876_v20 = vpop.permute.xlu1 %8875  ;;  %v12264_v47 = vpop.f32.mrf.mxu0  ;;  %v8883_v49 = vunpack.i.h.bf16 %v8881_v48  ;;  %v8882_v31 = vunpack.i.l.bf16 %v8881_v48  ;;  %v8872_v48 = vunpack.i.l.bf16 %v12233_v58  ;;  %v1182_v36 = vadd.f32 %v12222_v17, %v12115_v27 }
 0x24c   :  { %v2529_v42 = vmul.f32 0.25, %v2465_v21  ;;  %v8878_v62 = vunpack.i.h.bf16 %v8876_v20  ;;  %v8877_v9 = vunpack.i.l.bf16 %v8876_v20  ;;  %2083 = vrot.lane.b32.xlu0 %v12258_v57, %s9896_s23 }
 0x24d   :  { %2079 = vrot.lane.b32.xlu1 %v12269_v52, %s9896_s23  ;;  %v1223_v29 = vpop.f32.mrf.mxu0  ;;  %vm1496_vm5 = vcmp.ge.f32.partialorder %v1182_v36, 0.0 }
 0x24e   :  { %2685 = vst.msk [vmem:[#allocation2 + $0x1c8] sm:$0xff] %vm2567_vm3, %v2529_v42  ;;  %v8886_v10 = vpop.permute.xlu0 %8885  ;;  %v5102_v35 = vsel %vm4900_vm13, %v5038_v45, %v8877_v9  ;;  %v4909_v21 = vsel %vm4900_vm13, %v4844_v34, %v8878_v62  ;;  %v12287_v42 = vld [vmem:[#allocation2 + $0x18f] sm:$0xff]  ;;  %v8873_v9 = vunpack.i.h.bf16 %v12233_v58  ;;  %v12303_v58 = vsel %vm1494_vm4, %v1172_v11, %v1622_v56 }
 0x24f   :  { %v2038_v20 = vpop.permute.xlu1 %2037  ;;  %v5166_v3 = vsel %vm4965_vm14, %v5102_v35, %v8882_v31  ;;  %v4974_v28 = vsel %vm4965_vm14, %v4909_v21, %v8883_v49  ;;  %v12289_v60 = vpop.f32.mrf.mxu0  ;;  %v8888_v40 = vunpack.i.h.bf16 %v8886_v10  ;;  %v8887_v31 = vunpack.i.l.bf16 %v8886_v10  ;;  %v12306_v29 = vld [vmem:[#allocation2 + $0x189] sm:$0xff] }
 0x250   :  { %v2366_v62 = vadd.f32 %v2038_v20, %v11635_v4  ;;  %9060 = vrot.lane.b32.xlu0 %v9059_v8, %s9896_s23  ;;  %5561 = vmatprep.mubr.f32.mxu1 %v5166_v3  ;;  %v9064_v39 = vpack.i.bf16 %v12143_v50, %v12287_v42  ;;  %v5039_v3 = vsel %vm2567_vm3, %v2988_v6, %v8872_v48  ;;  %v2732_v10 = vld [vmem:[#allocation2 + $0x8f] sm:$0xff]  ;;  %v1624_v50 = vmul.f32 0.2, %v1182_v36 }
 0x251   :  { %9055 = vrot.lane.b32.xlu1 %v9054_v46, %s9898_s19  ;;  %5562 = vmatmul.mubr.f32.gmra.mxu1 %v4974_v28  ;;  %v1228_v49 = vpop.f32.mrf.mxu0  ;;  %v4845_v20 = vsel %vm2567_vm3, %v2732_v10, %v8873_v9  ;;  %v12312_v46 = vld [vmem:[#allocation2 + $0x190] sm:$0xff]  ;;  %v5103_v11 = vsel %vm4900_vm13, %v5039_v3, %v8887_v31  ;;  %v1187_v48 = vadd.f32 %v12222_v17, %v12138_v59 }
 0x252   :  { %v2466_v45 = vadd.f32 %v2366_v62, %v2364_v13  ;;  %v12299_v34 = vpop.permute.xlu0 %8895  ;;  %v4910_v56 = vsel %vm4900_vm13, %v4845_v20, %v8888_v40  ;;  %v9074_v62 = vpack.i.bf16 %v12163_v37, %v12306_v29  ;;  %v9069_v40 = vpack.i.bf16 %v12188_v44, %v12312_v46 }
 0x253   :  { %v8891_v4 = vpop.permute.xlu1 %8890  ;;  %v12308_v8 = vpop.f32.mrf.mxu0  ;;  %v1177_v31 = vadd.f32 %v12222_v17, %v12096_v2  ;;  %v1625_v37 = vmul.f32 0.2, %v1187_v48  ;;  %v12339_v6 = vsel %vm1496_vm5, %v1182_v36, %v1624_v50  ;;  %vm1497_vm6 = vcmp.ge.f32.partialorder %v1187_v48, 0.0 }
 0x254   :  { %v2530_v35 = vmul.f32 0.25, %v2466_v45  ;;  %v8893_v27 = vunpack.i.h.bf16 %v8891_v4  ;;  %v8892_v21 = vunpack.i.l.bf16 %v8891_v4  ;;  %9065 = vrot.lane.b32.xlu0 %v9064_v39, %s9898_s19  ;;  %v12336_v39 = vld [vmem:[#allocation2 + $0x191] sm:$0xff]  ;;  %15193 = vst [vmem:[#allocation13_spill] sm:$0xff] %v12339_v6  ;;  %v8898_v36 = vunpack.i.h.bf16 %v12299_v34 }
 0x255   :  { %2085 = vrot.lane.b32.xlu1 %v12303_v58, %s9896_s23  ;;  %v1233_v28 = vpop.f32.mrf.mxu0  ;;  %vm1495_vm7 = vcmp.ge.f32.partialorder %v1177_v31, 0.0  ;;  %v8897_v20 = vunpack.i.l.bf16 %v12299_v34 }
 0x256   :  { %2686 = vst.msk [vmem:[#allocation2 + $0x1d0] sm:$0xff] %vm2567_vm3, %v2530_v35  ;;  %v12321_v13 = vpop.permute.xlu0 %2041  ;;  %v5167_v9 = vsel %vm4965_vm14, %v5103_v11, %v8892_v21  ;;  %v4975_v49 = vsel %vm4965_vm14, %v4910_v56, %v8893_v27  ;;  %v9079_v35 = vpack.i.bf16 %v12213_v51, %v12336_v39  ;;  %v1623_v27 = vmul.f32 0.2, %v1177_v31 }
 0x257   :  { %v12327_v45 = vpop.permute.xlu1 %8900  ;;  %5566 = vmatprep.mubr.f32.mxu1 %v5167_v9  ;;  %v12331_v59 = vpop.f32.mrf.mxu0  ;;  %v1192_v56 = vadd.f32 %v12222_v17, %v12151_v43 }
 0x258   :  { %9075 = vrot.lane.b32.xlu0 %v9074_v62, %s9897_s16  ;;  %5567 = vmatmul.mubr.f32.gmra.mxu1 %v4975_v49  ;;  %v12363_v34 = vsel %vm1495_vm7, %v1177_v31, %v1623_v27 }
 0x259   :  { %9070 = vrot.lane.b32.xlu1 %v9069_v40, %s9896_s23  ;;  %v1238_v4 = vpop.f32.mrf.mxu0  ;;  %vm1498_vm8 = vcmp.ge.f32.partialorder %v1192_v56, 0.0 }
 0x25a   :  { %v2044_v3 = vpop.permute.xlu0 %2043  ;;  %v2733_v4 = vld [vmem:[#allocation2 + $0xa7] sm:$0xff] }
 0x25b   :  { %v2369_v44 = vadd.f32 %v2044_v3, %v11688_v32  ;;  %v2040_v10 = vpop.permute.xlu1 %2039  ;;  %v12344_v2 = vpop.f32.mrf.mxu0  ;;  %v12352_v32 = vsel %vm1497_vm6, %v1187_v48, %v1625_v37  ;;  %v2989_v48 = vld [vmem:[#allocation2 + $0xc8] sm:$0xff] }
 0x25c   :  { %v2367_v21 = vadd.f32 %v2040_v10, %v11693_v18  ;;  %2089 = vrot.lane.b32.xlu0 %v12339_v6, %s9896_s23  ;;  %v12356_v18 = vld [vmem:[#allocation2 + $0x1a8] sm:$0xff]  ;;  %v4846_v10 = vsel %vm2567_vm3, %v2733_v4, %v8898_v36 }
 0x25d   :  { %9080 = vrot.lane.b32.xlu1 %v9079_v35, %s9897_s16  ;;  %v1243_v50 = vpop.f32.mrf.mxu0  ;;  %v12365_v37 = vld [vmem:[#allocation2 + $0x1a7] sm:$0xff]  ;;  %v9089_v31 = vpack.i.bf16 %v12271_v63, %v12356_v18  ;;  %v2368_v63 = vadd.f32 %v12321_v13, %v11671_v30  ;;  %v2990_v13 = vld [vmem:[#allocation2 + $0xd0] sm:$0xff] }
 0x25e   :  { %v2467_v11 = vadd.f32 %v2369_v44, %v2367_v21  ;;  %v8911_v51 = vpop.permute.xlu0 %8910  ;;  %v5040_v44 = vsel %vm2567_vm3, %v2989_v48, %v8897_v20  ;;  %v1626_v21 = vmul.f32 0.2, %v1192_v56  ;;  %v9084_v36 = vpack.i.bf16 %v12207_v14, %v12365_v37 }
 0x25f   :  { %v8906_v28 = vpop.permute.xlu1 %8905  ;;  %v12358_v9 = vpop.f32.mrf.mxu0  ;;  %v8913_v3 = vunpack.i.h.bf16 %v8911_v51  ;;  %v8912_v43 = vunpack.i.l.bf16 %v8911_v51  ;;  %v8902_v51 = vunpack.i.l.bf16 %v12327_v45  ;;  %v1202_v14 = vadd.f32 %v12222_v17, %v12190_v53 }
 0x260   :  { %v2531_v62 = vmul.f32 0.25, %v2467_v11  ;;  %v8908_v49 = vunpack.i.h.bf16 %v8906_v28  ;;  %v8907_v40 = vunpack.i.l.bf16 %v8906_v28  ;;  %2091 = vrot.lane.b32.xlu0 %v12352_v32, %s9896_s23 }
 0x261   :  { %2087 = vrot.lane.b32.xlu1 %v12363_v34, %s9896_s23  ;;  %v1248_v35 = vpop.f32.mrf.mxu0  ;;  %vm1500_vm0 = vcmp.ge.f32.partialorder %v1202_v14, 0.0 }
 0x262   :  { %2687 = vst.msk [vmem:[#allocation2 + $0x1e8] sm:$0xff] %vm2567_vm3, %v2531_v62  ;;  %v8916_v50 = vpop.permute.xlu0 %8915  ;;  %v5104_v27 = vsel %vm4900_vm13, %v5040_v44, %v8907_v40  ;;  %v4911_v11 = vsel %vm4900_vm13, %v4846_v10, %v8908_v49  ;;  %v12381_v62 = vld [vmem:[#allocation2 + $0x1af] sm:$0xff]  ;;  %v8903_v40 = vunpack.i.h.bf16 %v12327_v45  ;;  %v12397_v45 = vsel %vm1498_vm8, %v1192_v56, %v1626_v21 }
 0x263   :  { %v2046_v28 = vpop.permute.xlu1 %2045  ;;  %v5168_v6 = vsel %vm4965_vm14, %v5104_v27, %v8912_v43  ;;  %v4976_v20 = vsel %vm4965_vm14, %v4911_v11, %v8913_v3  ;;  %v12383_v48 = vpop.f32.mrf.mxu0  ;;  %v8918_v4 = vunpack.i.h.bf16 %v8916_v50  ;;  %v8917_v43 = vunpack.i.l.bf16 %v8916_v50  ;;  %v12400_v35 = vld [vmem:[#allocation2 + $0x1a9] sm:$0xff] }
 0x264   :  { %v2370_v49 = vadd.f32 %v2046_v28, %v11747_v22  ;;  %9090 = vrot.lane.b32.xlu0 %v9089_v31, %s9896_s23  ;;  %5571 = vmatprep.mubr.f32.mxu1 %v5168_v6  ;;  %v9094_v30 = vpack.i.bf16 %v12242_v38, %v12381_v62  ;;  %v5041_v6 = vsel %vm2567_vm3, %v2990_v13, %v8902_v51  ;;  %v2734_v50 = vld [vmem:[#allocation2 + $0xaf] sm:$0xff]  ;;  %v1628_v38 = vmul.f32 0.2, %v1202_v14 }
 0x265   :  { %9085 = vrot.lane.b32.xlu1 %v9084_v36, %s9898_s19  ;;  %5572 = vmatmul.mubr.f32.gmra.mxu1 %v4976_v20  ;;  %v1253_v3 = vpop.f32.mrf.mxu0  ;;  %v4847_v28 = vsel %vm2567_vm3, %v2734_v50, %v8903_v40  ;;  %v12406_v36 = vld [vmem:[#allocation2 + $0x1b0] sm:$0xff]  ;;  %v5105_v56 = vsel %vm4900_vm13, %v5041_v6, %v8917_v43  ;;  %v1207_v51 = vadd.f32 %v12222_v17, %v12209_v61 }
 0x266   :  { %v2468_v44 = vadd.f32 %v2370_v49, %v2368_v63  ;;  %v12393_v10 = vpop.permute.xlu0 %8925  ;;  %v4912_v21 = vsel %vm4900_vm13, %v4847_v28, %v8918_v4  ;;  %v9104_v49 = vpack.i.bf16 %v12262_v19, %v12400_v35  ;;  %v9099_v4 = vpack.i.bf16 %v12287_v42, %v12406_v36 }
 0x267   :  { %v8921_v22 = vpop.permute.xlu1 %8920  ;;  %v12402_v31 = vpop.f32.mrf.mxu0  ;;  %v1197_v43 = vadd.f32 %v12222_v17, %v12165_v41  ;;  %v1629_v19 = vmul.f32 0.2, %v1207_v51  ;;  %v12433_v13 = vsel %vm1500_vm0, %v1202_v14, %v1628_v38  ;;  %vm1501_vm9 = vcmp.ge.f32.partialorder %v1207_v51, 0.0 }
 0x268   :  { %v2532_v27 = vmul.f32 0.25, %v2468_v44  ;;  %v8923_v53 = vunpack.i.h.bf16 %v8921_v22  ;;  %v8922_v11 = vunpack.i.l.bf16 %v8921_v22  ;;  %9095 = vrot.lane.b32.xlu0 %v9094_v30, %s9898_s19  ;;  %v12430_v30 = vld [vmem:[#allocation2 + $0x1b1] sm:$0xff]  ;;  %15194 = vst [vmem:[#allocation14_spill] sm:$0xff] %v12433_v13  ;;  %v8928_v14 = vunpack.i.h.bf16 %v12393_v10 }
 0x269   :  { %2093 = vrot.lane.b32.xlu1 %v12397_v45, %s9896_s23  ;;  %v1258_v20 = vpop.f32.mrf.mxu0  ;;  %vm1499_vm10 = vcmp.ge.f32.partialorder %v1197_v43, 0.0  ;;  %v8927_v38 = vunpack.i.l.bf16 %v12393_v10 }
 0x26a   :  { %2688 = vst.msk [vmem:[#allocation2 + $0x1f0] sm:$0xff] %vm2567_vm3, %v2532_v27  ;;  %v12415_v63 = vpop.permute.xlu0 %2049  ;;  %v5169_v40 = vsel %vm4965_vm14, %v5105_v56, %v8922_v11  ;;  %v4977_v3 = vsel %vm4965_vm14, %v4912_v21, %v8923_v53  ;;  %v9109_v27 = vpack.i.bf16 %v12312_v46, %v12430_v30  ;;  %v1627_v53 = vmul.f32 0.2, %v1197_v43  ;;  %v15195_v11 = vld [vmem:[#allocation9_spill] sm:$0xff] }
 0x26b   :  { %v12421_v44 = vpop.permute.xlu1 %8930  ;;  %5576 = vmatprep.mubr.f32.mxu1 %v5169_v40  ;;  %v12425_v61 = vpop.f32.mrf.mxu0  ;;  %v1212_v20 = vadd.f32 %v12222_v17, %v12237_v26 }
 0x26c   :  { %9105 = vrot.lane.b32.xlu0 %v9104_v49, %s9897_s16  ;;  %5577 = vmatmul.mubr.f32.gmra.mxu1 %v4977_v3  ;;  %v12450_v49 = vld [vmem:[#allocation2 + $0x1c8] sm:$0xff]  ;;  %v12457_v10 = vsel %vm1499_vm10, %v1197_v43, %v1627_v53 }
 0x26d   :  { %9100 = vrot.lane.b32.xlu1 %v9099_v4, %s9896_s23  ;;  %v1263_v22 = vpop.f32.mrf.mxu0  ;;  %15196 = vst [vmem:[#allocation9_spill] sm:$0xff] %v12457_v10  ;;  %v9119_v43 = vpack.i.bf16 %v12365_v37, %v12450_v49  ;;  %vm1502_vm11 = vcmp.ge.f32.partialorder %v1212_v20, 0.0 }
 0x26e   :  { %v2052_v6 = vpop.permute.xlu0 %2051 }
 0x26f   :  { %v2373_v42 = vadd.f32 %v2052_v6, %v11802_v25  ;;  %v2048_v50 = vpop.permute.xlu1 %2047  ;;  %v12438_v41 = vpop.f32.mrf.mxu0  ;;  %v12446_v25 = vsel %vm1501_vm9, %v1207_v51, %v1629_v19  ;;  %v2991_v51 = vld [vmem:[#allocation2 + $0xe8] sm:$0xff] }
 0x270   :  { %v2371_v28 = vadd.f32 %v2048_v50, %v15195_v11  ;;  %2097 = vrot.lane.b32.xlu0 %v12433_v13, %s9896_s23  ;;  %v12459_v19 = vld [vmem:[#allocation2 + $0x1c7] sm:$0xff] }
 0x271   :  { %9110 = vrot.lane.b32.xlu1 %v9109_v27, %s9897_s16  ;;  %v1268_v56 = vpop.f32.mrf.mxu0  ;;  %v5042_v27 = vsel %vm2567_vm3, %v2991_v51, %v8927_v38 }
 0x272   :  { %v2469_v21 = vadd.f32 %v2373_v42, %v2371_v28  ;;  %v8941_v46 = vpop.permute.xlu0 %8940  ;;  %v2735_v42 = vld [vmem:[#allocation2 + $0xc7] sm:$0xff]  ;;  %v1630_v56 = vmul.f32 0.2, %v1212_v20 }
 0x273   :  { %v8936_v40 = vpop.permute.xlu1 %8935  ;;  %v12452_v3 = vpop.f32.mrf.mxu0  ;;  %v8943_v50 = vunpack.i.h.bf16 %v8941_v46  ;;  %v8942_v26 = vunpack.i.l.bf16 %v8941_v46  ;;  %v4848_v11 = vsel %vm2567_vm3, %v2735_v42, %v8928_v14  ;;  %v8932_v46 = vunpack.i.l.bf16 %v12421_v44  ;;  %v15197_v42 = vld [vmem:[#allocation8_spill] sm:$0xff] }
 0x274   :  { %v2533_v4 = vmul.f32 0.25, %v2469_v21  ;;  %v8938_v22 = vunpack.i.h.bf16 %v8936_v40  ;;  %v8937_v6 = vunpack.i.l.bf16 %v8936_v40  ;;  %2099 = vrot.lane.b32.xlu0 %v12446_v25, %s9896_s23  ;;  %v9114_v14 = vpack.i.bf16 %v12306_v29, %v12459_v19 }
 0x275   :  { %2095 = vrot.lane.b32.xlu1 %v12457_v10, %s9896_s23  ;;  %v1273_v28 = vpop.f32.mrf.mxu0  ;;  %v2372_v37 = vadd.f32 %v12415_v63, %v15197_v42  ;;  %v1222_v29 = vadd.f32 %v12222_v17, %v12264_v47  ;;  %v12500_v42 = vld [vmem:[#allocation2 + $0x1d0] sm:$0xff] }
 0x276   :  { %2689 = vst.msk [vmem:[#allocation2 + $0x208] sm:$0xff] %vm2567_vm3, %v2533_v4  ;;  %v8946_v21 = vpop.permute.xlu0 %8945  ;;  %v5106_v53 = vsel %vm4900_vm13, %v5042_v27, %v8937_v6  ;;  %v4913_v40 = vsel %vm4900_vm13, %v4848_v11, %v8938_v22  ;;  %v12475_v4 = vld [vmem:[#allocation2 + $0x1cf] sm:$0xff]  ;;  %v8933_v6 = vunpack.i.h.bf16 %v12421_v44 }
 0x277   :  { %v2054_v13 = vpop.permute.xlu1 %2053  ;;  %v5170_v10 = vsel %vm4965_vm14, %v5106_v53, %v8942_v26  ;;  %v4978_v38 = vsel %vm4965_vm14, %v4913_v40, %v8943_v50  ;;  %v12477_v51 = vpop.f32.mrf.mxu0  ;;  %v8948_v26 = vunpack.i.h.bf16 %v8946_v21  ;;  %v8947_v27 = vunpack.i.l.bf16 %v8946_v21  ;;  %v2992_v44 = vld [vmem:[#allocation2 + $0xf0] sm:$0xff] }
 0x278   :  { %v2374_v22 = vadd.f32 %v2054_v13, %v11864_v54  ;;  %9120 = vrot.lane.b32.xlu0 %v9119_v43, %s9896_s23  ;;  %5581 = vmatprep.mubr.f32.mxu1 %v5170_v10  ;;  %v9124_v63 = vpack.i.bf16 %v12336_v39, %v12475_v4  ;;  %v12491_v13 = vsel %vm1502_vm11, %v1212_v20, %v1630_v56  ;;  %v12494_v21 = vld [vmem:[#allocation2 + $0x1c9] sm:$0xff]  ;;  %v1632_v39 = vmul.f32 0.2, %v1222_v29 }
 0x279   :  { %9115 = vrot.lane.b32.xlu1 %v9114_v14, %s9898_s19  ;;  %5582 = vmatmul.mubr.f32.gmra.mxu1 %v4978_v38  ;;  %v1278_v50 = vpop.f32.mrf.mxu0  ;;  %v5043_v10 = vsel %vm2567_vm3, %v2992_v44, %v8932_v46  ;;  %v2736_v43 = vld [vmem:[#allocation2 + $0xcf] sm:$0xff]  ;;  %v1227_v46 = vadd.f32 %v12222_v17, %v12289_v60  ;;  %vm1504_vm12 = vcmp.ge.f32.partialorder %v1222_v29, 0.0  ;;  %v1217_v60 = vadd.f32 %v12222_v17, %v12250_v55 }
 0x27a   :  { %v2470_v11 = vadd.f32 %v2374_v22, %v2372_v37  ;;  %v12487_v28 = vpop.permute.xlu0 %8955  ;;  %v4849_v38 = vsel %vm2567_vm3, %v2736_v43, %v8933_v6  ;;  %v5107_v20 = vsel %vm4900_vm13, %v5043_v10, %v8947_v27  ;;  %v9134_v50 = vpack.i.bf16 %v12356_v18, %v12494_v21  ;;  %v12522_v44 = vld [vmem:[#allocation2 + $0x1d1] sm:$0xff] }
 0x27b   :  { %v8951_v54 = vpop.permute.xlu1 %8950  ;;  %v12496_v53 = vpop.f32.mrf.mxu0  ;;  %v4914_v56 = vsel %vm4900_vm13, %v4849_v38, %v8948_v26  ;;  %v9129_v26 = vpack.i.bf16 %v12381_v62, %v12500_v42  ;;  %v1633_v18 = vmul.f32 0.2, %v1227_v46  ;;  %vm1505_vm15 = vcmp.ge.f32.partialorder %v1227_v46, 0.0 }
 0x27c   :  { %v2534_v40 = vmul.f32 0.25, %v2470_v11  ;;  %v8953_v47 = vunpack.i.h.bf16 %v8951_v54  ;;  %v8952_v14 = vunpack.i.l.bf16 %v8951_v54  ;;  %9125 = vrot.lane.b32.xlu0 %v9124_v63, %s9898_s19  ;;  %v12525_v54 = vsel %vm1504_vm12, %v1222_v29, %v1632_v39 }
 0x27d   :  { %2101 = vrot.lane.b32.xlu1 %v12491_v13, %s9896_s23  ;;  %v1283_v37 = vpop.f32.mrf.mxu0  ;;  %15198 = vst [vmem:[#allocation8_spill] sm:$0xff] %v12525_v54  ;;  %v9139_v55 = vpack.i.bf16 %v12406_v36, %v12522_v44  ;;  %vm1503_vm1 = vcmp.ge.f32.partialorder %v1217_v60, 0.0  ;;  %v1631_v38 = vmul.f32 0.2, %v1217_v60  ;;  %v8958_v29 = vunpack.i.h.bf16 %v12487_v28 }
 0x27e   :  { %2690 = vst.msk [vmem:[#allocation2 + $0x210] sm:$0xff] %vm2567_vm3, %v2534_v40  ;;  %v2056_v22 = vpop.permute.xlu0 %2055  ;;  %v5171_v6 = vsel %vm4965_vm14, %v5107_v20, %v8952_v14  ;;  %v4979_v11 = vsel %vm4965_vm14, %v4914_v56, %v8953_v47  ;;  %v8957_v39 = vunpack.i.l.bf16 %v12487_v28  ;;  %v1232_v36 = vadd.f32 %v12222_v17, %v12308_v8 }
 0x27f   :  { %v12513_v63 = vpop.permute.xlu1 %8960  ;;  %5586 = vmatprep.mubr.f32.mxu1 %v5171_v6  ;;  %v12517_v27 = vpop.f32.mrf.mxu0  ;;  %v2375_v62 = vadd.f32 %v2056_v22, %v11911_v7  ;;  %v12538_v7 = vsel %vm1505_vm15, %v1227_v46, %v1633_v18  ;;  %v12542_v6 = vld [vmem:[#allocation2 + $0x1e8] sm:$0xff]  ;;  %v12549_v28 = vsel %vm1503_vm1, %v1217_v60, %v1631_v38 }
 0x280   :  { %9135 = vrot.lane.b32.xlu0 %v9134_v50, %s9897_s16  ;;  %5587 = vmatmul.mubr.f32.gmra.mxu1 %v4979_v11  ;;  %v2993_v46 = vld [vmem:[#allocation2 + $0x108] sm:$0xff]  ;;  %v9149_v60 = vpack.i.bf16 %v12459_v19, %v12542_v6  ;;  %v8963_v19 = vunpack.i.h.bf16 %v12513_v63  ;;  %vm1506_vm2 = vcmp.ge.f32.partialorder %v1232_v36, 0.0 }
 0x281   :  { %9130 = vrot.lane.b32.xlu1 %v9129_v26, %s9896_s23  ;;  %v1288_v10 = vpop.f32.mrf.mxu0  ;;  %v12551_v18 = vld [vmem:[#allocation2 + $0x1e7] sm:$0xff] }
 0x282   :  { %v2060_v43 = vpop.permute.xlu0 %2059  ;;  %v2737_v10 = vld [vmem:[#allocation2 + $0xe7] sm:$0xff] }
 0x283   :  { %v2377_v40 = vadd.f32 %v2060_v43, %v11933_v24  ;;  %v2058_v47 = vpop.permute.xlu1 %2057  ;;  %v12531_v14 = vpop.f32.mrf.mxu0 }
 0x284   :  { %2105 = vrot.lane.b32.xlu0 %v12525_v54, %s9896_s23 }
 0x285   :  { %v2471_v20 = vadd.f32 %v2377_v40, %v2375_v62  ;;  %9140 = vrot.lane.b32.xlu1 %v9139_v55, %s9897_s16  ;;  %v1293_v24 = vpop.f32.mrf.mxu0  ;;  %v5044_v62 = vsel %vm2567_vm3, %v2993_v46, %v8957_v39  ;;  %v4850_v40 = vsel %vm2567_vm3, %v2737_v10, %v8958_v29  ;;  %v9144_v39 = vpack.i.bf16 %v12400_v35, %v12551_v18  ;;  %v12567_v46 = vld [vmem:[#allocation2 + $0x1ef] sm:$0xff] }
 0x286   :  { %v8971_v56 = vpop.permute.xlu0 %8970 }
 0x287   :  { %v2535_v37 = vmul.f32 0.25, %v2471_v20  ;;  %v8966_v22 = vpop.permute.xlu1 %8965  ;;  %v12544_v50 = vpop.f32.mrf.mxu0  ;;  %v8973_v8 = vunpack.i.h.bf16 %v8971_v56  ;;  %v8972_v43 = vunpack.i.l.bf16 %v8971_v56  ;;  %v1634_v20 = vmul.f32 0.2, %v1232_v36 }
 0x288   :  { %v8968_v11 = vunpack.i.h.bf16 %v8966_v22  ;;  %v8967_v26 = vunpack.i.l.bf16 %v8966_v22  ;;  %2107 = vrot.lane.b32.xlu0 %v12538_v7, %s9896_s23 }
 0x289   :  { %2691 = vst.msk [vmem:[#allocation2 + $0x268] sm:$0xff] %vm2567_vm3, %v2535_v37  ;;  %2103 = vrot.lane.b32.xlu1 %v12549_v28, %s9896_s23  ;;  %v1298_v55 = vpop.f32.mrf.mxu0  ;;  %v8962_v37 = vunpack.i.l.bf16 %v12513_v63  ;;  %v9154_v63 = vpack.i.bf16 %v12430_v30, %v12567_v46 }
 0x28a   :  { %v8976_v24 = vpop.permute.xlu0 %8975  ;;  %v5108_v38 = vsel %vm4900_vm13, %v5044_v62, %v8967_v26  ;;  %v4915_v22 = vsel %vm4900_vm13, %v4850_v40, %v8968_v11  ;;  %v15199_v55 = vld [vmem:[#allocation10_spill] sm:$0xff] }
 0x28b   :  { %v2062_v56 = vpop.permute.xlu1 %2061  ;;  %v5172_v54 = vsel %vm4965_vm14, %v5108_v38, %v8972_v43  ;;  %v4980_v29 = vsel %vm4965_vm14, %v4915_v22, %v8973_v8  ;;  %v12569_v10 = vpop.f32.mrf.mxu0  ;;  %v2376_v26 = vadd.f32 %v2058_v47, %v15199_v55  ;;  %v8978_v43 = vunpack.i.h.bf16 %v8976_v24  ;;  %v2994_v38 = vld [vmem:[#allocation2 + $0x110] sm:$0xff] }
 0x28c   :  { %v2378_v11 = vadd.f32 %v2062_v56, %v11996_v16  ;;  %9150 = vrot.lane.b32.xlu0 %v9149_v60, %s9896_s23  ;;  %5591 = vmatprep.mubr.f32.mxu1 %v5172_v54  ;;  %v8977_v62 = vunpack.i.l.bf16 %v8976_v24  ;;  %v12580_v22 = vsel %vm1506_vm2, %v1232_v36, %v1634_v20  ;;  %v5045_v16 = vsel %vm2567_vm3, %v2994_v38, %v8962_v37  ;;  %v12583_v60 = vld [vmem:[#allocation2 + $0x1e9] sm:$0xff] }
 0x28d   :  { %9145 = vrot.lane.b32.xlu1 %v9144_v39, %s9898_s19  ;;  %5592 = vmatmul.mubr.f32.gmra.mxu1 %v4980_v29  ;;  %v1303_v35 = vpop.f32.mrf.mxu0  ;;  %v2738_v54 = vld [vmem:[#allocation2 + $0xef] sm:$0xff]  ;;  %v1242_v20 = vadd.f32 %v12222_v17, %v12344_v2 }
 0x28e   :  { %v2472_v8 = vadd.f32 %v2378_v11, %v2376_v26  ;;  %v12576_v40 = vpop.permute.xlu0 %8985  ;;  %v4851_v55 = vsel %vm2567_vm3, %v2738_v54, %v8963_v19  ;;  %v12589_v26 = vld [vmem:[#allocation2 + $0x1f0] sm:$0xff]  ;;  %v5109_v30 = vsel %vm4900_vm13, %v5045_v16, %v8977_v62  ;;  %v9164_v19 = vpack.i.bf16 %v12450_v49, %v12583_v60 }
 0x28f   :  { %v8981_v47 = vpop.permute.xlu1 %8980  ;;  %v12585_v24 = vpop.f32.mrf.mxu0  ;;  %v4916_v36 = vsel %vm4900_vm13, %v4851_v55, %v8978_v43  ;;  %v9159_v43 = vpack.i.bf16 %v12475_v4, %v12589_v26  ;;  %v2882_v62 = vld [vmem:[#allocation2 + $0x1f1] sm:$0xff]  ;;  %v1636_v49 = vmul.f32 0.2, %v1242_v20  ;;  %vm1508_vm4 = vcmp.ge.f32.partialorder %v1242_v20, 0.0 }
 0x290   :  { %v2536_v56 = vmul.f32 0.25, %v2472_v8  ;;  %v8983_v39 = vunpack.i.h.bf16 %v8981_v47  ;;  %v8982_v29 = vunpack.i.l.bf16 %v8981_v47  ;;  %9155 = vrot.lane.b32.xlu0 %v9154_v63, %s9898_s19  ;;  %v3139_v2 = vld [vmem:[#allocation2 + $0x22f] sm:$0xff]  ;;  %v1247_v47 = vadd.f32 %v12222_v17, %v12358_v9 }
 0x291   :  { %2109 = vrot.lane.b32.xlu1 %v12580_v22, %s9896_s23  ;;  %v1308_v37 = vpop.f32.mrf.mxu0  ;;  %v1237_v4 = vadd.f32 %v12222_v17, %v12331_v59  ;;  %v9169_v55 = vpack.i.bf16 %v12500_v42, %v2882_v62 }
 0x292   :  { %2692 = vst.msk [vmem:[#allocation2 + $0x270] sm:$0xff] %vm2567_vm3, %v2536_v56  ;;  %v12598_v11 = vpop.permute.xlu0 %2065  ;;  %v5173_v35 = vsel %vm4965_vm14, %v5109_v30, %v8982_v29  ;;  %v4981_v8 = vsel %vm4965_vm14, %v4916_v36, %v8983_v39  ;;  %v9179_v56 = vpack.i.bf16 %v2882_v62, %v3139_v2  ;;  %v1637_v9 = vmul.f32 0.2, %v1247_v47  ;;  %v3138_v37 = vld [vmem:[#allocation2 + $0x227] sm:$0xff] }
 0x293   :  { %v12604_v63 = vpop.permute.xlu1 %8990  ;;  %5596 = vmatprep.mubr.f32.mxu1 %v5173_v35  ;;  %v12608_v38 = vpop.f32.mrf.mxu0  ;;  %v8988_v35 = vunpack.i.h.bf16 %v12576_v40  ;;  %vm1509_vm5 = vcmp.ge.f32.partialorder %v1247_v47, 0.0  ;;  %vm1507_vm6 = vcmp.ge.f32.partialorder %v1237_v4, 0.0  ;;  %v9174_v62 = vpack.i.bf16 %v12583_v60, %v3138_v37 }
 0x294   :  { %9165 = vrot.lane.b32.xlu0 %v9164_v19, %s9897_s16  ;;  %5597 = vmatmul.mubr.f32.gmra.mxu1 %v4981_v8  ;;  %v8987_v19 = vunpack.i.l.bf16 %v12576_v40  ;;  %v12633_v40 = vsel %vm1509_vm5, %v1247_v47, %v1637_v9  ;;  %v8992_v47 = vunpack.i.l.bf16 %v12604_v63 }
 0x295   :  { %9160 = vrot.lane.b32.xlu1 %v9159_v43, %s9896_s23  ;;  %v1313_v16 = vpop.f32.mrf.mxu0  ;;  %v1635_v43 = vmul.f32 0.2, %v1237_v4 }
 0x296   :  { %v2068_v54 = vpop.permute.xlu0 %2067 }
 0x297   :  { %v2381_v39 = vadd.f32 %v2068_v54, %v12065_v1  ;;  %v2064_v29 = vpop.permute.xlu1 %2063  ;;  %v12618_v30 = vpop.f32.mrf.mxu0  ;;  %v12626_v1 = vsel %vm1508_vm4, %v1242_v20, %v1636_v49  ;;  %v2995_v20 = vld [vmem:[#allocation2 + $0x128] sm:$0xff] }
 0x298   :  { %v2379_v36 = vadd.f32 %v2064_v29, %v12078_v5  ;;  %9180 = vrot.lane.b32.xlu0 %v9179_v56, %s9898_s19  ;;  %v2739_v49 = vld [vmem:[#allocation2 + $0x107] sm:$0xff] }
 0x299   :  { %9170 = vrot.lane.b32.xlu1 %v9169_v55, %s9897_s16  ;;  %v1318_v59 = vpop.f32.mrf.mxu0  ;;  %v5046_v55 = vsel %vm2567_vm3, %v2995_v20, %v8987_v19  ;;  %v4852_v60 = vsel %vm2567_vm3, %v2739_v49, %v8988_v35  ;;  %v12655_v20 = vsel %vm1507_vm6, %v1237_v4, %v1635_v43  ;;  %v3202_v43 = vld [vmem:[#allocation2 + $0x228] sm:$0xff] }
 0x29a   :  { %v2473_v42 = vadd.f32 %v2381_v39, %v2379_v36  ;;  %v9001_v8 = vpop.permute.xlu0 %9000 }
 0x29b   :  { %v8996_v5 = vpop.permute.xlu1 %8995  ;;  %v12629_v2 = vpop.f32.mrf.mxu0  ;;  %v9003_v29 = vunpack.i.h.bf16 %v9001_v8  ;;  %v9002_v39 = vunpack.i.l.bf16 %v9001_v8  ;;  %v1252_v8 = vadd.f32 %v12222_v17, %v12383_v48  ;;  %v3136_v48 = vld [vmem:[#allocation2 + $0x207] sm:$0xff] }
 0x29c   :  { %v2537_v16 = vmul.f32 0.25, %v2473_v42  ;;  %v8998_v54 = vunpack.i.h.bf16 %v8996_v5  ;;  %v8997_v56 = vunpack.i.l.bf16 %v8996_v5  ;;  %2113 = vrot.lane.b32.xlu0 %v12626_v1, %s9896_s23 }
 0x29d   :  { %9175 = vrot.lane.b32.xlu1 %v9174_v62, %s9898_s19  ;;  %v1323_v36 = vpop.f32.mrf.mxu0  ;;  %v3200_v62 = vld [vmem:[#allocation2 + $0x208] sm:$0xff]  ;;  %vm1510_vm7 = vcmp.ge.f32.partialorder %v1252_v8, 0.0 }
 0x29e   :  { %2693 = vst.msk [vmem:[#allocation2 + $0x288] sm:$0xff] %vm2567_vm3, %v2537_v16  ;;  %v9006_v37 = vpop.permute.xlu0 %9005  ;;  %v5110_v59 = vsel %vm4900_vm13, %v5046_v55, %v8997_v56  ;;  %v4917_v42 = vsel %vm4900_vm13, %v4852_v60, %v8998_v54  ;;  %v2380_v16 = vadd.f32 %v12598_v11, %v12043_v12  ;;  %v8993_v56 = vunpack.i.h.bf16 %v12604_v63  ;;  %v2996_v63 = vld [vmem:[#allocation2 + $0x130] sm:$0xff] }
 0x29f   :  { %v2070_v9 = vpop.permute.xlu1 %2069  ;;  %v5174_v5 = vsel %vm4965_vm14, %v5110_v59, %v9002_v39  ;;  %v4982_v19 = vsel %vm4965_vm14, %v4917_v42, %v9003_v29  ;;  %v12646_v35 = vpop.f32.mrf.mxu0  ;;  %v9008_v49 = vunpack.i.h.bf16 %v9006_v37  ;;  %v9007_v29 = vunpack.i.l.bf16 %v9006_v37  ;;  %v2740_v59 = vld [vmem:[#allocation2 + $0x10f] sm:$0xff] }
 0x2a0   :  { %v2382_v54 = vadd.f32 %v2070_v9, %v12110_v33  ;;  %2115 = vrot.lane.b32.xlu0 %v12633_v40, %s9896_s23  ;;  %5601 = vmatprep.mubr.f32.mxu1 %v5174_v5  ;;  %v9189_v33 = vpack.i.bf16 %v12551_v18, %v3200_v62  ;;  %v1638_v55 = vmul.f32 0.2, %v1252_v8  ;;  %v9184_v36 = vpack.i.bf16 %v12494_v21, %v3136_v48 }
 0x2a1   :  { %2111 = vrot.lane.b32.xlu1 %v12655_v20, %s9896_s23  ;;  %5602 = vmatmul.mubr.f32.gmra.mxu1 %v4982_v19  ;;  %v1328_v39 = vpop.f32.mrf.mxu0  ;;  %v5047_v4 = vsel %vm2567_vm3, %v2996_v63, %v8992_v47  ;;  %v4853_v19 = vsel %vm2567_vm3, %v2740_v59, %v8993_v56  ;;  %v1262_v56 = vadd.f32 %v12222_v17, %v12425_v61  ;;  %v3201_v63 = vld [vmem:[#allocation2 + $0x210] sm:$0xff]  ;;  %v12695_v17 = vld [vmem:[%s15158_s2] ss:$0 sm:$0xff] }
 0x2a2   :  { %v2474_v12 = vadd.f32 %v2382_v54, %v2380_v16  ;;  %v12659_v11 = vpop.permute.xlu0 %9015  ;;  %v5111_v18 = vsel %vm4900_vm13, %v5047_v4, %v9007_v29  ;;  %v4918_v21 = vsel %vm4900_vm13, %v4853_v19, %v9008_v49  ;;  %v9194_v54 = vpack.i.bf16 %v3136_v48, %v3202_v43  ;;  %v3073_v59 = vld [vmem:[#allocation2 + $0x209] sm:$0xff] }
 0x2a3   :  { %v9011_v60 = vpop.permute.xlu1 %9010  ;;  %v12664_v37 = vpop.f32.mrf.mxu0  ;;  %v12686_v49 = vsel %vm1510_vm7, %v1252_v8, %v1638_v55  ;;  %v12699_v61 = vadd.f32 %v12695_v17, %v12402_v31  ;;  %v1640_v8 = vmul.f32 0.2, %v1262_v56  ;;  %v9204_v43 = vpack.i.bf16 %v12567_v46, %v3201_v63 }
 0x2a4   :  { %v2538_v42 = vmul.f32 0.25, %v2474_v12  ;;  %v9013_v9 = vunpack.i.h.bf16 %v9011_v60  ;;  %v9012_v5 = vunpack.i.l.bf16 %v9011_v60  ;;  %9190 = vrot.lane.b32.xlu0 %v9189_v33, %s9896_s23  ;;  %v12680_v33 = vld [vmem:[#allocation2 + $0x20f] sm:$0xff]  ;;  %vm1512_vm8 = vcmp.ge.f32.partialorder %v1262_v56, 0.0 }
 0x2a5   :  { %9185 = vrot.lane.b32.xlu1 %v9184_v36, %s9898_s19  ;;  %v1333_v62 = vpop.f32.mrf.mxu0  ;;  %v9199_v36 = vpack.i.bf16 %v12522_v44, %v12680_v33  ;;  %v9018_v31 = vunpack.i.h.bf16 %v12659_v11  ;;  %v9017_v19 = vunpack.i.l.bf16 %v12659_v11  ;;  %vm1511_vm9 = vcmp.ge.f32.partialorder %v12699_v61, 0.0 }
 0x2a6   :  { %2694 = vst.msk [vmem:[#allocation2 + $0x290] sm:$0xff] %vm2567_vm3, %v2538_v42  ;;  %v12672_v47 = vpop.permute.xlu0 %2073  ;;  %v5175_v16 = vsel %vm4965_vm14, %v5111_v18, %v9012_v5  ;;  %v4983_v39 = vsel %vm4965_vm14, %v4918_v21, %v9013_v9  ;;  %v1267_v9 = vadd.f32 %v12695_v17, %v12438_v41  ;;  %v3074_v5 = vld [vmem:[#allocation2 + $0x211] sm:$0xff]  ;;  %v9209_v21 = vpack.i.bf16 %v12542_v6, %v3073_v59 }
 0x2a7   :  { %v12676_v12 = vpop.permute.xlu1 %9020  ;;  %5606 = vmatprep.mubr.f32.mxu1 %v5175_v16  ;;  %v12682_v29 = vpop.f32.mrf.mxu0  ;;  %v1639_v62 = vmul.f32 0.2, %v12699_v61  ;;  %v9214_v16 = vpack.i.bf16 %v12589_v26, %v3074_v5 }
 0x2a8   :  { %9195 = vrot.lane.b32.xlu0 %v9194_v54, %s9896_s23  ;;  %5607 = vmatmul.mubr.f32.gmra.mxu1 %v4983_v39  ;;  %v12715_v54 = vsel %vm1512_vm8, %v1262_v56, %v1640_v8  ;;  %v1641_v63 = vmul.f32 0.2, %v1267_v9  ;;  %vm1513_vm0 = vcmp.ge.f32.partialorder %v1267_v9, 0.0  ;;  %v1272_v8 = vadd.f32 %v12695_v17, %v12452_v3 }
 0x2a9   :  { %2117 = vrot.lane.b32.xlu1 %v12686_v49, %s9896_s23  ;;  %v1338_v48 = vpop.f32.mrf.mxu0 }
 0x2aa   :  { %v2076_v60 = vpop.permute.xlu0 %2075  ;;  %vm1514_vm10 = vcmp.ge.f32.partialorder %v1272_v8, 0.0 }
 0x2ab   :  { %v2385_v55 = vadd.f32 %v2076_v60, %v12159_v0  ;;  %v2072_v4 = vpop.permute.xlu1 %2071  ;;  %v12703_v42 = vpop.f32.mrf.mxu0  ;;  %v2997_v60 = vld [vmem:[#allocation2 + $0x148] sm:$0xff] }
 0x2ac   :  { %v2383_v44 = vadd.f32 %v2072_v4, %v12170_v23  ;;  %9200 = vrot.lane.b32.xlu0 %v9199_v36, %s9898_s19  ;;  %v3203_v36 = vld [vmem:[#allocation2 + $0x230] sm:$0xff] }
 0x2ad   :  { %9205 = vrot.lane.b32.xlu1 %v9204_v43, %s9896_s23  ;;  %v1343_v0 = vpop.f32.mrf.mxu0  ;;  %v5048_v43 = vsel %vm2567_vm3, %v2997_v60, %v9017_v19  ;;  %v9219_v19 = vpack.i.bf16 %v12680_v33, %v3203_v36  ;;  %v12743_v33 = vsel %vm1513_vm0, %v1267_v9, %v1641_v63  ;;  %v1282_v60 = vadd.f32 %v12695_v17, %v12496_v53  ;;  %v2819_v9 = vld [vmem:[#allocation2 + $0x248] sm:$0xff] }
 0x2ae   :  { %v2475_v46 = vadd.f32 %v2385_v55, %v2383_v44  ;;  %v9031_v18 = vpop.permute.xlu0 %9030  ;;  %v2741_v55 = vld [vmem:[#allocation2 + $0x127] sm:$0xff]  ;;  %v9022_v0 = vunpack.i.l.bf16 %v12676_v12 }
 0x2af   :  { %v9026_v23 = vpop.permute.xlu1 %9025  ;;  %v12717_v41 = vpop.f32.mrf.mxu0  ;;  %v9033_v4 = vunpack.i.h.bf16 %v9031_v18  ;;  %v9032_v6 = vunpack.i.l.bf16 %v9031_v18  ;;  %v4854_v26 = vsel %vm2567_vm3, %v2741_v55, %v9018_v31  ;;  %v1642_v55 = vmul.f32 0.2, %v1272_v8  ;;  %v12755_v63 = vld [vmem:[#allocation2 + $0x269] sm:$0xff] }
 0x2b0   :  { %v2539_v39 = vmul.f32 0.25, %v2475_v46  ;;  %v9028_v48 = vunpack.i.h.bf16 %v9026_v23  ;;  %v9027_v11 = vunpack.i.l.bf16 %v9026_v23  ;;  %9210 = vrot.lane.b32.xlu0 %v9209_v21, %s9897_s16  ;;  %v15200_v23 = vld [vmem:[#allocation11_spill] sm:$0xff]  ;;  %vm1516_vm11 = vcmp.ge.f32.partialorder %v1282_v60, 0.0 }
 0x2b1   :  { %9215 = vrot.lane.b32.xlu1 %v9214_v16, %s9897_s16  ;;  %v1348_v56 = vpop.f32.mrf.mxu0  ;;  %v2384_v3 = vadd.f32 %v12672_v47, %v15200_v23  ;;  %v9023_v16 = vunpack.i.h.bf16 %v12676_v12  ;;  %v9224_v23 = vpack.i.bf16 %v2819_v9, %v12755_v63 }
 0x2b2   :  { %2695 = vst.msk [vmem:[#allocation2 + $0x2a8] sm:$0xff] %vm2567_vm3, %v2539_v39  ;;  %v9036_v59 = vpop.permute.xlu0 %9035  ;;  %v5112_v44 = vsel %vm4900_vm13, %v5048_v43, %v9027_v11  ;;  %v4919_v5 = vsel %vm4900_vm13, %v4854_v26, %v9028_v48  ;;  %v2742_v26 = vld [vmem:[#allocation2 + $0x12f] sm:$0xff] }
 0x2b3   :  { %v2078_v46 = vpop.permute.xlu1 %2077  ;;  %v5176_v18 = vsel %vm4965_vm14, %v5112_v44, %v9032_v6  ;;  %v4984_v31 = vsel %vm4965_vm14, %v4919_v5, %v9033_v4  ;;  %v12732_v21 = vpop.f32.mrf.mxu0  ;;  %v9038_v48 = vunpack.i.h.bf16 %v9036_v59  ;;  %v9037_v11 = vunpack.i.l.bf16 %v9036_v59 }
 0x2b4   :  { %v2386_v39 = vadd.f32 %v2078_v46, %v12204_v15  ;;  %2121 = vrot.lane.b32.xlu0 %v12715_v54, %s9896_s23  ;;  %5611 = vmatprep.mubr.f32.mxu1 %v5176_v18  ;;  %v2998_v15 = vld [vmem:[#allocation2 + $0x150] sm:$0xff]  ;;  %v12752_v6 = vsel %vm1511_vm9, %v12699_v61, %v1639_v62  ;;  %v4855_v5 = vsel %vm2567_vm3, %v2742_v26, %v9023_v16  ;;  %v1644_v61 = vmul.f32 0.2, %v1282_v60 }
 0x2b5   :  { %9220 = vrot.lane.b32.xlu1 %v9219_v19, %s9896_s23  ;;  %5612 = vmatmul.mubr.f32.gmra.mxu1 %v4984_v31  ;;  %v1353_v47 = vpop.f32.mrf.mxu0  ;;  %v5049_v43 = vsel %vm2567_vm3, %v2998_v15, %v9022_v0  ;;  %v4920_v0 = vsel %vm4900_vm13, %v4855_v5, %v9038_v48  ;;  %v1287_v46 = vadd.f32 %v12695_v17, %v12517_v27 }
 0x2b6   :  { %v2476_v36 = vadd.f32 %v2386_v39, %v2384_v3  ;;  %v12747_v12 = vpop.permute.xlu0 %9045  ;;  %v5113_v62 = vsel %vm4900_vm13, %v5049_v43, %v9037_v11  ;;  %v1277_v27 = vadd.f32 %v12695_v17, %v12477_v51  ;;  %v12782_v48 = vsel %vm1514_vm10, %v1272_v8, %v1642_v55  ;;  %v2820_v11 = vld [vmem:[#allocation2 + $0x250] sm:$0xff] }
 0x2b7   :  { %v9041_v4 = vpop.permute.xlu1 %9040  ;;  %v12757_v53 = vpop.f32.mrf.mxu0  ;;  %v12784_v47 = vld [vmem:[#allocation2 + $0x271] sm:$0xff]  ;;  %v12789_v15 = vsel %vm1516_vm11, %v1282_v60, %v1644_v61  ;;  %vm1517_vm12 = vcmp.ge.f32.partialorder %v1287_v46, 0.0  ;;  %v9048_v60 = vunpack.i.h.bf16 %v12747_v12 }
 0x2b8   :  { %v2540_v56 = vmul.f32 0.25, %v2476_v36  ;;  %v9043_v59 = vunpack.i.h.bf16 %v9041_v4  ;;  %v9042_v44 = vunpack.i.l.bf16 %v9041_v4  ;;  %2123 = vrot.lane.b32.xlu0 %v12743_v33, %s9896_s23  ;;  %v1645_v36 = vmul.f32 0.2, %v1287_v46  ;;  %15201 = vst [vmem:[#allocation10_spill] sm:$0xff] %v12789_v15 }
 0x2b9   :  { %2119 = vrot.lane.b32.xlu1 %v12752_v6, %s9896_s23  ;;  %v1358_v18 = vpop.f32.mrf.mxu0  ;;  %v9229_v26 = vpack.i.bf16 %v2820_v11, %v12784_v47  ;;  %v1643_v55 = vmul.f32 0.2, %v1277_v27  ;;  %vm1515_vm15 = vcmp.ge.f32.partialorder %v1277_v27, 0.0 }
 0x2ba   :  { %2696 = vst.msk [vmem:[#allocation2 + $0x2b0] sm:$0xff] %vm2567_vm3, %v2540_v56  ;;  %v12769_v19 = vpop.permute.xlu0 %2081  ;;  %v5177_v31 = vsel %vm4965_vm14, %v5113_v62, %v9042_v44  ;;  %v4985_v3 = vsel %vm4965_vm14, %v4920_v0, %v9043_v59  ;;  %v9047_v59 = vunpack.i.l.bf16 %v12747_v12 }
 0x2bb   :  { %v12774_v16 = vpop.permute.xlu1 %9050  ;;  %5616 = vmatprep.mubr.f32.mxu1 %v5177_v31  ;;  %v12776_v39 = vpop.f32.mrf.mxu0  ;;  %v12807_v31 = vld [vmem:[#allocation2 + $0x288] sm:$0xff] }
 0x2bc   :  { %9225 = vrot.lane.b32.xlu0 %v9224_v23, %s9897_s16  ;;  %5617 = vmatmul.mubr.f32.gmra.mxu1 %v4985_v3  ;;  %v2743_v23 = vld [vmem:[#allocation2 + $0x147] sm:$0xff] }
 0x2bd   :  { %2125 = vrot.lane.b32.xlu1 %v12782_v48, %s9896_s23  ;;  %v1363_v4 = vpop.f32.mrf.mxu0 }
 0x2be   :  { %v2084_v43 = vpop.permute.xlu0 %2083  ;;  %v2883_v4 = vld [vmem:[#allocation2 + $0x249] sm:$0xff] }
 0x2bf   :  { %v2389_v51 = vadd.f32 %v2084_v43, %v12258_v57  ;;  %v2080_v9 = vpop.permute.xlu1 %2079  ;;  %v12793_v8 = vpop.f32.mrf.mxu0  ;;  %v12803_v57 = vsel %vm1517_vm12, %v1287_v46, %v1645_v36  ;;  %v12812_v46 = vsel %vm1515_vm15, %v1277_v27, %v1643_v55  ;;  %v2999_v36 = vld [vmem:[#allocation2 + $0x168] sm:$0xff] }
 0x2c0   :  { %v2387_v56 = vadd.f32 %v2080_v9, %v12269_v52  ;;  %2129 = vrot.lane.b32.xlu0 %v12789_v15, %s9896_s23  ;;  %v1292_v52 = vadd.f32 %v12695_v17, %v12531_v14  ;;  %15203 = vst [vmem:[#allocation15_spill] sm:$0xff] %v12812_v46  ;;  %v12814_v43 = vld [vmem:[#allocation2 + $0x287] sm:$0xff] }
 0x2c1   :  { %9230 = vrot.lane.b32.xlu1 %v9229_v26, %s9897_s16  ;;  %v12801_v44 = vpop.f32.mrf.mxu1  ;;  %v1368_v5 = vpop.f32.mrf.mxu0  ;;  %v2947_v26 = vld [vmem:[#allocation2 + $0x267] sm:$0xff] }
 0x2c2   :  { %15202 = vst [vmem:[#allocation11_spill] sm:$0xff] %v12801_v44  ;;  %v2477_v61 = vadd.f32 %v2389_v51, %v2387_v56  ;;  %v9061_v62 = vpop.permute.xlu0 %9060  ;;  %v5050_v56 = vsel %vm2567_vm3, %v2999_v36, %v9047_v59  ;;  %v4856_v5 = vsel %vm2567_vm3, %v2743_v23, %v9048_v60  ;;  %v1646_v27 = vmul.f32 0.2, %v1292_v52  ;;  %v2884_v23 = vld [vmem:[#allocation2 + $0x251] sm:$0xff]  ;;  %v15204_v36 = vld [vmem:[#allocation12_spill] sm:$0xff] }
 0x2c3   :  { %v9056_v0 = vpop.permute.xlu1 %9055  ;;  %v5525_v18 = vpop.f32.mrf.mxu1  ;;  %v9063_v14 = vunpack.i.h.bf16 %v9061_v62  ;;  %v9062_v9 = vunpack.i.l.bf16 %v9061_v62  ;;  %v9052_v62 = vunpack.i.l.bf16 %v12774_v16  ;;  %v9234_v59 = vpack.i.bf16 %v2883_v4, %v12814_v43 }
 0x2c4   :  { %v2541_v3 = vmul.f32 0.25, %v2477_v61  ;;  %v9058_v11 = vunpack.i.h.bf16 %v9056_v0  ;;  %v9057_v12 = vunpack.i.l.bf16 %v9056_v0  ;;  %2131 = vrot.lane.b32.xlu0 %v12803_v57, %s9896_s23  ;;  %v12816_v51 = vpop.f32.mrf.mxu0  ;;  %v9239_v61 = vpack.i.bf16 %v2947_v26, %v12807_v31 }
 0x2c5   :  { %2127 = vrot.lane.b32.xlu1 %v12812_v46, %s9896_s23  ;;  %v2388_v26 = vadd.f32 %v12769_v19, %v15204_v36  ;;  %vm1518_vm1 = vcmp.ge.f32.partialorder %v1292_v52, 0.0  ;;  %v1302_v19 = vadd.f32 %v12695_v17, %v12569_v10 }
 0x2c6   :  { %2697 = vst.msk [vmem:[#allocation2 + $0x2c8] sm:$0xff] %vm2567_vm3, %v2541_v3  ;;  %v9066_v55 = vpop.permute.xlu0 %9065  ;;  %v5114_v0 = vsel %vm4900_vm13, %v5050_v56, %v9057_v12  ;;  %v4921_v18 = vsel %vm4900_vm13, %v4856_v5, %v9058_v11  ;;  %v1373_v44 = vpop.f32.mrf.mxu0  ;;  %v12830_v3 = vld [vmem:[#allocation2 + $0x28f] sm:$0xff]  ;;  %v9053_v12 = vunpack.i.h.bf16 %v12774_v16 }
 0x2c7   :  { %v2086_v15 = vpop.permute.xlu1 %2085  ;;  %v5178_v46 = vsel %vm4965_vm14, %v5114_v0, %v9062_v9  ;;  %v4986_v60 = vsel %vm4965_vm14, %v4921_v18, %v9063_v14  ;;  %v9068_v4 = vunpack.i.h.bf16 %v9066_v55  ;;  %v9067_v14 = vunpack.i.l.bf16 %v9066_v55  ;;  %v12851_v55 = vld [vmem:[#allocation2 + $0x289] sm:$0xff] }
 0x2c8   :  { %v2390_v44 = vadd.f32 %v2086_v15, %v12303_v58  ;;  %9240 = vrot.lane.b32.xlu0 %v9239_v61, %s9896_s23  ;;  %v12837_v11 = vpop.f32.mrf.mxu1  ;;  %5621 = vmatprep.mubr.f32.mxu1 %v5178_v46  ;;  %v12839_v9 = vpop.f32.mrf.mxu0  ;;  %v9244_v58 = vpack.i.bf16 %v2884_v23, %v12830_v3  ;;  %v3000_v15 = vld [vmem:[#allocation2 + $0x170] sm:$0xff]  ;;  %v12848_v46 = vsel %vm1518_vm1, %v1292_v52, %v1646_v27  ;;  %v1648_v52 = vmul.f32 0.2, %v1302_v19 }
 0x2c9   :  { %15205 = vst [vmem:[#allocation12_spill] sm:$0xff] %v12837_v11  ;;  %9235 = vrot.lane.b32.xlu1 %v9234_v59, %s9898_s19  ;;  %5622 = vmatmul.mubr.f32.gmra.mxu1 %v4986_v60  ;;  %15206 = vst [vmem:[#allocation16_spill] sm:$0xff] %v12848_v46  ;;  %v5051_v0 = vsel %vm2567_vm3, %v3000_v15, %v9052_v62  ;;  %v2744_v18 = vld [vmem:[#allocation2 + $0x14f] sm:$0xff]  ;;  %vm1520_vm2 = vcmp.ge.f32.partialorder %v1302_v19, 0.0 }
 0x2ca   :  { %v2478_v56 = vadd.f32 %v2390_v44, %v2388_v26  ;;  %v12844_v16 = vpop.permute.xlu0 %9075  ;;  %v5530_v5 = vpop.f32.mrf.mxu1  ;;  %v4857_v26 = vsel %vm2567_vm3, %v2744_v18, %v9053_v12  ;;  %v12855_v44 = vld [vmem:[#allocation2 + $0x290] sm:$0xff]  ;;  %v5115_v27 = vsel %vm4900_vm13, %v5051_v0, %v9067_v14  ;;  %v2821_v62 = vld [vmem:[#allocation2 + $0x268] sm:$0xff]  ;;  %v1297_v18 = vadd.f32 %v12695_v17, %v12544_v50  ;;  %v5257_v50 = vld [vmem:[%s15159_s3 + $0x118] sm:$0xff] }
 0x2cb   :  { %v9071_v61 = vpop.permute.xlu1 %9070  ;;  %v1378_v59 = vpop.f32.mrf.mxu0  ;;  %v4922_v23 = vsel %vm4900_vm13, %v4857_v26, %v9068_v4  ;;  %v9254_v15 = vpack.i.bf16 %v2821_v62, %v12851_v55  ;;  %v2948_v14 = vld [vmem:[#allocation2 + $0x26f] sm:$0xff]  ;;  %8595 = vmatprep.subr.mxu1 %v5257_v50 }
 0x2cc   :  { %v2542_v60 = vmul.f32 0.25, %v2478_v56  ;;  %v9073_v36 = vunpack.i.h.bf16 %v9071_v61  ;;  %v9072_v10 = vunpack.i.l.bf16 %v9071_v61  ;;  %9245 = vrot.lane.b32.xlu0 %v9244_v58, %s9898_s19  ;;  %v1307_v56 = vadd.f32 %v12695_v17, %v12585_v24  ;;  %v12877_v59 = vld [vmem:[#allocation2 + $0x291] sm:$0xff]  ;;  %8596 = vmatpush3.msra.mxu1 %v5257_v50 }
 0x2cd   :  { %2133 = vrot.lane.b32.xlu1 %v12848_v46, %s9896_s23  ;;  %v12863_v5 = vpop.f32.mrf.mxu0  ;;  %v9249_v4 = vpack.i.bf16 %v2948_v14, %v12855_v44  ;;  %vm1519_vm5 = vcmp.ge.f32.partialorder %v1297_v18, 0.0  ;;  %v9077_v14 = vunpack.i.l.bf16 %v12844_v16 }
 0x2ce   :  { %2698 = vst.msk [vmem:[#allocation2 + $0x2d0] sm:$0xff] %vm2567_vm3, %v2542_v60  ;;  %v12866_v12 = vpop.permute.xlu0 %2089  ;;  %v5179_v58 = vsel %vm4965_vm14, %v5115_v27, %v9072_v10  ;;  %v4987_v61 = vsel %vm4965_vm14, %v4922_v23, %v9073_v36  ;;  %v1649_v60 = vmul.f32 0.2, %v1307_v56  ;;  %v12881_v36 = vsel %vm1520_vm2, %v1302_v19, %v1648_v52  ;;  %v2822_v27 = vld [vmem:[#allocation2 + $0x270] sm:$0xff] }
 0x2cf   :  { %v12871_v0 = vpop.permute.xlu1 %9080  ;;  %5626 = vmatprep.mubr.f32.mxu1 %v5179_v58  ;;  %v1383_v24 = vpop.f32.mrf.mxu0  ;;  %15207 = vst [vmem:[#allocation17_spill] sm:$0xff] %v12881_v36  ;;  %vm1521_vm4 = vcmp.ge.f32.partialorder %v1307_v56, 0.0  ;;  %v9259_v58 = vpack.i.bf16 %v2822_v27, %v12877_v59  ;;  %v9078_v52 = vunpack.i.h.bf16 %v12844_v16  ;;  %v1312_v27 = vadd.f32 %v12695_v17, %v12608_v38 }
 0x2d0   :  { %9255 = vrot.lane.b32.xlu0 %v9254_v15, %s9897_s16  ;;  %5627 = vmatmul.mubr.f32.gmra.mxu1 %v4987_v61  ;;  %v1647_v61 = vmul.f32 0.2, %v1297_v18 }
 0x2d1   :  { %9250 = vrot.lane.b32.xlu1 %v9249_v4, %s9896_s23  ;;  %v12883_v10 = vpop.f32.mrf.mxu0  ;;  %v12899_v4 = vsel %vm1521_vm4, %v1307_v56, %v1649_v60  ;;  %v3001_v60 = vld [vmem:[#allocation2 + $0x188] sm:$0xff]  ;;  %vm1522_vm6 = vcmp.ge.f32.partialorder %v1312_v27, 0.0 }
 0x2d2   :  { %v2092_v26 = vpop.permute.xlu0 %2091  ;;  %15209 = vst [vmem:[#allocation19_spill] sm:$0xff] %v12899_v4  ;;  %v12910_v56 = vsel %vm1519_vm5, %v1297_v18, %v1647_v61 }
 0x2d3   :  { %v2393_v62 = vadd.f32 %v2092_v26, %v12352_v32  ;;  %v2088_v23 = vpop.permute.xlu1 %2087  ;;  %v1388_v15 = vpop.f32.mrf.mxu0  ;;  %15210 = vst [vmem:[#allocation20_spill] sm:$0xff] %v12910_v56 }
 0x2d4   :  { %v2391_v19 = vadd.f32 %v2088_v23, %v12363_v34  ;;  %2137 = vrot.lane.b32.xlu0 %v12881_v36, %s9896_s23  ;;  %v12905_v15 = vld [vmem:[#allocation2 + $0x2a8] sm:$0xff] }
 0x2d5   :  { %9260 = vrot.lane.b32.xlu1 %v9259_v58, %s9897_s16  ;;  %v12896_v32 = vpop.f32.mrf.mxu1  ;;  %v12901_v24 = vpop.f32.mrf.mxu0  ;;  %v12912_v58 = vld [vmem:[#allocation2 + $0x2a7] sm:$0xff]  ;;  %v9269_v18 = vpack.i.bf16 %v12814_v43, %v12905_v15 }
 0x2d6   :  { %15208 = vst [vmem:[#allocation18_spill] sm:$0xff] %v12896_v32  ;;  %v2479_v26 = vadd.f32 %v2393_v62, %v2391_v19  ;;  %v9091_v34 = vpop.permute.xlu0 %9090  ;;  %v2745_v62 = vld [vmem:[#allocation2 + $0x167] sm:$0xff] }
 0x2d7   :  { %v9086_v50 = vpop.permute.xlu1 %9085  ;;  %v5535_v23 = vpop.f32.mrf.mxu1  ;;  %v9093_v32 = vunpack.i.h.bf16 %v9091_v34  ;;  %v9092_v38 = vunpack.i.l.bf16 %v9091_v34  ;;  %v9082_v34 = vunpack.i.l.bf16 %v12871_v0 }
 0x2d8   :  { %v2543_v11 = vmul.f32 0.25, %v2479_v26  ;;  %v9088_v16 = vunpack.i.h.bf16 %v9086_v50  ;;  %v9087_v36 = vunpack.i.l.bf16 %v9086_v50  ;;  %2139 = vrot.lane.b32.xlu0 %v12899_v4, %s9896_s23  ;;  %v1393_v19 = vpop.f32.mrf.mxu0  ;;  %v5052_v26 = vsel %vm2567_vm3, %v3001_v60, %v9077_v14  ;;  %v12930_v60 = vld [vmem:[#allocation2 + $0x2af] sm:$0xff] }
 0x2d9   :  { %2135 = vrot.lane.b32.xlu1 %v12910_v56, %s9896_s23  ;;  %v4858_v50 = vsel %vm2567_vm3, %v2745_v62, %v9078_v52  ;;  %v1650_v23 = vmul.f32 0.2, %v1312_v27  ;;  %v9264_v52 = vpack.i.bf16 %v12755_v63, %v12912_v58  ;;  %v15211_v62 = vld [vmem:[#allocation13_spill] sm:$0xff] }
 0x2da   :  { %2699 = vst.msk [vmem:[#allocation2 + $0x2e8] sm:$0xff] %vm2567_vm3, %v2543_v11  ;;  %v9096_v4 = vpop.permute.xlu0 %9095  ;;  %v5116_v61 = vsel %vm4900_vm13, %v5052_v26, %v9087_v36  ;;  %v4923_v19 = vsel %vm4900_vm13, %v4858_v50, %v9088_v16  ;;  %v12923_v46 = vpop.f32.mrf.mxu0  ;;  %v2392_v43 = vadd.f32 %v12866_v12, %v15211_v62  ;;  %v9083_v36 = vunpack.i.h.bf16 %v12871_v0 }
 0x2db   :  { %v2094_v56 = vpop.permute.xlu1 %2093  ;;  %v5180_v14 = vsel %vm4965_vm14, %v5116_v61, %v9092_v38  ;;  %v4988_v11 = vsel %vm4965_vm14, %v4923_v19, %v9093_v32  ;;  %v9098_v50 = vunpack.i.h.bf16 %v9096_v4  ;;  %v9097_v63 = vunpack.i.l.bf16 %v9096_v4 }
 0x2dc   :  { %v2394_v16 = vadd.f32 %v2094_v56, %v12397_v45  ;;  %9270 = vrot.lane.b32.xlu0 %v9269_v18, %s9896_s23  ;;  %v12937_v26 = vpop.f32.mrf.mxu1  ;;  %5631 = vmatprep.mubr.f32.mxu1 %v5180_v14  ;;  %v1398_v38 = vpop.f32.mrf.mxu0  ;;  %v1322_v32 = vadd.f32 %v12695_v17, %v12629_v2  ;;  %v9274_v45 = vpack.i.bf16 %v12784_v47, %v12930_v60  ;;  %v3002_v56 = vld [vmem:[#allocation2 + $0x190] sm:$0xff] }
 0x2dd   :  { %15212 = vst [vmem:[#allocation13_spill] sm:$0xff] %v12937_v26  ;;  %9265 = vrot.lane.b32.xlu1 %v9264_v52, %s9898_s19  ;;  %5632 = vmatmul.mubr.f32.gmra.mxu1 %v4988_v11  ;;  %v12947_v19 = vsel %vm1522_vm6, %v1312_v27, %v1650_v23  ;;  %v5053_v4 = vsel %vm2567_vm3, %v3002_v56, %v9082_v34  ;;  %v12950_v14 = vld [vmem:[#allocation2 + $0x2a9] sm:$0xff] }
 0x2de   :  { %v2480_v12 = vadd.f32 %v2394_v16, %v2392_v43  ;;  %v12942_v61 = vpop.permute.xlu0 %9105  ;;  %v5540_v0 = vpop.f32.mrf.mxu1  ;;  %v2746_v52 = vld [vmem:[#allocation2 + $0x16f] sm:$0xff]  ;;  %v1652_v27 = vmul.f32 0.2, %v1322_v32  ;;  %v5117_v23 = vsel %vm4900_vm13, %v5053_v4, %v9097_v63  ;;  %v1327_v38 = vadd.f32 %v12695_v17, %v12646_v35 }
 0x2df   :  { %v9101_v18 = vpop.permute.xlu1 %9100  ;;  %v12952_v11 = vpop.f32.mrf.mxu0  ;;  %v4859_v16 = vsel %vm2567_vm3, %v2746_v52, %v9083_v36  ;;  %v12956_v47 = vld [vmem:[#allocation2 + $0x2b0] sm:$0xff]  ;;  %vm1524_vm7 = vcmp.ge.f32.partialorder %v1322_v32, 0.0  ;;  %v1317_v63 = vadd.f32 %v12695_v17, %v12618_v30 }
 0x2e0   :  { %v2544_v2 = vmul.f32 0.25, %v2480_v12  ;;  %v9103_v62 = vunpack.i.h.bf16 %v9101_v18  ;;  %v9102_v43 = vunpack.i.l.bf16 %v9101_v18  ;;  %9275 = vrot.lane.b32.xlu0 %v9274_v45, %s9898_s19  ;;  %v4924_v34 = vsel %vm4900_vm13, %v4859_v16, %v9098_v50  ;;  %v12980_v4 = vld [vmem:[#allocation2 + $0x2b1] sm:$0xff] }
 0x2e1   :  { %2141 = vrot.lane.b32.xlu1 %v12947_v19, %s9896_s23  ;;  %v1403_v12 = vpop.f32.mrf.mxu0  ;;  %v9284_v45 = vpack.i.bf16 %v12807_v31, %v12950_v14  ;;  %v9279_v50 = vpack.i.bf16 %v12830_v3, %v12956_v47  ;;  %v1653_v31 = vmul.f32 0.2, %v1327_v38  ;;  %v12983_v52 = vsel %vm1524_vm7, %v1322_v32, %v1652_v27 }
 0x2e2   :  { %2700 = vst.msk [vmem:[#allocation2 + $0x2f0] sm:$0xff] %vm2567_vm3, %v2544_v2  ;;  %v12965_v0 = vpop.permute.xlu0 %2097  ;;  %v5181_v36 = vsel %vm4965_vm14, %v5117_v23, %v9102_v43  ;;  %v4989_v56 = vsel %vm4965_vm14, %v4924_v34, %v9103_v62  ;;  %15213 = vst [vmem:[#allocation21_spill] sm:$0xff] %v12983_v52  ;;  %vm1525_vm8 = vcmp.ge.f32.partialorder %v1327_v38, 0.0  ;;  %v9289_v16 = vpack.i.bf16 %v12855_v44, %v12980_v4  ;;  %v15214_v34 = vld [vmem:[#allocation9_spill] sm:$0xff] }
 0x2e3   :  { %v12971_v18 = vpop.permute.xlu1 %9110  ;;  %5636 = vmatprep.mubr.f32.mxu1 %v5181_v36  ;;  %v12975_v35 = vpop.f32.mrf.mxu0  ;;  %v1651_v23 = vmul.f32 0.2, %v1317_v63  ;;  %vm1523_vm0 = vcmp.ge.f32.partialorder %v1317_v63, 0.0  ;;  %v9108_v32 = vunpack.i.h.bf16 %v12942_v61  ;;  %v9107_v27 = vunpack.i.l.bf16 %v12942_v61 }
 0x2e4   :  { %9285 = vrot.lane.b32.xlu0 %v9284_v45, %s9897_s16  ;;  %5637 = vmatmul.mubr.f32.gmra.mxu1 %v4989_v56  ;;  %v12998_v36 = vsel %vm1525_vm8, %v1327_v38, %v1653_v31  ;;  %v3003_v38 = vld [vmem:[#allocation2 + $0x1a8] sm:$0xff] }
 0x2e5   :  { %9280 = vrot.lane.b32.xlu1 %v9279_v50, %s9896_s23  ;;  %v1408_v2 = vpop.f32.mrf.mxu0  ;;  %v1332_v50 = vadd.f32 %v12695_v17, %v12664_v37  ;;  %v13007_v61 = vsel %vm1523_vm0, %v1317_v63, %v1651_v23  ;;  %v13009_v31 = vld [vmem:[#allocation2 + $0x2c7] sm:$0xff]  ;;  %v5054_v37 = vsel %vm2567_vm3, %v3003_v38, %v9107_v27  ;;  %v15217_v38 = vld [vmem:[#allocation14_spill] sm:$0xff] }
 0x2e6   :  { %v2100_v62 = vpop.permute.xlu0 %2099  ;;  %15216 = vst [vmem:[#allocation22_spill] sm:$0xff] %v13007_v61  ;;  %v9294_v27 = vpack.i.bf16 %v12851_v55, %v13009_v31  ;;  %v1342_v55 = vadd.f32 %v12695_v17, %v12703_v42 }
 0x2e7   :  { %v2397_v3 = vadd.f32 %v2100_v62, %v12446_v25  ;;  %v2096_v43 = vpop.permute.xlu1 %2095  ;;  %v12988_v30 = vpop.f32.mrf.mxu0  ;;  %vm1526_vm9 = vcmp.ge.f32.partialorder %v1332_v50, 0.0 }
 0x2e8   :  { %v2395_v12 = vadd.f32 %v2096_v43, %v15214_v34  ;;  %2145 = vrot.lane.b32.xlu0 %v12983_v52, %s9896_s23  ;;  %v13002_v43 = vld [vmem:[#allocation2 + $0x2c8] sm:$0xff]  ;;  %vm1528_vm10 = vcmp.ge.f32.partialorder %v1342_v55, 0.0 }
 0x2e9   :  { %9290 = vrot.lane.b32.xlu1 %v9289_v16, %s9897_s16  ;;  %v12996_v25 = vpop.f32.mrf.mxu1  ;;  %v1413_v44 = vpop.f32.mrf.mxu0  ;;  %v9299_v63 = vpack.i.bf16 %v12912_v58, %v13002_v43  ;;  %v9113_v58 = vunpack.i.h.bf16 %v12971_v18 }
 0x2ea   :  { %15215 = vst [vmem:[#allocation9_spill] sm:$0xff] %v12996_v25  ;;  %v2481_v45 = vadd.f32 %v2397_v3, %v2395_v12  ;;  %v9121_v56 = vpop.permute.xlu0 %9120  ;;  %v2747_v3 = vld [vmem:[#allocation2 + $0x187] sm:$0xff] }
 0x2eb   :  { %v9116_v2 = vpop.permute.xlu1 %9115  ;;  %v5545_v62 = vpop.f32.mrf.mxu1  ;;  %v9123_v16 = vunpack.i.h.bf16 %v9121_v56  ;;  %v9122_v12 = vunpack.i.l.bf16 %v9121_v56  ;;  %v4860_v44 = vsel %vm2567_vm3, %v2747_v3, %v9108_v32  ;;  %v9112_v56 = vunpack.i.l.bf16 %v12971_v18 }
 0x2ec   :  { %v2545_v34 = vmul.f32 0.25, %v2481_v45  ;;  %v9118_v26 = vunpack.i.h.bf16 %v9116_v2  ;;  %v9117_v52 = vunpack.i.l.bf16 %v9116_v2  ;;  %2147 = vrot.lane.b32.xlu0 %v12998_v36, %s9896_s23  ;;  %v1654_v45 = vmul.f32 0.2, %v1332_v50 }
 0x2ed   :  { %2143 = vrot.lane.b32.xlu1 %v13007_v61, %s9896_s23  ;;  %v2396_v3 = vadd.f32 %v12965_v0, %v15217_v38  ;;  %v13049_v38 = vld [vmem:[#allocation2 + $0x2d0] sm:$0xff] }
 0x2ee   :  { %2701 = vst.msk [vmem:[#allocation2 + $0x308] sm:$0xff] %vm2567_vm3, %v2545_v34  ;;  %v9126_v2 = vpop.permute.xlu0 %9125  ;;  %v5118_v23 = vsel %vm4900_vm13, %v5054_v37, %v9117_v52  ;;  %v4925_v62 = vsel %vm4900_vm13, %v4860_v44, %v9118_v26  ;;  %v13025_v34 = vld [vmem:[#allocation2 + $0x2cf] sm:$0xff] }
 0x2ef   :  { %v2102_v25 = vpop.permute.xlu1 %2101  ;;  %v5182_v61 = vsel %vm4965_vm14, %v5118_v23, %v9122_v12  ;;  %v4990_v32 = vsel %vm4965_vm14, %v4925_v62, %v9123_v16  ;;  %v9128_v12 = vunpack.i.h.bf16 %v9126_v2  ;;  %v9127_v37 = vunpack.i.l.bf16 %v9126_v2  ;;  %v13045_v2 = vld [vmem:[#allocation2 + $0x2c9] sm:$0xff] }
 0x2f0   :  { %v2398_v26 = vadd.f32 %v2102_v25, %v12491_v13  ;;  %9300 = vrot.lane.b32.xlu0 %v9299_v63, %s9896_s23  ;;  %v13032_v52 = vpop.f32.mrf.mxu1  ;;  %5641 = vmatprep.mubr.f32.mxu1 %v5182_v61  ;;  %v9304_v13 = vpack.i.bf16 %v12877_v59, %v13025_v34  ;;  %v3004_v25 = vld [vmem:[#allocation2 + $0x1b0] sm:$0xff]  ;;  %v13042_v63 = vsel %vm1526_vm9, %v1332_v50, %v1654_v45  ;;  %v1656_v59 = vmul.f32 0.2, %v1342_v55 }
 0x2f1   :  { %9295 = vrot.lane.b32.xlu1 %v9294_v27, %s9898_s19  ;;  %5642 = vmatmul.mubr.f32.gmra.mxu1 %v4990_v32  ;;  %v5055_v61 = vsel %vm2567_vm3, %v3004_v25, %v9112_v56  ;;  %v2748_v23 = vld [vmem:[#allocation2 + $0x18f] sm:$0xff]  ;;  %v1347_v56 = vadd.f32 %v12695_v17, %v12717_v41  ;;  %v1337_v41 = vadd.f32 %v12695_v17, %v12682_v29 }
 0x2f2   :  { %v2482_v16 = vadd.f32 %v2398_v26, %v2396_v3  ;;  %v13037_v0 = vpop.permute.xlu0 %9135  ;;  %v5550_v18 = vpop.f32.mrf.mxu1  ;;  %v4861_v32 = vsel %vm2567_vm3, %v2748_v23, %v9113_v58  ;;  %v5119_v50 = vsel %vm4900_vm13, %v5055_v61, %v9127_v37  ;;  %v9314_v58 = vpack.i.bf16 %v12905_v15, %v13045_v2  ;;  %v13069_v37 = vld [vmem:[#allocation2 + $0x2d1] sm:$0xff] }
 0x2f3   :  { %v9131_v44 = vpop.permute.xlu1 %9130  ;;  %v4926_v45 = vsel %vm4900_vm13, %v4861_v32, %v9128_v12  ;;  %v9309_v12 = vpack.i.bf16 %v12930_v60, %v13049_v38  ;;  %v13072_v15 = vsel %vm1528_vm10, %v1342_v55, %v1656_v59  ;;  %vm1529_vm11 = vcmp.ge.f32.partialorder %v1347_v56, 0.0 }
 0x2f4   :  { %v2546_v62 = vmul.f32 0.25, %v2482_v16  ;;  %v9133_v27 = vunpack.i.h.bf16 %v9131_v44  ;;  %v9132_v42 = vunpack.i.l.bf16 %v9131_v44  ;;  %9305 = vrot.lane.b32.xlu0 %v9304_v13, %s9898_s19  ;;  %v1657_v13 = vmul.f32 0.2, %v1347_v56 }
 0x2f5   :  { %2149 = vrot.lane.b32.xlu1 %v13042_v63, %s9896_s23  ;;  %v9319_v60 = vpack.i.bf16 %v12956_v47, %v13069_v37  ;;  %v1655_v23 = vmul.f32 0.2, %v1337_v41  ;;  %vm1527_vm12 = vcmp.ge.f32.partialorder %v1337_v41, 0.0  ;;  %v9137_v55 = vunpack.i.l.bf16 %v13037_v0 }
 0x2f6   :  { %2702 = vst.msk [vmem:[#allocation2 + $0x310] sm:$0xff] %vm2567_vm3, %v2546_v62  ;;  %v2106_v3 = vpop.permute.xlu0 %2105  ;;  %v5183_v26 = vsel %vm4965_vm14, %v5119_v50, %v9132_v42  ;;  %v4991_v16 = vsel %vm4965_vm14, %v4926_v45, %v9133_v27  ;;  %v9138_v62 = vunpack.i.h.bf16 %v13037_v0  ;;  %v1352_v47 = vadd.f32 %v12695_v17, %v12732_v21  ;;  %v13089_v50 = vld [vmem:[#allocation2 + $0x2e8] sm:$0xff] }
 0x2f7   :  { %v13062_v18 = vpop.permute.xlu1 %9140  ;;  %5646 = vmatprep.mubr.f32.mxu1 %v5183_v26  ;;  %v13094_v0 = vsel %vm1527_vm12, %v1337_v41, %v1655_v23  ;;  %v9329_v41 = vpack.i.bf16 %v13009_v31, %v13089_v50 }
 0x2f8   :  { %9315 = vrot.lane.b32.xlu0 %v9314_v58, %s9897_s16  ;;  %5647 = vmatmul.mubr.f32.gmra.mxu1 %v4991_v16  ;;  %v13096_v16 = vld [vmem:[#allocation2 + $0x2e7] sm:$0xff]  ;;  %v9143_v31 = vunpack.i.h.bf16 %v13062_v18  ;;  %vm1530_vm15 = vcmp.ge.f32.partialorder %v1352_v47, 0.0 }
 0x2f9   :  { %9310 = vrot.lane.b32.xlu1 %v9309_v12, %s9896_s23  ;;  %v2749_v12 = vld [vmem:[#allocation2 + $0x1a7] sm:$0xff] }
 0x2fa   :  { %v2108_v25 = vpop.permute.xlu0 %2107 }
 0x2fb   :  { %v2401_v44 = vadd.f32 %v2108_v25, %v12538_v7  ;;  %v2104_v61 = vpop.permute.xlu1 %2103  ;;  %v13085_v7 = vsel %vm1529_vm11, %v1347_v56, %v1657_v13  ;;  %v3005_v56 = vld [vmem:[#allocation2 + $0x1c8] sm:$0xff] }
 0x2fc   :  { %v2399_v29 = vadd.f32 %v2104_v61, %v12549_v28  ;;  %2153 = vrot.lane.b32.xlu0 %v13072_v15, %s9896_s23  ;;  %v5056_v21 = vsel %vm2567_vm3, %v3005_v56, %v9137_v55  ;;  %v1658_v61 = vmul.f32 0.2, %v1352_v47  ;;  %v9324_v55 = vpack.i.bf16 %v12950_v14, %v13096_v16 }
 0x2fd   :  { %9320 = vrot.lane.b32.xlu1 %v9319_v60, %s9897_s16  ;;  %v13083_v27 = vpop.f32.mrf.mxu1  ;;  %v1362_v14 = vadd.f32 %v12695_v17, %v12776_v39 }
 0x2fe   :  { %v2483_v42 = vadd.f32 %v2401_v44, %v2399_v29  ;;  %v9151_v32 = vpop.permute.xlu0 %9150  ;;  %v4862_v44 = vsel %vm2567_vm3, %v2749_v12, %v9138_v62 }
 0x2ff   :  { %v9146_v28 = vpop.permute.xlu1 %9145  ;;  %v5555_v59 = vpop.f32.mrf.mxu1  ;;  %v9153_v13 = vunpack.i.h.bf16 %v9151_v32  ;;  %v9152_v25 = vunpack.i.l.bf16 %v9151_v32  ;;  %vm1532_vm1 = vcmp.ge.f32.partialorder %v1362_v14, 0.0 }
 0x300   :  { %v2547_v45 = vmul.f32 0.25, %v2483_v42  ;;  %v9148_v26 = vunpack.i.h.bf16 %v9146_v28  ;;  %v9147_v58 = vunpack.i.l.bf16 %v9146_v28  ;;  %2155 = vrot.lane.b32.xlu0 %v13085_v7, %s9896_s23  ;;  %v9142_v42 = vunpack.i.l.bf16 %v13062_v18  ;;  %v13112_v59 = vld [vmem:[#allocation2 + $0x2ef] sm:$0xff] }
 0x301   :  { %2151 = vrot.lane.b32.xlu1 %v13094_v0, %s9896_s23 }
 0x302   :  { %2703 = vst.msk [vmem:[#allocation2 + $0x328] sm:$0xff] %vm2567_vm3, %v2547_v45  ;;  %v9156_v60 = vpop.permute.xlu0 %9155  ;;  %v5120_v23 = vsel %vm4900_vm13, %v5056_v21, %v9147_v58  ;;  %v4927_v29 = vsel %vm4900_vm13, %v4862_v44, %v9148_v26  ;;  %v15218_v45 = vld [vmem:[#allocation8_spill] sm:$0xff]  ;;  %v3006_v21 = vld [vmem:[#allocation2 + $0x1d0] sm:$0xff] }
 0x303   :  { %v2110_v32 = vpop.permute.xlu1 %2109  ;;  %v5184_v28 = vsel %vm4965_vm14, %v5120_v23, %v9152_v25  ;;  %v4992_v62 = vsel %vm4965_vm14, %v4927_v29, %v9153_v13  ;;  %v2400_v56 = vadd.f32 %v2106_v3, %v15218_v45  ;;  %v9158_v12 = vunpack.i.h.bf16 %v9156_v60  ;;  %v13131_v23 = vld [vmem:[#allocation2 + $0x2e9] sm:$0xff] }
 0x304   :  { %v2402_v58 = vadd.f32 %v2110_v32, %v12580_v22  ;;  %9330 = vrot.lane.b32.xlu0 %v9329_v41, %s9896_s23  ;;  %v13118_v26 = vpop.f32.mrf.mxu1  ;;  %5651 = vmatprep.mubr.f32.mxu1 %v5184_v28  ;;  %v9157_v25 = vunpack.i.l.bf16 %v9156_v60  ;;  %v9334_v22 = vpack.i.bf16 %v12980_v4, %v13112_v59  ;;  %v13128_v41 = vsel %vm1530_vm15, %v1352_v47, %v1658_v61  ;;  %v2750_v29 = vld [vmem:[#allocation2 + $0x1af] sm:$0xff] }
 0x305   :  { %9325 = vrot.lane.b32.xlu1 %v9324_v55, %s9898_s19  ;;  %5652 = vmatmul.mubr.f32.gmra.mxu1 %v4992_v62  ;;  %v5057_v60 = vsel %vm2567_vm3, %v3006_v21, %v9142_v42  ;;  %v4863_v55 = vsel %vm2567_vm3, %v2750_v29, %v9143_v31  ;;  %v13135_v62 = vld [vmem:[#allocation2 + $0x2f0] sm:$0xff]  ;;  %v1660_v4 = vmul.f32 0.2, %v1362_v14  ;;  %v1367_v42 = vadd.f32 %v12695_v17, %v12793_v8 }
 0x306   :  { %v2484_v13 = vadd.f32 %v2402_v58, %v2400_v56  ;;  %v13123_v3 = vpop.permute.xlu0 %9165  ;;  %v5560_v18 = vpop.f32.mrf.mxu1  ;;  %v5121_v47 = vsel %vm4900_vm13, %v5057_v60, %v9157_v25  ;;  %v4928_v61 = vsel %vm4900_vm13, %v4863_v55, %v9158_v12  ;;  %v9344_v31 = vpack.i.bf16 %v13002_v43, %v13131_v23  ;;  %v13157_v25 = vld [vmem:[#allocation2 + $0x2f1] sm:$0xff] }
 0x307   :  { %v9161_v44 = vpop.permute.xlu1 %9160  ;;  %v9339_v12 = vpack.i.bf16 %v13025_v34, %v13135_v62  ;;  %v1357_v8 = vadd.f32 %v12695_v17, %v12757_v53  ;;  %v1661_v18 = vmul.f32 0.2, %v1367_v42  ;;  %v13160_v43 = vsel %vm1532_vm1, %v1362_v14, %v1660_v4 }
 0x308   :  { %v2548_v32 = vmul.f32 0.25, %v2484_v13  ;;  %v9163_v28 = vunpack.i.h.bf16 %v9161_v44  ;;  %v9162_v39 = vunpack.i.l.bf16 %v9161_v44  ;;  %9335 = vrot.lane.b32.xlu0 %v9334_v22, %s9898_s19  ;;  %vm1533_vm2 = vcmp.ge.f32.partialorder %v1367_v42, 0.0 }
 0x309   :  { %2157 = vrot.lane.b32.xlu1 %v13128_v41, %s9896_s23  ;;  %v9349_v34 = vpack.i.bf16 %v13049_v38, %v13157_v25  ;;  %v1659_v44 = vmul.f32 0.2, %v1357_v8  ;;  %vm1531_vm4 = vcmp.ge.f32.partialorder %v1357_v8, 0.0  ;;  %v13171_v53 = vsel %vm1533_vm2, %v1367_v42, %v1661_v18  ;;  %v13177_v38 = vld [vmem:[%s15158_s2] ss:$0 sm:$0xff] }
 0x30a   :  { %2704 = vst.msk [vmem:[#allocation2 + $0x330] sm:$0xff] %vm2567_vm3, %v2548_v32  ;;  %v13144_v45 = vpop.permute.xlu0 %9180  ;;  %v5185_v56 = vsel %vm4965_vm14, %v5121_v47, %v9162_v39  ;;  %v4993_v58 = vsel %vm4965_vm14, %v4928_v61, %v9163_v28  ;;  %v1372_v28 = vadd.f32 %v13177_v38, %v12816_v51  ;;  %v13181_v39 = vld [vmem:[#allocation2 + $0x308] sm:$0xff]  ;;  %v9168_v47 = vunpack.i.h.bf16 %v13123_v3 }
 0x30b   :  { %v13150_v13 = vpop.permute.xlu1 %9170  ;;  %5656 = vmatprep.mubr.f32.mxu1 %v5185_v56  ;;  %v13186_v4 = vsel %vm1531_vm4, %v1357_v8, %v1659_v44  ;;  %v9167_v61 = vunpack.i.l.bf16 %v13123_v3  ;;  %v9359_v56 = vpack.i.bf16 %v13096_v16, %v13181_v39  ;;  %v13201_v8 = vld [vmem:[#allocation2 + $0x30f] sm:$0xff] }
 0x30c   :  { %9345 = vrot.lane.b32.xlu0 %v9344_v31, %s9897_s16  ;;  %5657 = vmatmul.mubr.f32.gmra.mxu1 %v4993_v58  ;;  %vm1534_vm5 = vcmp.ge.f32.partialorder %v1372_v28, 0.0  ;;  %v1662_v31 = vmul.f32 0.2, %v1372_v28  ;;  %v3007_v16 = vld [vmem:[#allocation2 + $0x1e8] sm:$0xff] }
 0x30d   :  { %9340 = vrot.lane.b32.xlu1 %v9339_v12, %s9896_s23 }
 0x30e   :  { %v2114_v22 = vpop.permute.xlu0 %2113 }
 0x30f   :  { %v13162_v21 = vpop.permute.xlu1 %9175 }
 0x310   :  { %2161 = vrot.lane.b32.xlu0 %v13160_v43, %s9896_s23 }
 0x311   :  { %9350 = vrot.lane.b32.xlu1 %v9349_v34, %s9897_s16  ;;  %v13169_v17 = vpop.f32.mrf.mxu1 }
 0x312   :  { %15219 = vst [vmem:[#allocation14_spill] sm:$0xff] %v13169_v17  ;;  %v2116_v14 = vpop.permute.xlu0 %2115 }
 0x313   :  { %v2405_v60 = vadd.f32 %v2116_v14, %v12633_v40  ;;  %v2112_v29 = vpop.permute.xlu1 %2111  ;;  %v5565_v32 = vpop.f32.mrf.mxu1  ;;  %v13188_v40 = vld [vmem:[#allocation2 + $0x307] sm:$0xff] }
 0x314   :  { %v2403_v55 = vadd.f32 %v2112_v29, %v12655_v20  ;;  %2163 = vrot.lane.b32.xlu0 %v13171_v53, %s9896_s23  ;;  %v5256_v20 = vld [vmem:[%s15159_s3 + $0x110] sm:$0xff]  ;;  %v9354_v12 = vpack.i.bf16 %v13045_v2, %v13188_v40  ;;  %v2751_v14 = vld [vmem:[#allocation2 + $0x1c7] sm:$0xff]  ;;  %v5058_v2 = vsel %vm2567_vm3, %v3007_v16, %v9167_v61  ;;  %v9173_v16 = vunpack.i.h.bf16 %v13150_v13 }
 0x315   :  { %2159 = vrot.lane.b32.xlu1 %v13186_v4, %s9896_s23  ;;  %8597 = vmatprep.subr.mxu1 %v5256_v20 }
 0x316   :  { %v2485_v42 = vadd.f32 %v2405_v60, %v2403_v55  ;;  %v9191_v51 = vpop.permute.xlu0 %9190  ;;  %v1382_v60 = vadd.f32 %v13177_v38, %v12863_v5  ;;  %8598 = vmatpush3.msra.mxu1 %v5256_v20  ;;  %v4864_v55 = vsel %vm2567_vm3, %v2751_v14, %v9168_v47  ;;  %v9172_v20 = vunpack.i.l.bf16 %v13150_v13 }
 0x317   :  { %v9186_v58 = vpop.permute.xlu1 %9185  ;;  %v9193_v29 = vunpack.i.h.bf16 %v9191_v51  ;;  %v9192_v32 = vunpack.i.l.bf16 %v9191_v51  ;;  %v1387_v51 = vadd.f32 %v13177_v38, %v12883_v10  ;;  %v13230_v10 = vsel %vm1534_vm5, %v1372_v28, %v1662_v31  ;;  %v3008_v31 = vld [vmem:[#allocation2 + $0x1f0] sm:$0xff] }
 0x318   :  { %v2549_v3 = vmul.f32 0.25, %v2485_v42  ;;  %v9188_v18 = vunpack.i.h.bf16 %v9186_v58  ;;  %v9187_v34 = vunpack.i.l.bf16 %v9186_v58  ;;  %9360 = vrot.lane.b32.xlu0 %v9359_v56, %s9896_s23  ;;  %v13204_v44 = vpop.f32.mrf.mxu1  ;;  %v9364_v58 = vpack.i.bf16 %v13069_v37, %v13201_v8 }
 0x319   :  { %9355 = vrot.lane.b32.xlu1 %v9354_v12, %s9898_s19  ;;  %v2404_v37 = vadd.f32 %v2114_v22, %v12626_v1  ;;  %vm1536_vm6 = vcmp.ge.f32.partialorder %v1382_v60, 0.0  ;;  %v1664_v1 = vmul.f32 0.2, %v1382_v60  ;;  %vm1537_vm7 = vcmp.ge.f32.partialorder %v1387_v51, 0.0 }
 0x31a   :  { %2705 = vst.msk [vmem:[#allocation2 + $0x348] sm:$0xff] %vm2567_vm3, %v2549_v3  ;;  %v13212_v42 = vpop.permute.xlu0 %9195  ;;  %v5570_v56 = vpop.f32.mrf.mxu1  ;;  %v5122_v17 = vsel %vm4900_vm13, %v5058_v2, %v9187_v34  ;;  %v4929_v5 = vsel %vm4900_vm13, %v4864_v55, %v9188_v18  ;;  %v13223_v3 = vld [vmem:[#allocation2 + $0x309] sm:$0xff]  ;;  %v1665_v28 = vmul.f32 0.2, %v1387_v51  ;;  %v5059_v2 = vsel %vm2567_vm3, %v3008_v31, %v9172_v20 }
 0x31b   :  { %v2118_v61 = vpop.permute.xlu1 %2117  ;;  %v5186_v47 = vsel %vm4965_vm14, %v5122_v17, %v9192_v32  ;;  %v4994_v12 = vsel %vm4965_vm14, %v4929_v5, %v9193_v29  ;;  %v13232_v18 = vld [vmem:[#allocation2 + $0x310] sm:$0xff]  ;;  %v13236_v17 = vadd.f32 %v13177_v38, %v12839_v9  ;;  %v9374_v22 = vpack.i.bf16 %v13089_v50, %v13223_v3 }
 0x31c   :  { %v2406_v34 = vadd.f32 %v2118_v61, %v12686_v49  ;;  %9365 = vrot.lane.b32.xlu0 %v9364_v58, %s9898_s19  ;;  %5661 = vmatprep.mubr.f32.mxu1 %v5186_v47  ;;  %v9369_v9 = vpack.i.bf16 %v13112_v59, %v13232_v18  ;;  %v2752_v55 = vld [vmem:[#allocation2 + $0x1cf] sm:$0xff]  ;;  %v9178_v31 = vunpack.i.h.bf16 %v13162_v21 }
 0x31d   :  { %2165 = vrot.lane.b32.xlu1 %v13230_v10, %s9896_s23  ;;  %5662 = vmatmul.mubr.f32.gmra.mxu1 %v4994_v12  ;;  %v4865_v61 = vsel %vm2567_vm3, %v2752_v55, %v9173_v16  ;;  %v13247_v50 = vld [vmem:[#allocation2 + $0x311] sm:$0xff]  ;;  %v13252_v12 = vsel %vm1536_vm6, %v1382_v60, %v1664_v1  ;;  %vm1535_vm8 = vcmp.ge.f32.partialorder %v13236_v17, 0.0  ;;  %v1663_v20 = vmul.f32 0.2, %v13236_v17 }
 0x31e   :  { %v2486_v13 = vadd.f32 %v2406_v34, %v2404_v37  ;;  %v9201_v49 = vpop.permute.xlu0 %9200  ;;  %v9379_v60 = vpack.i.bf16 %v13135_v62, %v13247_v50  ;;  %v13263_v1 = vsel %vm1537_vm7, %v1387_v51, %v1665_v28  ;;  %v9198_v55 = vunpack.i.h.bf16 %v13212_v42  ;;  %v3010_v28 = vld [vmem:[#allocation2 + $0x210] sm:$0xff] }
 0x31f   :  { %v9203_v14 = vunpack.i.h.bf16 %v9201_v49  ;;  %v9202_v29 = vunpack.i.l.bf16 %v9201_v49  ;;  %v9206_v32 = vpop.permute.xlu1 %9205 }
 0x320   :  { %v2550_v56 = vmul.f32 0.25, %v2486_v13  ;;  %v9208_v58 = vunpack.i.h.bf16 %v9206_v32  ;;  %v9207_v5 = vunpack.i.l.bf16 %v9206_v32  ;;  %9375 = vrot.lane.b32.xlu0 %v9374_v22, %s9897_s16 }
 0x321   :  { %9370 = vrot.lane.b32.xlu1 %v9369_v9, %s9896_s23  ;;  %v5123_v47 = vsel %vm4900_vm13, %v5059_v2, %v9202_v29  ;;  %v4930_v59 = vsel %vm4900_vm13, %v4865_v61, %v9203_v14  ;;  %v9177_v14 = vunpack.i.l.bf16 %v13162_v21  ;;  %v3009_v9 = vld [vmem:[#allocation2 + $0x208] sm:$0xff] }
 0x322   :  { %2706 = vst.msk [vmem:[#allocation2 + $0x350] sm:$0xff] %vm2567_vm3, %v2550_v56  ;;  %v9211_v37 = vpop.permute.xlu0 %9210  ;;  %v5187_v16 = vsel %vm4965_vm14, %v5123_v47, %v9207_v5  ;;  %v4995_v34 = vsel %vm4965_vm14, %v4930_v59, %v9208_v58  ;;  %v2753_v2 = vld [vmem:[#allocation2 + $0x1e7] sm:$0xff]  ;;  %v9197_v56 = vunpack.i.l.bf16 %v13212_v42  ;;  %v9182_v59 = vunpack.i.l.bf16 %v13144_v45 }
 0x323   :  { %v9213_v13 = vunpack.i.h.bf16 %v9211_v37  ;;  %v9212_v49 = vunpack.i.l.bf16 %v9211_v37  ;;  %v9216_v22 = vpop.permute.xlu1 %9215  ;;  %5666 = vmatprep.mubr.f32.mxu1 %v5187_v16 }
 0x324   :  { %v9218_v29 = vunpack.i.h.bf16 %v9216_v22  ;;  %v9217_v32 = vunpack.i.l.bf16 %v9216_v22  ;;  %2169 = vrot.lane.b32.xlu0 %v13252_v12, %s9896_s23  ;;  %5667 = vmatmul.mubr.f32.gmra.mxu1 %v4995_v34  ;;  %v13284_v34 = vsel %vm1535_vm8, %v13236_v17, %v1663_v20  ;;  %v2754_v22 = vld [vmem:[#allocation2 + $0x1ef] sm:$0xff]  ;;  %v9183_v17 = vunpack.i.h.bf16 %v13144_v45 }
 0x325   :  { %9380 = vrot.lane.b32.xlu1 %v9379_v60, %s9897_s16  ;;  %v13272_v62 = vpop.f32.mrf.mxu1  ;;  %v5060_v51 = vsel %vm2567_vm3, %v3009_v9, %v9212_v49  ;;  %v4866_v21 = vsel %vm2567_vm3, %v2753_v2, %v9213_v13  ;;  %v13287_v49 = vld [vmem:[#allocation2 + $0x328] sm:$0xff] }
 0x326   :  { %v2122_v58 = vpop.permute.xlu0 %2121  ;;  %v5124_v5 = vsel %vm4900_vm13, %v5060_v51, %v9177_v14  ;;  %v4931_v61 = vsel %vm4900_vm13, %v4866_v21, %v9178_v31  ;;  %v5061_v47 = vsel %vm2567_vm3, %v3010_v28, %v9217_v32  ;;  %v1392_v14 = vadd.f32 %v13177_v38, %v12901_v24  ;;  %v13293_v32 = vld [vmem:[#allocation2 + $0x327] sm:$0xff]  ;;  %v13307_v21 = vld [vmem:[#allocation2 + $0x32f] sm:$0xff] }
 0x327   :  { %v9221_v37 = vpop.permute.xlu1 %9220  ;;  %v5575_v42 = vpop.f32.mrf.mxu1  ;;  %v5188_v16 = vsel %vm4965_vm14, %v5124_v5, %v9197_v56  ;;  %v4996_v13 = vsel %vm4965_vm14, %v4931_v61, %v9198_v55  ;;  %v4867_v9 = vsel %vm2567_vm3, %v2754_v22, %v9218_v29  ;;  %v5125_v20 = vsel %vm4900_vm13, %v5061_v47, %v9182_v59 }
 0x328   :  { %v9223_v60 = vunpack.i.h.bf16 %v9221_v37  ;;  %v9222_v31 = vunpack.i.l.bf16 %v9221_v37  ;;  %2171 = vrot.lane.b32.xlu0 %v13263_v1, %s9896_s23  ;;  %5671 = vmatprep.mubr.f32.mxu1 %v5188_v16  ;;  %v9389_v56 = vpack.i.bf16 %v13188_v40, %v13287_v49  ;;  %v9384_v29 = vpack.i.bf16 %v13131_v23, %v13293_v32  ;;  %v13321_v42 = vld [vmem:[#allocation2 + $0x329] sm:$0xff] }
 0x329   :  { %2167 = vrot.lane.b32.xlu1 %v13284_v34, %s9896_s23  ;;  %5672 = vmatmul.mubr.f32.gmra.mxu1 %v4996_v13  ;;  %v4932_v45 = vsel %vm4900_vm13, %v4867_v9, %v9183_v17  ;;  %v1666_v28 = vmul.f32 0.2, %v1392_v14  ;;  %vm1538_vm0 = vcmp.ge.f32.partialorder %v1392_v14, 0.0  ;;  %v2408_v16 = vadd.f32 %v2122_v58, %v12715_v54 }
 0x32a   :  { %v2124_v2 = vpop.permute.xlu0 %2123  ;;  %v5189_v55 = vsel %vm4965_vm14, %v5125_v20, %v9222_v31  ;;  %v4997_v40 = vsel %vm4965_vm14, %v4932_v45, %v9223_v60  ;;  %v1397_v17 = vadd.f32 %v13177_v38, %v12923_v46 }
 0x32b   :  { %v2409_v24 = vadd.f32 %v2124_v2, %v12743_v33  ;;  %v2120_v51 = vpop.permute.xlu1 %2119  ;;  %5676 = vmatprep.mubr.f32.mxu1 %v5189_v55  ;;  %v1402_v33 = vadd.f32 %v13177_v38, %v12952_v11  ;;  %v13326_v60 = vsel %vm1538_vm0, %v1392_v14, %v1666_v28  ;;  %v13328_v11 = vld [vmem:[#allocation2 + $0x330] sm:$0xff] }
 0x32c   :  { %v2407_v5 = vadd.f32 %v2120_v51, %v12752_v6  ;;  %9390 = vrot.lane.b32.xlu0 %v9389_v56, %s9896_s23  ;;  %v13311_v61 = vpop.f32.mrf.mxu1  ;;  %v9394_v6 = vpack.i.bf16 %v13157_v25, %v13307_v21  ;;  %v1407_v25 = vadd.f32 %v13177_v38, %v12975_v35  ;;  %v9399_v14 = vpack.i.bf16 %v13201_v8, %v13328_v11  ;;  %v13344_v35 = vld [vmem:[#allocation2 + $0x331] sm:$0xff]  ;;  %v15220_v51 = vld [vmem:[#allocation15_spill] sm:$0xff] }
 0x32d   :  { %9385 = vrot.lane.b32.xlu1 %v9384_v29, %s9898_s19  ;;  %5677 = vmatmul.mubr.f32.gmra.mxu1 %v4997_v40  ;;  %v1668_v31 = vmul.f32 0.2, %v1402_v33  ;;  %vm1540_vm9 = vcmp.ge.f32.partialorder %v1402_v33, 0.0  ;;  %v9409_v46 = vpack.i.bf16 %v13232_v18, %v13344_v35  ;;  %vm1539_vm11 = vcmp.ge.f32.partialorder %v1397_v17, 0.0 }
 0x32e   :  { %v2487_v23 = vadd.f32 %v2409_v24, %v2407_v5  ;;  %v13317_v47 = vpop.permute.xlu0 %9225  ;;  %v5580_v59 = vpop.f32.mrf.mxu1  ;;  %v1669_v2 = vmul.f32 0.2, %v1407_v25  ;;  %vm1541_vm10 = vcmp.ge.f32.partialorder %v1407_v25, 0.0  ;;  %v1667_v24 = vmul.f32 0.2, %v1397_v17 }
 0x32f   :  { %v2126_v37 = vpop.permute.xlu1 %2125  ;;  %v13347_v55 = vsel %vm1540_vm9, %v1402_v33, %v1668_v31  ;;  %v9228_v45 = vunpack.i.h.bf16 %v13317_v47  ;;  %v9227_v28 = vunpack.i.l.bf16 %v13317_v47  ;;  %v1412_v18 = vadd.f32 %v13177_v38, %v12988_v30  ;;  %v3011_v31 = vld [vmem:[#allocation2 + $0x268] sm:$0xff] }
 0x330   :  { %v2551_v13 = vmul.f32 0.25, %v2487_v23  ;;  %v2410_v22 = vadd.f32 %v2126_v37, %v12782_v48  ;;  %9395 = vrot.lane.b32.xlu0 %v9394_v6, %s9898_s19  ;;  %v9404_v48 = vpack.i.bf16 %v13181_v39, %v13321_v42  ;;  %v2755_v23 = vld [vmem:[#allocation2 + $0x247] sm:$0xff]  ;;  %v13370_v47 = vsel %vm1539_vm11, %v1397_v17, %v1667_v24 }
 0x331   :  { %2173 = vrot.lane.b32.xlu1 %v13326_v60, %s9896_s23  ;;  %v13365_v37 = vld [vmem:[#allocation2 + $0x348] sm:$0xff]  ;;  %v5062_v30 = vsel %vm2567_vm3, %v3011_v31, %v9227_v28  ;;  %v4868_v38 = vsel %vm2567_vm3, %v2755_v23, %v9228_v45  ;;  %v15221_v45 = vld [vmem:[#allocation10_spill] sm:$0xff]  ;;  %vm1542_vm12 = vcmp.ge.f32.partialorder %v1412_v18, 0.0 }
 0x332   :  { %2707 = vst.msk [vmem:[#allocation2 + $0x368] sm:$0xff] %vm2567_vm3, %v2551_v13  ;;  %v2488_v9 = vadd.f32 %v2410_v22, %v2408_v16  ;;  %v2130_v54 = vpop.permute.xlu0 %2129  ;;  %v9419_v17 = vpack.i.bf16 %v13293_v32, %v13365_v37 }
 0x333   :  { %v13337_v58 = vpop.permute.xlu1 %9230  ;;  %v2412_v28 = vadd.f32 %v2130_v54, %v15221_v45 }
 0x334   :  { %v2552_v20 = vmul.f32 0.25, %v2488_v9  ;;  %9405 = vrot.lane.b32.xlu0 %v9404_v48, %s9897_s16  ;;  %v9233_v32 = vunpack.i.h.bf16 %v13337_v58 }
 0x335   :  { %9400 = vrot.lane.b32.xlu1 %v9399_v14, %s9896_s23  ;;  %v1670_v14 = vmul.f32 0.2, %v1412_v18 }
 0x336   :  { %2708 = vst.msk [vmem:[#allocation2 + $0x370] sm:$0xff] %vm2567_vm3, %v2552_v20  ;;  %v2132_v39 = vpop.permute.xlu0 %2131 }
 0x337   :  { %v2413_v56 = vadd.f32 %v2132_v39, %v12803_v57  ;;  %v2128_v8 = vpop.permute.xlu1 %2127  ;;  %v13361_v57 = vsel %vm1541_vm10, %v1407_v25, %v1669_v2  ;;  %v13372_v25 = vld [vmem:[#allocation2 + $0x347] sm:$0xff] }
 0x338   :  { %v2411_v29 = vadd.f32 %v2128_v8, %v15220_v51  ;;  %2177 = vrot.lane.b32.xlu0 %v13347_v55, %s9896_s23  ;;  %v9414_v24 = vpack.i.bf16 %v13223_v3, %v13372_v25  ;;  %v2756_v3 = vld [vmem:[#allocation2 + $0x24f] sm:$0xff] }
 0x339   :  { %9410 = vrot.lane.b32.xlu1 %v9409_v46, %s9897_s16  ;;  %v13359_v5 = vpop.f32.mrf.mxu1  ;;  %v13424_v45 = vld [vmem:[#allocation2 + $0x368] sm:$0xff] }
 0x33a   :  { %v2489_v40 = vadd.f32 %v2413_v56, %v2411_v29  ;;  %v9241_v33 = vpop.permute.xlu0 %9240  ;;  %v9232_v56 = vunpack.i.l.bf16 %v13337_v58  ;;  %v13388_v29 = vld [vmem:[#allocation2 + $0x34f] sm:$0xff] }
 0x33b   :  { %v9236_v59 = vpop.permute.xlu1 %9235  ;;  %v5585_v6 = vpop.f32.mrf.mxu1  ;;  %v9243_v9 = vunpack.i.h.bf16 %v9241_v33  ;;  %v9242_v48 = vunpack.i.l.bf16 %v9241_v33  ;;  %v9424_v58 = vpack.i.bf16 %v13247_v50, %v13388_v29 }
 0x33c   :  { %v2553_v16 = vmul.f32 0.25, %v2489_v40  ;;  %v9238_v13 = vunpack.i.h.bf16 %v9236_v59  ;;  %v9237_v22 = vunpack.i.l.bf16 %v9236_v59  ;;  %2179 = vrot.lane.b32.xlu0 %v13361_v57, %s9896_s23  ;;  %v15222_v40 = vld [vmem:[#allocation16_spill] sm:$0xff] }
 0x33d   :  { %2175 = vrot.lane.b32.xlu1 %v13370_v47, %s9896_s23 }
 0x33e   :  { %2709 = vst.msk [vmem:[#allocation2 + $0x388] sm:$0xff] %vm2567_vm3, %v2553_v16  ;;  %v9246_v20 = vpop.permute.xlu0 %9245  ;;  %v5126_v2 = vsel %vm4900_vm13, %v5062_v30, %v9237_v22  ;;  %v4933_v39 = vsel %vm4900_vm13, %v4868_v38, %v9238_v13  ;;  %v3012_v22 = vld [vmem:[#allocation2 + $0x270] sm:$0xff] }
 0x33f   :  { %v2134_v8 = vpop.permute.xlu1 %2133  ;;  %v5190_v46 = vsel %vm4965_vm14, %v5126_v2, %v9242_v48  ;;  %v4998_v51 = vsel %vm4965_vm14, %v4933_v39, %v9243_v9  ;;  %v9248_v59 = vunpack.i.h.bf16 %v9246_v20  ;;  %v9247_v6 = vunpack.i.l.bf16 %v9246_v20  ;;  %v13405_v30 = vld [vmem:[#allocation2 + $0x349] sm:$0xff] }
 0x340   :  { %v2414_v33 = vadd.f32 %v2134_v8, %v15222_v40  ;;  %9420 = vrot.lane.b32.xlu0 %v9419_v17, %s9896_s23  ;;  %v13394_v23 = vpop.f32.mrf.mxu1  ;;  %5681 = vmatprep.mubr.f32.mxu1 %v5190_v46  ;;  %v13402_v9 = vsel %vm1542_vm12, %v1412_v18, %v1670_v14  ;;  %v5063_v48 = vsel %vm2567_vm3, %v3012_v22, %v9232_v56  ;;  %v13409_v39 = vld [vmem:[#allocation2 + $0x350] sm:$0xff]  ;;  %v15223_v40 = vld [vmem:[#allocation19_spill] sm:$0xff] }
 0x341   :  { %9415 = vrot.lane.b32.xlu1 %v9414_v24, %s9898_s19  ;;  %5682 = vmatmul.mubr.f32.gmra.mxu1 %v4998_v51  ;;  %v4869_v2 = vsel %vm2567_vm3, %v2756_v3, %v9233_v32  ;;  %v5127_v50 = vsel %vm4900_vm13, %v5063_v48, %v9247_v6  ;;  %v9434_v8 = vpack.i.bf16 %v13287_v49, %v13405_v30  ;;  %v15224_v3 = vld [vmem:[#allocation20_spill] sm:$0xff] }
 0x342   :  { %v2490_v16 = vadd.f32 %v2414_v33, %v2412_v28  ;;  %v13397_v13 = vpop.permute.xlu0 %9255  ;;  %v5590_v54 = vpop.f32.mrf.mxu1  ;;  %v4934_v18 = vsel %vm4900_vm13, %v4869_v2, %v9248_v59  ;;  %v9429_v51 = vpack.i.bf16 %v13307_v21, %v13409_v39  ;;  %v13427_v28 = vld [vmem:[#allocation2 + $0x351] sm:$0xff]  ;;  %v9449_v49 = vpack.i.bf16 %v13372_v25, %v13424_v45  ;;  %v13447_v2 = vld [vmem:[#allocation2 + $0x369] sm:$0xff] }
 0x343   :  { %v9251_v31 = vpop.permute.xlu1 %9250  ;;  %v9439_v6 = vpack.i.bf16 %v13328_v11, %v13427_v28  ;;  %v13435_v21 = vld [vmem:[#allocation2 + $0x36f] sm:$0xff]  ;;  %v3154_v54 = vld [vmem:[#allocation2 + $0x367] sm:$0xff]  ;;  %v9257_v22 = vunpack.i.l.bf16 %v13397_v13 }
 0x344   :  { %v2554_v38 = vmul.f32 0.25, %v2490_v16  ;;  %v9253_v20 = vunpack.i.h.bf16 %v9251_v31  ;;  %v9252_v17 = vunpack.i.l.bf16 %v9251_v31  ;;  %9425 = vrot.lane.b32.xlu0 %v9424_v58, %s9898_s19  ;;  %v9258_v58 = vunpack.i.h.bf16 %v13397_v13  ;;  %v3013_v13 = vld [vmem:[#allocation2 + $0x288] sm:$0xff] }
 0x345   :  { %2181 = vrot.lane.b32.xlu1 %v13402_v9, %s9896_s23  ;;  %v9454_v11 = vpack.i.bf16 %v13344_v35, %v13435_v21 }
 0x346   :  { %2710 = vst.msk [vmem:[#allocation2 + $0x390] sm:$0xff] %vm2567_vm3, %v2554_v38  ;;  %v2138_v14 = vpop.permute.xlu0 %2137  ;;  %v5191_v56 = vsel %vm4965_vm14, %v5127_v50, %v9252_v17  ;;  %v4999_v46 = vsel %vm4965_vm14, %v4934_v18, %v9253_v20  ;;  %v9444_v17 = vpack.i.bf16 %v13321_v42, %v3154_v54  ;;  %v2757_v50 = vld [vmem:[#allocation2 + $0x267] sm:$0xff]  ;;  %v5064_v42 = vsel %vm2567_vm3, %v3013_v13, %v9257_v22  ;;  %v3014_v13 = vld [vmem:[#allocation2 + $0x290] sm:$0xff] }
 0x347   :  { %v13420_v24 = vpop.permute.xlu1 %9260  ;;  %5686 = vmatprep.mubr.f32.mxu1 %v5191_v56 }
 0x348   :  { %9435 = vrot.lane.b32.xlu0 %v9434_v8, %s9897_s16  ;;  %5687 = vmatmul.mubr.f32.gmra.mxu1 %v4999_v46  ;;  %v13450_v46 = vld [vmem:[#allocation2 + $0x370] sm:$0xff] }
 0x349   :  { %9430 = vrot.lane.b32.xlu1 %v9429_v51, %s9896_s23  ;;  %v5255_v51 = vld [vmem:[%s15159_s3 + $0x108] sm:$0xff] }
 0x34a   :  { %v2140_v32 = vpop.permute.xlu0 %2139  ;;  %8599 = vmatprep.subr.mxu1 %v5255_v51 }
 0x34b   :  { %v2417_v33 = vadd.f32 %v2140_v32, %v15223_v40  ;;  %v2136_v59 = vpop.permute.xlu1 %2135  ;;  %8600 = vmatpush3.msra.mxu1 %v5255_v51 }
 0x34c   :  { %v2415_v16 = vadd.f32 %v2136_v59, %v15224_v3  ;;  %9450 = vrot.lane.b32.xlu0 %v9449_v49, %s9896_s23  ;;  %v4870_v49 = vsel %vm2567_vm3, %v2757_v50, %v9258_v58  ;;  %v9262_v3 = vunpack.i.l.bf16 %v13420_v24  ;;  %v9459_v58 = vpack.i.bf16 %v13388_v29, %v13450_v46  ;;  %v13476_v50 = vld [vmem:[#allocation2 + $0x371] sm:$0xff] }
 0x34d   :  { %9440 = vrot.lane.b32.xlu1 %v9439_v6, %s9897_s16  ;;  %v13442_v25 = vpop.f32.mrf.mxu1  ;;  %v9469_v51 = vpack.i.bf16 %v13409_v39, %v13476_v50 }
 0x34e   :  { %v2491_v31 = vadd.f32 %v2417_v33, %v2415_v16  ;;  %v9271_v48 = vpop.permute.xlu0 %9270  ;;  %v9464_v33 = vpack.i.bf16 %v13365_v37, %v13447_v2  ;;  %v9263_v37 = vunpack.i.h.bf16 %v13420_v24 }
 0x34f   :  { %v9266_v38 = vpop.permute.xlu1 %9265  ;;  %v5595_v20 = vpop.f32.mrf.mxu1  ;;  %v9273_v35 = vunpack.i.h.bf16 %v9271_v48  ;;  %v9272_v32 = vunpack.i.l.bf16 %v9271_v48  ;;  %v13468_v48 = vld [vmem:[#allocation2 + $0x388] sm:$0xff] }
 0x350   :  { %v2555_v18 = vmul.f32 0.25, %v2491_v31  ;;  %v9268_v56 = vunpack.i.h.bf16 %v9266_v38  ;;  %v9267_v8 = vunpack.i.l.bf16 %v9266_v38  ;;  %9455 = vrot.lane.b32.xlu0 %v9454_v11, %s9898_s19  ;;  %v15225_v11 = vld [vmem:[#allocation17_spill] sm:$0xff]  ;;  %v9479_v24 = vpack.i.bf16 %v3154_v54, %v13468_v48 }
 0x351   :  { %9445 = vrot.lane.b32.xlu1 %v9444_v17, %s9898_s19  ;;  %v2416_v38 = vadd.f32 %v2138_v14, %v15225_v11 }
 0x352   :  { %2711 = vst.msk [vmem:[#allocation2 + $0x3a8] sm:$0xff] %vm2567_vm3, %v2555_v18  ;;  %v9276_v40 = vpop.permute.xlu0 %9275  ;;  %v5128_v59 = vsel %vm4900_vm13, %v5064_v42, %v9267_v8  ;;  %v4935_v6 = vsel %vm4900_vm13, %v4870_v49, %v9268_v56  ;;  %v2758_v42 = vld [vmem:[#allocation2 + $0x26f] sm:$0xff] }
 0x353   :  { %v2142_v16 = vpop.permute.xlu1 %2141  ;;  %v5192_v31 = vsel %vm4965_vm14, %v5128_v59, %v9272_v32  ;;  %v5000_v22 = vsel %vm4965_vm14, %v4935_v6, %v9273_v35  ;;  %v9278_v18 = vunpack.i.h.bf16 %v9276_v40  ;;  %v9277_v56 = vunpack.i.l.bf16 %v9276_v40  ;;  %v13485_v32 = vld [vmem:[#allocation2 + $0x38f] sm:$0xff]  ;;  %v3156_v6 = vld [vmem:[#allocation2 + $0x387] sm:$0xff] }
 0x354   :  { %v2418_v20 = vadd.f32 %v2142_v16, %v12947_v19  ;;  %9465 = vrot.lane.b32.xlu0 %v9464_v33, %s9897_s16  ;;  %v13474_v17 = vpop.f32.mrf.mxu1  ;;  %5691 = vmatprep.mubr.f32.mxu1 %v5192_v31  ;;  %v5065_v35 = vsel %vm2567_vm3, %v3014_v13, %v9262_v3  ;;  %v4871_v59 = vsel %vm2567_vm3, %v2758_v42, %v9263_v37  ;;  %v13503_v37 = vld [vmem:[#allocation2 + $0x390] sm:$0xff] }
 0x355   :  { %9460 = vrot.lane.b32.xlu1 %v9459_v58, %s9896_s23  ;;  %5692 = vmatmul.mubr.f32.gmra.mxu1 %v5000_v22  ;;  %v5129_v54 = vsel %vm4900_vm13, %v5065_v35, %v9277_v56  ;;  %v4936_v16 = vsel %vm4900_vm13, %v4871_v59, %v9278_v18  ;;  %v9484_v31 = vpack.i.bf16 %v13427_v28, %v13485_v32  ;;  %v13515_v13 = vld [vmem:[#allocation2 + $0x391] sm:$0xff] }
 0x356   :  { %v2492_v29 = vadd.f32 %v2418_v20, %v2416_v38  ;;  %v13479_v8 = vpop.permute.xlu0 %9285  ;;  %v5600_v14 = vpop.f32.mrf.mxu1  ;;  %v9474_v11 = vpack.i.bf16 %v13405_v30, %v3156_v6  ;;  %v13500_v38 = vld [vmem:[#allocation2 + $0x389] sm:$0xff] }
 0x357   :  { %v9281_v19 = vpop.permute.xlu1 %9280  ;;  %v9494_v28 = vpack.i.bf16 %v13424_v45, %v13500_v38  ;;  %v15226_v14 = vld [vmem:[#allocation22_spill] sm:$0xff] }
 0x358   :  { %v2556_v49 = vmul.f32 0.25, %v2492_v29  ;;  %v9283_v40 = vunpack.i.h.bf16 %v9281_v19  ;;  %v9282_v33 = vunpack.i.l.bf16 %v9281_v19  ;;  %9480 = vrot.lane.b32.xlu0 %v9479_v24, %s9896_s23  ;;  %v9489_v29 = vpack.i.bf16 %v13435_v21, %v13503_v37 }
 0x359   :  { %9470 = vrot.lane.b32.xlu1 %v9469_v51, %s9897_s16  ;;  %v13511_v30 = vld [vmem:[#allocation2 + $0x3a8] sm:$0xff]  ;;  %v9288_v19 = vunpack.i.h.bf16 %v13479_v8  ;;  %v9287_v51 = vunpack.i.l.bf16 %v13479_v8 }
 0x35a   :  { %2712 = vst.msk [vmem:[#allocation2 + $0x3b0] sm:$0xff] %vm2567_vm3, %v2556_v49  ;;  %v2146_v39 = vpop.permute.xlu0 %2145  ;;  %v5193_v3 = vsel %vm4965_vm14, %v5129_v54, %v9282_v33  ;;  %v5001_v58 = vsel %vm4965_vm14, %v4936_v16, %v9283_v40  ;;  %v9509_v21 = vpack.i.bf16 %v3156_v6, %v13511_v30  ;;  %v9499_v40 = vpack.i.bf16 %v13450_v46, %v13515_v13  ;;  %v3015_v8 = vld [vmem:[#allocation2 + $0x2a8] sm:$0xff] }
 0x35b   :  { %v13497_v22 = vpop.permute.xlu1 %9290  ;;  %5696 = vmatprep.mubr.f32.mxu1 %v5193_v3  ;;  %v3158_v3 = vld [vmem:[#allocation2 + $0x3a7] sm:$0xff]  ;;  %v5066_v6 = vsel %vm2567_vm3, %v3015_v8, %v9287_v51 }
 0x35c   :  { %9485 = vrot.lane.b32.xlu0 %v9484_v31, %s9898_s19  ;;  %5697 = vmatmul.mubr.f32.gmra.mxu1 %v5001_v58  ;;  %v2759_v31 = vld [vmem:[#allocation2 + $0x287] sm:$0xff] }
 0x35d   :  { %9475 = vrot.lane.b32.xlu1 %v9474_v11, %s9898_s19 }
 0x35e   :  { %v2148_v20 = vpop.permute.xlu0 %2147 }
 0x35f   :  { %v2421_v18 = vadd.f32 %v2148_v20, %v12998_v36  ;;  %v2144_v56 = vpop.permute.xlu1 %2143  ;;  %v4872_v20 = vsel %vm2567_vm3, %v2759_v31, %v9288_v19 }
 0x360   :  { %v2419_v24 = vadd.f32 %v2144_v56, %v15226_v14  ;;  %9495 = vrot.lane.b32.xlu0 %v9494_v28, %s9897_s16 }
 0x361   :  { %9490 = vrot.lane.b32.xlu1 %v9489_v29, %s9896_s23  ;;  %v13520_v45 = vpop.f32.mrf.mxu1  ;;  %v13525_v33 = vld [vmem:[#allocation2 + $0x3af] sm:$0xff]  ;;  %v9292_v29 = vunpack.i.l.bf16 %v13497_v22 }
 0x362   :  { %v2493_v36 = vadd.f32 %v2421_v18, %v2419_v24  ;;  %v9301_v35 = vpop.permute.xlu0 %9300  ;;  %v9514_v28 = vpack.i.bf16 %v13476_v50, %v13525_v33  ;;  %v13540_v19 = vld [vmem:[#allocation2 + $0x3a9] sm:$0xff] }
 0x363   :  { %v9296_v42 = vpop.permute.xlu1 %9295  ;;  %v5605_v49 = vpop.f32.mrf.mxu1  ;;  %v9303_v58 = vunpack.i.h.bf16 %v9301_v35  ;;  %v9302_v11 = vunpack.i.l.bf16 %v9301_v35  ;;  %v15227_v35 = vld [vmem:[#allocation21_spill] sm:$0xff] }
 0x364   :  { %v2557_v59 = vmul.f32 0.25, %v2493_v36  ;;  %v9298_v54 = vunpack.i.h.bf16 %v9296_v42  ;;  %v9297_v16 = vunpack.i.l.bf16 %v9296_v42  ;;  %9510 = vrot.lane.b32.xlu0 %v9509_v21, %s9896_s23  ;;  %v9504_v36 = vpack.i.bf16 %v13447_v2, %v3158_v3 }
 0x365   :  { %9500 = vrot.lane.b32.xlu1 %v9499_v40, %s9897_s16  ;;  %v2420_v21 = vadd.f32 %v2146_v39, %v15227_v35  ;;  %v9293_v42 = vunpack.i.h.bf16 %v13497_v22  ;;  %v13548_v40 = vld [vmem:[#allocation2 + $0x3b0] sm:$0xff]  ;;  %v9524_v39 = vpack.i.bf16 %v13468_v48, %v13540_v19 }
 0x366   :  { %2713 = vst.msk [vmem:[#allocation2 + $0x3c8] sm:$0xff] %vm2567_vm3, %v2557_v59  ;;  %v9306_v46 = vpop.permute.xlu0 %9305  ;;  %v5130_v18 = vsel %vm4900_vm13, %v5066_v6, %v9297_v16  ;;  %v4937_v56 = vsel %vm4900_vm13, %v4872_v20, %v9298_v54  ;;  %v3016_v22 = vld [vmem:[#allocation2 + $0x2b0] sm:$0xff]  ;;  %v9519_v31 = vpack.i.bf16 %v13485_v32, %v13548_v40 }
 0x367   :  { %v2150_v14 = vpop.permute.xlu1 %2149  ;;  %v5194_v24 = vsel %vm4965_vm14, %v5130_v18, %v9302_v11  ;;  %v5002_v51 = vsel %vm4965_vm14, %v4937_v56, %v9303_v58  ;;  %v9308_v59 = vunpack.i.h.bf16 %v9306_v46  ;;  %v9307_v54 = vunpack.i.l.bf16 %v9306_v46  ;;  %v2760_v11 = vld [vmem:[#allocation2 + $0x28f] sm:$0xff] }
 0x368   :  { %v2422_v50 = vadd.f32 %v2150_v14, %v13042_v63  ;;  %9515 = vrot.lane.b32.xlu0 %v9514_v28, %s9898_s19  ;;  %v13546_v49 = vpop.f32.mrf.mxu1  ;;  %5701 = vmatprep.mubr.f32.mxu1 %v5194_v24  ;;  %v5067_v58 = vsel %vm2567_vm3, %v3016_v22, %v9292_v29  ;;  %v4873_v28 = vsel %vm2567_vm3, %v2760_v11, %v9293_v42  ;;  %v13558_v18 = vld [vmem:[#allocation2 + $0x3b1] sm:$0xff] }
 0x369   :  { %9505 = vrot.lane.b32.xlu1 %v9504_v36, %s9898_s19  ;;  %5702 = vmatmul.mubr.f32.gmra.mxu1 %v5002_v51  ;;  %v5131_v48 = vsel %vm4900_vm13, %v5067_v58, %v9307_v54  ;;  %v4938_v32 = vsel %vm4900_vm13, %v4873_v28, %v9308_v59  ;;  %v9529_v35 = vpack.i.bf16 %v13503_v37, %v13558_v18 }
 0x36a   :  { %v2494_v2 = vadd.f32 %v2422_v50, %v2420_v21  ;;  %v9316_v16 = vpop.permute.xlu0 %9315  ;;  %v5610_v8 = vpop.f32.mrf.mxu1 }
 0x36b   :  { %v9311_v63 = vpop.permute.xlu1 %9310  ;;  %v9317_v8 = vunpack.i.l.bf16 %v9316_v16 }
 0x36c   :  { %v2558_v6 = vmul.f32 0.25, %v2494_v2  ;;  %v9313_v20 = vunpack.i.h.bf16 %v9311_v63  ;;  %v9312_v46 = vunpack.i.l.bf16 %v9311_v63  ;;  %9525 = vrot.lane.b32.xlu0 %v9524_v39, %s9897_s16  ;;  %v9318_v2 = vunpack.i.h.bf16 %v9316_v16 }
 0x36d   :  { %9520 = vrot.lane.b32.xlu1 %v9519_v31, %s9896_s23  ;;  %v13562_v56 = vld [vmem:[#allocation2 + $0x3c8] sm:$0xff] }
 0x36e   :  { %2714 = vst.msk [vmem:[#allocation2 + $0x3d0] sm:$0xff] %vm2567_vm3, %v2558_v6  ;;  %v2154_v29 = vpop.permute.xlu0 %2153  ;;  %v5195_v14 = vsel %vm4965_vm14, %v5131_v48, %v9312_v46  ;;  %v9539_v24 = vpack.i.bf16 %v3158_v3, %v13562_v56  ;;  %v5003_v36 = vsel %vm4965_vm14, %v4938_v32, %v9313_v20  ;;  %v13574_v21 = vld [vmem:[#allocation2 + $0x3c7] sm:$0xff] }
 0x36f   :  { %v13569_v51 = vpop.permute.xlu1 %9320  ;;  %5706 = vmatprep.mubr.f32.mxu1 %v5195_v14  ;;  %v9534_v3 = vpack.i.bf16 %v13500_v38, %v13574_v21  ;;  %v3017_v46 = vld [vmem:[#allocation2 + $0x2c8] sm:$0xff] }
 0x370   :  { %9540 = vrot.lane.b32.xlu0 %v9539_v24, %s9896_s23  ;;  %5707 = vmatmul.mubr.f32.gmra.mxu1 %v5003_v36  ;;  %v2761_v48 = vld [vmem:[#allocation2 + $0x2a7] sm:$0xff] }
 0x371   :  { %9530 = vrot.lane.b32.xlu1 %v9529_v35, %s9897_s16 }
 0x372   :  { %v2156_v42 = vpop.permute.xlu0 %2155 }
 0x373   :  { %v2425_v50 = vadd.f32 %v2156_v42, %v13085_v7  ;;  %v2152_v59 = vpop.permute.xlu1 %2151 }
 0x374   :  { %v2423_v54 = vadd.f32 %v2152_v59, %v13094_v0 }
 0x375   :  { %9535 = vrot.lane.b32.xlu1 %v9534_v3, %s9898_s19  ;;  %v13582_v37 = vpop.f32.mrf.mxu1  ;;  %v13584_v39 = vld [vmem:[#allocation2 + $0x3cf] sm:$0xff] }
 0x376   :  { %v13586_v22 = vld [vmem:[#allocation2 + $0x3d0] sm:$0xff]  ;;  %v2495_v63 = vadd.f32 %v2425_v50, %v2423_v54  ;;  %v9331_v31 = vpop.permute.xlu0 %9330  ;;  %v9544_v7 = vpack.i.bf16 %v13515_v13, %v13584_v39  ;;  %v5068_v13 = vsel %vm2567_vm3, %v3017_v46, %v9317_v8  ;;  %v9322_v50 = vunpack.i.l.bf16 %v13569_v51 }
 0x377   :  { %v9549_v38 = vpack.i.bf16 %v13525_v33, %v13586_v22  ;;  %v9326_v58 = vpop.permute.xlu1 %9325  ;;  %v5615_v0 = vpop.f32.mrf.mxu1  ;;  %v13592_v11 = vld [vmem:[#allocation2 + $0x3c9] sm:$0xff]  ;;  %v13595_v28 = vld [vmem:[#allocation2 + $0x3d1] sm:$0xff]  ;;  %v9333_v32 = vunpack.i.h.bf16 %v9331_v31  ;;  %v9332_v14 = vunpack.i.l.bf16 %v9331_v31  ;;  %v4874_v33 = vsel %vm2567_vm3, %v2761_v48, %v9318_v2 }
 0x378   :  { %v2559_v16 = vmul.f32 0.25, %v2495_v63  ;;  %v9328_v6 = vunpack.i.h.bf16 %v9326_v58  ;;  %v9327_v20 = vunpack.i.l.bf16 %v9326_v58  ;;  %9545 = vrot.lane.b32.xlu0 %v9544_v7, %s9898_s19  ;;  %v9554_v36 = vpack.i.bf16 %v13511_v30, %v13592_v11 }
 0x379   :  { %9550 = vrot.lane.b32.xlu1 %v9549_v38, %s9896_s23  ;;  %v9559_v54 = vpack.i.bf16 %v13548_v40, %v13595_v28  ;;  %v2424_v8 = vadd.f32 %v2154_v29, %v13072_v15  ;;  %v9323_v63 = vunpack.i.h.bf16 %v13569_v51  ;;  %v2762_v29 = vld [vmem:[#allocation2 + $0x2af] sm:$0xff] }
 0x37a   :  { %2715 = vst.msk [vmem:[#allocation2 + $0x3e8] sm:$0xff] %vm2567_vm3, %v2559_v16  ;;  %v9336_v24 = vpop.permute.xlu0 %9335  ;;  %v5132_v35 = vsel %vm4900_vm13, %v5068_v13, %v9327_v20  ;;  %v4939_v42 = vsel %vm4900_vm13, %v4874_v33, %v9328_v6  ;;  %v3018_v16 = vld [vmem:[#allocation2 + $0x2d0] sm:$0xff] }
 0x37b   :  { %v2158_v59 = vpop.permute.xlu1 %2157  ;;  %v5196_v3 = vsel %vm4965_vm14, %v5132_v35, %v9332_v14  ;;  %v5004_v2 = vsel %vm4965_vm14, %v4939_v42, %v9333_v32  ;;  %v9338_v7 = vunpack.i.h.bf16 %v9336_v24  ;;  %v9337_v38 = vunpack.i.l.bf16 %v9336_v24 }
 0x37c   :  { %v2426_v30 = vadd.f32 %v2158_v59, %v13128_v41  ;;  %9555 = vrot.lane.b32.xlu0 %v9554_v36, %s9897_s16  ;;  %v13614_v31 = vpop.f32.mrf.mxu1  ;;  %5711 = vmatprep.mubr.f32.mxu1 %v5196_v3  ;;  %v5069_v15 = vsel %vm2567_vm3, %v3018_v16, %v9322_v50  ;;  %v4875_v46 = vsel %vm2567_vm3, %v2762_v29, %v9323_v63 }
 0x37d   :  { %9560 = vrot.lane.b32.xlu1 %v9559_v54, %s9897_s16  ;;  %5712 = vmatmul.mubr.f32.gmra.mxu1 %v5004_v2  ;;  %v5133_v48 = vsel %vm4900_vm13, %v5069_v15, %v9337_v38  ;;  %v4940_v13 = vsel %vm4900_vm13, %v4875_v46, %v9338_v7 }
 0x37e   :  { %v2496_v58 = vadd.f32 %v2426_v30, %v2424_v8  ;;  %v9346_v40 = vpop.permute.xlu0 %9345  ;;  %v5620_v0 = vpop.f32.mrf.mxu1 }
 0x37f   :  { %v9341_v6 = vpop.permute.xlu1 %9340  ;;  %v9347_v8 = vunpack.i.l.bf16 %v9346_v40 }
 0x380   :  { %v2560_v51 = vmul.f32 0.25, %v2496_v58  ;;  %v9343_v41 = vunpack.i.h.bf16 %v9341_v6  ;;  %v9342_v20 = vunpack.i.l.bf16 %v9341_v6 }
 0x381   :  { %v13620_v32 = vld [vmem:[#allocation2 + $0x3e8] sm:$0xff] }
 0x382   :  { %v13622_v14 = vld [vmem:[#allocation2 + $0x3e7] sm:$0xff]  ;;  %2716 = vst.msk [vmem:[#allocation2 + $0x3f0] sm:$0xff] %vm2567_vm3, %v2560_v51  ;;  %v2162_v33 = vpop.permute.xlu0 %2161  ;;  %v5197_v24 = vsel %vm4965_vm14, %v5133_v48, %v9342_v20  ;;  %v9569_v36 = vpack.i.bf16 %v13574_v21, %v13620_v32  ;;  %v5005_v42 = vsel %vm4965_vm14, %v4940_v13, %v9343_v41  ;;  %v9348_v21 = vunpack.i.h.bf16 %v9346_v40 }
 0x383   :  { %v9564_v35 = vpack.i.bf16 %v13540_v19, %v13622_v14  ;;  %v13632_v50 = vpop.permute.xlu1 %9350  ;;  %5716 = vmatprep.mubr.f32.mxu1 %v5197_v24  ;;  %v3019_v51 = vld [vmem:[#allocation2 + $0x2e8] sm:$0xff] }
 0x384   :  { %9570 = vrot.lane.b32.xlu0 %v9569_v36, %s9896_s23  ;;  %5717 = vmatmul.mubr.f32.gmra.mxu1 %v5005_v42  ;;  %v2763_v41 = vld [vmem:[#allocation2 + $0x2c7] sm:$0xff]  ;;  %v5070_v46 = vsel %vm2567_vm3, %v3019_v51, %v9347_v8  ;;  %v9352_v42 = vunpack.i.l.bf16 %v13632_v50 }
 0x385   :  { %9565 = vrot.lane.b32.xlu1 %v9564_v35, %s9898_s19 }
 0x386   :  { %v2164_v59 = vpop.permute.xlu0 %2163 }
 0x387   :  { %v2429_v3 = vadd.f32 %v2164_v59, %v13171_v53  ;;  %v2160_v54 = vpop.permute.xlu1 %2159 }
 0x388   :  { %v2427_v2 = vadd.f32 %v2160_v54, %v13186_v4 }
 0x389   :  { %v13638_v63 = vpop.f32.mrf.mxu1  ;;  %v13640_v19 = vld [vmem:[#allocation2 + $0x3ef] sm:$0xff] }
 0x38a   :  { %v13642_v30 = vld [vmem:[#allocation2 + $0x3f0] sm:$0xff]  ;;  %v2497_v7 = vadd.f32 %v2429_v3, %v2427_v2  ;;  %v9361_v38 = vpop.permute.xlu0 %9360  ;;  %v9574_v58 = vpack.i.bf16 %v13558_v18, %v13640_v19  ;;  %v5254_v2 = vld [vmem:[%s15159_s3 + $0x100] sm:$0xff] }
 0x38b   :  { %v9579_v0 = vpack.i.bf16 %v13584_v39, %v13642_v30  ;;  %v9356_v53 = vpop.permute.xlu1 %9355  ;;  %v5625_v16 = vpop.f32.mrf.mxu1  ;;  %v13648_v6 = vld [vmem:[#allocation2 + $0x3f1] sm:$0xff]  ;;  %v13650_v4 = vld [vmem:[#allocation2 + $0x3e9] sm:$0xff]  ;;  %v9363_v20 = vunpack.i.h.bf16 %v9361_v38  ;;  %v9362_v18 = vunpack.i.l.bf16 %v9361_v38  ;;  %v4876_v39 = vsel %vm2567_vm3, %v2763_v41, %v9348_v21  ;;  %8601 = vmatprep.subr.mxu1 %v5254_v2 }
 0x38c   :  { %v2561_v40 = vmul.f32 0.25, %v2497_v7  ;;  %v9358_v15 = vunpack.i.h.bf16 %v9356_v53  ;;  %v9357_v29 = vunpack.i.l.bf16 %v9356_v53  ;;  %9575 = vrot.lane.b32.xlu0 %v9574_v58, %s9898_s19  ;;  %v9589_v13 = vpack.i.bf16 %v13586_v22, %v13648_v6  ;;  %v3020_v16 = vld [vmem:[#allocation2 + $0x2f0] sm:$0xff]  ;;  %8602 = vmatpush3.msra.mxu1 %v5254_v2 }
 0x38d   :  { %9580 = vrot.lane.b32.xlu1 %v9579_v0, %s9896_s23  ;;  %v9584_v24 = vpack.i.bf16 %v13562_v56, %v13650_v4  ;;  %v2428_v22 = vadd.f32 %v2162_v33, %v13160_v43  ;;  %v9353_v21 = vunpack.i.h.bf16 %v13632_v50  ;;  %v5071_v33 = vsel %vm2567_vm3, %v3020_v16, %v9352_v42  ;;  %v2764_v50 = vld [vmem:[#allocation2 + $0x2cf] sm:$0xff] }
 0x38e   :  { %2717 = vst.msk [vmem:[#allocation2 + $0x408] sm:$0xff] %vm2567_vm3, %v2561_v40  ;;  %v9366_v48 = vpop.permute.xlu0 %9365  ;;  %v5134_v36 = vsel %vm4900_vm13, %v5070_v46, %v9357_v29  ;;  %v4941_v35 = vsel %vm4900_vm13, %v4876_v39, %v9358_v15 }
 0x38f   :  { %v2166_v59 = vpop.permute.xlu1 %2165  ;;  %v5198_v3 = vsel %vm4965_vm14, %v5134_v36, %v9362_v18  ;;  %v5006_v54 = vsel %vm4965_vm14, %v4941_v35, %v9363_v20  ;;  %v9368_v7 = vunpack.i.h.bf16 %v9366_v48  ;;  %v9367_v38 = vunpack.i.l.bf16 %v9366_v48 }
 0x390   :  { %v2430_v56 = vadd.f32 %v2166_v59, %v13230_v10  ;;  %9585 = vrot.lane.b32.xlu0 %v9584_v24, %s9897_s16  ;;  %v13674_v8 = vpop.f32.mrf.mxu1  ;;  %5721 = vmatprep.mubr.f32.mxu1 %v5198_v3  ;;  %v4877_v29 = vsel %vm2567_vm3, %v2764_v50, %v9353_v21  ;;  %v2765_v50 = vld [vmem:[#allocation2 + $0x2e7] sm:$0xff] }
 0x391   :  { %9590 = vrot.lane.b32.xlu1 %v9589_v13, %s9897_s16  ;;  %5722 = vmatmul.mubr.f32.gmra.mxu1 %v5006_v54  ;;  %v5135_v51 = vsel %vm4900_vm13, %v5071_v33, %v9367_v38  ;;  %v4942_v18 = vsel %vm4900_vm13, %v4877_v29, %v9368_v7  ;;  %v3021_v33 = vld [vmem:[#allocation2 + $0x308] sm:$0xff] }
 0x392   :  { %v2498_v58 = vadd.f32 %v2430_v56, %v2428_v22  ;;  %v9376_v0 = vpop.permute.xlu0 %9375  ;;  %v5630_v53 = vpop.f32.mrf.mxu1 }
 0x393   :  { %v9371_v43 = vpop.permute.xlu1 %9370  ;;  %v9377_v54 = vunpack.i.l.bf16 %v9376_v0 }
 0x394   :  { %v2562_v10 = vmul.f32 0.25, %v2498_v58  ;;  %v9373_v40 = vunpack.i.h.bf16 %v9371_v43  ;;  %v9372_v15 = vunpack.i.l.bf16 %v9371_v43 }
 0x395   :  { %v13679_v41 = vld [vmem:[#allocation2 + $0x408] sm:$0xff] }
 0x396   :  { %v13681_v20 = vld [vmem:[#allocation2 + $0x407] sm:$0xff]  ;;  %2718 = vst.msk [vmem:[#allocation2 + $0x410] sm:$0xff] %vm2567_vm3, %v2562_v10  ;;  %v2170_v46 = vpop.permute.xlu0 %2169  ;;  %v5199_v39 = vsel %vm4965_vm14, %v5135_v51, %v9372_v15  ;;  %v9599_v48 = vpack.i.bf16 %v13622_v14, %v13679_v41  ;;  %v5007_v24 = vsel %vm4965_vm14, %v4942_v18, %v9373_v40  ;;  %v9378_v14 = vunpack.i.h.bf16 %v9376_v0 }
 0x397   :  { %v9594_v13 = vpack.i.bf16 %v13592_v11, %v13681_v20  ;;  %v13691_v36 = vpop.permute.xlu1 %9380  ;;  %5726 = vmatprep.mubr.f32.mxu1 %v5199_v39  ;;  %v5072_v40 = vsel %vm2567_vm3, %v3021_v33, %v9377_v54 }
 0x398   :  { %9600 = vrot.lane.b32.xlu0 %v9599_v48, %s9896_s23  ;;  %5727 = vmatmul.mubr.f32.gmra.mxu1 %v5007_v24  ;;  %v9382_v48 = vunpack.i.l.bf16 %v13691_v36 }
 0x399   :  { %9595 = vrot.lane.b32.xlu1 %v9594_v13, %s9898_s19 }
 0x39a   :  { %v2172_v35 = vpop.permute.xlu0 %2171 }
 0x39b   :  { %v2433_v42 = vadd.f32 %v2172_v35, %v13263_v1  ;;  %v2168_v59 = vpop.permute.xlu1 %2167 }
 0x39c   :  { %v2431_v3 = vadd.f32 %v2168_v59, %v13284_v34  ;;  %v9383_v59 = vunpack.i.h.bf16 %v13691_v36 }
 0x39d   :  { %v13697_v2 = vpop.f32.mrf.mxu1  ;;  %v13699_v11 = vld [vmem:[#allocation2 + $0x40f] sm:$0xff] }
 0x39e   :  { %v13701_v22 = vld [vmem:[#allocation2 + $0x410] sm:$0xff]  ;;  %v2499_v21 = vadd.f32 %v2433_v42, %v2431_v3  ;;  %v9391_v56 = vpop.permute.xlu0 %9390  ;;  %v9604_v7 = vpack.i.bf16 %v13595_v28, %v13699_v11  ;;  %v2432_v42 = vadd.f32 %v2170_v46, %v13252_v12 }
 0x39f   :  { %v9609_v38 = vpack.i.bf16 %v13640_v19, %v13701_v22  ;;  %v9386_v1 = vpop.permute.xlu1 %9385  ;;  %v5635_v58 = vpop.f32.mrf.mxu1  ;;  %v13707_v53 = vld [vmem:[#allocation2 + $0x411] sm:$0xff]  ;;  %v13709_v34 = vld [vmem:[#allocation2 + $0x409] sm:$0xff]  ;;  %v9393_v10 = vunpack.i.h.bf16 %v9391_v56  ;;  %v9392_v28 = vunpack.i.l.bf16 %v9391_v56  ;;  %v4878_v19 = vsel %vm2567_vm3, %v2765_v50, %v9378_v14 }
 0x3a0   :  { %v2563_v0 = vmul.f32 0.25, %v2499_v21  ;;  %v9388_v16 = vunpack.i.h.bf16 %v9386_v1  ;;  %v9387_v43 = vunpack.i.l.bf16 %v9386_v1  ;;  %9605 = vrot.lane.b32.xlu0 %v9604_v7, %s9898_s19  ;;  %v9619_v29 = vpack.i.bf16 %v13642_v30, %v13707_v53  ;;  %v3022_v7 = vld [vmem:[#allocation2 + $0x310] sm:$0xff] }
 0x3a1   :  { %9610 = vrot.lane.b32.xlu1 %v9609_v38, %s9896_s23  ;;  %v9614_v51 = vpack.i.bf16 %v13620_v32, %v13709_v34  ;;  %v5073_v12 = vsel %vm2567_vm3, %v3022_v7, %v9382_v48  ;;  %v2766_v46 = vld [vmem:[#allocation2 + $0x2ef] sm:$0xff] }
 0x3a2   :  { %2719 = vst.msk [vmem:[#allocation2 + $0x428] sm:$0xff] %vm2567_vm3, %v2563_v0  ;;  %v9396_v15 = vpop.permute.xlu0 %9395  ;;  %v5136_v18 = vsel %vm4900_vm13, %v5072_v40, %v9387_v43  ;;  %v4943_v39 = vsel %vm4900_vm13, %v4878_v19, %v9388_v16  ;;  %v4879_v58 = vsel %vm2567_vm3, %v2766_v46, %v9383_v59 }
 0x3a3   :  { %v2174_v13 = vpop.permute.xlu1 %2173  ;;  %v5200_v24 = vsel %vm4965_vm14, %v5136_v18, %v9392_v28  ;;  %v5008_v35 = vsel %vm4965_vm14, %v4943_v39, %v9393_v10  ;;  %v9398_v3 = vunpack.i.h.bf16 %v9396_v15  ;;  %v9397_v14 = vunpack.i.l.bf16 %v9396_v15 }
 0x3a4   :  { %v2434_v30 = vadd.f32 %v2174_v13, %v13326_v60  ;;  %9615 = vrot.lane.b32.xlu0 %v9614_v51, %s9897_s16  ;;  %v13730_v32 = vpop.f32.mrf.mxu1  ;;  %5731 = vmatprep.mubr.f32.mxu1 %v5200_v24 }
 0x3a5   :  { %9620 = vrot.lane.b32.xlu1 %v9619_v29, %s9897_s16  ;;  %5732 = vmatmul.mubr.f32.gmra.mxu1 %v5008_v35  ;;  %v5137_v0 = vsel %vm4900_vm13, %v5073_v12, %v9397_v14  ;;  %v4944_v33 = vsel %vm4900_vm13, %v4879_v58, %v9398_v3  ;;  %v2767_v12 = vld [vmem:[#allocation2 + $0x307] sm:$0xff] }
 0x3a6   :  { %v2500_v54 = vadd.f32 %v2434_v30, %v2432_v42  ;;  %v9406_v21 = vpop.permute.xlu0 %9405  ;;  %v5640_v56 = vpop.f32.mrf.mxu1 }
 0x3a7   :  { %v9401_v38 = vpop.permute.xlu1 %9400  ;;  %v9408_v48 = vunpack.i.h.bf16 %v9406_v21  ;;  %v9407_v13 = vunpack.i.l.bf16 %v9406_v21 }
 0x3a8   :  { %v2564_v36 = vmul.f32 0.25, %v2500_v54  ;;  %v9403_v60 = vunpack.i.h.bf16 %v9401_v38  ;;  %v9402_v1 = vunpack.i.l.bf16 %v9401_v38  ;;  %v3023_v38 = vld [vmem:[#allocation2 + $0x328] sm:$0xff] }
 0x3a9   :  { %v13735_v16 = vld [vmem:[#allocation2 + $0x428] sm:$0xff] }
 0x3aa   :  { %v13737_v43 = vld [vmem:[#allocation2 + $0x427] sm:$0xff]  ;;  %2720 = vst.msk [vmem:[#allocation2 + $0x430] sm:$0xff] %vm2567_vm3, %v2564_v36  ;;  %v2178_v50 = vpop.permute.xlu0 %2177  ;;  %v5201_v10 = vsel %vm4965_vm14, %v5137_v0, %v9402_v1  ;;  %v9629_v28 = vpack.i.bf16 %v13681_v20, %v13735_v16  ;;  %v5009_v19 = vsel %vm4965_vm14, %v4944_v33, %v9403_v60  ;;  %v5074_v36 = vsel %vm2567_vm3, %v3023_v38, %v9407_v13 }
 0x3ab   :  { %v9624_v40 = vpack.i.bf16 %v13650_v4, %v13737_v43  ;;  %v13747_v15 = vpop.permute.xlu1 %9410  ;;  %5736 = vmatprep.mubr.f32.mxu1 %v5201_v10  ;;  %v4880_v60 = vsel %vm2567_vm3, %v2767_v12, %v9408_v48 }
 0x3ac   :  { %9630 = vrot.lane.b32.xlu0 %v9629_v28, %s9896_s23  ;;  %5737 = vmatmul.mubr.f32.gmra.mxu1 %v5009_v19  ;;  %v9412_v28 = vunpack.i.l.bf16 %v13747_v15 }
 0x3ad   :  { %9625 = vrot.lane.b32.xlu1 %v9624_v40, %s9898_s19 }
 0x3ae   :  { %v2180_v29 = vpop.permute.xlu0 %2179 }
 0x3af   :  { %v2437_v51 = vadd.f32 %v2180_v29, %v13361_v57  ;;  %v2176_v18 = vpop.permute.xlu1 %2175 }
 0x3b0   :  { %v2435_v39 = vadd.f32 %v2176_v18, %v13370_v47  ;;  %v9413_v18 = vunpack.i.h.bf16 %v13747_v15 }
 0x3b1   :  { %v13753_v24 = vpop.f32.mrf.mxu1  ;;  %v13755_v4 = vld [vmem:[#allocation2 + $0x42f] sm:$0xff] }
 0x3b2   :  { %v13757_v35 = vld [vmem:[#allocation2 + $0x430] sm:$0xff]  ;;  %v2501_v42 = vadd.f32 %v2437_v51, %v2435_v39  ;;  %v9421_v59 = vpop.permute.xlu0 %9420  ;;  %v9634_v30 = vpack.i.bf16 %v13648_v6, %v13755_v4  ;;  %v2436_v51 = vadd.f32 %v2178_v50, %v13347_v55 }
 0x3b3   :  { %v9639_v3 = vpack.i.bf16 %v13699_v11, %v13757_v35  ;;  %v9416_v57 = vpop.permute.xlu1 %9415  ;;  %v5645_v14 = vpop.f32.mrf.mxu1  ;;  %v13763_v54 = vld [vmem:[#allocation2 + $0x431] sm:$0xff]  ;;  %v13765_v47 = vld [vmem:[#allocation2 + $0x429] sm:$0xff]  ;;  %v9423_v46 = vunpack.i.h.bf16 %v9421_v59  ;;  %v9422_v6 = vunpack.i.l.bf16 %v9421_v59 }
 0x3b4   :  { %v2565_v21 = vmul.f32 0.25, %v2501_v42  ;;  %v9418_v56 = vunpack.i.h.bf16 %v9416_v57  ;;  %v9417_v7 = vunpack.i.l.bf16 %v9416_v57  ;;  %9635 = vrot.lane.b32.xlu0 %v9634_v30, %s9898_s19  ;;  %v9649_v58 = vpack.i.bf16 %v13701_v22, %v13763_v54  ;;  %v3024_v57 = vld [vmem:[#allocation2 + $0x330] sm:$0xff] }
 0x3b5   :  { %9640 = vrot.lane.b32.xlu1 %v9639_v3, %s9896_s23  ;;  %v9644_v0 = vpack.i.bf16 %v13679_v41, %v13765_v47  ;;  %v5075_v55 = vsel %vm2567_vm3, %v3024_v57, %v9412_v28  ;;  %v2768_v50 = vld [vmem:[#allocation2 + $0x30f] sm:$0xff] }
 0x3b6   :  { %2721 = vst.msk [vmem:[#allocation2 + $0x448] sm:$0xff] %vm2567_vm3, %v2565_v21  ;;  %v9426_v1 = vpop.permute.xlu0 %9425  ;;  %v5138_v33 = vsel %vm4900_vm13, %v5074_v36, %v9417_v7  ;;  %v4945_v10 = vsel %vm4900_vm13, %v4880_v60, %v9418_v56  ;;  %v4881_v56 = vsel %vm2567_vm3, %v2768_v50, %v9413_v18 }
 0x3b7   :  { %v2182_v40 = vpop.permute.xlu1 %2181  ;;  %v5202_v19 = vsel %vm4965_vm14, %v5138_v33, %v9422_v6  ;;  %v5010_v29 = vsel %vm4965_vm14, %v4945_v10, %v9423_v46  ;;  %v9428_v13 = vunpack.i.h.bf16 %v9426_v1  ;;  %v9427_v42 = vunpack.i.l.bf16 %v9426_v1  ;;  %v3170_v33 = vld [vmem:[#allocation2 + $0x467] sm:$0xff] }
 0x3b8   :  { %v2438_v39 = vadd.f32 %v2182_v40, %v13402_v9  ;;  %9645 = vrot.lane.b32.xlu0 %v9644_v0, %s9897_s16  ;;  %v13786_v48 = vpop.f32.mrf.mxu1  ;;  %5741 = vmatprep.mubr.f32.mxu1 %v5202_v19  ;;  %v9659_v19 = vpack.i.bf16 %v13765_v47, %v3170_v33 }
 0x3b9   :  { %9650 = vrot.lane.b32.xlu1 %v9649_v58, %s9897_s16  ;;  %5742 = vmatmul.mubr.f32.gmra.mxu1 %v5010_v29  ;;  %v5139_v7 = vsel %vm4900_vm13, %v5075_v55, %v9427_v42  ;;  %v4946_v46 = vsel %vm4900_vm13, %v4881_v56, %v9428_v13  ;;  %v2769_v13 = vld [vmem:[#allocation2 + $0x327] sm:$0xff]  ;;  %v3026_v56 = vld [vmem:[#allocation2 + $0x350] sm:$0xff] }
 0x3ba   :  { %v2502_v59 = vadd.f32 %v2438_v39, %v2436_v51  ;;  %v9436_v30 = vpop.permute.xlu0 %9435  ;;  %v5650_v3 = vpop.f32.mrf.mxu1 }
 0x3bb   :  { %v9431_v14 = vpop.permute.xlu1 %9430  ;;  %v9438_v10 = vunpack.i.h.bf16 %v9436_v30  ;;  %v9437_v28 = vunpack.i.l.bf16 %v9436_v30 }
 0x3bc   :  { %v2566_v15 = vmul.f32 0.25, %v2502_v59  ;;  %v9433_v9 = vunpack.i.h.bf16 %v9431_v14  ;;  %v9432_v21 = vunpack.i.l.bf16 %v9431_v14 }
 0x3bd   :  { %v13791_v38 = vld [vmem:[#allocation2 + $0x448] sm:$0xff]  ;;  %v4882_v55 = vsel %vm2567_vm3, %v2769_v13, %v9438_v10 }
 0x3be   :  { %v13793_v12 = vld [vmem:[#allocation2 + $0x447] sm:$0xff]  ;;  %2722 = vst.msk [vmem:[#allocation2 + $0x450] sm:$0xff] %vm2567_vm3, %v2566_v15  ;;  %v9451_v6 = vpop.permute.xlu0 %9450  ;;  %v5203_v36 = vsel %vm4965_vm14, %v5139_v7, %v9432_v21  ;;  %v9664_v60 = vpack.i.bf16 %v13737_v43, %v13791_v38  ;;  %v5011_v58 = vsel %vm4965_vm14, %v4946_v46, %v9433_v9  ;;  %v2770_v13 = vld [vmem:[#allocation2 + $0x32f] sm:$0xff] }
 0x3bf   :  { %v9654_v1 = vpack.i.bf16 %v13709_v34, %v13793_v12  ;;  %v9441_v0 = vpop.permute.xlu1 %9440  ;;  %5746 = vmatprep.mubr.f32.mxu1 %v5203_v36  ;;  %v3025_v34 = vld [vmem:[#allocation2 + $0x348] sm:$0xff]  ;;  %v9452_v42 = vunpack.i.l.bf16 %v9451_v6  ;;  %v9453_v47 = vunpack.i.h.bf16 %v9451_v6  ;;  %v7281_v6 = vld [vmem:[%s15161_s5 + $0x238] sm:$0xff] }
 0x3c0   :  { %9665 = vrot.lane.b32.xlu0 %v9664_v60, %s9896_s23  ;;  %5747 = vmatmul.mubr.f32.gmra.mxu1 %v5011_v58  ;;  %v9442_v51 = vunpack.i.l.bf16 %v9441_v0  ;;  %v5076_v30 = vsel %vm2567_vm3, %v3025_v34, %v9437_v28  ;;  %v9443_v7 = vunpack.i.h.bf16 %v9441_v0 }
 0x3c1   :  { %9655 = vrot.lane.b32.xlu1 %v9654_v1, %s9898_s19  ;;  %8699 = vmatprep.subr.mxu0 %v7281_v6 }
 0x3c2   :  { %v9456_v40 = vpop.permute.xlu0 %9455  ;;  %v5077_v28 = vsel %vm2567_vm3, %v3026_v56, %v9442_v51  ;;  %v3234_v51 = vld [vmem:[#allocation2 + $0x468] sm:$0xff]  ;;  %8700 = vmatpush3.msra.mxu0 %v7281_v6 }
 0x3c3   :  { %v9446_v29 = vpop.permute.xlu1 %9445  ;;  %v9457_v59 = vunpack.i.l.bf16 %v9456_v40 }
 0x3c4   :  { %v9448_v18 = vunpack.i.h.bf16 %v9446_v29  ;;  %v9447_v39 = vunpack.i.l.bf16 %v9446_v29 }
 0x3c5   :  { %9660 = vrot.lane.b32.xlu1 %v9659_v19, %s9898_s19  ;;  %v13807_v3 = vpop.f32.mrf.mxu1  ;;  %v3169_v57 = vld [vmem:[#allocation2 + $0x44f] sm:$0xff]  ;;  %v5141_v29 = vsel %vm4900_vm13, %v5077_v28, %v9457_v59 }
 0x3c6   :  { %v13809_v14 = vld [vmem:[#allocation2 + $0x450] sm:$0xff]  ;;  %v9466_v50 = vpop.permute.xlu0 %9465  ;;  %v9669_v15 = vpack.i.bf16 %v13707_v53, %v3169_v57  ;;  %v5140_v21 = vsel %vm4900_vm13, %v5076_v30, %v9447_v39  ;;  %v4947_v1 = vsel %vm4900_vm13, %v4882_v55, %v9448_v18  ;;  %v9458_v53 = vunpack.i.h.bf16 %v9456_v40 }
 0x3c7   :  { %v9674_v9 = vpack.i.bf16 %v13755_v4, %v13809_v14  ;;  %v9461_v46 = vpop.permute.xlu1 %9460  ;;  %v5655_v36 = vpop.f32.mrf.mxu1  ;;  %v5204_v60 = vsel %vm4965_vm14, %v5140_v21, %v9452_v42  ;;  %v3106_v58 = vld [vmem:[#allocation2 + $0x451] sm:$0xff]  ;;  %v3105_v33 = vld [vmem:[#allocation2 + $0x449] sm:$0xff]  ;;  %v5012_v0 = vsel %vm4965_vm14, %v4947_v1, %v9453_v47  ;;  %v4883_v30 = vsel %vm2567_vm3, %v2770_v13, %v9443_v7 }
 0x3c8   :  { %v9462_v10 = vunpack.i.l.bf16 %v9461_v46  ;;  %9670 = vrot.lane.b32.xlu0 %v9669_v15, %s9898_s19  ;;  %v9463_v19 = vunpack.i.h.bf16 %v9461_v46  ;;  %5751 = vmatprep.mubr.f32.mxu1 %v5204_v60  ;;  %v9694_v34 = vpack.i.bf16 %v13757_v35, %v3106_v58  ;;  %v9679_v40 = vpack.i.bf16 %v13735_v16, %v3105_v33  ;;  %v3235_v55 = vld [vmem:[#allocation2 + $0x470] sm:$0xff]  ;;  %v3027_v58 = vld [vmem:[#allocation2 + $0x368] sm:$0xff] }
 0x3c9   :  { %9675 = vrot.lane.b32.xlu1 %v9674_v9, %s9896_s23  ;;  %5752 = vmatmul.mubr.f32.gmra.mxu1 %v5012_v0  ;;  %v9467_v47 = vunpack.i.l.bf16 %v9466_v50  ;;  %v4948_v15 = vsel %vm4900_vm13, %v4883_v30, %v9458_v53  ;;  %v9468_v9 = vunpack.i.h.bf16 %v9466_v50  ;;  %v9699_v36 = vpack.i.bf16 %v3169_v57, %v3235_v55  ;;  %v3171_v1 = vld [vmem:[#allocation2 + $0x46f] sm:$0xff]  ;;  %v2771_v53 = vld [vmem:[#allocation2 + $0x347] sm:$0xff] }
 0x3ca   :  { %v9481_v18 = vpop.permute.xlu0 %9480  ;;  %v5205_v39 = vsel %vm4965_vm14, %v5141_v29, %v9462_v10  ;;  %v5013_v21 = vsel %vm4965_vm14, %v4948_v15, %v9463_v19  ;;  %v9684_v7 = vpack.i.bf16 %v13793_v12, %v3234_v51 }
 0x3cb   :  { %v9471_v42 = vpop.permute.xlu1 %9470  ;;  %5756 = vmatprep.mubr.f32.mxu1 %v5205_v39  ;;  %v5078_v50 = vsel %vm2567_vm3, %v3027_v58, %v9467_v47  ;;  %v9483_v0 = vunpack.i.h.bf16 %v9481_v18  ;;  %v9482_v28 = vunpack.i.l.bf16 %v9481_v18  ;;  %v4884_v57 = vsel %vm2567_vm3, %v2771_v53, %v9468_v9  ;;  %v3028_v47 = vld [vmem:[#allocation2 + $0x370] sm:$0xff] }
 0x3cc   :  { %9680 = vrot.lane.b32.xlu0 %v9679_v40, %s9897_s16  ;;  %v13833_v59 = vpop.f32.mrf.mxu1  ;;  %v9472_v33 = vunpack.i.l.bf16 %v9471_v42  ;;  %v9473_v29 = vunpack.i.h.bf16 %v9471_v42  ;;  %v9689_v39 = vpack.i.bf16 %v13763_v54, %v3171_v1  ;;  %v2772_v9 = vld [vmem:[#allocation2 + $0x34f] sm:$0xff] }
 0x3cd   :  { %9695 = vrot.lane.b32.xlu1 %v9694_v34, %s9897_s16  ;;  %5757 = vmatmul.mubr.f32.gmra.mxu1 %v5013_v21 }
 0x3ce   :  { %v9486_v56 = vpop.permute.xlu0 %9485  ;;  %v5660_v46 = vpop.f32.mrf.mxu1  ;;  %v5079_v42 = vsel %vm2567_vm3, %v3028_v47, %v9472_v33 }
 0x3cf   :  { %v9476_v60 = vpop.permute.xlu1 %9475  ;;  %v9487_v19 = vunpack.i.l.bf16 %v9486_v56  ;;  %v9488_v13 = vunpack.i.h.bf16 %v9486_v56  ;;  %v4885_v46 = vsel %vm2567_vm3, %v2772_v9, %v9473_v29 }
 0x3d0   :  { %v9478_v6 = vunpack.i.h.bf16 %v9476_v60  ;;  %v9477_v10 = vunpack.i.l.bf16 %v9476_v60  ;;  %9685 = vrot.lane.b32.xlu0 %v9684_v7, %s9896_s23 }
 0x3d1   :  { %9700 = vrot.lane.b32.xlu1 %v9699_v36, %s9896_s23  ;;  %v5143_v54 = vsel %vm4900_vm13, %v5079_v42, %v9487_v19  ;;  %v4950_v7 = vsel %vm4900_vm13, %v4885_v46, %v9488_v13  ;;  %v2773_v19 = vld [vmem:[#allocation2 + $0x367] sm:$0xff]  ;;  %v3030_v42 = vld [vmem:[#allocation2 + $0x390] sm:$0xff] }
 0x3d2   :  { %v9496_v12 = vpop.permute.xlu0 %9495  ;;  %v5142_v34 = vsel %vm4900_vm13, %v5078_v50, %v9477_v10  ;;  %v4949_v40 = vsel %vm4900_vm13, %v4884_v57, %v9478_v6  ;;  %v3029_v10 = vld [vmem:[#allocation2 + $0x388] sm:$0xff] }
 0x3d3   :  { %v9491_v30 = vpop.permute.xlu1 %9490  ;;  %v5206_v55 = vsel %vm4965_vm14, %v5142_v34, %v9482_v28  ;;  %v5014_v51 = vsel %vm4965_vm14, %v4949_v40, %v9483_v0  ;;  %v9497_v60 = vunpack.i.l.bf16 %v9496_v12  ;;  %v9498_v58 = vunpack.i.h.bf16 %v9496_v12 }
 0x3d4   :  { %v9493_v15 = vunpack.i.h.bf16 %v9491_v30  ;;  %v9492_v18 = vunpack.i.l.bf16 %v9491_v30  ;;  %9690 = vrot.lane.b32.xlu0 %v9689_v39, %s9898_s19  ;;  %5761 = vmatprep.mubr.f32.mxu1 %v5206_v55 }
 0x3d5   :  { %5762 = vmatmul.mubr.f32.gmra.mxu1 %v5014_v51  ;;  %v5080_v28 = vsel %vm2567_vm3, %v3029_v10, %v9497_v60  ;;  %v4886_v40 = vsel %vm2567_vm3, %v2773_v19, %v9498_v58 }
 0x3d6   :  { %v9511_v21 = vpop.permute.xlu0 %9510  ;;  %v5207_v56 = vsel %vm4965_vm14, %v5143_v54, %v9492_v18  ;;  %v5015_v1 = vsel %vm4965_vm14, %v4950_v7, %v9493_v15 }
 0x3d7   :  { %v9501_v36 = vpop.permute.xlu1 %9500  ;;  %5766 = vmatprep.mubr.f32.mxu1 %v5207_v56  ;;  %v9513_v57 = vunpack.i.h.bf16 %v9511_v21  ;;  %v9512_v29 = vunpack.i.l.bf16 %v9511_v21 }
 0x3d8   :  { %v9502_v50 = vunpack.i.l.bf16 %v9501_v36  ;;  %v9503_v13 = vunpack.i.h.bf16 %v9501_v36  ;;  %v2774_v36 = vld [vmem:[#allocation2 + $0x36f] sm:$0xff] }
 0x3d9   :  { %5767 = vmatmul.mubr.f32.gmra.mxu1 %v5015_v1 }
 0x3da   :  { %v9516_v6 = vpop.permute.xlu0 %9515  ;;  %v5081_v56 = vsel %vm2567_vm3, %v3030_v42, %v9502_v50  ;;  %v4887_v60 = vsel %vm2567_vm3, %v2774_v36, %v9503_v13  ;;  %v2775_v13 = vld [vmem:[#allocation2 + $0x387] sm:$0xff] }
 0x3db   :  { %v9506_v33 = vpop.permute.xlu1 %9505  ;;  %v9517_v39 = vunpack.i.l.bf16 %v9516_v6  ;;  %v9518_v55 = vunpack.i.h.bf16 %v9516_v6 }
 0x3dc   :  { %v9508_v53 = vunpack.i.h.bf16 %v9506_v33  ;;  %v9507_v0 = vunpack.i.l.bf16 %v9506_v33 }
 0x3dd   :  { %v13855_v34 = vpop.f32.mrf.mxu1  ;;  %v5145_v46 = vsel %vm4900_vm13, %v5081_v56, %v9517_v39  ;;  %v4952_v58 = vsel %vm4900_vm13, %v4887_v60, %v9518_v55  ;;  %v2776_v60 = vld [vmem:[#allocation2 + $0x38f] sm:$0xff] }
 0x3de   :  { %v5144_v12 = vsel %vm4900_vm13, %v5080_v28, %v9507_v0  ;;  %v4951_v30 = vsel %vm4900_vm13, %v4886_v40, %v9508_v53  ;;  %v9526_v54 = vpop.permute.xlu0 %9525  ;;  %v3031_v40 = vld [vmem:[#allocation2 + $0x3a8] sm:$0xff] }
 0x3df   :  { %v9521_v51 = vpop.permute.xlu1 %9520  ;;  %v5665_v47 = vpop.f32.mrf.mxu1  ;;  %v5208_v15 = vsel %vm4965_vm14, %v5144_v12, %v9512_v29  ;;  %v5016_v18 = vsel %vm4965_vm14, %v4951_v30, %v9513_v57  ;;  %v9528_v10 = vunpack.i.h.bf16 %v9526_v54  ;;  %v9527_v53 = vunpack.i.l.bf16 %v9526_v54 }
 0x3e0   :  { %v9523_v9 = vunpack.i.h.bf16 %v9521_v51  ;;  %v9522_v21 = vunpack.i.l.bf16 %v9521_v51  ;;  %5771 = vmatprep.mubr.f32.mxu1 %v5208_v15 }
 0x3e1   :  { %5772 = vmatmul.mubr.f32.gmra.mxu1 %v5016_v18  ;;  %v5082_v55 = vsel %vm2567_vm3, %v3031_v40, %v9527_v53  ;;  %v4888_v47 = vsel %vm2567_vm3, %v2775_v13, %v9528_v10 }
 0x3e2   :  { %v5209_v7 = vsel %vm4965_vm14, %v5145_v46, %v9522_v21  ;;  %v5017_v33 = vsel %vm4965_vm14, %v4952_v58, %v9523_v9  ;;  %v9541_v50 = vpop.permute.xlu0 %9540 }
 0x3e3   :  { %v9531_v1 = vpop.permute.xlu1 %9530  ;;  %5776 = vmatprep.mubr.f32.mxu1 %v5209_v7  ;;  %v9543_v12 = vunpack.i.h.bf16 %v9541_v50  ;;  %v9542_v30 = vunpack.i.l.bf16 %v9541_v50  ;;  %v3032_v7 = vld [vmem:[#allocation2 + $0x3b0] sm:$0xff] }
 0x3e4   :  { %v13867_v6 = vpop.f32.mrf.mxu1  ;;  %v9533_v19 = vunpack.i.h.bf16 %v9531_v1  ;;  %v9532_v57 = vunpack.i.l.bf16 %v9531_v1 }
 0x3e5   :  { %5777 = vmatmul.mubr.f32.gmra.mxu1 %v5017_v33 }
 0x3e6   :  { %v5670_v0 = vpop.f32.mrf.mxu1  ;;  %v5083_v33 = vsel %vm2567_vm3, %v3032_v7, %v9532_v57  ;;  %v4889_v10 = vsel %vm2567_vm3, %v2776_v60, %v9533_v19 }
 0x3e7   :  { %v9536_v28 = vpop.permute.xlu1 %9535 }
 0x3e8   :  { %v9538_v29 = vunpack.i.h.bf16 %v9536_v28  ;;  %v9537_v39 = vunpack.i.l.bf16 %v9536_v28 }
 0x3e9   :  { %v13870_v51 = vpop.f32.mrf.mxu1 }
 0x3ea   :  { %v9546_v15 = vpop.permute.xlu0 %9545  ;;  %v5146_v18 = vsel %vm4900_vm13, %v5082_v55, %v9537_v39  ;;  %v4953_v42 = vsel %vm4900_vm13, %v4888_v47, %v9538_v29 }
 0x3eb   :  { %v9548_v54 = vunpack.i.h.bf16 %v9546_v15  ;;  %v9547_v9 = vunpack.i.l.bf16 %v9546_v15  ;;  %v9551_v21 = vpop.permute.xlu1 %9550  ;;  %v5675_v56 = vpop.f32.mrf.mxu1  ;;  %v5210_v46 = vsel %vm4965_vm14, %v5146_v18, %v9542_v30  ;;  %v5018_v36 = vsel %vm4965_vm14, %v4953_v42, %v9543_v12  ;;  %v3033_v42 = vld [vmem:[#allocation2 + $0x3c8] sm:$0xff] }
 0x3ec   :  { %v9553_v1 = vunpack.i.h.bf16 %v9551_v21  ;;  %v9552_v58 = vunpack.i.l.bf16 %v9551_v21  ;;  %5781 = vmatprep.mubr.f32.mxu1 %v5210_v46 }
 0x3ed   :  { %v13880_v53 = vpop.f32.mrf.mxu1  ;;  %5782 = vmatmul.mubr.f32.gmra.mxu1 %v5018_v36  ;;  %v5147_v50 = vsel %vm4900_vm13, %v5083_v33, %v9547_v9  ;;  %v4954_v0 = vsel %vm4900_vm13, %v4889_v10, %v9548_v54  ;;  %v2777_v9 = vld [vmem:[#allocation2 + $0x3a7] sm:$0xff] }
 0x3ee   :  { %v5211_v28 = vsel %vm4965_vm14, %v5147_v50, %v9552_v58  ;;  %v5019_v39 = vsel %vm4965_vm14, %v4954_v0, %v9553_v1  ;;  %v9556_v40 = vpop.permute.xlu0 %9555 }
 0x3ef   :  { %v5680_v29 = vpop.f32.mrf.mxu1  ;;  %5786 = vmatprep.mubr.f32.mxu1 %v5211_v28  ;;  %v9561_v13 = vpop.permute.xlu1 %9560  ;;  %v9558_v12 = vunpack.i.h.bf16 %v9556_v40  ;;  %v9557_v57 = vunpack.i.l.bf16 %v9556_v40 }
 0x3f0   :  { %v9563_v60 = vunpack.i.h.bf16 %v9561_v13  ;;  %v9562_v1 = vunpack.i.l.bf16 %v9561_v13  ;;  %v3034_v29 = vld [vmem:[#allocation2 + $0x3d0] sm:$0xff] }
 0x3f1   :  { %5787 = vmatmul.mubr.f32.gmra.mxu1 %v5019_v39  ;;  %v5084_v54 = vsel %vm2567_vm3, %v3033_v42, %v9557_v57  ;;  %v4890_v21 = vsel %vm2567_vm3, %v2777_v9, %v9558_v12  ;;  %v2778_v39 = vld [vmem:[#allocation2 + $0x3af] sm:$0xff] }
 0x3f2   :  { %v5085_v40 = vsel %vm2567_vm3, %v3034_v29, %v9562_v1  ;;  %v4891_v12 = vsel %vm2567_vm3, %v2778_v39, %v9563_v60 }
 0x3f6   :  { %v9571_v19 = vpop.permute.xlu0 %9570 }
 0x3f7   :  { %v9566_v30 = vpop.permute.xlu1 %9565  ;;  %v9573_v15 = vunpack.i.h.bf16 %v9571_v19  ;;  %v9572_v18 = vunpack.i.l.bf16 %v9571_v19 }
 0x3f8   :  { %v9568_v55 = vunpack.i.h.bf16 %v9566_v30  ;;  %v9567_v47 = vunpack.i.l.bf16 %v9566_v30 }
 0x3fa   :  { %v5148_v56 = vsel %vm4900_vm13, %v5084_v54, %v9567_v47  ;;  %v4955_v46 = vsel %vm4900_vm13, %v4890_v21, %v9568_v55  ;;  %v7280_v21 = vld [vmem:[%s15161_s5 + $0x230] sm:$0xff] }
 0x3fb   :  { %v5212_v36 = vsel %vm4965_vm14, %v5148_v56, %v9572_v18  ;;  %v5020_v7 = vsel %vm4965_vm14, %v4955_v46, %v9573_v15  ;;  %8701 = vmatprep.subr.mxu0 %v7280_v21 }
 0x3fc   :  { %5791 = vmatprep.mubr.f32.mxu1 %v5212_v36  ;;  %8702 = vmatpush3.msra.mxu0 %v7280_v21  ;;  %v2779_v36 = vld [vmem:[#allocation2 + $0x3c7] sm:$0xff] }
 0x3fd   :  { %5792 = vmatmul.mubr.f32.gmra.mxu1 %v5020_v7 }
 0x3fe   :  { %v9576_v33 = vpop.permute.xlu0 %9575 }
 0x3ff   :  { %v9581_v58 = vpop.permute.xlu1 %9580  ;;  %v9578_v0 = vunpack.i.h.bf16 %v9576_v33  ;;  %v9577_v28 = vunpack.i.l.bf16 %v9576_v33 }
 0x400   :  { %v9583_v10 = vunpack.i.h.bf16 %v9581_v58  ;;  %v9582_v50 = vunpack.i.l.bf16 %v9581_v58 }
 0x401   :  { %v13894_v57 = vpop.f32.mrf.mxu1  ;;  %v5149_v30 = vsel %vm4900_vm13, %v5085_v40, %v9577_v28  ;;  %v4956_v19 = vsel %vm4900_vm13, %v4891_v12, %v9578_v0 }
 0x402   :  { %v5213_v13 = vsel %vm4965_vm14, %v5149_v30, %v9582_v50  ;;  %v5021_v55 = vsel %vm4965_vm14, %v4956_v19, %v9583_v10  ;;  %v9586_v15 = vpop.permute.xlu0 %9585  ;;  %v3035_v10 = vld [vmem:[#allocation2 + $0x3e8] sm:$0xff] }
 0x403   :  { %v5685_v47 = vpop.f32.mrf.mxu1  ;;  %5796 = vmatprep.mubr.f32.mxu1 %v5213_v13  ;;  %v9591_v18 = vpop.permute.xlu1 %9590  ;;  %v9588_v42 = vunpack.i.h.bf16 %v9586_v15  ;;  %v9587_v9 = vunpack.i.l.bf16 %v9586_v15 }
 0x404   :  { %5797 = vmatmul.mubr.f32.gmra.mxu1 %v5021_v55  ;;  %v9593_v12 = vunpack.i.h.bf16 %v9591_v18  ;;  %v9592_v30 = vunpack.i.l.bf16 %v9591_v18  ;;  %v2780_v55 = vld [vmem:[#allocation2 + $0x3cf] sm:$0xff] }
 0x405   :  { %v4892_v50 = vsel %vm2567_vm3, %v2779_v36, %v9588_v42  ;;  %v5086_v0 = vsel %vm2567_vm3, %v3035_v10, %v9587_v9  ;;  %v3036_v9 = vld [vmem:[#allocation2 + $0x3f0] sm:$0xff] }
 0x408   :  { %v13900_v54 = vpop.f32.mrf.mxu1 }
 0x40a   :  { %v9601_v46 = vpop.permute.xlu0 %9600  ;;  %v5690_v33 = vpop.f32.mrf.mxu1 }
 0x40b   :  { %v9596_v56 = vpop.permute.xlu1 %9595  ;;  %v9603_v1 = vunpack.i.h.bf16 %v9601_v46  ;;  %v9602_v58 = vunpack.i.l.bf16 %v9601_v46  ;;  %v5087_v46 = vsel %vm2567_vm3, %v3036_v9, %v9592_v30 }
 0x40c   :  { %v9598_v7 = vunpack.i.h.bf16 %v9596_v56  ;;  %v9597_v60 = vunpack.i.l.bf16 %v9596_v56  ;;  %v4893_v56 = vsel %vm2567_vm3, %v2780_v55, %v9593_v12 }
 0x40e   :  { %v5150_v28 = vsel %vm4900_vm13, %v5086_v0, %v9597_v60  ;;  %v4957_v29 = vsel %vm4900_vm13, %v4892_v50, %v9598_v7 }
 0x40f   :  { %v5214_v39 = vsel %vm4965_vm14, %v5150_v28, %v9602_v58  ;;  %v5022_v40 = vsel %vm4965_vm14, %v4957_v29, %v9603_v1 }
 0x410   :  { %5801 = vmatprep.mubr.f32.mxu1 %v5214_v39 }
 0x411   :  { %5802 = vmatmul.mubr.f32.gmra.mxu1 %v5022_v40  ;;  %v2781_v40 = vld [vmem:[#allocation2 + $0x3e7] sm:$0xff] }
 0x412   :  { %v9606_v13 = vpop.permute.xlu0 %9605 }
 0x413   :  { %v9611_v19 = vpop.permute.xlu1 %9610  ;;  %v9608_v42 = vunpack.i.h.bf16 %v9606_v13  ;;  %v9607_v21 = vunpack.i.l.bf16 %v9606_v13 }
 0x414   :  { %v9613_v47 = vunpack.i.h.bf16 %v9611_v19  ;;  %v9612_v15 = vunpack.i.l.bf16 %v9611_v19 }
 0x415   :  { %v13913_v36 = vpop.f32.mrf.mxu1  ;;  %v5151_v7 = vsel %vm4900_vm13, %v5087_v46, %v9607_v21  ;;  %v4958_v60 = vsel %vm4900_vm13, %v4893_v56, %v9608_v42 }
 0x416   :  { %v5215_v18 = vsel %vm4965_vm14, %v5151_v7, %v9612_v15  ;;  %v5023_v1 = vsel %vm4965_vm14, %v4958_v60, %v9613_v47  ;;  %v9616_v33 = vpop.permute.xlu0 %9615 }
 0x417   :  { %v5695_v58 = vpop.f32.mrf.mxu1  ;;  %5806 = vmatprep.mubr.f32.mxu1 %v5215_v18  ;;  %v9621_v10 = vpop.permute.xlu1 %9620  ;;  %v9618_v50 = vunpack.i.h.bf16 %v9616_v33  ;;  %v9617_v0 = vunpack.i.l.bf16 %v9616_v33 }
 0x418   :  { %5807 = vmatmul.mubr.f32.gmra.mxu1 %v5023_v1  ;;  %v9623_v46 = vunpack.i.h.bf16 %v9621_v10  ;;  %v9622_v7 = vunpack.i.l.bf16 %v9621_v10 }
 0x419   :  { %v4894_v15 = vsel %vm2567_vm3, %v2781_v40, %v9618_v50  ;;  %v5088_v47 = vsel %vm2567_vm3, %v13679_v41, %v9617_v0 }
 0x41a   :  { %v5089_v0 = vsel %vm2567_vm3, %v13701_v22, %v9622_v7 }
 0x41c   :  { %v13919_v28 = vpop.f32.mrf.mxu1 }
 0x41e   :  { %v9631_v39 = vpop.permute.xlu0 %9630  ;;  %v5700_v55 = vpop.f32.mrf.mxu1 }
 0x41f   :  { %v9626_v29 = vpop.permute.xlu1 %9625  ;;  %v9633_v19 = vunpack.i.h.bf16 %v9631_v39  ;;  %v9632_v13 = vunpack.i.l.bf16 %v9631_v39 }
 0x420   :  { %v9628_v12 = vunpack.i.h.bf16 %v9626_v29  ;;  %v9627_v30 = vunpack.i.l.bf16 %v9626_v29  ;;  %v9869_v29 = vld [vmem:[#allocation2 + $0x3ef] sm:$0xff] }
 0x421   :  { %v4895_v41 = vsel %vm2567_vm3, %v9869_v29, %v9623_v46 }
 0x422   :  { %v5152_v42 = vsel %vm4900_vm13, %v5088_v47, %v9627_v30  ;;  %v4959_v21 = vsel %vm4900_vm13, %v4894_v15, %v9628_v12 }
 0x423   :  { %v5216_v9 = vsel %vm4965_vm14, %v5152_v42, %v9632_v13  ;;  %v5024_v56 = vsel %vm4965_vm14, %v4959_v21, %v9633_v19 }
 0x424   :  { %5811 = vmatprep.mubr.f32.mxu1 %v5216_v9 }
 0x425   :  { %5812 = vmatmul.mubr.f32.gmra.mxu1 %v5024_v56 }
 0x426   :  { %v9636_v18 = vpop.permute.xlu0 %9635 }
 0x427   :  { %v9641_v60 = vpop.permute.xlu1 %9640  ;;  %v9638_v33 = vunpack.i.h.bf16 %v9636_v18  ;;  %v9637_v50 = vunpack.i.l.bf16 %v9636_v18 }
 0x428   :  { %v9643_v1 = vunpack.i.h.bf16 %v9641_v60  ;;  %v9642_v58 = vunpack.i.l.bf16 %v9641_v60 }
 0x429   :  { %v13931_v39 = vpop.f32.mrf.mxu1  ;;  %v5153_v40 = vsel %vm4900_vm13, %v5089_v0, %v9637_v50  ;;  %v4960_v12 = vsel %vm4900_vm13, %v4895_v41, %v9638_v33 }
 0x42a   :  { %v5217_v10 = vsel %vm4965_vm14, %v5153_v40, %v9642_v58  ;;  %v5025_v30 = vsel %vm4965_vm14, %v4960_v12, %v9643_v1  ;;  %v9646_v13 = vpop.permute.xlu0 %9645 }
 0x42b   :  { %v5705_v19 = vpop.f32.mrf.mxu1  ;;  %5816 = vmatprep.mubr.f32.mxu1 %v5217_v10  ;;  %v9651_v55 = vpop.permute.xlu1 %9650  ;;  %v9648_v15 = vunpack.i.h.bf16 %v9646_v13  ;;  %v9647_v47 = vunpack.i.l.bf16 %v9646_v13 }
 0x42c   :  { %5817 = vmatmul.mubr.f32.gmra.mxu1 %v5025_v30  ;;  %v9653_v0 = vunpack.i.h.bf16 %v9651_v55  ;;  %v9652_v40 = vunpack.i.l.bf16 %v9651_v55 }
 0x42d   :  { %v4896_v18 = vsel %vm2567_vm3, %v13681_v20, %v9648_v15  ;;  %v5090_v1 = vsel %vm2567_vm3, %v13735_v16, %v9647_v47 }
 0x42e   :  { %v4897_v16 = vsel %vm2567_vm3, %v13699_v11, %v9653_v0  ;;  %v5091_v15 = vsel %vm2567_vm3, %v13757_v35, %v9652_v40 }
 0x430   :  { %v13937_v42 = vpop.f32.mrf.mxu1 }
 0x432   :  { %v9666_v21 = vpop.permute.xlu0 %9665  ;;  %v5710_v60 = vpop.f32.mrf.mxu1 }
 0x433   :  { %v9656_v22 = vpop.permute.xlu1 %9655  ;;  %v9668_v46 = vunpack.i.h.bf16 %v9666_v21  ;;  %v9667_v7 = vunpack.i.l.bf16 %v9666_v21 }
 0x434   :  { %v9658_v9 = vunpack.i.h.bf16 %v9656_v22  ;;  %v9657_v56 = vunpack.i.l.bf16 %v9656_v22 }
 0x436   :  { %v5154_v58 = vsel %vm4900_vm13, %v5090_v1, %v9657_v56  ;;  %v4961_v33 = vsel %vm4900_vm13, %v4896_v18, %v9658_v9 }
 0x437   :  { %v9661_v50 = vpop.permute.xlu1 %9660  ;;  %v5218_v29 = vsel %vm4965_vm14, %v5154_v58, %v9667_v7  ;;  %v5026_v41 = vsel %vm4965_vm14, %v4961_v33, %v9668_v46 }
 0x438   :  { %5821 = vmatprep.mubr.f32.mxu1 %v5218_v29  ;;  %v9663_v1 = vunpack.i.h.bf16 %v9661_v50  ;;  %v9662_v58 = vunpack.i.l.bf16 %v9661_v50 }
 0x439   :  { %5822 = vmatmul.mubr.f32.gmra.mxu1 %v5026_v41 }
 0x43a   :  { %v9671_v10 = vpop.permute.xlu0 %9670 }
 0x43b   :  { %v9676_v12 = vpop.permute.xlu1 %9675  ;;  %v9673_v19 = vunpack.i.h.bf16 %v9671_v10  ;;  %v9672_v13 = vunpack.i.l.bf16 %v9671_v10 }
 0x43c   :  { %v9678_v30 = vunpack.i.h.bf16 %v9676_v12  ;;  %v9677_v20 = vunpack.i.l.bf16 %v9676_v12 }
 0x43d   :  { %v13951_v47 = vpop.f32.mrf.mxu1  ;;  %v5155_v22 = vsel %vm4900_vm13, %v5091_v15, %v9672_v13  ;;  %v4962_v21 = vsel %vm4900_vm13, %v4897_v16, %v9673_v19 }
 0x43e   :  { %v9681_v55 = vpop.permute.xlu0 %9680  ;;  %v5219_v9 = vsel %vm4965_vm14, %v5155_v22, %v9677_v20  ;;  %v5027_v56 = vsel %vm4965_vm14, %v4962_v21, %v9678_v30 }
 0x43f   :  { %v9696_v46 = vpop.permute.xlu1 %9695  ;;  %v9683_v7 = vunpack.i.h.bf16 %v9681_v55  ;;  %v9682_v60 = vunpack.i.l.bf16 %v9681_v55  ;;  %v5715_v18 = vpop.f32.mrf.mxu1  ;;  %5826 = vmatprep.mubr.f32.mxu1 %v5219_v9  ;;  %v7279_v9 = vld [vmem:[%s15161_s5 + $0x228] sm:$0xff] }
 0x440   :  { %5827 = vmatmul.mubr.f32.gmra.mxu1 %v5027_v56  ;;  %v9698_v0 = vunpack.i.h.bf16 %v9696_v46  ;;  %v9697_v40 = vunpack.i.l.bf16 %v9696_v46  ;;  %8703 = vmatprep.subr.mxu0 %v7279_v9  ;;  %v3238_v18 = vld [vmem:[#allocation2 + $0x69] sm:$0xff] }
 0x441   :  { %v4898_v11 = vsel %vm2567_vm3, %v13737_v43, %v9683_v7  ;;  %v5092_v35 = vsel %vm2567_vm3, %v13791_v38, %v9682_v60  ;;  %8704 = vmatpush3.msra.mxu0 %v7279_v9  ;;  %v3253_v9 = vld [vmem:[#allocation2 + $0x151] sm:$0xff] }
 0x442   :  { %v9686_v33 = vpop.permute.xlu0 %9685  ;;  %v5156_v12 = vsel %vm4900_vm13, %v5092_v35, %v9662_v58  ;;  %v4963_v10 = vsel %vm4900_vm13, %v4898_v11, %v9663_v1  ;;  %v4899_v15 = vsel %vm2567_vm3, %v13755_v4, %v9698_v0  ;;  %v5093_v55 = vsel %vm2567_vm3, %v13809_v14, %v9697_v40  ;;  %v3236_v4 = vld [vmem:[#allocation2 + $0x49] sm:$0xff]  ;;  %v3237_v14 = vld [vmem:[#allocation2 + $0x51] sm:$0xff] }
 0x443   :  { %v9688_v29 = vunpack.i.h.bf16 %v9686_v33  ;;  %v9687_v41 = vunpack.i.l.bf16 %v9686_v33  ;;  %v9701_v30 = vpop.permute.xlu1 %9700  ;;  %v3239_v35 = vld [vmem:[#allocation2 + $0x71] sm:$0xff]  ;;  %v3240_v58 = vld [vmem:[#allocation2 + $0x89] sm:$0xff] }
 0x444   :  { %v13963_v20 = vpop.f32.mrf.mxu1  ;;  %v9703_v22 = vunpack.i.h.bf16 %v9701_v30  ;;  %v9702_v21 = vunpack.i.l.bf16 %v9701_v30  ;;  %v3241_v33 = vld [vmem:[#allocation2 + $0x91] sm:$0xff]  ;;  %v3246_v30 = vld [vmem:[#allocation2 + $0xe9] sm:$0xff] }
 0x445   :  { %v5220_v19 = vsel %vm4965_vm14, %v5156_v12, %v9687_v41  ;;  %v5028_v43 = vsel %vm4965_vm14, %v4963_v10, %v9688_v29  ;;  %v3242_v29 = vld [vmem:[#allocation2 + $0xa9] sm:$0xff]  ;;  %v3243_v40 = vld [vmem:[#allocation2 + $0xb1] sm:$0xff] }
 0x446   :  { %v9691_v13 = vpop.permute.xlu0 %9690  ;;  %5831 = vmatprep.mubr.f32.mxu1 %v5220_v19  ;;  %v5720_v16 = vpop.f32.mrf.mxu1  ;;  %v3244_v12 = vld [vmem:[#allocation2 + $0xc9] sm:$0xff]  ;;  %v3245_v10 = vld [vmem:[#allocation2 + $0xd1] sm:$0xff] }
 0x447   :  { %v9693_v38 = vunpack.i.h.bf16 %v9691_v13  ;;  %v9692_v50 = vunpack.i.l.bf16 %v9691_v13  ;;  %5832 = vmatmul.mubr.f32.gmra.mxu1 %v5028_v43  ;;  %v3247_v19 = vld [vmem:[#allocation2 + $0xf1] sm:$0xff]  ;;  %v3248_v43 = vld [vmem:[#allocation2 + $0x109] sm:$0xff] }
 0x448   :  { %v3250_v16 = vld [vmem:[#allocation2 + $0x129] sm:$0xff] }
 0x449   :  { %v5157_v56 = vsel %vm4900_vm13, %v5093_v55, %v9692_v50  ;;  %v4964_v46 = vsel %vm4900_vm13, %v4899_v15, %v9693_v38  ;;  %v3249_v38 = vld [vmem:[#allocation2 + $0x111] sm:$0xff] }
 0x44a   :  { %v5221_v7 = vsel %vm4965_vm14, %v5157_v56, %v9702_v21  ;;  %v5029_v60 = vsel %vm4965_vm14, %v4964_v46, %v9703_v22  ;;  %v3251_v15 = vld [vmem:[#allocation2 + $0x131] sm:$0xff]  ;;  %v3252_v22 = vld [vmem:[#allocation2 + $0x149] sm:$0xff]  ;;  %vm6676_vm14 = vcmask 516096  }
 0x44b   :  { %5836 = vmatprep.mubr.f32.mxu1 %v5221_v7  ;;  %v3254_v56 = vld [vmem:[#allocation2 + $0x169] sm:$0xff]  ;;  %v3255_v46 = vld [vmem:[#allocation2 + $0x171] sm:$0xff] }
 0x44c   :  { %5837 = vmatmul.mubr.f32.gmra.mxu1 %v5029_v60  ;;  %v3256_v7 = vld [vmem:[#allocation2 + $0x189] sm:$0xff]  ;;  %v3257_v60 = vld [vmem:[#allocation2 + $0x191] sm:$0xff] }
 0x44d   :  { %8603 = vmatprep.mubr.msk.f32.mxu1 %vm2567_vm3, %v3236_v4  ;;  %v3258_v4 = vld [vmem:[#allocation2 + $0x1a9] sm:$0xff] }
 0x450   :  { %8604 = vmatmul.mubr.msk.f32.vlgmr.msra.gmra.mxu1 %vm2567_vm3, %v3237_v14 }
 0x451   :  { %8606 = vmatprep.mubr.msk.f32.mxu1 %vm2567_vm3, %v3238_v18  ;;  %v13981_v11 = vpop.f32.mrf.mxu1  ;;  %v3259_v18 = vld [vmem:[#allocation2 + $0x1b1] sm:$0xff] }
 0x453   :  { %v5725_v1 = vpop.f32.mrf.mxu1 }
 0x454   :  { %8607 = vmatmul.mubr.msk.f32.gmra.mxu1 %vm2567_vm3, %v3239_v35  ;;  %v3260_v1 = vld [vmem:[#allocation2 + $0x1c9] sm:$0xff] }
 0x455   :  { %8609 = vmatprep.mubr.msk.f32.mxu1 %vm2567_vm3, %v3240_v58  ;;  %v3261_v58 = vld [vmem:[#allocation2 + $0x1d1] sm:$0xff] }
 0x458   :  { %8610 = vmatmul.mubr.msk.f32.gmra.mxu1 %vm2567_vm3, %v3241_v33  ;;  %v13986_v41 = vpop.f32.mrf.mxu1  ;;  %v3262_v33 = vld [vmem:[#allocation2 + $0x1e9] sm:$0xff] }
 0x459   :  { %8612 = vmatprep.mubr.msk.f32.mxu1 %vm2567_vm3, %v3242_v29 }
 0x45a   :  { %v5730_v0 = vpop.f32.mrf.mxu1 }
 0x45c   :  { %8613 = vmatmul.mubr.msk.f32.gmra.mxu1 %vm2567_vm3, %v3243_v40  ;;  %v3263_v40 = vld [vmem:[#allocation2 + $0x1f1] sm:$0xff] }
 0x45d   :  { %8615 = vmatprep.mubr.msk.f32.mxu1 %vm2567_vm3, %v3244_v12  ;;  %v3264_v12 = vld [vmem:[#allocation2 + $0x209] sm:$0xff] }
 0x460   :  { %8616 = vmatmul.mubr.msk.f32.gmra.mxu1 %vm2567_vm3, %v3245_v10  ;;  %v3266_v10 = vld [vmem:[#allocation2 + $0x229] sm:$0xff] }
 0x461   :  { %8618 = vmatprep.mubr.msk.f32.mxu1 %vm2567_vm3, %v3246_v30  ;;  %v3265_v30 = vld [vmem:[#allocation2 + $0x211] sm:$0xff] }
 0x464   :  { %8619 = vmatmul.mubr.msk.f32.gmra.mxu1 %vm2567_vm3, %v3247_v19  ;;  %v7278_v19 = vld [vmem:[%s15161_s5 + $0x220] sm:$0xff] }
 0x465   :  { %8621 = vmatprep.mubr.msk.f32.mxu1 %vm2567_vm3, %v3248_v43  ;;  %v13995_v13 = vpop.f32.mrf.mxu1  ;;  %v3267_v43 = vld [vmem:[#allocation2 + $0x231] sm:$0xff]  ;;  %8705 = vmatprep.subr.mxu0 %v7278_v19 }
 0x466   :  { %8706 = vmatpush3.msra.mxu0 %v7278_v19  ;;  %v3280_v19 = vld [vmem:[#allocation2 + $0x349] sm:$0xff] }
 0x467   :  { %v5735_v50 = vpop.f32.mrf.mxu1 }
 0x468   :  { %8622 = vmatmul.mubr.msk.f32.gmra.mxu1 %vm2567_vm3, %v3249_v38 }
 0x469   :  { %8624 = vmatprep.mubr.msk.f32.mxu1 %vm2567_vm3, %v3250_v16  ;;  %v3268_v16 = vld [vmem:[#allocation2 + $0x289] sm:$0xff] }
 0x46c   :  { %8625 = vmatmul.mubr.msk.f32.gmra.mxu1 %vm2567_vm3, %v3251_v15  ;;  %v14000_v21 = vpop.f32.mrf.mxu1 }
 0x46d   :  { %8627 = vmatprep.mubr.msk.f32.mxu1 %vm2567_vm3, %v3252_v22  ;;  %v3269_v22 = vld [vmem:[#allocation2 + $0x291] sm:$0xff] }
 0x46e   :  { %v5740_v55 = vpop.f32.mrf.mxu1 }
 0x470   :  { %8628 = vmatmul.mubr.msk.f32.gmra.mxu1 %vm2567_vm3, %v3253_v9  ;;  %v3270_v9 = vld [vmem:[#allocation2 + $0x2a9] sm:$0xff] }
 0x471   :  { %8630 = vmatprep.mubr.msk.f32.mxu1 %vm2567_vm3, %v3254_v56  ;;  %v3271_v56 = vld [vmem:[#allocation2 + $0x2b1] sm:$0xff] }
 0x474   :  { %8631 = vmatmul.mubr.msk.f32.gmra.mxu1 %vm2567_vm3, %v3255_v46  ;;  %v3272_v46 = vld [vmem:[#allocation2 + $0x2c9] sm:$0xff] }
 0x475   :  { %8633 = vmatprep.mubr.msk.f32.mxu1 %vm2567_vm3, %v3256_v7 }
 0x478   :  { %8634 = vmatmul.mubr.msk.f32.gmra.mxu1 %vm2567_vm3, %v3257_v60 }
 0x479   :  { %8636 = vmatprep.mubr.msk.f32.mxu1 %vm2567_vm3, %v3258_v4  ;;  %v14009_v14 = vpop.f32.mrf.mxu1  ;;  %v3273_v4 = vld [vmem:[#allocation2 + $0x2d1] sm:$0xff] }
 0x47b   :  { %v5745_v35 = vpop.f32.mrf.mxu1 }
 0x47c   :  { %8637 = vmatmul.mubr.msk.f32.gmra.mxu1 %vm2567_vm3, %v3259_v18  ;;  %v3274_v18 = vld [vmem:[#allocation2 + $0x2e9] sm:$0xff] }
 0x47d   :  { %8639 = vmatprep.mubr.msk.f32.mxu1 %vm2567_vm3, %v3260_v1 }
 0x480   :  { %8640 = vmatmul.mubr.msk.f32.gmra.mxu1 %vm2567_vm3, %v3261_v58  ;;  %v14014_v29 = vpop.f32.mrf.mxu1  ;;  %v3275_v58 = vld [vmem:[#allocation2 + $0x2f1] sm:$0xff] }
 0x481   :  { %8642 = vmatprep.mubr.msk.f32.mxu1 %vm2567_vm3, %v3262_v33  ;;  %v3276_v33 = vld [vmem:[#allocation2 + $0x309] sm:$0xff] }
 0x482   :  { %v5750_v0 = vpop.f32.mrf.mxu1 }
 0x483   :  { %v3277_v0 = vld [vmem:[#allocation2 + $0x311] sm:$0xff] }
 0x484   :  { %8643 = vmatmul.mubr.msk.f32.gmra.mxu1 %vm2567_vm3, %v3263_v40  ;;  %v3278_v40 = vld [vmem:[#allocation2 + $0x329] sm:$0xff] }
 0x485   :  { %8645 = vmatprep.mubr.msk.f32.mxu1 %vm2567_vm3, %v3264_v12 }
 0x488   :  { %8646 = vmatmul.mubr.msk.f32.gmra.mxu1 %vm2567_vm3, %v3265_v30  ;;  %v3279_v30 = vld [vmem:[#allocation2 + $0x331] sm:$0xff] }
 0x489   :  { %8648 = vmatprep.mubr.msk.f32.mxu1 %vm2567_vm3, %v3266_v10  ;;  %v14024_v38 = vpop.f32.mrf.mxu1 }
 0x48b   :  { %v5755_v50 = vpop.f32.mrf.mxu1 }
 0x48c   :  { %8649 = vmatmul.mubr.msk.f32.gmra.mxu1 %vm2567_vm3, %v3267_v43 }
 0x48d   :  { %8651 = vmatprep.mubr.msk.f32.mxu1 %vm2567_vm3, %v3268_v16  ;;  %v14028_v15 = vpop.f32.mrf.mxu1  ;;  %v3281_v16 = vld [vmem:[#allocation2 + $0x351] sm:$0xff] }
 0x48f   :  { %v5760_v55 = vpop.f32.mrf.mxu1 }
 0x490   :  { %8652 = vmatmul.mubr.msk.f32.gmra.mxu1 %vm2567_vm3, %v3269_v22  ;;  %v3282_v22 = vld [vmem:[#allocation2 + $0x369] sm:$0xff]  ;;  %v3283_v55 = vld [vmem:[#allocation2 + $0x371] sm:$0xff] }
 0x491   :  { %8654 = vmatprep.mubr.msk.f32.mxu1 %vm2567_vm3, %v3270_v9  ;;  %v3284_v9 = vld [vmem:[#allocation2 + $0x389] sm:$0xff] }
 0x494   :  { %8655 = vmatmul.mubr.msk.f32.gmra.mxu1 %vm2567_vm3, %v3271_v56 }
 0x495   :  { %v14033_v7 = vpop.f32.mrf.mxu1  ;;  %8657 = vmatprep.mubr.msk.f32.mxu1 %vm2567_vm3, %v3272_v46  ;;  %v15229_v46 = vmov 0.0  }
 0x496   :  { %6689 = vst.msk [vmem:[#allocation3 + $0x1f] sm:$0x1] %vm6676_vm14, %v15229_v46  ;;  %6677 = vst.msk [vmem:[#allocation3 + $0x10] sm:$0x1] %vm6676_vm14, %v15229_v46 }
 0x497   :  { %v5765_v60 = vpop.f32.mrf.mxu1  ;;  %6680 = vst.msk [vmem:[#allocation3 + $0x100] sm:$0x1] %vm6676_vm14, %v15229_v46  ;;  %6684 = vst.msk [vmem:[#allocation3 + $0xe8] sm:$0x1] %vm6676_vm14, %v15229_v46 }
 0x498   :  { %8658 = vmatmul.mubr.msk.f32.gmra.mxu1 %vm2567_vm3, %v3273_v4  ;;  %6687 = vst.msk [vmem:[#allocation3 + $0x1d8] sm:$0x1] %vm6676_vm14, %v15229_v46  ;;  %6688 = vst.msk [vmem:[#allocation3 + $0x7] sm:$0x1] %vm6676_vm14, %v15229_v46  ;;  %v3285_v4 = vld [vmem:[#allocation2 + $0x391] sm:$0xff] }
 0x499   :  { %v14037_v35 = vpop.f32.mrf.mxu1  ;;  %8660 = vmatprep.mubr.msk.f32.mxu1 %vm2567_vm3, %v3274_v18  ;;  %6690 = vst.msk [vmem:[#allocation3 + $0x37] sm:$0x1] %vm6676_vm14, %v15229_v46  ;;  %6691 = vst.msk [vmem:[#allocation3 + $0x4f] sm:$0x1] %vm6676_vm14, %v15229_v46  ;;  %v3286_v18 = vld [vmem:[#allocation2 + $0x3a9] sm:$0xff] }
 0x49a   :  { %6692 = vst.msk [vmem:[#allocation3 + $0x67] sm:$0x1] %vm6676_vm14, %v15229_v46  ;;  %6693 = vst.msk [vmem:[#allocation3 + $0x7f] sm:$0x1] %vm6676_vm14, %v15229_v46 }
 0x49b   :  { %v5770_v1 = vpop.f32.mrf.mxu1  ;;  %6694 = vst.msk [vmem:[#allocation3 + $0x97] sm:$0x1] %vm6676_vm14, %v15229_v46  ;;  %6695 = vst.msk [vmem:[#allocation3 + $0xaf] sm:$0x1] %vm6676_vm14, %v15229_v46 }
 0x49c   :  { %8661 = vmatmul.mubr.msk.f32.gmra.mxu1 %vm2567_vm3, %v3275_v58  ;;  %6696 = vst.msk [vmem:[#allocation3 + $0xc7] sm:$0x1] %vm6676_vm14, %v15229_v46  ;;  %6697 = vst.msk [vmem:[#allocation3 + $0xdf] sm:$0x1] %vm6676_vm14, %v15229_v46 }
 0x49d   :  { %8663 = vmatprep.mubr.msk.f32.mxu1 %vm2567_vm3, %v3276_v33  ;;  %6698 = vst.msk [vmem:[#allocation3 + $0xf7] sm:$0x1] %vm6676_vm14, %v15229_v46  ;;  %6699 = vst.msk [vmem:[#allocation3 + $0x10f] sm:$0x1] %vm6676_vm14, %v15229_v46  ;;  %v3287_v33 = vld [vmem:[#allocation2 + $0x3b1] sm:$0xff] }
 0x49e   :  { %6700 = vst.msk [vmem:[#allocation3 + $0x127] sm:$0x1] %vm6676_vm14, %v15229_v46  ;;  %6701 = vst.msk [vmem:[#allocation3 + $0x13f] sm:$0x1] %vm6676_vm14, %v15229_v46 }
 0x49f   :  { %6702 = vst.msk [vmem:[#allocation3 + $0x157] sm:$0x1] %vm6676_vm14, %v15229_v46  ;;  %6703 = vst.msk [vmem:[#allocation3 + $0x16f] sm:$0x1] %vm6676_vm14, %v15229_v46 }
 0x4a0   :  { %8664 = vmatmul.mubr.msk.f32.gmra.mxu1 %vm2567_vm3, %v3277_v0  ;;  %6704 = vst.msk [vmem:[#allocation3 + $0x187] sm:$0x1] %vm6676_vm14, %v15229_v46  ;;  %6705 = vst.msk [vmem:[#allocation3 + $0x19f] sm:$0x1] %vm6676_vm14, %v15229_v46  ;;  %v3288_v0 = vld [vmem:[#allocation2 + $0x3c9] sm:$0xff] }
 0x4a1   :  { %v14043_v12 = vpop.f32.mrf.mxu1  ;;  %8666 = vmatprep.mubr.msk.f32.mxu1 %vm2567_vm3, %v3278_v40  ;;  %6706 = vst.msk [vmem:[#allocation3 + $0x1b7] sm:$0x1] %vm6676_vm14, %v15229_v46  ;;  %6707 = vst.msk [vmem:[#allocation3 + $0x1cf] sm:$0x1] %vm6676_vm14, %v15229_v46  ;;  %v3289_v40 = vld [vmem:[#allocation2 + $0x3d1] sm:$0xff] }
 0x4a2   :  { %6709 = vst.msk [vmem:[#allocation3 + $0x28] sm:$0x1] %vm6676_vm14, %v15229_v46  ;;  %6710 = vst.msk [vmem:[#allocation3 + $0x40] sm:$0x1] %vm6676_vm14, %v15229_v46 }
 0x4a3   :  { %v5775_v10 = vpop.f32.mrf.mxu1  ;;  %6711 = vst.msk [vmem:[#allocation3 + $0x58] sm:$0x1] %vm6676_vm14, %v15229_v46  ;;  %6712 = vst.msk [vmem:[#allocation3 + $0x70] sm:$0x1] %vm6676_vm14, %v15229_v46 }
 0x4a4   :  { %8667 = vmatmul.mubr.msk.f32.gmra.mxu1 %vm2567_vm3, %v3279_v30  ;;  %6713 = vst.msk [vmem:[#allocation3 + $0x88] sm:$0x1] %vm6676_vm14, %v15229_v46  ;;  %6714 = vst.msk [vmem:[#allocation3 + $0xa0] sm:$0x1] %vm6676_vm14, %v15229_v46  ;;  %v3290_v10 = vld [vmem:[#allocation2 + $0x3e9] sm:$0xff]  ;;  %v3291_v30 = vld [vmem:[#allocation2 + $0x3f1] sm:$0xff] }
 0x4a5   :  { %v14047_v43 = vpop.f32.mrf.mxu1  ;;  %8669 = vmatprep.mubr.msk.f32.mxu1 %vm2567_vm3, %v3280_v19  ;;  %6715 = vst.msk [vmem:[#allocation3 + $0xb8] sm:$0x1] %vm6676_vm14, %v15229_v46  ;;  %6716 = vst.msk [vmem:[#allocation3 + $0xd0] sm:$0x1] %vm6676_vm14, %v15229_v46 }
 0x4a6   :  { %6719 = vst.msk [vmem:[#allocation3 + $0x118] sm:$0x1] %vm6676_vm14, %v15229_v46  ;;  %6720 = vst.msk [vmem:[#allocation3 + $0x130] sm:$0x1] %vm6676_vm14, %v15229_v46 }
 0x4a7   :  { %v5780_v50 = vpop.f32.mrf.mxu1  ;;  %6721 = vst.msk [vmem:[#allocation3 + $0x148] sm:$0x1] %vm6676_vm14, %v15229_v46  ;;  %6722 = vst.msk [vmem:[#allocation3 + $0x160] sm:$0x1] %vm6676_vm14, %v15229_v46 }
 0x4a8   :  { %8670 = vmatmul.mubr.msk.f32.gmra.mxu1 %vm2567_vm3, %v3281_v16  ;;  %6723 = vst.msk [vmem:[#allocation3 + $0x178] sm:$0x1] %vm6676_vm14, %v15229_v46  ;;  %6724 = vst.msk [vmem:[#allocation3 + $0x190] sm:$0x1] %vm6676_vm14, %v15229_v46  ;;  %v3292_v50 = vld [vmem:[#allocation2 + $0x409] sm:$0xff]  ;;  %v7277_v16 = vld [vmem:[%s15161_s5 + $0x218] sm:$0xff] }
 0x4a9   :  { %8672 = vmatprep.mubr.msk.f32.mxu1 %vm2567_vm3, %v3282_v22  ;;  %6725 = vst.msk [vmem:[#allocation3 + $0x1a8] sm:$0x1] %vm6676_vm14, %v15229_v46  ;;  %6726 = vst.msk [vmem:[#allocation3 + $0x1c0] sm:$0x1] %vm6676_vm14, %v15229_v46  ;;  %8707 = vmatprep.subr.mxu0 %v7277_v16 }
 0x4aa   :  { %6708 = vst.msk [vmem:[#allocation3 + $0x10] sm:$0x1] %vm6676_vm14, %v15229_v46  ;;  %6717 = vst.msk [vmem:[#allocation3 + $0xe8] sm:$0x1] %vm6676_vm14, %v15229_v46  ;;  %8708 = vmatpush3.msra.mxu0 %v7277_v16 }
 0x4ab   :  { %6718 = vst.msk [vmem:[#allocation3 + $0x100] sm:$0x1] %vm6676_vm14, %v15229_v46  ;;  %6727 = vst.msk [vmem:[#allocation3 + $0x1d8] sm:$0x1] %vm6676_vm14, %v15229_v46 }
 0x4ac   :  { %8673 = vmatmul.mubr.msk.f32.gmra.mxu1 %vm2567_vm3, %v3283_v55  ;;  %v7276_v55 = vld [vmem:[%s15161_s5 + $0x210] sm:$0xff] }
 0x4ad   :  { %v14053_v56 = vpop.f32.mrf.mxu1  ;;  %8675 = vmatprep.mubr.msk.f32.mxu1 %vm2567_vm3, %v3284_v9  ;;  %v3293_v9 = vld [vmem:[#allocation2 + $0x411] sm:$0xff]  ;;  %8709 = vmatprep.subr.mxu0 %v7276_v55 }
 0x4ae   :  { %15228 = vst [vmem:[#allocation8_spill] sm:$0xff] %v14053_v56  ;;  %8710 = vmatpush3.msra.mxu0 %v7276_v55 }
 0x4af   :  { %v5785_v60 = vpop.f32.mrf.mxu1 }
 0x4b0   :  { %8676 = vmatmul.mubr.msk.f32.gmra.mxu1 %vm2567_vm3, %v3285_v4  ;;  %v3294_v60 = vld [vmem:[#allocation2 + $0x429] sm:$0xff] }
 0x4b1   :  { %v14145_v1 = vpop.f32.mrf.mxu1  ;;  %8678 = vmatprep.mubr.msk.f32.mxu1 %vm2567_vm3, %v3286_v18  ;;  %v7275_v4 = vld [vmem:[%s15161_s5 + $0x208] sm:$0xff]  ;;  %v7274_v18 = vld [vmem:[%s15161_s5 + $0x200] sm:$0xff] }
 0x4b2   :  { %15230 = vst [vmem:[#allocation15_spill] sm:$0xff] %v14145_v1  ;;  %8711 = vmatprep.subr.mxu0 %v7275_v4  ;;  %v7236_v1 = vld [vmem:[%s15161_s5 + $0xd0] sm:$0xff] }
 0x4b3   :  { %v5790_v58 = vpop.f32.mrf.mxu1  ;;  %8712 = vmatpush3.msra.mxu0 %v7275_v4 }
 0x4b4   :  { %8679 = vmatmul.mubr.msk.f32.gmra.mxu1 %vm2567_vm3, %v3287_v33  ;;  %v3295_v58 = vld [vmem:[#allocation2 + $0x431] sm:$0xff]  ;;  %8713 = vmatprep.subr.mxu0 %v7274_v18 }
 0x4b5   :  { %8681 = vmatprep.mubr.msk.f32.mxu1 %vm2567_vm3, %v3288_v0  ;;  %v3296_v0 = vld [vmem:[#allocation2 + $0x449] sm:$0xff]  ;;  %8714 = vmatpush3.msra.mxu0 %v7274_v18 }
 0x4b8   :  { %8682 = vmatmul.mubr.msk.f32.gmra.mxu1 %vm2567_vm3, %v3289_v40 }
 0x4b9   :  { %8684 = vmatprep.mubr.msk.f32.mxu1 %vm2567_vm3, %v3290_v10  ;;  %v3298_v10 = vld [vmem:[#allocation2 + $0x469] sm:$0xff] }
 0x4bc   :  { %8685 = vmatmul.mubr.msk.f32.gmra.mxu1 %vm2567_vm3, %v3291_v30  ;;  %v3297_v30 = vld [vmem:[#allocation2 + $0x451] sm:$0xff] }
 0x4bd   :  { %v14152_v19 = vpop.f32.mrf.mxu1  ;;  %8687 = vmatprep.mubr.msk.f32.mxu1 %vm2567_vm3, %v3292_v50  ;;  %v3299_v50 = vld [vmem:[#allocation2 + $0x471] sm:$0xff] }
 0x4be   :  { %15231 = vst [vmem:[#allocation10_spill] sm:$0xff] %v14152_v19  ;;  %v15244_v19 = vld [vmem:[#allocation18_spill] sm:$0xff] }
 0x4bf   :  { %v5795_v22 = vpop.f32.mrf.mxu1 }
 0x4c0   :  { %8688 = vmatmul.mubr.msk.f32.gmra.mxu1 %vm2567_vm3, %v3293_v9 }
 0x4c1   :  { %8690 = vmatprep.mubr.msk.f32.mxu1 %vm2567_vm3, %v3294_v60 }
 0x4c4   :  { %v14170_v33 = vpop.f32.mrf.mxu1  ;;  %8691 = vmatmul.mubr.msk.f32.gmra.mxu1 %vm2567_vm3, %v3295_v58 }
 0x4c5   :  { %15232 = vst [vmem:[#allocation16_spill] sm:$0xff] %v14170_v33  ;;  %8693 = vmatprep.mubr.msk.f32.mxu1 %vm2567_vm3, %v3296_v0  ;;  %v7241_v0 = vld [vmem:[%s15161_s5 + $0xf8] sm:$0xff] }
 0x4c6   :  { %v5800_v40 = vpop.f32.mrf.mxu1  ;;  %8376 = vmatprep.subr.mxu1 %v7241_v0  ;;  %v7223_v0 = vld [vmem:[%s15161_s5 + $0x68] sm:$0xff] }
 0x4c7   :  { %v7225_v40 = vld [vmem:[%s15161_s5 + $0x78] sm:$0xff] }
 0x4c8   :  { %8694 = vmatmul.mubr.msk.f32.gmra.mxu1 %vm2567_vm3, %v3297_v30 }
 0x4c9   :  { %8696 = vmatprep.mubr.msk.f32.mxu1 %vm2567_vm3, %v3298_v10  ;;  %8377 = vmatpush3.msra.mxu1 %v7225_v40 }
 0x4cc   :  { %8697 = vmatmul.mubr.msk.f32.gmra.mxu1 %vm2567_vm3, %v3299_v50  ;;  %v7240_v50 = vld [vmem:[%s15161_s5 + $0xf0] sm:$0xff] }
 0x4cd   :  { %8378 = vmatprep.subr.mxu1 %v7240_v50  ;;  %v7238_v50 = vld [vmem:[%s15161_s5 + $0xe0] sm:$0xff] }
 0x4d1   :  { %v14177_v16 = vpop.f32.mrf.mxu1 }
 0x4d2   :  { %15233 = vst [vmem:[#allocation19_spill] sm:$0xff] %v14177_v16 }
 0x4d3   :  { %v5805_v22 = vpop.f32.mrf.mxu1 }
 0x4d4   :  { %v7224_v22 = vld [vmem:[%s15161_s5 + $0x70] sm:$0xff] }
 0x4d5   :  { %8379 = vmatpush3.msra.mxu1 %v7224_v22  ;;  %v7222_v22 = vld [vmem:[%s15161_s5 + $0x60] sm:$0xff] }
 0x4d8   :  { %v14179_v55 = vpop.f32.mrf.mxu1 }
 0x4d9   :  { %15234 = vst [vmem:[#allocation20_spill] sm:$0xff] %v14179_v55 }
 0x4da   :  { %v5810_v9 = vpop.f32.mrf.mxu1 }
 0x4e5   :  { %v14181_v60 = vpop.f32.mrf.mxu1 }
 0x4e6   :  { %15235 = vst [vmem:[#allocation17_spill] sm:$0xff] %v14181_v60 }
 0x4e7   :  { %v5815_v4 = vpop.f32.mrf.mxu1 }
 0x4ec   :  { %v14183_v18 = vpop.f32.mrf.mxu1 }
 0x4ed   :  { %15236 = vst [vmem:[#allocation22_spill] sm:$0xff] %v14183_v18  ;;  %v15243_v18 = vld [vmem:[#allocation13_spill] sm:$0xff] }
 0x4ee   :  { %v5820_v58 = vpop.f32.mrf.mxu1 }
 0x4ef   :  { %v7239_v58 = vld [vmem:[%s15161_s5 + $0xe8] sm:$0xff] }
 0x4f0   :  { %8380 = vmatprep.subr.mxu1 %v7239_v58 }
 0x4f1   :  { %8381 = vmatpush3.msra.mxu1 %v7223_v0  ;;  %v15241_v0 = vld [vmem:[#allocation12_spill] sm:$0xff] }
 0x4f2   :  { %8382 = vmatprep.subr.mxu1 %v7238_v50 }
 0x4f3   :  { %8383 = vmatpush3.msra.mxu1 %v7222_v22  ;;  %v7237_v22 = vld [vmem:[%s15161_s5 + $0xd8] sm:$0xff] }
 0x4f4   :  { %8384 = vmatprep.subr.mxu1 %v7237_v22 }
 0x4f9   :  { %v14191_v10 = vpop.f32.mrf.mxu1 }
 0x4fa   :  { %15237 = vst [vmem:[#allocation21_spill] sm:$0xff] %v14191_v10 }
 0x4fb   :  { %v5825_v30 = vpop.f32.mrf.mxu1 }
 0x500   :  { %v14199_v9 = vpop.f32.mrf.mxu1 }
 0x501   :  { %15238 = vst [vmem:[#allocation23_spill] sm:$0xff] %v14199_v9 }
 0x502   :  { %v5830_v4 = vpop.f32.mrf.mxu1 }
 0x503   :  { %v14220_v4 = vld [vmem:[%s15160_s4] ss:$0 sm:$0xff] }
 0x504   :  { %v5539_v16 = vadd.f32 %v14220_v4, %v15243_v18  ;;  %v5534_v33 = vadd.f32 %v14220_v4, %v15244_v19 }
 0x507   :  { %v14207_v40 = vpop.f32.mrf.mxu1 }
 0x508   :  { %15239 = vst [vmem:[#allocation24_spill] sm:$0xff] %v14207_v40 }
 0x509   :  { %v5835_v30 = vpop.f32.mrf.mxu1 }
 0x50a   :  { %v5529_v30 = vadd.f32 %v14220_v4, %v15241_v0 }
 0x50c   :  { %v14209_v46 = vpop.f32.mrf.mxu1 }
 0x50d   :  { %15240 = vst [vmem:[#allocation25_spill] sm:$0xff] %v14209_v46  ;;  %v15242_v46 = vld [vmem:[#allocation11_spill] sm:$0xff] }
 0x50e   :  { %v5840_v58 = vpop.f32.mrf.mxu1  ;;  %v5524_v10 = vadd.f32 %v14220_v4, %v15242_v46  ;;  %v7221_v46 = vld [vmem:[%s15161_s5 + $0x58] sm:$0xff] }
 0x50f   :  { %8385 = vmatpush3.msra.mxu1 %v7221_v46  ;;  %v5559_v46 = vadd.f32 %v14220_v4, %v13118_v26  ;;  %v5554_v26 = vadd.f32 %v14220_v4, %v13083_v27 }
 0x510   :  { %v8605_v40 = vpop.f32.mrf.mxu1  ;;  %8386 = vmatprep.subr.mxu1 %v7236_v1  ;;  %v7219_v1 = vld [vmem:[%s15161_s5 + $0x48] sm:$0xff] }
 0x511   :  { %v5914_v9 = vadd.f32 %v8605_v40, %v5529_v30 }
 0x512   :  { %v5908_v60 = vpop.f32.mrf.mxu1 }
 0x513   :  { %vm6228_vm3 = vcmp.ge.f32.partialorder %v5914_v9, 0.0  ;;  %v6292_v50 = vmul.f32 0.2, %v5914_v9  ;;  %v5909_v55 = vadd.f32 %v5908_v60, %v5524_v10  ;;  %v5549_v60 = vadd.f32 %v14220_v4, %v13032_v52  ;;  %v7220_v52 = vld [vmem:[%s15161_s5 + $0x50] sm:$0xff] }
 0x514   :  { %v8608_v58 = vpop.f32.mrf.mxu1  ;;  %8387 = vmatpush3.msra.mxu1 %v7220_v52  ;;  %v7232_v52 = vld [vmem:[%s15161_s5 + $0xb0] sm:$0xff] }
 0x515   :  { %v6356_v40 = vsel %vm6228_vm3, %v5914_v9, %v6292_v50  ;;  %vm6227_vm15 = vcmp.ge.f32.partialorder %v5909_v55, 0.0  ;;  %v6291_v0 = vmul.f32 0.2, %v5909_v55  ;;  %v5924_v30 = vadd.f32 %v8608_v58, %v5539_v16  ;;  %v15245_v9 = vld [vmem:[#allocation9_spill] sm:$0xff] }
 0x516   :  { %6420 = vst.msk [vmem:[#allocation4 + $0x8] sm:$0xff] %vm4900_vm13, %v6356_v40  ;;  %v5918_v19 = vpop.f32.mrf.mxu1  ;;  %v5544_v50 = vadd.f32 %v14220_v4, %v15245_v9  ;;  %v7217_v9 = vld [vmem:[%s15161_s5 + $0x38] sm:$0xff] }
 0x517   :  { %v6355_v18 = vsel %vm6227_vm15, %v5909_v55, %v6291_v0  ;;  %vm6230_vm1 = vcmp.ge.f32.partialorder %v5924_v30, 0.0  ;;  %v6294_v10 = vmul.f32 0.2, %v5924_v30  ;;  %v5919_v56 = vadd.f32 %v5918_v19, %v5534_v33  ;;  %v7235_v33 = vld [vmem:[%s15161_s5 + $0xc8] sm:$0xff]  ;;  %v7234_v19 = vld [vmem:[%s15161_s5 + $0xc0] sm:$0xff] }
 0x518   :  { %6419 = vst.msk [vmem:[#allocation4] sm:$0xff] %vm4900_vm13, %v6355_v18  ;;  %v8611_v16 = vpop.f32.mrf.mxu1  ;;  %8388 = vmatprep.subr.mxu1 %v7235_v33  ;;  %v5569_v33 = vadd.f32 %v14220_v4, %v13204_v44 }
 0x519   :  { %v6358_v58 = vsel %vm6230_vm1, %v5924_v30, %v6294_v10  ;;  %vm6229_vm2 = vcmp.ge.f32.partialorder %v5919_v56, 0.0  ;;  %v6293_v55 = vmul.f32 0.2, %v5919_v56  ;;  %v5934_v22 = vadd.f32 %v8611_v16, %v5549_v60  ;;  %8389 = vmatpush3.msra.mxu1 %v7219_v1  ;;  %v7218_v10 = vld [vmem:[%s15161_s5 + $0x40] sm:$0xff] }
 0x51a   :  { %6422 = vst.msk [vmem:[#allocation4 + $0x18] sm:$0xff] %vm4900_vm13, %v6358_v58  ;;  %v5928_v40 = vpop.f32.mrf.mxu1  ;;  %8390 = vmatprep.subr.mxu1 %v7234_v19  ;;  %v7215_v19 = vld [vmem:[%s15161_s5 + $0x28] sm:$0xff] }
 0x51b   :  { %v6357_v0 = vsel %vm6229_vm2, %v5919_v56, %v6293_v55  ;;  %vm6232_vm4 = vcmp.ge.f32.partialorder %v5934_v22, 0.0  ;;  %v6296_v30 = vmul.f32 0.2, %v5934_v22  ;;  %v5929_v60 = vadd.f32 %v5928_v40, %v5544_v50  ;;  %v7233_v56 = vld [vmem:[%s15161_s5 + $0xb8] sm:$0xff]  ;;  %8391 = vmatpush3.msra.mxu1 %v7218_v10  ;;  %v7216_v55 = vld [vmem:[%s15161_s5 + $0x30] sm:$0xff] }
 0x51c   :  { %6421 = vst.msk [vmem:[#allocation4 + $0x10] sm:$0xff] %vm4900_vm13, %v6357_v0  ;;  %v8614_v18 = vpop.f32.mrf.mxu1  ;;  %8392 = vmatprep.subr.mxu1 %v7233_v56  ;;  %v7230_v56 = vld [vmem:[%s15161_s5 + $0xa0] sm:$0xff] }
 0x51d   :  { %v6360_v50 = vsel %vm6232_vm4, %v5934_v22, %v6296_v30  ;;  %vm6231_vm5 = vcmp.ge.f32.partialorder %v5929_v60, 0.0  ;;  %v6295_v16 = vmul.f32 0.2, %v5929_v60  ;;  %v5944_v27 = vadd.f32 %v8614_v18, %v5559_v46  ;;  %8393 = vmatpush3.msra.mxu1 %v7217_v9  ;;  %v7231_v46 = vld [vmem:[%s15161_s5 + $0xa8] sm:$0xff]  ;;  %v15246_v18 = vld [vmem:[#allocation14_spill] sm:$0xff] }
 0x51e   :  { %6424 = vst.msk [vmem:[#allocation4 + $0x28] sm:$0xff] %vm4900_vm13, %v6360_v50  ;;  %v5938_v58 = vpop.f32.mrf.mxu1  ;;  %8394 = vmatprep.subr.mxu1 %v7232_v52  ;;  %v5564_v44 = vadd.f32 %v14220_v4, %v15246_v18  ;;  %v5579_v52 = vadd.f32 %v14220_v4, %v13311_v61  ;;  %v7213_v61 = vld [vmem:[%s15161_s5 + $0x18] sm:$0xff] }
 0x51f   :  { %v6359_v22 = vsel %vm6231_vm5, %v5929_v60, %v6295_v16  ;;  %vm6234_vm6 = vcmp.ge.f32.partialorder %v5944_v27, 0.0  ;;  %v5939_v40 = vadd.f32 %v5938_v58, %v5554_v26  ;;  %v6483_v1 = vld [vmem:[#allocation4] ss:$2 sm:$0xff]  ;;  %v6298_v0 = vmul.f32 0.2, %v5944_v27  ;;  %8395 = vmatpush3.msra.mxu1 %v7216_v55 }
 0x520   :  { %6423 = vst.msk [vmem:[#allocation4 + $0x20] sm:$0xff] %vm4900_vm13, %v6359_v22  ;;  %v8617_v30 = vpop.f32.mrf.mxu1  ;;  %v6547_v60 = vld [vmem:[#allocation4 + $0x1] ss:$2 sm:$0xff]  ;;  %8396 = vmatprep.subr.mxu1 %v7231_v46 }
 0x521   :  { %vm6233_vm7 = vcmp.ge.f32.partialorder %v5939_v40, 0.0  ;;  %v6297_v26 = vmul.f32 0.2, %v5939_v40  ;;  %v5954_v10 = vadd.f32 %v8617_v30, %v5569_v33  ;;  %v6362_v9 = vsel %vm6234_vm6, %v5944_v27, %v6298_v0  ;;  %v7214_v16 = vld [vmem:[%s15161_s5 + $0x20] sm:$0xff]  ;;  %8397 = vmatpush3.msra.mxu1 %v7215_v19  ;;  %v7229_v27 = vld [vmem:[%s15161_s5 + $0x98] sm:$0xff] }
 0x522   :  { %v5948_v50 = vpop.f32.mrf.mxu1  ;;  %6426 = vst.msk [vmem:[#allocation4 + $0x38] sm:$0xff] %vm4900_vm13, %v6362_v9  ;;  %v6610_v46 = vadd.f32 %v6547_v60, %v6483_v1  ;;  %8398 = vmatprep.subr.mxu1 %v7230_v56  ;;  %v7228_v1 = vld [vmem:[%s15161_s5 + $0x90] sm:$0xff] }
 0x523   :  { %v6485_v58 = vld [vmem:[#allocation4 + $0x10] ss:$2 sm:$0xff]  ;;  %v6549_v22 = vld [vmem:[#allocation4 + $0x11] ss:$2 sm:$0xff]  ;;  %v6361_v55 = vsel %vm6233_vm7, %v5939_v40, %v6297_v26  ;;  %vm6236_vm8 = vcmp.ge.f32.partialorder %v5954_v10, 0.0  ;;  %v5949_v33 = vadd.f32 %v5948_v50, %v5564_v44  ;;  %v5574_v40 = vadd.f32 %v14220_v4, %v13272_v62  ;;  %8399 = vmatpush3.msra.mxu1 %v7214_v16 }
 0x524   :  { %v6611_v0 = vadd.f32 %v6549_v22, %v6485_v58  ;;  %6425 = vst.msk [vmem:[#allocation4 + $0x30] sm:$0xff] %vm4900_vm13, %v6361_v55  ;;  %v6300_v30 = vmul.f32 0.2, %v5954_v10  ;;  %v8620_v18 = vpop.f32.mrf.mxu1  ;;  %8400 = vmatprep.subr.mxu1 %v7229_v27  ;;  %v7212_v56 = vld [vmem:[%s15161_s5 + $0x10] sm:$0xff]  ;;  %v5589_v62 = vadd.f32 %v14220_v4, %v13394_v23  ;;  %v5584_v27 = vadd.f32 %v14220_v4, %v13359_v5  ;;  %v7210_v5 = vld [vmem:[%s15161_s5] sm:$0xff] }
 0x525   :  { %vm6235_vm0 = vcmp.ge.f32.partialorder %v5949_v33, 0.0  ;;  %v6299_v19 = vmul.f32 0.2, %v5949_v33  ;;  %v5964_v44 = vadd.f32 %v8620_v18, %v5579_v52  ;;  %8401 = vmatpush3.msra.mxu1 %v7213_v61 }
 0x526   :  { %v6642_v60 = vadd.f32 %v6611_v0, %v6610_v46  ;;  %v6364_v26 = vsel %vm6236_vm8, %v5954_v10, %v6300_v30  ;;  %v5958_v9 = vpop.f32.mrf.mxu1  ;;  %8402 = vmatprep.subr.mxu1 %v7228_v1  ;;  %v7211_v0 = vld [vmem:[%s15161_s5 + $0x8] sm:$0xff]  ;;  %v7226_v30 = vld [vmem:[%s15161_s5 + $0x80] sm:$0xff] }
 0x527   :  { %v6487_v50 = vld [vmem:[#allocation4 + $0x20] ss:$2 sm:$0xff]  ;;  %6428 = vst.msk [vmem:[#allocation4 + $0x48] sm:$0xff] %vm4900_vm13, %v6364_v26  ;;  %v6363_v16 = vsel %vm6235_vm0, %v5949_v33, %v6299_v19  ;;  %vm6238_vm9 = vcmp.ge.f32.partialorder %v5964_v44, 0.0  ;;  %v5959_v52 = vadd.f32 %v5958_v9, %v5574_v40  ;;  %v6551_v58 = vld [vmem:[#allocation4 + $0x21] ss:$2 sm:$0xff]  ;;  %8403 = vmatpush3.msra.mxu1 %v7212_v56  ;;  %v5599_v40 = vadd.f32 %v14220_v4, %v13474_v17 }
 0x528   :  { %6427 = vst.msk [vmem:[#allocation4 + $0x40] sm:$0xff] %vm4900_vm13, %v6363_v16  ;;  %v6302_v10 = vmul.f32 0.2, %v5964_v44  ;;  %v8623_v22 = vpop.f32.mrf.mxu1  ;;  %v6658_v55 = vmul.f32 0.25, %v6642_v60  ;;  %v7227_v33 = vld [vmem:[%s15161_s5 + $0x88] sm:$0xff]  ;;  %v6612_v56 = vadd.f32 %v6551_v58, %v6487_v50  ;;  %v5594_v16 = vadd.f32 %v14220_v4, %v13442_v25 }
 0x529   :  { %vm6237_vm10 = vcmp.ge.f32.partialorder %v5959_v52, 0.0  ;;  %v6301_v46 = vmul.f32 0.2, %v5959_v52  ;;  %v5974_v23 = vadd.f32 %v8623_v22, %v5589_v62  ;;  %8404 = vmatprep.subr.mxu1 %v7227_v33  ;;  %v6761_v58 = vld [vmem:[#allocation3 + $0x8] sm:$0xff] }
 0x52a   :  { %v6366_v18 = vsel %vm6238_vm9, %v5964_v44, %v6302_v10  ;;  %v5968_v61 = vpop.f32.mrf.mxu1  ;;  %6729 = vst.msk [vmem:[#allocation3 + $0x20] sm:$0xff] %vm4900_vm13, %v6658_v55  ;;  %8405 = vmatpush3.msra.mxu1 %v7211_v0 }
 0x52b   :  { %v6489_v19 = vld [vmem:[#allocation4 + $0x30] ss:$2 sm:$0xff]  ;;  %v6553_v1 = vld [vmem:[#allocation4 + $0x31] ss:$2 sm:$0xff]  ;;  %6430 = vst.msk [vmem:[#allocation4 + $0x58] sm:$0xff] %vm4900_vm13, %v6366_v18  ;;  %v6365_v60 = vsel %vm6237_vm10, %v5959_v52, %v6301_v46  ;;  %vm6240_vm11 = vcmp.ge.f32.partialorder %v5974_v23, 0.0  ;;  %v5969_v26 = vadd.f32 %v5968_v61, %v5584_v27  ;;  %8406 = vmatprep.subr.mxu1 %v7226_v30  ;;  %v5609_v27 = vadd.f32 %v14220_v4, %v13546_v49 }
 0x52c   :  { %6429 = vst.msk [vmem:[#allocation4 + $0x50] sm:$0xff] %vm4900_vm13, %v6365_v60  ;;  %v6304_v44 = vmul.f32 0.2, %v5974_v23  ;;  %v8626_v9 = vpop.f32.mrf.mxu1  ;;  %v6613_v62 = vadd.f32 %v6553_v1, %v6489_v19  ;;  %8407 = vmatpush3.msra.mxu1 %v7210_v5  ;;  %v5619_v60 = vadd.f32 %v14220_v4, %v13614_v31 }
 0x52d   :  { %vm6239_vm12 = vcmp.ge.f32.partialorder %v5969_v26, 0.0  ;;  %v6303_v17 = vmul.f32 0.2, %v5969_v26  ;;  %v5984_v10 = vadd.f32 %v8626_v9, %v5599_v40 }
 0x52e   :  { %v6368_v22 = vsel %vm6240_vm11, %v5974_v23, %v6304_v44  ;;  %v5978_v55 = vpop.f32.mrf.mxu1  ;;  %v6643_v52 = vadd.f32 %v6613_v62, %v6612_v56  ;;  %v5604_v23 = vadd.f32 %v14220_v4, %v13520_v45 }
 0x52f   :  { %6432 = vst.msk [vmem:[#allocation4 + $0x68] sm:$0xff] %vm4900_vm13, %v6368_v22  ;;  %v6367_v46 = vsel %vm6239_vm12, %v5969_v26, %v6303_v17  ;;  %vm6242_vm14 = vcmp.ge.f32.partialorder %v5984_v10, 0.0  ;;  %v5979_v50 = vadd.f32 %v5978_v55, %v5594_v16  ;;  %v6491_v33 = vld [vmem:[#allocation4 + $0x40] ss:$2 sm:$0xff]  ;;  %v6306_v25 = vmul.f32 0.2, %v5984_v10 }
 0x530   :  { %6431 = vst.msk [vmem:[#allocation4 + $0x60] sm:$0xff] %vm4900_vm13, %v6367_v46  ;;  %v8629_v0 = vpop.f32.mrf.mxu1  ;;  %v6659_v30 = vmul.f32 0.25, %v6643_v52  ;;  %v6555_v18 = vld [vmem:[#allocation4 + $0x41] ss:$2 sm:$0xff]  ;;  %v5629_v46 = vadd.f32 %v14220_v4, %v13674_v8 }
 0x531   :  { %vm6241_vm3 = vcmp.ge.f32.partialorder %v5979_v50, 0.0  ;;  %v6305_v61 = vmul.f32 0.2, %v5979_v50  ;;  %v5994_v5 = vadd.f32 %v8629_v0, %v5609_v27  ;;  %v6793_v49 = vld [vmem:[#allocation3 + $0x1f] sm:$0xff]  ;;  %v6370_v40 = vsel %vm6242_vm14, %v5984_v10, %v6306_v25 }
 0x532   :  { %v5988_v19 = vpop.f32.mrf.mxu1  ;;  %v9704_v1 = vpack.i.bf16 %v6761_v58, %v6793_v49  ;;  %6730 = vst.msk [vmem:[#allocation3 + $0x38] sm:$0xff] %vm4900_vm13, %v6659_v30  ;;  %6434 = vst.msk [vmem:[#allocation4 + $0x78] sm:$0xff] %vm4900_vm13, %v6370_v40  ;;  %v6614_v56 = vadd.f32 %v6555_v18, %v6491_v33  ;;  %v5614_v10 = vadd.f32 %v14220_v4, %v13582_v37  ;;  %v6762_v8 = vld [vmem:[#allocation3 + $0x20] sm:$0xff] }
 0x533   :  { %v6493_v26 = vld [vmem:[#allocation4 + $0x50] ss:$2 sm:$0xff]  ;;  %v6557_v44 = vld [vmem:[#allocation4 + $0x51] ss:$2 sm:$0xff]  ;;  %v6369_v9 = vsel %vm6241_vm3, %v5979_v50, %v6305_v61  ;;  %vm6244_vm15 = vcmp.ge.f32.partialorder %v5994_v5, 0.0  ;;  %v5989_v45 = vadd.f32 %v5988_v19, %v5604_v23  ;;  %v5624_v23 = vadd.f32 %v14220_v4, %v13638_v63 }
 0x534   :  { %v6615_v62 = vadd.f32 %v6557_v44, %v6493_v26  ;;  %6433 = vst.msk [vmem:[#allocation4 + $0x70] sm:$0xff] %vm4900_vm13, %v6369_v9  ;;  %v6308_v16 = vmul.f32 0.2, %v5994_v5  ;;  %v8632_v17 = vpop.f32.mrf.mxu1  ;;  %9705 = vrot.lane.b32.xlu0 %v9704_v1, %s9898_s19 }
 0x535   :  { %vm6243_vm1 = vcmp.ge.f32.partialorder %v5989_v45, 0.0  ;;  %v6307_v31 = vmul.f32 0.2, %v5989_v45  ;;  %v6004_v22 = vadd.f32 %v8632_v17, %v5619_v60  ;;  %v5639_v60 = vadd.f32 %v14220_v4, %v13730_v32 }
 0x536   :  { %v6644_v55 = vadd.f32 %v6615_v62, %v6614_v56  ;;  %v6372_v52 = vsel %vm6244_vm15, %v5994_v5, %v6308_v16  ;;  %v5998_v27 = vpop.f32.mrf.mxu1  ;;  %v5634_v17 = vadd.f32 %v14220_v4, %v13697_v2 }
 0x537   :  { %v6495_v50 = vld [vmem:[#allocation4 + $0x60] ss:$2 sm:$0xff]  ;;  %6436 = vst.msk [vmem:[#allocation4 + $0x88] sm:$0xff] %vm4900_vm13, %v6372_v52  ;;  %v6371_v58 = vsel %vm6243_vm1, %v5989_v45, %v6307_v31  ;;  %vm6246_vm2 = vcmp.ge.f32.partialorder %v6004_v22, 0.0  ;;  %v5999_v33 = vadd.f32 %v5998_v27, %v5614_v10  ;;  %v6559_v0 = vld [vmem:[#allocation4 + $0x61] ss:$2 sm:$0xff]  ;;  %v5649_v52 = vadd.f32 %v14220_v4, %v13786_v48 }
 0x538   :  { %v6660_v25 = vmul.f32 0.25, %v6644_v55  ;;  %6435 = vst.msk [vmem:[#allocation4 + $0x80] sm:$0xff] %vm4900_vm13, %v6371_v58  ;;  %v6310_v37 = vmul.f32 0.2, %v6004_v22  ;;  %v8635_v30 = vpop.f32.mrf.mxu1  ;;  %v6616_v62 = vadd.f32 %v6559_v0, %v6495_v50  ;;  %v5644_v0 = vadd.f32 %v14220_v4, %v13753_v24 }
 0x539   :  { %vm6245_vm4 = vcmp.ge.f32.partialorder %v5999_v33, 0.0  ;;  %v6309_v18 = vmul.f32 0.2, %v5999_v33  ;;  %v6014_v61 = vadd.f32 %v8635_v30, %v5629_v46  ;;  %v6874_v5 = vld [vmem:[#allocation3 + $0x39] sm:$0xff]  ;;  %v5659_v24 = vadd.f32 %v14220_v4, %v13833_v59 }
 0x53a   :  { %v6794_v49 = vld [vmem:[#allocation3 + $0x37] sm:$0xff]  ;;  %6731 = vst.msk [vmem:[#allocation3 + $0x50] sm:$0xff] %vm4900_vm13, %v6660_v25  ;;  %v6374_v40 = vsel %vm6246_vm2, %v6004_v22, %v6310_v37  ;;  %v6008_v19 = vpop.f32.mrf.mxu1  ;;  %8715 = vmatprep.mubr.msk.f32.mxu0 %vm4900_vm13, %v6874_v5 }
 0x53b   :  { %v9709_v1 = vpack.i.bf16 %v6762_v8, %v6794_v49  ;;  %v6497_v26 = vld [vmem:[#allocation4 + $0x70] ss:$2 sm:$0xff]  ;;  %v6561_v44 = vld [vmem:[#allocation4 + $0x71] ss:$2 sm:$0xff]  ;;  %6438 = vst.msk [vmem:[#allocation4 + $0x98] sm:$0xff] %vm4900_vm13, %v6374_v40  ;;  %v6373_v63 = vsel %vm6245_vm4, %v5999_v33, %v6309_v18  ;;  %vm6248_vm5 = vcmp.ge.f32.partialorder %v6014_v61, 0.0  ;;  %v6009_v9 = vadd.f32 %v6008_v19, %v5624_v23 }
 0x53c   :  { %6437 = vst.msk [vmem:[#allocation4 + $0x90] sm:$0xff] %vm4900_vm13, %v6373_v63  ;;  %v6312_v45 = vmul.f32 0.2, %v6014_v61  ;;  %v8638_v56 = vpop.f32.mrf.mxu1  ;;  %v6617_v16 = vadd.f32 %v6561_v44, %v6497_v26  ;;  %v14380_v48 = vld [vmem:[#allocation3 + $0x38] sm:$0xff] }
 0x53d   :  { %9710 = vrot.lane.b32.xlu1 %v9709_v1, %s9898_s19  ;;  %vm6247_vm6 = vcmp.ge.f32.partialorder %v6009_v9, 0.0  ;;  %v6311_v32 = vmul.f32 0.2, %v6009_v9  ;;  %v6024_v10 = vadd.f32 %v8638_v56, %v5639_v60 }
 0x53e   :  { %v6376_v31 = vsel %vm6248_vm5, %v6014_v61, %v6312_v45  ;;  %v6018_v22 = vpop.f32.mrf.mxu1  ;;  %v6645_v55 = vadd.f32 %v6617_v16, %v6616_v62 }
 0x53f   :  { %v6499_v27 = vld [vmem:[#allocation4 + $0x80] ss:$2 sm:$0xff]  ;;  %6440 = vst.msk [vmem:[#allocation4 + $0xa8] sm:$0xff] %vm4900_vm13, %v6376_v31  ;;  %v6375_v46 = vsel %vm6247_vm6, %v6009_v9, %v6311_v32  ;;  %vm6250_vm7 = vcmp.ge.f32.partialorder %v6024_v10, 0.0  ;;  %v6019_v58 = vadd.f32 %v6018_v22, %v5634_v17  ;;  %v6563_v50 = vld [vmem:[#allocation4 + $0x81] ss:$2 sm:$0xff]  ;;  %v5654_v9 = vadd.f32 %v14220_v4, %v13807_v3 }
 0x540   :  { %6439 = vst.msk [vmem:[#allocation4 + $0xa0] sm:$0xff] %vm4900_vm13, %v6375_v46  ;;  %v6314_v33 = vmul.f32 0.2, %v6024_v10  ;;  %v8641_v2 = vpop.f32.mrf.mxu1  ;;  %v6661_v25 = vmul.f32 0.25, %v6645_v55  ;;  %v6618_v60 = vadd.f32 %v6563_v50, %v6499_v27  ;;  %v5669_v17 = vadd.f32 %v14220_v4, %v13867_v6 }
 0x541   :  { %vm6249_vm8 = vcmp.ge.f32.partialorder %v6019_v58, 0.0  ;;  %v6313_v37 = vmul.f32 0.2, %v6019_v58  ;;  %v6034_v30 = vadd.f32 %v8641_v2, %v5649_v52  ;;  %v14378_v23 = vld [vmem:[#allocation3 + $0x51] sm:$0xff]  ;;  %v5664_v46 = vadd.f32 %v14220_v4, %v13855_v34 }
 0x542   :  { %v6795_v18 = vld [vmem:[#allocation3 + $0x4f] sm:$0xff]  ;;  %v6378_v61 = vsel %vm6250_vm7, %v6024_v10, %v6314_v33  ;;  %v6028_v5 = vpop.f32.mrf.mxu1  ;;  %8716 = vmatmul.mubr.msk.f32.vlgmr.msra.gmra.mxu0 %vm4900_vm13, %v14378_v23  ;;  %6732 = vst.msk [vmem:[#allocation3 + $0x68] sm:$0xff] %vm4900_vm13, %v6661_v25 }
 0x543   :  { %v9714_v8 = vpack.i.bf16 %v14380_v48, %v6795_v18  ;;  %v6501_v49 = vld [vmem:[#allocation4 + $0x90] ss:$2 sm:$0xff]  ;;  %v6565_v40 = vld [vmem:[#allocation4 + $0x91] ss:$2 sm:$0xff]  ;;  %6442 = vst.msk [vmem:[#allocation4 + $0xb8] sm:$0xff] %vm4900_vm13, %v6378_v61  ;;  %v6377_v19 = vsel %vm6249_vm8, %v6019_v58, %v6313_v37  ;;  %vm6252_vm0 = vcmp.ge.f32.partialorder %v6034_v30, 0.0  ;;  %v6029_v1 = vadd.f32 %v6028_v5, %v5644_v0 }
 0x544   :  { %v6619_v26 = vadd.f32 %v6565_v40, %v6501_v49  ;;  %6441 = vst.msk [vmem:[#allocation4 + $0xb0] sm:$0xff] %vm4900_vm13, %v6377_v19  ;;  %v6316_v44 = vmul.f32 0.2, %v6034_v30  ;;  %v8644_v63 = vpop.f32.mrf.mxu1  ;;  %v14397_v52 = vld [vmem:[#allocation3 + $0x50] sm:$0xff] }
 0x545   :  { %9715 = vrot.lane.b32.xlu0 %v9714_v8, %s9898_s19  ;;  %vm6251_vm9 = vcmp.ge.f32.partialorder %v6029_v1, 0.0  ;;  %v6315_v59 = vmul.f32 0.2, %v6029_v1  ;;  %v6044_v45 = vadd.f32 %v8644_v63, %v5659_v24 }
 0x546   :  { %v6380_v56 = vsel %vm6252_vm0, %v6034_v30, %v6316_v44  ;;  %v6038_v62 = vpop.f32.mrf.mxu1  ;;  %v6646_v16 = vadd.f32 %v6619_v26, %v6618_v60  ;;  %v5679_v30 = vadd.f32 %v14220_v4, %v13880_v53 }
 0x547   :  { %v6503_v32 = vld [vmem:[#allocation4 + $0xa0] ss:$2 sm:$0xff]  ;;  %6444 = vst.msk [vmem:[#allocation4 + $0xc8] sm:$0xff] %vm4900_vm13, %v6380_v56  ;;  %v6379_v10 = vsel %vm6251_vm9, %v6029_v1, %v6315_v59  ;;  %vm6254_vm10 = vcmp.ge.f32.partialorder %v6044_v45, 0.0  ;;  %v6039_v31 = vadd.f32 %v6038_v62, %v5654_v9  ;;  %v6567_v22 = vld [vmem:[#allocation4 + $0xa1] ss:$2 sm:$0xff]  ;;  %v5674_v1 = vadd.f32 %v14220_v4, %v13870_v51 }
 0x548   :  { %6443 = vst.msk [vmem:[#allocation4 + $0xc0] sm:$0xff] %vm4900_vm13, %v6379_v10  ;;  %v6318_v55 = vmul.f32 0.2, %v6044_v45  ;;  %v8647_v3 = vpop.f32.mrf.mxu1  ;;  %v6662_v27 = vmul.f32 0.25, %v6646_v16  ;;  %v6620_v24 = vadd.f32 %v6567_v22, %v6503_v32  ;;  %v5689_v9 = vadd.f32 %v14220_v4, %v13900_v54 }
 0x549   :  { %vm6253_vm11 = vcmp.ge.f32.partialorder %v6039_v31, 0.0  ;;  %v6317_v58 = vmul.f32 0.2, %v6039_v31  ;;  %v6054_v6 = vadd.f32 %v8647_v3, %v5669_v17  ;;  %v14401_v50 = vld [vmem:[#allocation3 + $0x69] sm:$0xff]  ;;  %v5684_v32 = vadd.f32 %v14220_v4, %v13894_v57 }
 0x54a   :  { %v6796_v33 = vld [vmem:[#allocation3 + $0x67] sm:$0xff]  ;;  %v6382_v25 = vsel %vm6254_vm10, %v6044_v45, %v6318_v55  ;;  %v6048_v0 = vpop.f32.mrf.mxu1  ;;  %8718 = vmatprep.mubr.msk.f32.mxu0 %vm4900_vm13, %v14401_v50  ;;  %6733 = vst.msk [vmem:[#allocation3 + $0x80] sm:$0xff] %vm4900_vm13, %v6662_v27 }
 0x54b   :  { %v14403_v2 = vld [vmem:[#allocation3 + $0x68] sm:$0xff]  ;;  %v9719_v37 = vpack.i.bf16 %v14397_v52, %v6796_v33  ;;  %v6505_v18 = vld [vmem:[#allocation4 + $0xb0] ss:$2 sm:$0xff]  ;;  %v6569_v61 = vld [vmem:[#allocation4 + $0xb1] ss:$2 sm:$0xff]  ;;  %6446 = vst.msk [vmem:[#allocation4 + $0xd8] sm:$0xff] %vm4900_vm13, %v6382_v25  ;;  %v6381_v5 = vsel %vm6253_vm11, %v6039_v31, %v6317_v58  ;;  %v6049_v8 = vadd.f32 %v6048_v0, %v5664_v46  ;;  %v5699_v58 = vadd.f32 %v14220_v4, %v13919_v28 }
 0x54c   :  { %v9794_v34 = vpack.i.bf16 %v14378_v23, %v14403_v2  ;;  %vm6256_vm12 = vcmp.ge.f32.partialorder %v6054_v6, 0.0  ;;  %v6621_v49 = vadd.f32 %v6569_v61, %v6505_v18  ;;  %6445 = vst.msk [vmem:[#allocation4 + $0xd0] sm:$0xff] %vm4900_vm13, %v6381_v5  ;;  %v6320_v40 = vmul.f32 0.2, %v6054_v6  ;;  %v8650_v19 = vpop.f32.mrf.mxu1  ;;  %v7271_v23 = vld [vmem:[%s15161_s5 + $0x1e8] sm:$0xff] }
 0x54d   :  { %9720 = vrot.lane.b32.xlu1 %v9719_v37, %s9898_s19  ;;  %vm6255_vm14 = vcmp.ge.f32.partialorder %v6049_v8, 0.0  ;;  %v6319_v53 = vmul.f32 0.2, %v6049_v8  ;;  %v6064_v60 = vadd.f32 %v8650_v19, %v5679_v30  ;;  %v5694_v5 = vadd.f32 %v14220_v4, %v13913_v36 }
 0x54e   :  { %v6384_v26 = vsel %vm6256_vm12, %v6054_v6, %v6320_v40  ;;  %v6058_v44 = vpop.f32.mrf.mxu1  ;;  %v6647_v63 = vadd.f32 %v6621_v49, %v6620_v24  ;;  %v5709_v19 = vadd.f32 %v14220_v4, %v13937_v42 }
 0x54f   :  { %v6507_v59 = vld [vmem:[#allocation4 + $0xc0] ss:$2 sm:$0xff]  ;;  %6448 = vst.msk [vmem:[#allocation4 + $0xe8] sm:$0xff] %vm4900_vm13, %v6384_v26  ;;  %v6383_v45 = vsel %vm6255_vm14, %v6049_v8, %v6319_v53  ;;  %vm6258_vm3 = vcmp.ge.f32.partialorder %v6064_v60, 0.0  ;;  %v6059_v56 = vadd.f32 %v6058_v44, %v5674_v1  ;;  %v6571_v62 = vld [vmem:[#allocation4 + $0xc1] ss:$2 sm:$0xff] }
 0x550   :  { %6447 = vst.msk [vmem:[#allocation4 + $0xe0] sm:$0xff] %vm4900_vm13, %v6383_v45  ;;  %v6322_v16 = vmul.f32 0.2, %v6064_v60  ;;  %v8653_v51 = vpop.f32.mrf.mxu1  ;;  %v6663_v17 = vmul.f32 0.25, %v6647_v63  ;;  %v6622_v37 = vadd.f32 %v6571_v62, %v6507_v59 }
 0x551   :  { %vm6257_vm15 = vcmp.ge.f32.partialorder %v6059_v56, 0.0  ;;  %v6321_v10 = vmul.f32 0.2, %v6059_v56  ;;  %v6074_v31 = vadd.f32 %v8653_v51, %v5689_v9  ;;  %v14425_v22 = vld [vmem:[#allocation3 + $0x81] sm:$0xff]  ;;  %v5704_v9 = vadd.f32 %v14220_v4, %v13931_v39 }
 0x552   :  { %v6797_v54 = vld [vmem:[#allocation3 + $0x7f] sm:$0xff]  ;;  %v6386_v3 = vsel %vm6258_vm3, %v6064_v60, %v6322_v16  ;;  %v6068_v27 = vpop.f32.mrf.mxu1  ;;  %8719 = vmatmul.mubr.msk.f32.gmra.mxu0 %vm4900_vm13, %v14425_v22  ;;  %6734 = vst.msk [vmem:[#allocation3 + $0x98] sm:$0xff] %vm4900_vm13, %v6663_v17  ;;  %v5719_v39 = vadd.f32 %v14220_v4, %v13963_v20 }
 0x553   :  { %v14427_v55 = vld [vmem:[#allocation3 + $0x80] sm:$0xff]  ;;  %v9724_v46 = vpack.i.bf16 %v14403_v2, %v6797_v54  ;;  %v6509_v6 = vld [vmem:[#allocation4 + $0xd0] ss:$2 sm:$0xff]  ;;  %v6573_v33 = vld [vmem:[#allocation4 + $0xd1] ss:$2 sm:$0xff]  ;;  %6450 = vst.msk [vmem:[#allocation4 + $0xf8] sm:$0xff] %vm4900_vm13, %v6386_v3  ;;  %v6385_v25 = vsel %vm6257_vm15, %v6059_v56, %v6321_v10  ;;  %v6069_v0 = vadd.f32 %v6068_v27, %v5684_v32 }
 0x554   :  { %v9799_v57 = vpack.i.bf16 %v14401_v50, %v14427_v55  ;;  %vm6260_vm1 = vcmp.ge.f32.partialorder %v6074_v31, 0.0  ;;  %v6623_v30 = vadd.f32 %v6573_v33, %v6509_v6  ;;  %6449 = vst.msk [vmem:[#allocation4 + $0xf0] sm:$0xff] %vm4900_vm13, %v6385_v25  ;;  %v6324_v18 = vmul.f32 0.2, %v6074_v31  ;;  %v8656_v61 = vpop.f32.mrf.mxu1  ;;  %v7268_v50 = vld [vmem:[%s15161_s5 + $0x1d0] sm:$0xff] }
 0x555   :  { %9725 = vrot.lane.b32.xlu0 %v9724_v46, %s9898_s19  ;;  %vm6259_vm2 = vcmp.ge.f32.partialorder %v6069_v0, 0.0  ;;  %v6323_v28 = vmul.f32 0.2, %v6069_v0  ;;  %v6084_v8 = vadd.f32 %v8656_v61, %v5699_v58  ;;  %v5714_v58 = vadd.f32 %v14220_v4, %v13951_v47 }
 0x556   :  { %v6388_v24 = vsel %vm6260_vm1, %v6074_v31, %v6324_v18  ;;  %v6078_v49 = vpop.f32.mrf.mxu1  ;;  %v6648_v40 = vadd.f32 %v6623_v30, %v6622_v37  ;;  %v5729_v37 = vadd.f32 %v14220_v4, %v13986_v41 }
 0x557   :  { %v6511_v1 = vld [vmem:[#allocation4 + $0xe0] ss:$2 sm:$0xff]  ;;  %6452 = vst.msk [vmem:[#allocation4 + $0x108] sm:$0xff] %vm4900_vm13, %v6388_v24  ;;  %v6387_v53 = vsel %vm6259_vm2, %v6069_v0, %v6323_v28  ;;  %vm6262_vm4 = vcmp.ge.f32.partialorder %v6084_v8, 0.0  ;;  %v6079_v60 = vadd.f32 %v6078_v49, %v5694_v5  ;;  %v6575_v26 = vld [vmem:[#allocation4 + $0xe1] ss:$2 sm:$0xff]  ;;  %v5724_v24 = vadd.f32 %v14220_v4, %v13981_v11 }
 0x558   :  { %6451 = vst.msk [vmem:[#allocation4 + $0x100] sm:$0xff] %vm4900_vm13, %v6387_v53  ;;  %v6326_v44 = vmul.f32 0.2, %v6084_v8  ;;  %v8659_v36 = vpop.f32.mrf.mxu1  ;;  %v6664_v63 = vmul.f32 0.25, %v6648_v40  ;;  %v6624_v54 = vadd.f32 %v6575_v26, %v6511_v1  ;;  %v5739_v11 = vadd.f32 %v14220_v4, %v14000_v21 }
 0x559   :  { %vm6261_vm5 = vcmp.ge.f32.partialorder %v6079_v60, 0.0  ;;  %v6325_v59 = vmul.f32 0.2, %v6079_v60  ;;  %v6094_v45 = vadd.f32 %v8659_v36, %v5709_v19  ;;  %v14449_v56 = vld [vmem:[#allocation3 + $0x99] sm:$0xff]  ;;  %v5734_v21 = vadd.f32 %v14220_v4, %v13995_v13 }
 0x55a   :  { %v14451_v42 = vld [vmem:[#allocation3 + $0x97] sm:$0xff]  ;;  %v6390_v62 = vsel %vm6262_vm4, %v6084_v8, %v6326_v44  ;;  %v6088_v16 = vpop.f32.mrf.mxu1  ;;  %8721 = vmatprep.mubr.msk.f32.mxu0 %vm4900_vm13, %v14449_v56  ;;  %6735 = vst.msk [vmem:[#allocation3 + $0xb0] sm:$0xff] %vm4900_vm13, %v6664_v63 }
 0x55b   :  { %v9729_v51 = vpack.i.bf16 %v14427_v55, %v14451_v42  ;;  %v6513_v17 = vld [vmem:[#allocation4 + $0xf0] ss:$2 sm:$0xff]  ;;  %v6577_v32 = vld [vmem:[#allocation4 + $0xf1] ss:$2 sm:$0xff]  ;;  %6454 = vst.msk [vmem:[#allocation4 + $0x118] sm:$0xff] %vm4900_vm13, %v6390_v62  ;;  %v6389_v10 = vsel %vm6261_vm5, %v6079_v60, %v6325_v59  ;;  %vm6264_vm6 = vcmp.ge.f32.partialorder %v6094_v45, 0.0  ;;  %v6089_v31 = vadd.f32 %v6088_v16, %v5704_v9 }
 0x55c   :  { %v6625_v3 = vadd.f32 %v6577_v32, %v6513_v17  ;;  %6453 = vst.msk [vmem:[#allocation4 + $0x110] sm:$0xff] %vm4900_vm13, %v6389_v10  ;;  %v6328_v27 = vmul.f32 0.2, %v6094_v45  ;;  %v8662_v46 = vpop.f32.mrf.mxu1  ;;  %v14473_v41 = vld [vmem:[#allocation3 + $0x98] sm:$0xff] }
 0x55d   :  { %9730 = vrot.lane.b32.xlu1 %v9729_v51, %s9898_s19  ;;  %vm6263_vm7 = vcmp.ge.f32.partialorder %v6089_v31, 0.0  ;;  %v6327_v20 = vmul.f32 0.2, %v6089_v31  ;;  %v6104_v6 = vadd.f32 %v8662_v46, %v5719_v39  ;;  %v7273_v59 = vld [vmem:[%s15161_s5 + $0x1f8] sm:$0xff] }
 0x55e   :  { %v6392_v33 = vsel %vm6264_vm6, %v6094_v45, %v6328_v27  ;;  %v6098_v25 = vpop.f32.mrf.mxu1  ;;  %v6649_v0 = vadd.f32 %v6625_v3, %v6624_v54  ;;  %8456 = vmatprep.subr.mxu1 %v7273_v59  ;;  %v5749_v54 = vadd.f32 %v14220_v4, %v14014_v29  ;;  %v14518_v59 = vld [vmem:[%s15160_s4] ss:$0 sm:$0xff] }
 0x55f   :  { %v6515_v30 = vld [vmem:[#allocation4 + $0x100] ss:$2 sm:$0xff]  ;;  %6456 = vst.msk [vmem:[#allocation4 + $0x128] sm:$0xff] %vm4900_vm13, %v6392_v33  ;;  %v6391_v18 = vsel %vm6263_vm7, %v6089_v31, %v6327_v20  ;;  %vm6266_vm8 = vcmp.ge.f32.partialorder %v6104_v6, 0.0  ;;  %v6099_v61 = vadd.f32 %v6098_v25, %v5714_v58  ;;  %v6579_v5 = vld [vmem:[#allocation4 + $0x101] ss:$2 sm:$0xff]  ;;  %v5744_v25 = vadd.f32 %v14220_v4, %v14009_v14 }
 0x560   :  { %6455 = vst.msk [vmem:[#allocation4 + $0x120] sm:$0xff] %vm4900_vm13, %v6391_v18  ;;  %v6330_v28 = vmul.f32 0.2, %v6104_v6  ;;  %v8665_v47 = vpop.f32.mrf.mxu1  ;;  %v6665_v8 = vmul.f32 0.25, %v6649_v0  ;;  %v6626_v45 = vadd.f32 %v6579_v5, %v6515_v30  ;;  %v6881_v33 = vld [vmem:[#allocation3 + $0xe1] sm:$0xff]  ;;  %v5759_v14 = vadd.f32 %v14220_v4, %v14028_v15 }
 0x561   :  { %vm6265_vm0 = vcmp.ge.f32.partialorder %v6099_v61, 0.0  ;;  %v6329_v49 = vmul.f32 0.2, %v6099_v61  ;;  %v6114_v40 = vadd.f32 %v8665_v47, %v5729_v37  ;;  %v14471_v19 = vld [vmem:[#allocation3 + $0xb1] sm:$0xff]  ;;  %v5754_v15 = vadd.f32 %v14220_v4, %v14024_v38 }
 0x562   :  { %v14475_v1 = vld [vmem:[#allocation3 + $0xaf] sm:$0xff]  ;;  %v6394_v53 = vsel %vm6266_vm8, %v6104_v6, %v6330_v28  ;;  %v6108_v60 = vpop.f32.mrf.mxu1  ;;  %8722 = vmatmul.mubr.msk.f32.gmra.mxu0 %vm4900_vm13, %v14471_v19  ;;  %6736 = vst.msk [vmem:[#allocation3 + $0xc8] sm:$0xff] %vm4900_vm13, %v6665_v8  ;;  %v6769_v38 = vld [vmem:[#allocation3 + $0xf8] sm:$0xff] }
 0x563   :  { %v9734_v26 = vpack.i.bf16 %v14473_v41, %v14475_v1  ;;  %v6517_v44 = vld [vmem:[#allocation4 + $0x110] ss:$2 sm:$0xff]  ;;  %v6581_v36 = vld [vmem:[#allocation4 + $0x111] ss:$2 sm:$0xff]  ;;  %6458 = vst.msk [vmem:[#allocation4 + $0x138] sm:$0xff] %vm4900_vm13, %v6394_v53  ;;  %v6393_v63 = vsel %vm6265_vm0, %v6099_v61, %v6329_v49  ;;  %vm6268_vm9 = vcmp.ge.f32.partialorder %v6114_v40, 0.0  ;;  %v6109_v9 = vadd.f32 %v6108_v60, %v5724_v24 }
 0x564   :  { %v6627_v62 = vadd.f32 %v6581_v36, %v6517_v44  ;;  %6457 = vst.msk [vmem:[#allocation4 + $0x130] sm:$0xff] %vm4900_vm13, %v6393_v63  ;;  %v6332_v16 = vmul.f32 0.2, %v6114_v40  ;;  %v8668_v51 = vpop.f32.mrf.mxu1  ;;  %v14500_v30 = vld [vmem:[#allocation3 + $0xb0] sm:$0xff] }
 0x565   :  { %9735 = vrot.lane.b32.xlu0 %v9734_v26, %s9898_s19  ;;  %vm6267_vm10 = vcmp.ge.f32.partialorder %v6109_v9, 0.0  ;;  %v6331_v39 = vmul.f32 0.2, %v6109_v9  ;;  %v6124_v17 = vadd.f32 %v8668_v51, %v5739_v11 }
 0x566   :  { %v6650_v32 = vadd.f32 %v6627_v62, %v6626_v45  ;;  %v6396_v10 = vsel %vm6268_vm9, %v6114_v40, %v6332_v16  ;;  %v6118_v31 = vpop.f32.mrf.mxu1  ;;  %v5769_v45 = vadd.f32 %v14518_v59, %v14037_v35 }
 0x567   :  { %v6519_v3 = vld [vmem:[#allocation4 + $0x120] ss:$2 sm:$0xff]  ;;  %6460 = vst.msk [vmem:[#allocation4 + $0x148] sm:$0xff] %vm4900_vm13, %v6396_v10  ;;  %v6395_v27 = vsel %vm6267_vm10, %v6109_v9, %v6331_v39  ;;  %vm6270_vm11 = vcmp.ge.f32.partialorder %v6124_v17, 0.0  ;;  %v6119_v46 = vadd.f32 %v6118_v31, %v5734_v21  ;;  %v6583_v20 = vld [vmem:[#allocation4 + $0x121] ss:$2 sm:$0xff] }
 0x568   :  { %v6666_v58 = vmul.f32 0.25, %v6650_v32  ;;  %6459 = vst.msk [vmem:[#allocation4 + $0x140] sm:$0xff] %vm4900_vm13, %v6395_v27  ;;  %v6334_v13 = vmul.f32 0.2, %v6124_v17  ;;  %v8671_v6 = vpop.f32.mrf.mxu1  ;;  %v6628_v40 = vadd.f32 %v6583_v20, %v6519_v3 }
 0x569   :  { %vm6269_vm12 = vcmp.ge.f32.partialorder %v6119_v46, 0.0  ;;  %v6333_v0 = vmul.f32 0.2, %v6119_v46  ;;  %v6134_v37 = vadd.f32 %v8671_v6, %v5749_v54  ;;  %v14498_v29 = vld [vmem:[#allocation3 + $0xc9] sm:$0xff] }
 0x56a   :  { %v6800_v18 = vld [vmem:[#allocation3 + $0xc7] sm:$0xff]  ;;  %6737 = vst.msk [vmem:[#allocation3 + $0x110] sm:$0xff] %vm4900_vm13, %v6666_v58  ;;  %v6398_v61 = vsel %vm6270_vm11, %v6124_v17, %v6334_v13  ;;  %v6128_v5 = vpop.f32.mrf.mxu1  ;;  %8724 = vmatprep.mubr.msk.f32.mxu0 %vm4900_vm13, %v14498_v29  ;;  %v5764_v17 = vadd.f32 %v14518_v59, %v14033_v7 }
 0x56b   :  { %v9739_v28 = vpack.i.bf16 %v14500_v30, %v6800_v18  ;;  %v6521_v47 = vld [vmem:[#allocation4 + $0x130] ss:$2 sm:$0xff]  ;;  %v6585_v8 = vld [vmem:[#allocation4 + $0x131] ss:$2 sm:$0xff]  ;;  %6462 = vst.msk [vmem:[#allocation4 + $0x158] sm:$0xff] %vm4900_vm13, %v6398_v61  ;;  %v6397_v24 = vsel %vm6269_vm12, %v6119_v46, %v6333_v0  ;;  %vm6272_vm14 = vcmp.ge.f32.partialorder %v6134_v37, 0.0  ;;  %v6129_v49 = vadd.f32 %v6128_v5, %v5744_v25  ;;  %8725 = vmatmul.mubr.msk.f32.gmra.mxu0 %vm4900_vm13, %v6881_v33 }
 0x56c   :  { %v6629_v53 = vadd.f32 %v6585_v8, %v6521_v47  ;;  %6461 = vst.msk [vmem:[#allocation4 + $0x150] sm:$0xff] %vm4900_vm13, %v6397_v24  ;;  %v6336_v60 = vmul.f32 0.2, %v6134_v37  ;;  %v8674_v26 = vpop.f32.mrf.mxu1  ;;  %v5779_v46 = vadd.f32 %v14518_v59, %v14047_v43 }
 0x56d   :  { %9740 = vrot.lane.b32.xlu1 %v9739_v28, %s9898_s19  ;;  %vm6271_vm3 = vcmp.ge.f32.partialorder %v6129_v49, 0.0  ;;  %v6335_v11 = vmul.f32 0.2, %v6129_v49  ;;  %v6144_v44 = vadd.f32 %v8674_v26, %v5759_v14  ;;  %v15247_v14 = vld [vmem:[#allocation15_spill] sm:$0xff]  ;;  %v15248_v26 = vld [vmem:[#allocation8_spill] sm:$0xff] }
 0x56e   :  { %v6400_v36 = vsel %vm6272_vm14, %v6134_v37, %v6336_v60  ;;  %v6138_v63 = vpop.f32.mrf.mxu1  ;;  %v6651_v9 = vadd.f32 %v6629_v53, %v6628_v40  ;;  %v5774_v37 = vadd.f32 %v14518_v59, %v14043_v12  ;;  %v5789_v47 = vadd.f32 %v14518_v59, %v15247_v14 }
 0x56f   :  { %6464 = vst.msk [vmem:[#allocation4 + $0x168] sm:$0xff] %vm4900_vm13, %v6400_v36  ;;  %v6399_v62 = vsel %vm6271_vm3, %v6129_v49, %v6335_v11  ;;  %vm6274_vm15 = vcmp.ge.f32.partialorder %v6144_v44, 0.0  ;;  %v6139_v16 = vadd.f32 %v6138_v63, %v5754_v15  ;;  %v6523_v4 = vld [vmem:[#allocation4 + $0x140] ss:$2 sm:$0xff]  ;;  %v6338_v51 = vmul.f32 0.2, %v6144_v44 }
 0x570   :  { %6463 = vst.msk [vmem:[#allocation4 + $0x160] sm:$0xff] %vm4900_vm13, %v6399_v62  ;;  %v8677_v21 = vpop.f32.mrf.mxu1  ;;  %v6667_v39 = vmul.f32 0.25, %v6651_v9  ;;  %v6587_v32 = vld [vmem:[#allocation4 + $0x141] ss:$2 sm:$0xff]  ;;  %v5784_v15 = vadd.f32 %v14518_v59, %v15248_v26  ;;  %v15253_v26 = vld [vmem:[#allocation22_spill] sm:$0xff] }
 0x571   :  { %vm6273_vm1 = vcmp.ge.f32.partialorder %v6139_v16, 0.0  ;;  %v6337_v10 = vmul.f32 0.2, %v6139_v16  ;;  %v6154_v31 = vadd.f32 %v8677_v21, %v5769_v45  ;;  %v14526_v35 = vld [vmem:[#allocation3 + $0x10f] sm:$0xff]  ;;  %v6402_v54 = vsel %vm6274_vm15, %v6144_v44, %v6338_v51 }
 0x572   :  { %v6148_v3 = vpop.f32.mrf.mxu1  ;;  %v9744_v27 = vpack.i.bf16 %v6769_v38, %v14526_v35  ;;  %6738 = vst.msk [vmem:[#allocation3 + $0x128] sm:$0xff] %vm4900_vm13, %v6667_v39  ;;  %6466 = vst.msk [vmem:[#allocation4 + $0x178] sm:$0xff] %vm4900_vm13, %v6402_v54  ;;  %v6630_v6 = vadd.f32 %v6587_v32, %v6523_v4  ;;  %v6770_v63 = vld [vmem:[#allocation3 + $0x110] sm:$0xff]  ;;  %v15249_v38 = vld [vmem:[#allocation16_spill] sm:$0xff] }
 0x573   :  { %v6525_v58 = vld [vmem:[#allocation4 + $0x150] ss:$2 sm:$0xff]  ;;  %v6589_v20 = vld [vmem:[#allocation4 + $0x151] ss:$2 sm:$0xff]  ;;  %v6401_v7 = vsel %vm6273_vm1, %v6139_v16, %v6337_v10  ;;  %vm6276_vm2 = vcmp.ge.f32.partialorder %v6154_v31, 0.0  ;;  %v6149_v13 = vadd.f32 %v6148_v3, %v5764_v17  ;;  %v5799_v4 = vadd.f32 %v14518_v59, %v15249_v38 }
 0x574   :  { %v6631_v33 = vadd.f32 %v6589_v20, %v6525_v58  ;;  %6465 = vst.msk [vmem:[#allocation4 + $0x170] sm:$0xff] %vm4900_vm13, %v6401_v7  ;;  %v6340_v25 = vmul.f32 0.2, %v6154_v31  ;;  %v8680_v0 = vpop.f32.mrf.mxu1  ;;  %9745 = vrot.lane.b32.xlu0 %v9744_v27, %s9898_s19  ;;  %v15250_v3 = vld [vmem:[#allocation10_spill] sm:$0xff] }
 0x575   :  { %vm6275_vm4 = vcmp.ge.f32.partialorder %v6149_v13, 0.0  ;;  %v6339_v43 = vmul.f32 0.2, %v6149_v13  ;;  %v6164_v18 = vadd.f32 %v8680_v0, %v5779_v46  ;;  %v5794_v27 = vadd.f32 %v14518_v59, %v15250_v3 }
 0x576   :  { %v6404_v61 = vsel %vm6276_vm2, %v6154_v31, %v6340_v25  ;;  %v6158_v5 = vpop.f32.mrf.mxu1  ;;  %v6652_v28 = vadd.f32 %v6631_v33, %v6630_v6  ;;  %v15251_v6 = vld [vmem:[#allocation20_spill] sm:$0xff] }
 0x577   :  { %v6527_v8 = vld [vmem:[#allocation4 + $0x160] ss:$2 sm:$0xff]  ;;  %6468 = vst.msk [vmem:[#allocation4 + $0x188] sm:$0xff] %vm4900_vm13, %v6404_v61  ;;  %v6403_v24 = vsel %vm6275_vm4, %v6149_v13, %v6339_v43  ;;  %vm6278_vm5 = vcmp.ge.f32.partialorder %v6164_v18, 0.0  ;;  %v6159_v49 = vadd.f32 %v6158_v5, %v5774_v37  ;;  %v6591_v40 = vld [vmem:[#allocation4 + $0x161] ss:$2 sm:$0xff]  ;;  %v5809_v33 = vadd.f32 %v14518_v59, %v15251_v6 }
 0x578   :  { %6467 = vst.msk [vmem:[#allocation4 + $0x180] sm:$0xff] %vm4900_vm13, %v6403_v24  ;;  %v6342_v53 = vmul.f32 0.2, %v6164_v18  ;;  %v8683_v12 = vpop.f32.mrf.mxu1  ;;  %v6668_v60 = vmul.f32 0.25, %v6652_v28  ;;  %v6632_v32 = vadd.f32 %v6591_v40, %v6527_v8  ;;  %v15252_v28 = vld [vmem:[#allocation19_spill] sm:$0xff] }
 0x579   :  { %vm6277_vm6 = vcmp.ge.f32.partialorder %v6159_v49, 0.0  ;;  %v6341_v11 = vmul.f32 0.2, %v6159_v49  ;;  %v6174_v44 = vadd.f32 %v8683_v12, %v5789_v47  ;;  %v14543_v36 = vld [vmem:[#allocation3 + $0x129] sm:$0xff]  ;;  %v5804_v14 = vadd.f32 %v14518_v59, %v15252_v28 }
 0x57a   :  { %v14545_v9 = vld [vmem:[#allocation3 + $0x127] sm:$0xff]  ;;  %v6406_v45 = vsel %vm6278_vm5, %v6164_v18, %v6342_v53  ;;  %v6168_v62 = vpop.f32.mrf.mxu1  ;;  %8727 = vmatprep.mubr.msk.f32.mxu0 %vm4900_vm13, %v14543_v36  ;;  %6739 = vst.msk [vmem:[#allocation3 + $0x140] sm:$0xff] %vm4900_vm13, %v6668_v60 }
 0x57b   :  { %v9749_v16 = vpack.i.bf16 %v6770_v63, %v14545_v9  ;;  %v6529_v51 = vld [vmem:[#allocation4 + $0x170] ss:$2 sm:$0xff]  ;;  %v6593_v21 = vld [vmem:[#allocation4 + $0x171] ss:$2 sm:$0xff]  ;;  %6470 = vst.msk [vmem:[#allocation4 + $0x198] sm:$0xff] %vm4900_vm13, %v6406_v45  ;;  %v6405_v39 = vsel %vm6277_vm6, %v6159_v49, %v6341_v11  ;;  %vm6280_vm7 = vcmp.ge.f32.partialorder %v6174_v44, 0.0  ;;  %v6169_v17 = vadd.f32 %v6168_v62, %v5784_v15 }
 0x57c   :  { %v6633_v10 = vadd.f32 %v6593_v21, %v6529_v51  ;;  %6469 = vst.msk [vmem:[#allocation4 + $0x190] sm:$0xff] %vm4900_vm13, %v6405_v39  ;;  %v6344_v31 = vmul.f32 0.2, %v6174_v44  ;;  %v8686_v54 = vpop.f32.mrf.mxu1  ;;  %v14566_v49 = vld [vmem:[#allocation3 + $0x128] sm:$0xff]  ;;  %v5819_v15 = vadd.f32 %v14518_v59, %v15253_v26 }
 0x57d   :  { %9750 = vrot.lane.b32.xlu1 %v9749_v16, %s9898_s19  ;;  %vm6279_vm8 = vcmp.ge.f32.partialorder %v6169_v17, 0.0  ;;  %v6343_v46 = vmul.f32 0.2, %v6169_v17  ;;  %v6184_v58 = vadd.f32 %v8686_v54, %v5799_v4  ;;  %v15254_v51 = vld [vmem:[#allocation17_spill] sm:$0xff]  ;;  %v15255_v54 = vld [vmem:[#allocation23_spill] sm:$0xff] }
 0x57e   :  { %v6408_v20 = vsel %vm6280_vm7, %v6174_v44, %v6344_v31  ;;  %v6178_v7 = vpop.f32.mrf.mxu1  ;;  %v6653_v13 = vadd.f32 %v6633_v10, %v6632_v32  ;;  %v5814_v21 = vadd.f32 %v14518_v59, %v15254_v51  ;;  %v5829_v3 = vadd.f32 %v14518_v59, %v15255_v54 }
 0x57f   :  { %v6531_v25 = vld [vmem:[#allocation4 + $0x180] ss:$2 sm:$0xff]  ;;  %6472 = vst.msk [vmem:[#allocation4 + $0x1a8] sm:$0xff] %vm4900_vm13, %v6408_v20  ;;  %v6407_v0 = vsel %vm6279_vm8, %v6169_v17, %v6343_v46  ;;  %vm6282_vm0 = vcmp.ge.f32.partialorder %v6184_v58, 0.0  ;;  %v6179_v37 = vadd.f32 %v6178_v7, %v5794_v27  ;;  %v6595_v43 = vld [vmem:[#allocation4 + $0x181] ss:$2 sm:$0xff] }
 0x580   :  { %6471 = vst.msk [vmem:[#allocation4 + $0x1a0] sm:$0xff] %vm4900_vm13, %v6407_v0  ;;  %v6346_v18 = vmul.f32 0.2, %v6184_v58  ;;  %v8689_v61 = vpop.f32.mrf.mxu1  ;;  %v6669_v5 = vmul.f32 0.25, %v6653_v13  ;;  %v6634_v62 = vadd.f32 %v6595_v43, %v6531_v25 }
 0x581   :  { %vm6281_vm9 = vcmp.ge.f32.partialorder %v6179_v37, 0.0  ;;  %v6345_v47 = vmul.f32 0.2, %v6179_v37  ;;  %v6194_v8 = vadd.f32 %v8689_v61, %v5809_v33  ;;  %v14564_v24 = vld [vmem:[#allocation3 + $0x141] sm:$0xff]  ;;  %v15256_v33 = vld [vmem:[#allocation21_spill] sm:$0xff] }
 0x582   :  { %v14568_v40 = vld [vmem:[#allocation3 + $0x13f] sm:$0xff]  ;;  %v6410_v53 = vsel %vm6282_vm0, %v6184_v58, %v6346_v18  ;;  %v6188_v12 = vpop.f32.mrf.mxu1  ;;  %8728 = vmatmul.mubr.msk.f32.gmra.mxu0 %vm4900_vm13, %v14564_v24  ;;  %6740 = vst.msk [vmem:[#allocation3 + $0x158] sm:$0xff] %vm4900_vm13, %v6669_v5  ;;  %v5824_v25 = vadd.f32 %v14518_v59, %v15256_v33 }
 0x583   :  { %v9754_v60 = vpack.i.bf16 %v14566_v49, %v14568_v40  ;;  %v6533_v11 = vld [vmem:[#allocation4 + $0x190] ss:$2 sm:$0xff]  ;;  %v6597_v44 = vld [vmem:[#allocation4 + $0x191] ss:$2 sm:$0xff]  ;;  %6474 = vst.msk [vmem:[#allocation4 + $0x1b8] sm:$0xff] %vm4900_vm13, %v6410_v53  ;;  %v6409_v63 = vsel %vm6281_vm9, %v6179_v37, %v6345_v47  ;;  %vm6284_vm10 = vcmp.ge.f32.partialorder %v6194_v8, 0.0  ;;  %v6189_v45 = vadd.f32 %v6188_v12, %v5804_v14 }
 0x584   :  { %v6635_v16 = vadd.f32 %v6597_v44, %v6533_v11  ;;  %6473 = vst.msk [vmem:[#allocation4 + $0x1b0] sm:$0xff] %vm4900_vm13, %v6409_v63  ;;  %v6348_v38 = vmul.f32 0.2, %v6194_v8  ;;  %v8692_v4 = vpop.f32.mrf.mxu1  ;;  %v14590_v18 = vld [vmem:[#allocation3 + $0x140] sm:$0xff]  ;;  %v15257_v47 = vld [vmem:[#allocation25_spill] sm:$0xff] }
 0x585   :  { %9755 = vrot.lane.b32.xlu0 %v9754_v60, %s9898_s19  ;;  %vm6283_vm11 = vcmp.ge.f32.partialorder %v6189_v45, 0.0  ;;  %v6347_v39 = vmul.f32 0.2, %v6189_v45  ;;  %v6204_v17 = vadd.f32 %v8692_v4, %v5819_v15 }
 0x586   :  { %v6412_v32 = vsel %vm6284_vm10, %v6194_v8, %v6348_v38  ;;  %v6198_v10 = vpop.f32.mrf.mxu1  ;;  %v6654_v31 = vadd.f32 %v6635_v16, %v6634_v62  ;;  %v5839_v8 = vadd.f32 %v14518_v59, %v15257_v47 }
 0x587   :  { %v6535_v27 = vld [vmem:[#allocation4 + $0x1a0] ss:$2 sm:$0xff]  ;;  %6476 = vst.msk [vmem:[#allocation4 + $0x1c8] sm:$0xff] %vm4900_vm13, %v6412_v32  ;;  %v6411_v46 = vsel %vm6283_vm11, %v6189_v45, %v6347_v39  ;;  %vm6286_vm12 = vcmp.ge.f32.partialorder %v6204_v17, 0.0  ;;  %v6199_v58 = vadd.f32 %v6198_v10, %v5814_v21  ;;  %v6599_v20 = vld [vmem:[#allocation4 + $0x1a1] ss:$2 sm:$0xff] }
 0x588   :  { %6475 = vst.msk [vmem:[#allocation4 + $0x1c0] sm:$0xff] %vm4900_vm13, %v6411_v46  ;;  %v6350_v7 = vmul.f32 0.2, %v6204_v17  ;;  %v8695_v13 = vpop.f32.mrf.mxu1  ;;  %v6670_v6 = vmul.f32 0.25, %v6654_v31  ;;  %v6636_v15 = vadd.f32 %v6599_v20, %v6535_v27  ;;  %v15258_v45 = vld [vmem:[#allocation24_spill] sm:$0xff] }
 0x589   :  { %vm6285_vm14 = vcmp.ge.f32.partialorder %v6199_v58, 0.0  ;;  %v6349_v0 = vmul.f32 0.2, %v6199_v58  ;;  %v6214_v37 = vadd.f32 %v8695_v13, %v5829_v3  ;;  %v14588_v43 = vld [vmem:[#allocation3 + $0x159] sm:$0xff]  ;;  %v5834_v62 = vadd.f32 %v14518_v59, %v15258_v45 }
 0x58a   :  { %v14592_v61 = vld [vmem:[#allocation3 + $0x157] sm:$0xff]  ;;  %v6414_v5 = vsel %vm6286_vm12, %v6204_v17, %v6350_v7  ;;  %v6208_v28 = vpop.f32.mrf.mxu1  ;;  %8730 = vmatprep.mubr.msk.f32.mxu0 %vm4900_vm13, %v14588_v43  ;;  %6741 = vst.msk [vmem:[#allocation3 + $0x170] sm:$0xff] %vm4900_vm13, %v6670_v6 }
 0x58b   :  { %v9759_v14 = vpack.i.bf16 %v14590_v18, %v14592_v61  ;;  %v6537_v53 = vld [vmem:[#allocation4 + $0x1b0] ss:$2 sm:$0xff]  ;;  %v6601_v12 = vld [vmem:[#allocation4 + $0x1b1] ss:$2 sm:$0xff]  ;;  %6478 = vst.msk [vmem:[#allocation4 + $0x1d8] sm:$0xff] %vm4900_vm13, %v6414_v5  ;;  %v6413_v60 = vsel %vm6285_vm14, %v6199_v58, %v6349_v0  ;;  %vm6288_vm3 = vcmp.ge.f32.partialorder %v6214_v37, 0.0  ;;  %v6209_v26 = vadd.f32 %v6208_v28, %v5824_v25 }
 0x58c   :  { %v6637_v11 = vadd.f32 %v6601_v12, %v6537_v53  ;;  %6477 = vst.msk [vmem:[#allocation4 + $0x1d0] sm:$0xff] %vm4900_vm13, %v6413_v60  ;;  %v6352_v44 = vmul.f32 0.2, %v6214_v37  ;;  %v8698_v63 = vpop.f32.mrf.mxu1  ;;  %v14610_v27 = vld [vmem:[#allocation3 + $0x158] sm:$0xff] }
 0x58d   :  { %9760 = vrot.lane.b32.xlu1 %v9759_v14, %s9898_s19  ;;  %vm6287_vm15 = vcmp.ge.f32.partialorder %v6209_v26, 0.0  ;;  %v6351_v16 = vmul.f32 0.2, %v6209_v26  ;;  %v6224_v38 = vadd.f32 %v8698_v63, %v5839_v8 }
 0x58e   :  { %v6416_v4 = vsel %vm6288_vm3, %v6214_v37, %v6352_v44  ;;  %v6218_v51 = vpop.f32.mrf.mxu1  ;;  %v6655_v21 = vadd.f32 %v6637_v11, %v6636_v15 }
 0x58f   :  { %v6539_v39 = vld [vmem:[#allocation4 + $0x1c0] ss:$2 sm:$0xff]  ;;  %6480 = vst.msk [vmem:[#allocation4 + $0x1e8] sm:$0xff] %vm4900_vm13, %v6416_v4  ;;  %v6415_v17 = vsel %vm6287_vm15, %v6209_v26, %v6351_v16  ;;  %vm6290_vm1 = vcmp.ge.f32.partialorder %v6224_v38, 0.0  ;;  %v6219_v32 = vadd.f32 %v6218_v51, %v5834_v62  ;;  %v6603_v10 = vld [vmem:[#allocation4 + $0x1c1] ss:$2 sm:$0xff] }
 0x590   :  { %6479 = vst.msk [vmem:[#allocation4 + $0x1e0] sm:$0xff] %vm4900_vm13, %v6415_v17  ;;  %v6354_v31 = vmul.f32 0.2, %v6224_v38  ;;  %v6671_v54 = vmul.f32 0.25, %v6655_v21  ;;  %v6638_v33 = vadd.f32 %v6603_v10, %v6539_v39  ;;  %v6745_v4 = vld [vmem:[#allocation3 + $0x7] sm:$0xff] }
 0x591   :  { %vm6289_vm2 = vcmp.ge.f32.partialorder %v6219_v32, 0.0  ;;  %v6353_v3 = vmul.f32 0.2, %v6219_v32  ;;  %v14608_v59 = vld [vmem:[#allocation3 + $0x171] sm:$0xff]  ;;  %v6777_v39 = vld [vmem:[#allocation3 + $0x9] sm:$0xff] }
 0x592   :  { %v14612_v46 = vld [vmem:[#allocation3 + $0x16f] sm:$0xff]  ;;  %v6418_v58 = vsel %vm6290_vm1, %v6224_v38, %v6354_v31  ;;  %8731 = vmatmul.mubr.msk.f32.gmra.mxu0 %vm4900_vm13, %v14608_v59  ;;  %6742 = vst.msk [vmem:[#allocation3 + $0x188] sm:$0xff] %vm4900_vm13, %v6671_v54  ;;  %v6825_v38 = vld [vmem:[#allocation3 + $0x21] sm:$0xff] }
 0x593   :  { %v9764_v20 = vpack.i.bf16 %v14610_v27, %v14612_v46  ;;  %v6541_v7 = vld [vmem:[#allocation4 + $0x1d0] ss:$2 sm:$0xff]  ;;  %v6605_v13 = vld [vmem:[#allocation4 + $0x1d1] ss:$2 sm:$0xff]  ;;  %6482 = vst.msk [vmem:[#allocation4 + $0x1f8] sm:$0xff] %vm4900_vm13, %v6418_v58  ;;  %v6417_v6 = vsel %vm6289_vm2, %v6219_v32, %v6353_v3  ;;  %v9784_v21 = vpack.i.bf16 %v6825_v38, %v14380_v48 }
 0x594   :  { %v6639_v25 = vadd.f32 %v6605_v13, %v6541_v7  ;;  %6481 = vst.msk [vmem:[#allocation4 + $0x1f0] sm:$0xff] %vm4900_vm13, %v6417_v6  ;;  %v14622_v5 = vld [vmem:[#allocation3 + $0x170] sm:$0xff]  ;;  %v6826_v6 = vld [vmem:[#allocation3 + $0x39] sm:$0xff] }
 0x595   :  { %9765 = vrot.lane.b32.xlu0 %v9764_v20, %s9898_s19  ;;  %v7257_v20 = vld [vmem:[%s15161_s5 + $0x178] sm:$0xff]  ;;  %v7272_v7 = vld [vmem:[%s15161_s5 + $0x1f0] sm:$0xff] }
 0x596   :  { %v6656_v0 = vadd.f32 %v6639_v25, %v6638_v33  ;;  %v7256_v13 = vld [vmem:[%s15161_s5 + $0x170] sm:$0xff]  ;;  %v9804_v25 = vpack.i.bf16 %v14425_v22, %v14473_v41  ;;  %v6746_v22 = vld [vmem:[#allocation3 + $0x1f] sm:$0xff] }
 0x597   :  { %v6543_v37 = vld [vmem:[#allocation4 + $0x1e0] ss:$2 sm:$0xff]  ;;  %v6607_v14 = vld [vmem:[#allocation4 + $0x1e1] ss:$2 sm:$0xff] }
 0x598   :  { %v6672_v28 = vmul.f32 0.25, %v6656_v0  ;;  %v6640_v26 = vadd.f32 %v6607_v14, %v6543_v37  ;;  %v9789_v0 = vpack.i.bf16 %v6826_v6, %v14397_v52  ;;  %v14680_v37 = vld [vmem:[#allocation3 + $0xc8] sm:$0xff]  ;;  %v7270_v52 = vld [vmem:[%s15161_s5 + $0x1e0] sm:$0xff] }
 0x599   :  { %v14624_v47 = vld [vmem:[#allocation3 + $0x189] sm:$0xff] }
 0x59a   :  { %v14626_v8 = vld [vmem:[#allocation3 + $0x187] sm:$0xff]  ;;  %8733 = vmatprep.mubr.msk.f32.mxu0 %vm4900_vm13, %v14624_v47  ;;  %6743 = vst.msk [vmem:[#allocation3 + $0x1a0] sm:$0xff] %vm4900_vm13, %v6672_v28 }
 0x59b   :  { %v9769_v53 = vpack.i.bf16 %v14622_v5, %v14626_v8  ;;  %v6545_v12 = vld [vmem:[#allocation4 + $0x1f0] ss:$2 sm:$0xff]  ;;  %v6609_v60 = vld [vmem:[#allocation4 + $0x1f1] ss:$2 sm:$0xff]  ;;  %v14636_v45 = vld [vmem:[#allocation3 + $0x188] sm:$0xff] }
 0x59c   :  { %v6641_v15 = vadd.f32 %v6609_v60, %v6545_v12  ;;  %v7255_v28 = vld [vmem:[%s15161_s5 + $0x168] sm:$0xff]  ;;  %v7254_v12 = vld [vmem:[%s15161_s5 + $0x160] sm:$0xff]  ;;  %v7269_v60 = vld [vmem:[%s15161_s5 + $0x1d8] sm:$0xff] }
 0x59d   :  { %9770 = vrot.lane.b32.xlu1 %v9769_v53, %s9898_s19  ;;  %v9814_v53 = vpack.i.bf16 %v14471_v19, %v14680_v37 }
 0x59e   :  { %v6657_v11 = vadd.f32 %v6641_v15, %v6640_v26  ;;  %v7253_v26 = vld [vmem:[%s15161_s5 + $0x158] sm:$0xff] }
 0x59f   :  { %v14708_v15 = vld [vmem:[#allocation3 + $0x111] sm:$0xff] }
 0x5a0   :  { %v6673_v44 = vmul.f32 0.25, %v6657_v11 }
 0x5a1   :  { %v14634_v63 = vld [vmem:[#allocation3 + $0x1a1] sm:$0xff] }
 0x5a2   :  { %v14638_v62 = vld [vmem:[#allocation3 + $0x19f] sm:$0xff]  ;;  %8734 = vmatmul.mubr.msk.f32.gmra.mxu0 %vm4900_vm13, %v14634_v63  ;;  %6744 = vst.msk [vmem:[#allocation3 + $0x1b8] sm:$0xff] %vm4900_vm13, %v6673_v44  ;;  %v9824_v44 = vpack.i.bf16 %v14708_v15, %v14566_v49  ;;  %v14722_v49 = vld [vmem:[#allocation3 + $0x37] sm:$0xff] }
 0x5a3   :  { %v9774_v16 = vpack.i.bf16 %v14636_v45, %v14638_v62  ;;  %v14652_v3 = vld [vmem:[#allocation3 + $0x1a0] sm:$0xff] }
 0x5a5   :  { %9775 = vrot.lane.b32.xlu0 %v9774_v16, %s9898_s19  ;;  %v9809_v16 = vpack.i.bf16 %v14449_v56, %v14500_v30  ;;  %v7267_v30 = vld [vmem:[%s15161_s5 + $0x1c8] sm:$0xff] }
 0x5a6   :  { %v9706_v51 = vpop.permute.xlu0 %9705 }
 0x5a7   :  { %v9708_v17 = vunpack.i.h.bf16 %v9706_v51  ;;  %v9707_v32 = vunpack.i.l.bf16 %v9706_v51 }
 0x5a9   :  { %9785 = vrot.lane.b32.xlu0 %v9784_v21, %s9898_s19  ;;  %v7146_v10 = vsel %vm4900_vm13, %v6745_v4, %v9708_v17  ;;  %v7162_v31 = vsel %vm4900_vm13, %v6777_v39, %v9707_v32  ;;  %v14650_v54 = vld [vmem:[#allocation3 + $0x1b9] sm:$0xff]  ;;  %v7252_v4 = vld [vmem:[%s15161_s5 + $0x150] sm:$0xff]  ;;  %v9834_v39 = vpack.i.bf16 %v14564_v24, %v14610_v27  ;;  %v7251_v32 = vld [vmem:[%s15161_s5 + $0x148] sm:$0xff] }
 0x5aa   :  { %v14654_v58 = vld [vmem:[#allocation3 + $0x1b7] sm:$0xff]  ;;  %7401 = vmatprep.mubr.f32.mxu1 %v7162_v31  ;;  %8736 = vmatprep.mubr.msk.f32.mxu0 %vm4900_vm13, %v14650_v54  ;;  %v7250_v31 = vld [vmem:[%s15161_s5 + $0x140] sm:$0xff] }
 0x5ab   :  { %v9779_v48 = vpack.i.bf16 %v14652_v3, %v14654_v58  ;;  %7402 = vmatmul.mubr.f32.vlgmr.msra.gmra.mxu1 %v7146_v10  ;;  %v7266_v10 = vld [vmem:[%s15161_s5 + $0x1c0] sm:$0xff] }
 0x5ac   :  { %8457 = vmatpush3.msra.mxu1 %v7257_v20  ;;  %v9829_v20 = vpack.i.bf16 %v14543_v36, %v14590_v18 }
 0x5ad   :  { %9795 = vrot.lane.b32.xlu0 %v9794_v34, %s9898_s19  ;;  %9780 = vrot.lane.b32.xlu1 %v9779_v48, %s9898_s19  ;;  %v9844_v48 = vpack.i.bf16 %v14608_v59, %v14636_v45 }
 0x5ae   :  { %8458 = vmatprep.subr.mxu1 %v7272_v7  ;;  %v7265_v7 = vld [vmem:[%s15161_s5 + $0x1b8] sm:$0xff] }
 0x5af   :  { %v9711_v33 = vpop.permute.xlu1 %9710  ;;  %8459 = vmatpush3.msra.mxu1 %v7256_v13 }
 0x5b0   :  { %v9713_v2 = vunpack.i.h.bf16 %v9711_v33  ;;  %v9712_v34 = vunpack.i.l.bf16 %v9711_v33  ;;  %8460 = vmatprep.subr.mxu1 %v7271_v23  ;;  %v14751_v33 = vld [vmem:[#allocation3 + $0x1b8] sm:$0xff]  ;;  %v14758_v23 = vld [vmem:[#allocation3 + $0x4f] sm:$0xff] }
 0x5b1   :  { %9805 = vrot.lane.b32.xlu0 %v9804_v25, %s9898_s19  ;;  %9790 = vrot.lane.b32.xlu1 %v9789_v0, %s9898_s19  ;;  %v7249_v25 = vld [vmem:[%s15161_s5 + $0x138] sm:$0xff] }
 0x5b2   :  { %v7163_v41 = vsel %vm4900_vm13, %v6825_v38, %v9712_v34  ;;  %v7147_v14 = vsel %vm4900_vm13, %v6746_v22, %v9713_v2  ;;  %8461 = vmatpush3.msra.mxu1 %v7255_v28  ;;  %v6865_v38 = vld [vmem:[#allocation3 + $0xe0] sm:$0xff]  ;;  %v6780_v0 = vld [vmem:[#allocation3 + $0x51] sm:$0xff]  ;;  %v9854_v22 = vpack.i.bf16 %v14634_v63, %v14751_v33 }
 0x5b3   :  { %7406 = vmatprep.mubr.f32.mxu1 %v7163_v41  ;;  %8462 = vmatprep.subr.mxu1 %v7270_v52  ;;  %v9819_v17 = vpack.i.bf16 %v14498_v29, %v6865_v38  ;;  %v7264_v2 = vld [vmem:[%s15161_s5 + $0x1b0] sm:$0xff]  ;;  %v9839_v52 = vpack.i.bf16 %v14588_v43, %v14622_v5  ;;  %v14793_v38 = vld [vmem:[#allocation3 + $0x67] sm:$0xff] }
 0x5b4   :  { %7407 = vmatmul.mubr.f32.gmra.mxu1 %v7147_v14  ;;  %v7248_v41 = vld [vmem:[%s15161_s5 + $0x130] sm:$0xff]  ;;  %v7263_v14 = vld [vmem:[%s15161_s5 + $0x1a8] sm:$0xff] }
 0x5b5   :  { %9815 = vrot.lane.b32.xlu0 %v9814_v53, %s9898_s19  ;;  %9800 = vrot.lane.b32.xlu1 %v9799_v57, %s9898_s19  ;;  %v7247_v53 = vld [vmem:[%s15161_s5 + $0x128] sm:$0xff] }
 0x5b6   :  { %8463 = vmatpush3.msra.mxu1 %v7254_v12  ;;  %v7262_v12 = vld [vmem:[%s15161_s5 + $0x1a0] sm:$0xff] }
 0x5b7   :  { %v9716_v11 = vpop.permute.xlu0 %9715  ;;  %8464 = vmatprep.subr.mxu1 %v7269_v60 }
 0x5b8   :  { %v9718_v55 = vunpack.i.h.bf16 %v9716_v11  ;;  %v9717_v57 = vunpack.i.l.bf16 %v9716_v11  ;;  %8465 = vmatpush3.msra.mxu1 %v7253_v26  ;;  %v9849_v26 = vpack.i.bf16 %v14624_v47, %v14652_v3  ;;  %v7246_v11 = vld [vmem:[%s15161_s5 + $0x120] sm:$0xff] }
 0x5b9   :  { %9825 = vrot.lane.b32.xlu0 %v9824_v44, %s9898_s19  ;;  %9810 = vrot.lane.b32.xlu1 %v9809_v16, %s9898_s19 }
 0x5ba   :  { %v7164_v51 = vsel %vm4900_vm13, %v6826_v6, %v9717_v57  ;;  %v7148_v21 = vsel %vm4900_vm13, %v14722_v49, %v9718_v55  ;;  %8466 = vmatprep.subr.mxu1 %v7268_v50  ;;  %v6873_v50 = vld [vmem:[#allocation3 + $0x1d0] sm:$0xff]  ;;  %v7261_v55 = vld [vmem:[%s15161_s5 + $0x198] sm:$0xff] }
 0x5bb   :  { %7411 = vmatprep.mubr.f32.mxu1 %v7164_v51  ;;  %8467 = vmatpush3.msra.mxu1 %v7252_v4  ;;  %v6781_v57 = vld [vmem:[#allocation3 + $0x69] sm:$0xff]  ;;  %v7245_v51 = vld [vmem:[%s15161_s5 + $0x118] sm:$0xff] }
 0x5bc   :  { %7412 = vmatmul.mubr.f32.gmra.mxu1 %v7148_v21  ;;  %8468 = vmatprep.subr.mxu1 %v7267_v30  ;;  %v9859_v21 = vpack.i.bf16 %v14650_v54, %v6873_v50  ;;  %v7243_v54 = vld [vmem:[%s15161_s5 + $0x108] sm:$0xff] }
 0x5bd   :  { %9835 = vrot.lane.b32.xlu0 %v9834_v39, %s9898_s19  ;;  %9820 = vrot.lane.b32.xlu1 %v9819_v17, %s9898_s19  ;;  %v7260_v39 = vld [vmem:[%s15161_s5 + $0x190] sm:$0xff] }
 0x5be   :  { %8469 = vmatpush3.msra.mxu1 %v7251_v32  ;;  %v7244_v17 = vld [vmem:[%s15161_s5 + $0x110] sm:$0xff]  ;;  %v7259_v32 = vld [vmem:[%s15161_s5 + $0x188] sm:$0xff] }
 0x5bf   :  { %v9721_v29 = vpop.permute.xlu1 %9720  ;;  %8470 = vmatprep.subr.mxu1 %v7266_v10 }
 0x5c0   :  { %v9723_v13 = vunpack.i.h.bf16 %v9721_v29  ;;  %v9722_v6 = vunpack.i.l.bf16 %v9721_v29  ;;  %8471 = vmatpush3.msra.mxu1 %v7250_v31  ;;  %v7258_v31 = vld [vmem:[%s15161_s5 + $0x180] sm:$0xff] }
 0x5c1   :  { %9845 = vrot.lane.b32.xlu0 %v9844_v48, %s9898_s19  ;;  %9830 = vrot.lane.b32.xlu1 %v9829_v20, %s9898_s19  ;;  %v7242_v20 = vld [vmem:[%s15161_s5 + $0x100] sm:$0xff] }
 0x5c2   :  { %v7165_v34 = vsel %vm4900_vm13, %v6780_v0, %v9722_v6  ;;  %v7149_v28 = vsel %vm4900_vm13, %v14758_v23, %v9723_v13  ;;  %8472 = vmatprep.subr.mxu1 %v7265_v7  ;;  %v9871_v7 = vld [vmem:[#allocation3 + $0x81] sm:$0xff] }
 0x5c3   :  { %7416 = vmatprep.mubr.f32.mxu1 %v7165_v34  ;;  %8473 = vmatpush3.msra.mxu1 %v7249_v25  ;;  %v9872_v6 = vld [vmem:[#allocation3 + $0x7f] sm:$0xff] }
 0x5c4   :  { %7417 = vmatmul.mubr.f32.gmra.mxu1 %v7149_v28  ;;  %8474 = vmatprep.subr.mxu1 %v7264_v2 }
 0x5c5   :  { %9855 = vrot.lane.b32.xlu0 %v9854_v22, %s9898_s19  ;;  %9840 = vrot.lane.b32.xlu1 %v9839_v52, %s9898_s19 }
 0x5c6   :  { %8475 = vmatpush3.msra.mxu1 %v7248_v41 }
 0x5c7   :  { %v9726_v60 = vpop.permute.xlu0 %9725  ;;  %8476 = vmatprep.subr.mxu1 %v7263_v14 }
 0x5c8   :  { %v9728_v44 = vunpack.i.h.bf16 %v9726_v60  ;;  %v9727_v16 = vunpack.i.l.bf16 %v9726_v60  ;;  %8477 = vmatpush3.msra.mxu1 %v7247_v53  ;;  %v6889_v60 = vld [vmem:[#allocation3 + $0x1d1] sm:$0xff] }
 0x5c9   :  { %9850 = vrot.lane.b32.xlu1 %v9849_v26, %s9898_s19  ;;  %8478 = vmatprep.subr.mxu1 %v7262_v12  ;;  %v6785_v26 = vld [vmem:[#allocation3 + $0xf9] sm:$0xff] }
 0x5ca   :  { %v7166_v4 = vsel %vm4900_vm13, %v6781_v57, %v9727_v16  ;;  %v7150_v30 = vsel %vm4900_vm13, %v14793_v38, %v9728_v44  ;;  %8479 = vmatpush3.msra.mxu1 %v7246_v11  ;;  %8737 = vmatmul.mubr.msk.f32.gmra.mxu0 %vm4900_vm13, %v6889_v60  ;;  %v6753_v11 = vld [vmem:[#allocation3 + $0xf7] sm:$0xff] }
 0x5cb   :  { %7421 = vmatprep.mubr.f32.mxu1 %v7166_v4  ;;  %8480 = vmatprep.subr.mxu1 %v7261_v55 }
 0x5cc   :  { %7422 = vmatmul.mubr.f32.gmra.mxu1 %v7150_v30 }
 0x5cd   :  { %9860 = vrot.lane.b32.xlu1 %v9859_v21, %s9898_s19  ;;  %8481 = vmatpush3.msra.mxu1 %v7245_v51  ;;  %s8086_s19 = sshll.u32 %s9899_s22, 4  ;;  %s8087_s19 = int_to_ptr.vmem [resolvable:$true] %s8086_s19 }
 0x5ce   :  { %8482 = vmatprep.subr.mxu1 %v7260_v39  ;;  %p9878_p1 = scmp.lt.s32.totalorder %s8087_s19, %s8087_s19 }
 0x5cf   :  { %v9731_v10 = vpop.permute.xlu1 %9730  ;;  %8483 = vmatpush3.msra.mxu1 %v7244_v17 }
 0x5d0   :  { %v9733_v29 = vunpack.i.h.bf16 %v9731_v10  ;;  %v9732_v48 = vunpack.i.l.bf16 %v9731_v10  ;;  %8484 = vmatprep.subr.mxu1 %v7259_v32 }
 0x5d1   :  { %8485 = vmatpush3.msra.mxu1 %v7243_v54 }
 0x5d2   :  { %v7167_v13 = vsel %vm4900_vm13, %v9871_v7, %v9732_v48  ;;  %v7151_v25 = vsel %vm4900_vm13, %v9872_v6, %v9733_v29  ;;  %8486 = vmatprep.subr.mxu1 %v7258_v31 }
 0x5d3   :  { %7426 = vmatprep.mubr.f32.mxu1 %v7167_v13  ;;  %8487 = vmatpush3.msra.mxu1 %v7242_v20 }
 0x5d4   :  { %7427 = vmatmul.mubr.f32.gmra.mxu1 %v7151_v25 }
 0x5d7   :  { %v9736_v0 = vpop.permute.xlu0 %9735 }
 0x5d8   :  { %v9738_v2 = vunpack.i.h.bf16 %v9736_v0  ;;  %v9737_v34 = vunpack.i.l.bf16 %v9736_v0 }
 0x5da   :  { %v7168_v28 = vsel %vm4900_vm13, %v14449_v56, %v9737_v34  ;;  %v7152_v22 = vsel %vm4900_vm13, %v14451_v42, %v9738_v2 }
 0x5db   :  { %7431 = vmatprep.mubr.f32.mxu1 %v7168_v28 }
 0x5dc   :  { %7432 = vmatmul.mubr.f32.gmra.mxu1 %v7152_v22 }
 0x5df   :  { %v9741_v52 = vpop.permute.xlu1 %9740 }
 0x5e0   :  { %v9743_v41 = vunpack.i.h.bf16 %v9741_v52  ;;  %v9742_v14 = vunpack.i.l.bf16 %v9741_v52 }
 0x5e2   :  { %v7169_v53 = vsel %vm4900_vm13, %v14471_v19, %v9742_v14  ;;  %v7153_v12 = vsel %vm4900_vm13, %v14475_v1, %v9743_v41 }
 0x5e3   :  { %7436 = vmatprep.mubr.f32.mxu1 %v7169_v53 }
 0x5e4   :  { %7437 = vmatmul.mubr.f32.gmra.mxu1 %v7153_v12 }
 0x5e6   :  { %v9746_v56 = vpop.permute.xlu0 %9745 }
 0x5e7   :  { %v9748_v42 = vunpack.i.h.bf16 %v9746_v56  ;;  %v9747_v44 = vunpack.i.l.bf16 %v9746_v56 }
 0x5e9   :  { %v7170_v16 = vsel %vm4900_vm13, %v6785_v26, %v9747_v44  ;;  %v7154_v50 = vsel %vm4900_vm13, %v6753_v11, %v9748_v42  ;;  %v6809_v26 = vld [vmem:[#allocation3 + $0x20] sm:$0xff] }
 0x5ea   :  { %7441 = vmatprep.mubr.f32.mxu1 %v7170_v16 }
 0x5eb   :  { %7442 = vmatmul.mubr.f32.gmra.mxu1 %v7154_v50  ;;  %v6810_v50 = vld [vmem:[#allocation3 + $0x38] sm:$0xff] }
 0x5ef   :  { %v9751_v19 = vpop.permute.xlu1 %9750 }
 0x5f0   :  { %v9753_v55 = vunpack.i.h.bf16 %v9751_v19  ;;  %v9752_v57 = vunpack.i.l.bf16 %v9751_v19 }
 0x5f2   :  { %v7171_v1 = vsel %vm4900_vm13, %v14708_v15, %v9752_v57  ;;  %v7155_v4 = vsel %vm4900_vm13, %v14526_v35, %v9753_v55 }
 0x5f3   :  { %7446 = vmatprep.mubr.f32.mxu1 %v7171_v1 }
 0x5f4   :  { %7447 = vmatmul.mubr.f32.gmra.mxu1 %v7155_v4  ;;  %v6811_v4 = vld [vmem:[#allocation3 + $0x50] sm:$0xff] }
 0x5f7   :  { %v9756_v30 = vpop.permute.xlu0 %9755 }
 0x5f8   :  { %v9758_v51 = vunpack.i.h.bf16 %v9756_v30  ;;  %v9757_v21 = vunpack.i.l.bf16 %v9756_v30 }
 0x5fa   :  { %v7172_v39 = vsel %vm4900_vm13, %v14543_v36, %v9757_v21  ;;  %v7156_v17 = vsel %vm4900_vm13, %v14545_v9, %v9758_v51  ;;  %v6845_v21 = vld [vmem:[#allocation3 + $0x7f] sm:$0xff] }
 0x5fb   :  { %7451 = vmatprep.mubr.f32.mxu1 %v7172_v39 }
 0x5fc   :  { %7452 = vmatmul.mubr.f32.gmra.mxu1 %v7156_v17 }
 0x5ff   :  { %v9761_v32 = vpop.permute.xlu1 %9760 }
 0x600   :  { %v9763_v54 = vunpack.i.h.bf16 %v9761_v32  ;;  %v9762_v10 = vunpack.i.l.bf16 %v9761_v32  ;;  %v6812_v32 = vld [vmem:[#allocation3 + $0x68] sm:$0xff] }
 0x602   :  { %v7173_v15 = vsel %vm4900_vm13, %v14564_v24, %v9762_v10  ;;  %v7157_v35 = vsel %vm4900_vm13, %v14568_v40, %v9763_v54 }
 0x603   :  { %7456 = vmatprep.mubr.f32.mxu1 %v7173_v15  ;;  %v6846_v15 = vld [vmem:[#allocation3 + $0x97] sm:$0xff] }
 0x604   :  { %7457 = vmatmul.mubr.f32.gmra.mxu1 %v7157_v35 }
 0x607   :  { %v9766_v31 = vpop.permute.xlu0 %9765 }
 0x608   :  { %v9768_v29 = vunpack.i.h.bf16 %v9766_v31  ;;  %v9767_v48 = vunpack.i.l.bf16 %v9766_v31 }
 0x60a   :  { %v7174_v36 = vsel %vm4900_vm13, %v14588_v43, %v9767_v48  ;;  %v7158_v9 = vsel %vm4900_vm13, %v14592_v61, %v9768_v29  ;;  %v6813_v29 = vld [vmem:[#allocation3 + $0x80] sm:$0xff] }
 0x60b   :  { %7461 = vmatprep.mubr.f32.mxu1 %v7174_v36 }
 0x60c   :  { %7462 = vmatmul.mubr.f32.gmra.mxu1 %v7158_v9  ;;  %v6847_v9 = vld [vmem:[#allocation3 + $0xaf] sm:$0xff] }
 0x60f   :  { %v9771_v20 = vpop.permute.xlu1 %9770 }
 0x610   :  { %v9773_v7 = vunpack.i.h.bf16 %v9771_v20  ;;  %v9772_v13 = vunpack.i.l.bf16 %v9771_v20 }
 0x612   :  { %v7175_v24 = vsel %vm4900_vm13, %v14608_v59, %v9772_v13  ;;  %v7159_v40 = vsel %vm4900_vm13, %v14612_v46, %v9773_v7 }
 0x613   :  { %7466 = vmatprep.mubr.f32.mxu1 %v7175_v24  ;;  %v6814_v24 = vld [vmem:[#allocation3 + $0x98] sm:$0xff] }
 0x614   :  { %7467 = vmatmul.mubr.f32.gmra.mxu1 %v7159_v40 }
 0x617   :  { %v9776_v6 = vpop.permute.xlu0 %9775 }
 0x618   :  { %v9778_v25 = vunpack.i.h.bf16 %v9776_v6  ;;  %v9777_v0 = vunpack.i.l.bf16 %v9776_v6 }
 0x61a   :  { %v7176_v43 = vsel %vm4900_vm13, %v14624_v47, %v9777_v0  ;;  %v7160_v2 = vsel %vm4900_vm13, %v14626_v8, %v9778_v25  ;;  %v6848_v25 = vld [vmem:[#allocation3 + $0xc7] sm:$0xff] }
 0x61b   :  { %7471 = vmatprep.mubr.f32.mxu1 %v7176_v43  ;;  %v9786_v34 = vpop.permute.xlu0 %9785 }
 0x61c   :  { %7472 = vmatmul.mubr.f32.gmra.mxu1 %v7160_v2  ;;  %v9787_v22 = vunpack.i.l.bf16 %v9786_v34  ;;  %v9788_v53 = vunpack.i.h.bf16 %v9786_v34  ;;  %v6849_v34 = vld [vmem:[#allocation3 + $0xdf] sm:$0xff] }
 0x61e   :  { %v7194_v47 = vsel %vm4900_vm13, %v14722_v49, %v9787_v22  ;;  %v7178_v11 = vsel %vm4900_vm13, %v6809_v26, %v9788_v53 }
 0x61f   :  { %v9781_v28 = vpop.permute.xlu1 %9780  ;;  %v9796_v60 = vpop.permute.xlu0 %9795 }
 0x620   :  { %v9783_v59 = vunpack.i.h.bf16 %v9781_v28  ;;  %v9782_v52 = vunpack.i.l.bf16 %v9781_v28  ;;  %v9797_v44 = vunpack.i.l.bf16 %v9796_v60  ;;  %v9798_v19 = vunpack.i.h.bf16 %v9796_v60  ;;  %v6815_v28 = vld [vmem:[#allocation3 + $0xb0] sm:$0xff] }
 0x622   :  { %v7177_v41 = vsel %vm4900_vm13, %v14634_v63, %v9782_v52  ;;  %v7161_v14 = vsel %vm4900_vm13, %v14638_v62, %v9783_v59  ;;  %v7196_v49 = vsel %vm4900_vm13, %v14793_v38, %v9797_v44  ;;  %v7180_v51 = vsel %vm4900_vm13, %v6811_v4, %v9798_v19 }
 0x623   :  { %7476 = vmatprep.mubr.f32.mxu1 %v7177_v41  ;;  %v9791_v12 = vpop.permute.xlu1 %9790  ;;  %v9806_v1 = vpop.permute.xlu0 %9805 }
 0x624   :  { %7477 = vmatmul.mubr.f32.gmra.mxu1 %v7161_v14  ;;  %v9792_v56 = vunpack.i.l.bf16 %v9791_v12  ;;  %v9793_v42 = vunpack.i.h.bf16 %v9791_v12  ;;  %v9807_v39 = vunpack.i.l.bf16 %v9806_v1  ;;  %v9808_v54 = vunpack.i.h.bf16 %v9806_v1 }
 0x625   :  { %7546 = vmatprep.mubr.f32.mxu1 %v7194_v47  ;;  %v6850_v47 = vld [vmem:[#allocation3 + $0x127] sm:$0xff] }
 0x626   :  { %v7195_v63 = vsel %vm4900_vm13, %v14758_v23, %v9792_v56  ;;  %v7179_v55 = vsel %vm4900_vm13, %v6810_v50, %v9793_v42  ;;  %v7198_v38 = vsel %vm4900_vm13, %v6846_v15, %v9807_v39  ;;  %v7182_v36 = vsel %vm4900_vm13, %v6813_v29, %v9808_v54 }
 0x627   :  { %v9801_v16 = vpop.permute.xlu1 %9800  ;;  %v9816_v31 = vpop.permute.xlu0 %9815 }
 0x628   :  { %7547 = vmatmul.mubr.f32.vlgmr.msra.gmra.mxu1 %v7178_v11  ;;  %v9802_v57 = vunpack.i.l.bf16 %v9801_v16  ;;  %v9803_v30 = vunpack.i.h.bf16 %v9801_v16  ;;  %v9817_v20 = vunpack.i.l.bf16 %v9816_v31  ;;  %v9818_v40 = vunpack.i.h.bf16 %v9816_v31  ;;  %v6817_v11 = vld [vmem:[#allocation3 + $0x110] sm:$0xff] }
 0x629   :  { %7551 = vmatprep.mubr.f32.mxu1 %v7195_v63  ;;  %v6851_v63 = vld [vmem:[#allocation3 + $0x13f] sm:$0xff] }
 0x62a   :  { %v7197_v23 = vsel %vm4900_vm13, %v6845_v21, %v9802_v57  ;;  %v7181_v10 = vsel %vm4900_vm13, %v6812_v32, %v9803_v30  ;;  %v7200_v43 = vsel %vm4900_vm13, %v6848_v25, %v9817_v20  ;;  %v7184_v59 = vsel %vm4900_vm13, %v6815_v28, %v9818_v40  ;;  %v7878_v28 = vld [vmem:[%s15163_s7 + $0x70] sm:$0xff] }
 0x62b   :  { %v9811_v17 = vpop.permute.xlu1 %9810  ;;  %v9826_v2 = vpop.permute.xlu0 %9825 }
 0x62c   :  { %7552 = vmatmul.mubr.f32.gmra.mxu1 %v7179_v55  ;;  %v9812_v35 = vunpack.i.l.bf16 %v9811_v17  ;;  %v9813_v48 = vunpack.i.h.bf16 %v9811_v17  ;;  %v9827_v52 = vunpack.i.l.bf16 %v9826_v2  ;;  %v9828_v53 = vunpack.i.h.bf16 %v9826_v2  ;;  %v6818_v55 = vld [vmem:[#allocation3 + $0x128] sm:$0xff] }
 0x62d   :  { %7556 = vmatprep.mubr.f32.mxu1 %v7196_v49 }
 0x62e   :  { %v7199_v7 = vsel %vm4900_vm13, %v6847_v9, %v9812_v35  ;;  %v7183_v6 = vsel %vm4900_vm13, %v6814_v24, %v9813_v48  ;;  %v7202_v56 = vsel %vm4900_vm13, %v6850_v47, %v9827_v52  ;;  %v7186_v44 = vsel %vm4900_vm13, %v6817_v11, %v9828_v53  ;;  %v6857_v48 = vld [vmem:[#allocation3 + $0x1cf] sm:$0xff]  ;;  %v7875_v47 = vld [vmem:[%s15163_s7 + $0x58] sm:$0xff] }
 0x62f   :  { %v9821_v13 = vpop.permute.xlu1 %9820  ;;  %v9836_v26 = vpop.permute.xlu0 %9835  ;;  %v7877_v53 = vld [vmem:[%s15163_s7 + $0x68] sm:$0xff] }
 0x630   :  { %7557 = vmatmul.mubr.f32.gmra.mxu1 %v7180_v51  ;;  %v9822_v0 = vunpack.i.l.bf16 %v9821_v13  ;;  %v9823_v22 = vunpack.i.h.bf16 %v9821_v13  ;;  %v9837_v16 = vunpack.i.l.bf16 %v9836_v26 }
 0x631   :  { %7561 = vmatprep.mubr.f32.mxu1 %v7197_v23 }
 0x632   :  { %v7201_v41 = vsel %vm4900_vm13, %v6849_v34, %v9822_v0  ;;  %v7185_v12 = vsel %vm4900_vm13, %v14680_v37, %v9823_v22  ;;  %v9838_v37 = vunpack.i.h.bf16 %v9836_v26  ;;  %v7204_v1 = vsel %vm4900_vm13, %v14592_v61, %v9837_v16 }
 0x633   :  { %v9831_v14 = vpop.permute.xlu1 %9830  ;;  %v9846_v4 = vpop.permute.xlu0 %9845 }
 0x634   :  { %7562 = vmatmul.mubr.f32.gmra.mxu1 %v7181_v10  ;;  %v9832_v60 = vunpack.i.l.bf16 %v9831_v14  ;;  %v9833_v42 = vunpack.i.h.bf16 %v9831_v14  ;;  %v7188_v51 = vsel %vm4900_vm13, %v14590_v18, %v9838_v37  ;;  %v9847_v21 = vunpack.i.l.bf16 %v9846_v4 }
 0x635   :  { %7566 = vmatprep.mubr.f32.mxu1 %v7198_v38  ;;  %v9848_v17 = vunpack.i.h.bf16 %v9846_v4 }
 0x636   :  { %v7203_v50 = vsel %vm4900_vm13, %v6851_v63, %v9832_v60  ;;  %v7187_v57 = vsel %vm4900_vm13, %v6818_v55, %v9833_v42  ;;  %v7206_v61 = vsel %vm4900_vm13, %v14626_v8, %v9847_v21  ;;  %v7873_v42 = vld [vmem:[%s15163_s7 + $0x48] sm:$0xff]  ;;  %v7872_v63 = vld [vmem:[%s15163_s7 + $0x40] sm:$0xff]  ;;  %v7870_v55 = vld [vmem:[%s15163_s7 + $0x30] sm:$0xff] }
 0x637   :  { %v9841_v19 = vpop.permute.xlu1 %9840  ;;  %v9856_v10 = vpop.permute.xlu0 %9855  ;;  %v7190_v18 = vsel %vm4900_vm13, %v14622_v5, %v9848_v17  ;;  %v7868_v17 = vld [vmem:[%s15163_s7 + $0x20] sm:$0xff] }
 0x638   :  { %7567 = vmatmul.mubr.f32.gmra.mxu1 %v7182_v36  ;;  %v9842_v49 = vunpack.i.l.bf16 %v9841_v19  ;;  %v9843_v30 = vunpack.i.h.bf16 %v9841_v19  ;;  %v9857_v35 = vunpack.i.l.bf16 %v9856_v10  ;;  %v9858_v31 = vunpack.i.h.bf16 %v9856_v10  ;;  %v7871_v19 = vld [vmem:[%s15163_s7 + $0x38] sm:$0xff]  ;;  %v7864_v10 = vld [vmem:[%s15163_s7] sm:$0xff] }
 0x639   :  { %7571 = vmatprep.mubr.f32.mxu1 %v7199_v7 }
 0x63a   :  { %v7205_v39 = vsel %vm4900_vm13, %v14612_v46, %v9842_v49  ;;  %v7189_v32 = vsel %vm4900_vm13, %v14610_v27, %v9843_v30  ;;  %v7208_v8 = vsel %vm4900_vm13, %v14654_v58, %v9857_v35  ;;  %v7192_v5 = vsel %vm4900_vm13, %v14652_v3, %v9858_v31  ;;  %v7999_v35 = vld [vmem:[%s15165_s9 + $0xf0] sm:$0xff]  ;;  %v7998_v31 = vld [vmem:[%s15165_s9 + $0xe8] sm:$0xff] }
 0x63b   :  { %v9851_v23 = vpop.permute.xlu1 %9850 }
 0x63c   :  { %7572 = vmatmul.mubr.f32.gmra.mxu1 %v7183_v6  ;;  %v9852_v54 = vunpack.i.l.bf16 %v9851_v23  ;;  %v9853_v15 = vunpack.i.h.bf16 %v9851_v23 }
 0x63d   :  { %7576 = vmatprep.mubr.f32.mxu1 %v7200_v43 }
 0x63e   :  { %v7207_v46 = vsel %vm4900_vm13, %v14638_v62, %v9852_v54  ;;  %v7191_v27 = vsel %vm4900_vm13, %v14636_v45, %v9853_v15  ;;  %v15259_v45 = vmov 0.0   ;;  %v7866_v54 = vld [vmem:[%s15163_s7 + $0x10] sm:$0xff]  ;;  %v8000_v15 = vld [vmem:[%s15165_s9 + $0xf8] sm:$0xff] }
 0x63f   :  { %v9861_v38 = vpop.permute.xlu1 %9860  ;;  %8560 = vmatprep.subr.mxu0 %v8000_v15 }
 0x640   :  { %7577 = vmatmul.mubr.f32.gmra.mxu1 %v7184_v59  ;;  %v9862_v29 = vunpack.i.l.bf16 %v9861_v38  ;;  %v9863_v36 = vunpack.i.h.bf16 %v9861_v38 }
 0x641   :  { %7581 = vmatprep.mubr.f32.mxu1 %v7201_v41 }
 0x642   :  { %v7209_v62 = vsel %vm4900_vm13, %v6857_v48, %v9862_v29  ;;  %v7193_v9 = vsel %vm4900_vm13, %v14751_v33, %v9863_v36  ;;  %v7879_v33 = vld [vmem:[%s15163_s7 + $0x78] sm:$0xff]  ;;  %v7981_v36 = vld [vmem:[%s15165_s9 + $0x60] sm:$0xff] }
 0x643   :  { %7914 = vmatprep.subr.mxu1 %v7879_v33  ;;  %v7976_v33 = vld [vmem:[%s15165_s9 + $0x38] sm:$0xff] }
 0x644   :  { %7582 = vmatmul.mubr.f32.gmra.mxu1 %v7185_v12  ;;  %v7876_v12 = vld [vmem:[%s15163_s7 + $0x60] sm:$0xff] }
 0x645   :  { %7586 = vmatprep.mubr.f32.mxu1 %v7202_v56  ;;  %7915 = vmatpush1.msra.mxu1 %v7878_v28  ;;  %v7874_v56 = vld [vmem:[%s15163_s7 + $0x50] sm:$0xff] }
 0x646   :  { %7916 = vmatprep.subr.mxu1 %v7877_v53  ;;  %v7975_v28 = vld [vmem:[%s15165_s9 + $0x30] sm:$0xff] }
 0x647   :  { %7917 = vmatpush1.msra.mxu1 %v7876_v12  ;;  %v7989_v12 = vld [vmem:[%s15165_s9 + $0xa0] sm:$0xff] }
 0x648   :  { %7587 = vmatmul.mubr.f32.gmra.mxu1 %v7186_v44  ;;  %7918 = vmatprep.subr.mxu1 %v7875_v47 }
 0x649   :  { %7591 = vmatprep.mubr.f32.mxu1 %v7203_v50  ;;  %7919 = vmatpush1.msra.mxu1 %v7874_v56  ;;  %v7988_v56 = vld [vmem:[%s15165_s9 + $0x98] sm:$0xff] }
 0x64a   :  { %7920 = vmatprep.subr.mxu1 %v7873_v42  ;;  %v7987_v42 = vld [vmem:[%s15165_s9 + $0x90] sm:$0xff] }
 0x64b   :  { %7921 = vmatpush1.msra.mxu1 %v7872_v63 }
 0x64c   :  { %7592 = vmatmul.mubr.f32.gmra.mxu1 %v7187_v57  ;;  %7922 = vmatprep.subr.mxu1 %v7871_v19 }
 0x64d   :  { %7596 = vmatprep.mubr.f32.mxu1 %v7204_v1  ;;  %7923 = vmatpush1.msra.mxu1 %v7870_v55 }
 0x650   :  { %7597 = vmatmul.mubr.f32.gmra.mxu1 %v7188_v51 }
 0x651   :  { %7601 = vmatprep.mubr.f32.mxu1 %v7205_v39  ;;  %v7869_v39 = vld [vmem:[%s15163_s7 + $0x28] sm:$0xff] }
 0x652   :  { %7924 = vmatprep.subr.mxu1 %v7869_v39 }
 0x653   :  { %7925 = vmatpush1.msra.mxu1 %v7868_v17 }
 0x654   :  { %7602 = vmatmul.mubr.f32.gmra.mxu1 %v7189_v32  ;;  %v7867_v32 = vld [vmem:[%s15163_s7 + $0x18] sm:$0xff] }
 0x655   :  { %7606 = vmatprep.mubr.f32.mxu1 %v7206_v61  ;;  %v7865_v61 = vld [vmem:[%s15163_s7 + $0x8] sm:$0xff]  ;;  %7926 = vmatprep.subr.mxu1 %v7867_v32 }
 0x656   :  { %7927 = vmatpush1.msra.mxu1 %v7866_v54 }
 0x657   :  { %7928 = vmatprep.subr.mxu1 %v7865_v61 }
 0x658   :  { %7607 = vmatmul.mubr.f32.gmra.mxu1 %v7190_v18  ;;  %v7984_v18 = vld [vmem:[%s15165_s9 + $0x78] sm:$0xff] }
 0x659   :  { %7611 = vmatprep.mubr.f32.mxu1 %v7207_v46  ;;  %v7983_v46 = vld [vmem:[%s15165_s9 + $0x70] sm:$0xff]  ;;  %7929 = vmatpush1.msra.mxu1 %v7864_v10 }
 0x65a   :  { %8561 = vmatpush3.msra.mxu0 %v7984_v18 }
 0x65b   :  { %8562 = vmatprep.subr.mxu0 %v7999_v35 }
 0x65c   :  { %7612 = vmatmul.mubr.f32.gmra.mxu1 %v7191_v27  ;;  %v7982_v27 = vld [vmem:[%s15165_s9 + $0x68] sm:$0xff]  ;;  %8563 = vmatpush3.msra.mxu0 %v7983_v46 }
 0x65d   :  { %7616 = vmatprep.mubr.f32.mxu1 %v7208_v8  ;;  %v7997_v8 = vld [vmem:[%s15165_s9 + $0xe0] sm:$0xff]  ;;  %8564 = vmatprep.subr.mxu0 %v7998_v31 }
 0x65e   :  { %8565 = vmatpush3.msra.mxu0 %v7982_v27 }
 0x65f   :  { %8566 = vmatprep.subr.mxu0 %v7997_v8 }
 0x660   :  { %7617 = vmatmul.mubr.f32.gmra.mxu1 %v7192_v5  ;;  %v7996_v5 = vld [vmem:[%s15165_s9 + $0xd8] sm:$0xff]  ;;  %8567 = vmatpush3.msra.mxu0 %v7981_v36 }
 0x661   :  { %7621 = vmatprep.mubr.f32.mxu1 %v7209_v62  ;;  %v7980_v62 = vld [vmem:[%s15165_s9 + $0x58] sm:$0xff]  ;;  %8568 = vmatprep.subr.mxu0 %v7996_v5 }
 0x662   :  { %8569 = vmatpush3.msra.mxu0 %v7980_v62 }
 0x664   :  { %7622 = vmatmul.mubr.f32.gmra.mxu1 %v7193_v9  ;;  %v7995_v9 = vld [vmem:[%s15165_s9 + $0xd0] sm:$0xff] }
 0x665   :  { %7962 = vmatprep.mubr.f32.mxu1 %v15259_v45  ;;  %v7979_v45 = vld [vmem:[%s15165_s9 + $0x50] sm:$0xff]  ;;  %8570 = vmatprep.subr.mxu0 %v7995_v9 }
 0x666   :  { %8571 = vmatpush3.msra.mxu0 %v7979_v45 }
 0x66b   :  { %v8408_v20 = vpop.f32.mrf.mxu1 }
 0x66d   :  { %v8409_v7 = vpop.f32.mrf.mxu1 }
 0x66e   :  { %v14910_v13 = vadd.f32 %v8409_v7, %v8408_v20  ;;  %v7994_v7 = vld [vmem:[%s15165_s9 + $0xc8] sm:$0xff] }
 0x66f   :  { %8572 = vmatprep.subr.mxu0 %v7994_v7 }
 0x674   :  { %v8411_v58 = vpop.f32.mrf.mxu1 }
 0x676   :  { %v8412_v24 = vpop.f32.mrf.mxu1 }
 0x677   :  { %v14912_v40 = vadd.f32 %v8412_v24, %v8411_v58  ;;  %v7978_v58 = vld [vmem:[%s15165_s9 + $0x48] sm:$0xff] }
 0x678   :  { %8573 = vmatpush3.msra.mxu0 %v7978_v58 }
 0x67c   :  { %v8414_v6 = vpop.f32.mrf.mxu1 }
 0x67e   :  { %v8415_v3 = vpop.f32.mrf.mxu1 }
 0x67f   :  { %v14914_v25 = vadd.f32 %v8415_v3, %v8414_v6  ;;  %v7993_v6 = vld [vmem:[%s15165_s9 + $0xc0] sm:$0xff] }
 0x680   :  { %8574 = vmatprep.subr.mxu0 %v7993_v6 }
 0x684   :  { %v8417_v0 = vpop.f32.mrf.mxu1 }
 0x686   :  { %v8418_v43 = vpop.f32.mrf.mxu1 }
 0x687   :  { %v14916_v2 = vadd.f32 %v8418_v43, %v8417_v0  ;;  %v7977_v0 = vld [vmem:[%s15165_s9 + $0x40] sm:$0xff]  ;;  %v7992_v43 = vld [vmem:[%s15165_s9 + $0xb8] sm:$0xff] }
 0x688   :  { %8575 = vmatpush3.msra.mxu0 %v7977_v0 }
 0x689   :  { %8576 = vmatprep.subr.mxu0 %v7992_v43 }
 0x68a   :  { %8577 = vmatpush3.msra.mxu0 %v7976_v33 }
 0x68c   :  { %v8420_v34 = vpop.f32.mrf.mxu1 }
 0x68e   :  { %v8421_v22 = vpop.f32.mrf.mxu1 }
 0x68f   :  { %v14924_v59 = vadd.f32 %v8421_v22, %v8420_v34  ;;  %v7991_v34 = vld [vmem:[%s15165_s9 + $0xb0] sm:$0xff] }
 0x690   :  { %8578 = vmatprep.subr.mxu0 %v7991_v34 }
 0x691   :  { %8579 = vmatpush3.msra.mxu0 %v7975_v28 }
 0x694   :  { %v8423_v52 = vpop.f32.mrf.mxu1 }
 0x696   :  { %v8424_v41 = vpop.f32.mrf.mxu1 }
 0x697   :  { %v14926_v14 = vadd.f32 %v8424_v41, %v8423_v52  ;;  %v7990_v52 = vld [vmem:[%s15165_s9 + $0xa8] sm:$0xff] }
 0x698   :  { %v7974_v41 = vld [vmem:[%s15165_s9 + $0x28] sm:$0xff]  ;;  %8580 = vmatprep.subr.mxu0 %v7990_v52 }
 0x699   :  { %8581 = vmatpush3.msra.mxu0 %v7974_v41 }
 0x69a   :  { %8582 = vmatprep.subr.mxu0 %v7989_v12 }
 0x69c   :  { %v8426_v60 = vpop.f32.mrf.mxu1 }
 0x69e   :  { %v8427_v26 = vpop.f32.mrf.mxu1 }
 0x69f   :  { %v14940_v11 = vadd.f32 %v8427_v26, %v8426_v60  ;;  %v7973_v60 = vld [vmem:[%s15165_s9 + $0x20] sm:$0xff]  ;;  %v7972_v26 = vld [vmem:[%s15165_s9 + $0x18] sm:$0xff] }
 0x6a0   :  { %8583 = vmatpush3.msra.mxu0 %v7973_v60 }
 0x6a1   :  { %8584 = vmatprep.subr.mxu0 %v7988_v56 }
 0x6a2   :  { %8585 = vmatpush3.msra.mxu0 %v7972_v26 }
 0x6a3   :  { %8586 = vmatprep.subr.mxu0 %v7987_v42 }
 0x6a4   :  { %v8429_v44 = vpop.f32.mrf.mxu1 }
 0x6a6   :  { %v8430_v16 = vpop.f32.mrf.mxu1 }
 0x6a7   :  { %v14948_v50 = vadd.f32 %v8430_v16, %v8429_v44 }
 0x6ab   :  { %v8432_v37 = vpop.f32.mrf.mxu1 }
 0x6ad   :  { %v8433_v57 = vpop.f32.mrf.mxu1 }
 0x6ae   :  { %v14956_v49 = vadd.f32 %v8433_v57, %v8432_v37  ;;  %v15076_v37 = vld [vmem:[%s15162_s6] ss:$0 sm:$0xff] }
 0x6af   :  { %v7409_v61 = vadd.f32 %v14912_v40, %v15076_v37  ;;  %v7414_v27 = vadd.f32 %v14914_v25, %v15076_v37  ;;  %v7419_v45 = vadd.f32 %v14916_v2, %v15076_v37 }
 0x6b4   :  { %v8435_v1 = vpop.f32.mrf.mxu1 }
 0x6b6   :  { %v8436_v4 = vpop.f32.mrf.mxu1 }
 0x6b7   :  { %v14958_v30 = vadd.f32 %v8436_v4, %v8435_v1  ;;  %v8717_v1 = vpop.f32.mrf.mxu0 }
 0x6b9   :  { %v7693_v32 = vpop.f32.mrf.mxu0 }
 0x6bc   :  { %v8438_v51 = vpop.f32.mrf.mxu1 }
 0x6be   :  { %v8439_v21 = vpop.f32.mrf.mxu1 }
 0x6bf   :  { %v14963_v23 = vadd.f32 %v8439_v21, %v8438_v51  ;;  %v7404_v51 = vadd.f32 %v14910_v13, %v15076_v37 }
 0x6c4   :  { %v8441_v38 = vpop.f32.mrf.mxu1 }
 0x6c6   :  { %v8442_v29 = vpop.f32.mrf.mxu1 }
 0x6c7   :  { %v15001_v48 = vadd.f32 %v8442_v29, %v8441_v38  ;;  %v8720_v38 = vpop.f32.mrf.mxu0 }
 0x6c9   :  { %v7703_v9 = vpop.f32.mrf.mxu0 }
 0x6cb   :  { %v8723_v34 = vpop.f32.mrf.mxu0 }
 0x6cc   :  { %v8444_v20 = vpop.f32.mrf.mxu1 }
 0x6cd   :  { %v7713_v42 = vpop.f32.mrf.mxu0 }
 0x6ce   :  { %v8445_v24 = vpop.f32.mrf.mxu1 }
 0x6cf   :  { %v15027_v3 = vadd.f32 %v8445_v24, %v8444_v20 }
 0x6d4   :  { %v8447_v22 = vpop.f32.mrf.mxu1 }
 0x6d6   :  { %v8448_v53 = vpop.f32.mrf.mxu1 }
 0x6d7   :  { %v15053_v47 = vadd.f32 %v8448_v53, %v8447_v22  ;;  %v7424_v22 = vadd.f32 %v14924_v59, %v15076_v37 }
 0x6dc   :  { %v8450_v44 = vpop.f32.mrf.mxu1 }
 0x6de   :  { %v8451_v63 = vpop.f32.mrf.mxu1 }
 0x6df   :  { %v15067_v16 = vadd.f32 %v8451_v63, %v8450_v44  ;;  %v7429_v63 = vadd.f32 %v14926_v14, %v15076_v37 }
 0x6e4   :  { %v15069_v19 = vpop.f32.mrf.mxu1 }
 0x6e6   :  { %v15071_v55 = vpop.f32.mrf.mxu1 }
 0x6e8   :  { %v8488_v57 = vpop.f32.mrf.mxu1 }
 0x6ea   :  { %v8489_v4 = vpop.f32.mrf.mxu1 }
 0x6eb   :  { %v8490_v21 = vadd.f32 %v8489_v4, %v8488_v57 }
 0x6ec   :  { %v8491_v39 = vpop.f32.mrf.mxu1 }
 0x6ed   :  { %v7549_v17 = vadd.f32 %v8490_v21, %v7404_v51 }
 0x6ee   :  { %v8492_v54 = vpop.f32.mrf.mxu1 }
 0x6ef   :  { %v7694_v10 = vadd.f32 %v7693_v32, %v7549_v17  ;;  %v8493_v15 = vadd.f32 %v8492_v54, %v8491_v39  ;;  %v8726_v32 = vpop.f32.mrf.mxu0 }
 0x6f0   :  { %v8494_v18 = vpop.f32.mrf.mxu1 }
 0x6f1   :  { %v7788_v35 = vmul.f32 0.2, %v7694_v10  ;;  %v7554_v46 = vadd.f32 %v8493_v15, %v7409_v61  ;;  %vm7772_vm4 = vcmp.ge.f32.partialorder %v7694_v10, 0.0  ;;  %v7434_v61 = vadd.f32 %v14940_v11, %v15076_v37 }
 0x6f2   :  { %v8495_v31 = vpop.f32.mrf.mxu1 }
 0x6f3   :  { %v7699_v13 = vadd.f32 %v8717_v1, %v7554_v46  ;;  %v8496_v29 = vadd.f32 %v8495_v31, %v8494_v18  ;;  %v7804_v36 = vsel %vm7772_vm4, %v7694_v10, %v7788_v35 }
 0x6f4   :  { %v8497_v8 = vpop.f32.mrf.mxu1  ;;  %v7820_v24 = vsel %vm4900_vm13, %v7804_v36, 0.0 }
 0x6f5   :  { %vm7773_vm5 = vcmp.ge.f32.partialorder %v7699_v13, 0.0  ;;  %v7789_v5 = vmul.f32 0.2, %v7699_v13  ;;  %v7559_v62 = vadd.f32 %v8496_v29, %v7414_v27  ;;  %v7723_v27 = vpop.f32.mrf.mxu0  ;;  %v7439_v29 = vadd.f32 %v14948_v50, %v15076_v37 }
 0x6f6   :  { %v8498_v40 = vpop.f32.mrf.mxu1 }
 0x6f7   :  { %v7805_v20 = vsel %vm7773_vm5, %v7699_v13, %v7789_v5  ;;  %v7704_v7 = vadd.f32 %v7703_v9, %v7559_v62  ;;  %v8499_v58 = vadd.f32 %v8498_v40, %v8497_v8  ;;  %vm7894_vm5 = vcmask 1041409  }
 0x6f8   :  { %v7821_v6 = vsel %vm4900_vm13, %v7805_v20, 0.0  ;;  %v8500_v25 = vpop.f32.mrf.mxu1  ;;  %v8729_v20 = vpop.f32.mrf.mxu0 }
 0x6f9   :  { %v7822_v0 = vadd.f32 %v7821_v6, %v7820_v24  ;;  %vm7774_vm6 = vcmp.ge.f32.partialorder %v7704_v7, 0.0  ;;  %v7790_v43 = vmul.f32 0.2, %v7704_v7  ;;  %v7564_v33 = vadd.f32 %v8499_v58, %v7419_v45 }
 0x6fa   :  { %v8501_v28 = vpop.f32.mrf.mxu1  ;;  %v7444_v58 = vadd.f32 %v14956_v49, %v15076_v37 }
 0x6fb   :  { %v7806_v52 = vsel %vm7774_vm6, %v7704_v7, %v7790_v43  ;;  %v7709_v41 = vadd.f32 %v8720_v38, %v7564_v33  ;;  %v8502_v2 = vadd.f32 %v8501_v28, %v8500_v25  ;;  %v7733_v28 = vpop.f32.mrf.mxu0 }
 0x6fc   :  { %v7823_v53 = vsel %vm4900_vm13, %v7806_v52, 0.0  ;;  %v8503_v12 = vpop.f32.mrf.mxu1  ;;  %v7449_v52 = vadd.f32 %v14958_v30, %v15076_v37 }
 0x6fd   :  { %v7824_v60 = vadd.f32 %v7823_v53, %v7822_v0  ;;  %vm7775_vm7 = vcmp.ge.f32.partialorder %v7709_v41, 0.0  ;;  %v7791_v56 = vmul.f32 0.2, %v7709_v41  ;;  %v7569_v26 = vadd.f32 %v8502_v2, %v7424_v22 }
 0x6fe   :  { %v8504_v44 = vpop.f32.mrf.mxu1 }
 0x6ff   :  { %v7807_v57 = vsel %vm7775_vm7, %v7709_v41, %v7791_v56  ;;  %v7714_v1 = vadd.f32 %v7713_v42, %v7569_v26  ;;  %v8505_v4 = vadd.f32 %v8504_v44, %v8503_v12  ;;  %v8732_v42 = vpop.f32.mrf.mxu0 }
 0x700   :  { %v7825_v59 = vsel %vm4900_vm13, %v7807_v57, 0.0  ;;  %v8506_v51 = vpop.f32.mrf.mxu1 }
 0x701   :  { %v7826_v21 = vadd.f32 %v7825_v59, %v7824_v60  ;;  %vm7776_vm8 = vcmp.ge.f32.partialorder %v7714_v1, 0.0  ;;  %v7792_v39 = vmul.f32 0.2, %v7714_v1  ;;  %v7574_v17 = vadd.f32 %v8505_v4, %v7429_v63 }
 0x702   :  { %v8507_v54 = vpop.f32.mrf.mxu1  ;;  %v7454_v63 = vadd.f32 %v14963_v23, %v15076_v37 }
 0x703   :  { %v7808_v10 = vsel %vm7776_vm8, %v7714_v1, %v7792_v39  ;;  %v7719_v15 = vadd.f32 %v8723_v34, %v7574_v17  ;;  %v8508_v18 = vadd.f32 %v8507_v54, %v8506_v51 }
 0x704   :  { %v7827_v14 = vsel %vm4900_vm13, %v7808_v10, 0.0  ;;  %v8509_v35 = vpop.f32.mrf.mxu1 }
 0x705   :  { %v7828_v46 = vadd.f32 %v7827_v14, %v7826_v21  ;;  %vm7777_vm0 = vcmp.ge.f32.partialorder %v7719_v15, 0.0  ;;  %v7793_v38 = vmul.f32 0.2, %v7719_v15  ;;  %v7579_v31 = vadd.f32 %v8508_v18, %v7434_v61  ;;  %v7743_v21 = vpop.f32.mrf.mxu0 }
 0x706   :  { %v8510_v13 = vpop.f32.mrf.mxu1  ;;  %v7459_v61 = vadd.f32 %v15001_v48, %v15076_v37 }
 0x707   :  { %v7809_v8 = vsel %vm7777_vm0, %v7719_v15, %v7793_v38  ;;  %v7724_v36 = vadd.f32 %v7723_v27, %v7579_v31  ;;  %v8511_v5 = vadd.f32 %v8510_v13, %v8509_v35  ;;  %v8735_v35 = vpop.f32.mrf.mxu0  ;;  %v7464_v31 = vadd.f32 %v15027_v3, %v15076_v37 }
 0x708   :  { %v7829_v11 = vsel %vm4900_vm13, %v7809_v8, 0.0  ;;  %v8512_v62 = vpop.f32.mrf.mxu1 }
 0x709   :  { %v7830_v9 = vadd.f32 %v7829_v11, %v7828_v46  ;;  %vm7778_vm9 = vcmp.ge.f32.partialorder %v7724_v36, 0.0  ;;  %v7794_v40 = vmul.f32 0.2, %v7724_v36  ;;  %v7584_v45 = vadd.f32 %v8511_v5, %v7439_v29  ;;  %v7753_v11 = vpop.f32.mrf.mxu0 }
 0x70a   :  { %v8513_v7 = vpop.f32.mrf.mxu1 }
 0x70b   :  { %v7810_v24 = vsel %vm7778_vm9, %v7724_v36, %v7794_v40  ;;  %v7729_v6 = vadd.f32 %v8726_v32, %v7584_v45  ;;  %v8514_v25 = vadd.f32 %v8513_v7, %v8512_v62  ;;  %v7469_v40 = vadd.f32 %v15053_v47, %v15076_v37  ;;  %v8738_v3 = vpop.f32.mrf.mxu0 }
 0x70c   :  { %v7831_v50 = vsel %vm4900_vm13, %v7810_v24, 0.0  ;;  %v8515_v0 = vpop.f32.mrf.mxu1 }
 0x70d   :  { %v7832_v43 = vadd.f32 %v7831_v50, %v7830_v9  ;;  %vm7779_vm10 = vcmp.ge.f32.partialorder %v7729_v6, 0.0  ;;  %v7795_v33 = vmul.f32 0.2, %v7729_v6  ;;  %v7589_v34 = vadd.f32 %v8514_v25, %v7444_v58 }
 0x70e   :  { %v8516_v22 = vpop.f32.mrf.mxu1  ;;  %v8455_v50 = vadd.f32 %v15071_v55, %v15069_v19 }
 0x70f   :  { %v7811_v41 = vsel %vm7779_vm10, %v7729_v6, %v7795_v33  ;;  %v7734_v2 = vadd.f32 %v7733_v28, %v7589_v34  ;;  %v8517_v53 = vadd.f32 %v8516_v22, %v8515_v0  ;;  %v7474_v33 = vadd.f32 %v15067_v16, %v15076_v37 }
 0x710   :  { %v7833_v49 = vsel %vm4900_vm13, %v7811_v41, 0.0  ;;  %v8518_v12 = vpop.f32.mrf.mxu1  ;;  %v7763_v41 = vpop.f32.mrf.mxu0 }
 0x711   :  { %v15106_v60 = vadd.f32 %v7833_v49, %v7832_v43  ;;  %v7796_v56 = vmul.f32 0.2, %v7734_v2  ;;  %v7594_v26 = vadd.f32 %v8517_v53, %v7449_v52  ;;  %vm7780_vm11 = vcmp.ge.f32.partialorder %v7734_v2, 0.0 }
 0x712   :  { %v8519_v44 = vpop.f32.mrf.mxu1 }
 0x713   :  { %v7739_v57 = vadd.f32 %v8729_v20, %v7594_v26  ;;  %v8520_v1 = vadd.f32 %v8519_v44, %v8518_v12  ;;  %v7812_v30 = vsel %vm7780_vm11, %v7734_v2, %v7796_v56  ;;  %v7479_v12 = vadd.f32 %v8455_v50, %v15076_v37 }
 0x714   :  { %v8521_v4 = vpop.f32.mrf.mxu1  ;;  %v7841_v10 = vsel %vm4900_vm13, %v7812_v30, 0.0  ;;  %v7835_v19 = vrot.slane %v15106_v60, 4 }
 0x715   :  { %vm7781_vm12 = vcmp.ge.f32.partialorder %v7739_v57, 0.0  ;;  %v7797_v59 = vmul.f32 0.2, %v7739_v57  ;;  %v7599_v51 = vadd.f32 %v8520_v1, %v7454_v63 }
 0x716   :  { %v8522_v39 = vpop.f32.mrf.mxu1  ;;  %v7836_v1 = vadd.f32 %v7835_v19, %v15106_v60 }
 0x717   :  { %v7813_v17 = vsel %vm7781_vm12, %v7739_v57, %v7797_v59  ;;  %v7744_v32 = vadd.f32 %v7743_v21, %v7599_v51  ;;  %v8523_v54 = vadd.f32 %v8522_v39, %v8521_v4 }
 0x718   :  { %v7842_v15 = vsel %vm4900_vm13, %v7813_v17, 0.0  ;;  %v8524_v23 = vpop.f32.mrf.mxu1  ;;  %v7837_v21 = vrot.slane %v7836_v1, 2 }
 0x719   :  { %v7843_v18 = vadd.f32 %v7842_v15, %v7841_v10  ;;  %vm7782_vm14 = vcmp.ge.f32.partialorder %v7744_v32, 0.0  ;;  %v7798_v14 = vmul.f32 0.2, %v7744_v32  ;;  %v7604_v46 = vadd.f32 %v8523_v54, %v7459_v61 }
 0x71a   :  { %v8525_v38 = vpop.f32.mrf.mxu1  ;;  %v7838_v54 = vadd.f32 %v7837_v21, %v7836_v1 }
 0x71b   :  { %v7814_v27 = vsel %vm7782_vm14, %v7744_v32, %v7798_v14  ;;  %v8526_v13 = vadd.f32 %v8525_v38, %v8524_v23  ;;  %v7749_v8 = vadd.f32 %v8732_v42, %v7604_v46 }
 0x71c   :  { %v7844_v29 = vsel %vm4900_vm13, %v7814_v27, 0.0  ;;  %v8527_v48 = vpop.f32.mrf.mxu1  ;;  %v7839_v15 = vrot.slane %v7838_v54, 1  ;;  %v7971_v27 = vld [vmem:[%s15165_s9 + $0x10] sm:$0xff] }
 0x71d   :  { %v7845_v36 = vadd.f32 %v7844_v29, %v7843_v18  ;;  %v7609_v5 = vadd.f32 %v8526_v13, %v7464_v31  ;;  %vm7783_vm3 = vcmp.ge.f32.partialorder %v7749_v8, 0.0  ;;  %v7799_v62 = vmul.f32 0.2, %v7749_v8  ;;  %v7986_v13 = vld [vmem:[%s15165_s9 + $0x88] sm:$0xff]  ;;  %8587 = vmatpush3.msra.mxu0 %v7971_v27 }
 0x71e   :  { %v8528_v9 = vpop.f32.mrf.mxu1  ;;  %v7840_v60 = vadd.f32 %v7839_v15, %v7838_v54  ;;  %8588 = vmatprep.subr.mxu0 %v7986_v13  ;;  %v7970_v29 = vld [vmem:[%s15165_s9 + $0x8] sm:$0xff] }
 0x71f   :  { %v7754_v45 = vadd.f32 %v7753_v11, %v7609_v5  ;;  %v8529_v20 = vadd.f32 %v8528_v9, %v8527_v48  ;;  %v7815_v7 = vsel %vm7783_vm3, %v7749_v8, %v7799_v62  ;;  %v7985_v8 = vld [vmem:[%s15165_s9 + $0x80] sm:$0xff]  ;;  %8589 = vmatpush3.msra.mxu0 %v7970_v29 }
 0x720   :  { %v8530_v58 = vpop.f32.mrf.mxu1  ;;  %v7846_v24 = vsel %vm4900_vm13, %v7815_v7, 0.0  ;;  %v7862_v38 = vmul.f32 0.015625, %v7840_v60  ;;  %v7969_v48 = vld [vmem:[%s15165_s9] sm:$0xff]  ;;  %8590 = vmatprep.subr.mxu0 %v7985_v8 }
 0x721   :  { %vm7784_vm15 = vcmp.ge.f32.partialorder %v7754_v45, 0.0  ;;  %v7800_v6 = vmul.f32 0.2, %v7754_v45  ;;  %v7614_v25 = vadd.f32 %v8529_v20, %v7469_v40  ;;  %v7847_v0 = vadd.f32 %v7846_v24, %v7845_v36  ;;  %8591 = vmatpush3.msra.mxu0 %v7969_v48  ;;  %v7880_v9 = vld [vmem:[%s15164_s8] sm:$0x3]  ;;  %s9873_s8 = scalar_lea.vmem %s8087_s19, 32 }
 0x722   :  { %v8531_v43 = vpop.f32.mrf.mxu1  ;;  %v7882_v36 = vlaneseq  ;;  %p9874_p0 = scmp.ne.s32.totalorder %s8087_s19, %s9873_s8  ;;  %p9879_p2 = scmp.lt.s32.totalorder %s9873_s8, %s9873_s8 }
 0x723   :  { %v7816_v34 = vsel %vm7784_vm15, %v7754_v45, %v7800_v6  ;;  %v7759_v47 = vadd.f32 %v8735_v35, %v7614_v25  ;;  %v8532_v28 = vadd.f32 %v8531_v43, %v8530_v58  ;;  %v8307_v6 = vld [vmem:[%s15166_s10] ss:$0 sm:$0xff] }
 0x724   :  { %v7848_v22 = vsel %vm4900_vm13, %v7816_v34, 0.0  ;;  %v8533_v52 = vpop.f32.mrf.mxu1  ;;  %v7883_v5 = vshrl.u32 %v7882_v36, 7  ;;  %p9880_p3 = por %p9879_p2, %p9878_p1 }
 0x725   :  { %vm7785_vm1 = vcmp.ge.f32.partialorder %v7759_v47, 0.0  ;;  %v7801_v2 = vmul.f32 0.2, %v7759_v47  ;;  %v7619_v53 = vadd.f32 %v8532_v28, %v7474_v33  ;;  %v7849_v49 = vadd.f32 %v7848_v22, %v7847_v0 }
 0x726   :  { %v8534_v56 = vpop.f32.mrf.mxu1  ;;  %v7888_v11 = vsub.s32 1, %v7883_v5  ;;  %v7884_v62 = vsub.s32 0, %v7883_v5  ;;  %p9881_p4 = pnand %p9880_p3, %p9874_p0 }
 0x727   :  { %v7817_v55 = vsel %vm7785_vm1, %v7759_v47, %v7801_v2  ;;  %v8535_v26 = vadd.f32 %v8534_v56, %v8533_v52  ;;  %v7764_v42 = vadd.f32 %v7763_v41, %v7619_v53 }
 0x728   :  { %v7850_v16 = vsel %vm4900_vm13, %v7817_v55, 0.0  ;;  %v7889_v40 = vrot.slane %v7880_v9, %v7888_v11  ;;  %v7885_v45 = vrot.slane %v7880_v9, %v7884_v62 }
 0x729   :  { %v7624_v44 = vadd.f32 %v8535_v26, %v7479_v12  ;;  %vm7786_vm2 = vcmp.ge.f32.partialorder %v7764_v42, 0.0  ;;  %v7802_v63 = vmul.f32 0.2, %v7764_v42  ;;  %v7851_v57 = vadd.f32 %v7850_v16, %v7849_v49 }
 0x72b   :  { %v7769_v4 = vadd.f32 %v8738_v3, %v7624_v44  ;;  %v7818_v30 = vsel %vm7786_vm2, %v7764_v42, %v7802_v63 }
 0x72c   :  { %v7852_v59 = vsel %vm4900_vm13, %v7818_v30, 0.0 }
 0x72d   :  { %vm7787_vm4 = vcmp.ge.f32.partialorder %v7769_v4, 0.0  ;;  %v7803_v37 = vmul.f32 0.2, %v7769_v4  ;;  %v7853_v51 = vadd.f32 %v7852_v59, %v7851_v57 }
 0x72f   :  { %v7819_v39 = vsel %vm7787_vm4, %v7769_v4, %v7803_v37 }
 0x730   :  { %v7854_v17 = vsel %vm4900_vm13, %v7819_v39, 0.0 }
 0x731   :  { %v7855_v32 = vadd.f32 %v7854_v17, %v7853_v51 }
 0x733   :  { %v7856_v61 = vrot.slane %v7855_v32, 4 }
 0x735   :  { %v7857_v10 = vadd.f32 %v7856_v61, %v7855_v32 }
 0x737   :  { %v7858_v23 = vrot.slane %v7857_v10, 2 }
 0x739   :  { %v7859_v18 = vadd.f32 %v7858_v23, %v7857_v10 }
 0x73b   :  { %v7860_v14 = vrot.slane %v7859_v18, 1 }
 0x73d   :  { %v7861_v35 = vadd.f32 %v7860_v14, %v7859_v18 }
 0x73f   :  { %v7863_v46 = vmul.f32 0.015625, %v7861_v35 }
 0x741   :  { %v7895_v31 = vsel %vm7894_vm5, %v7863_v46, %v7862_v38 }
 0x742   :  { %8306 = vmatmul.mubr.msk.f32.vlgmr.msra.gmra.mxu1 %vm4900_vm13, %v7895_v31  ;;  %vm8078_vm13 = vcmask 17408  }
 0x802   :  { %v7964_v20 = vpop.f32.mrf.mxu1 }
 0x803   :  { %v7965_v3 = vadd.f32 %v7964_v20, %v7885_v45 }
 0x804   :  { %v7966_v7 = vpop.f32.mrf.mxu1 }
 0x805   :  { %v7967_v58 = vadd.f32 %v7966_v7, %v7889_v40 }
 0x807   :  { %8072 = vmatprep.mubr.f32.mxu0 %v7967_v58 }
 0x808   :  { %8073 = vmatmul.mubr.f32.vlgmr.msra.gmra.mxu0 %v7965_v3 }
 0x8c8   :  { %v8592_v24 = vpop.f32.mrf.mxu0 }
 0x8ca   :  { %v8593_v25 = vpop.f32.mrf.mxu0 }
 0x8cb   :  { %v8594_v50 = vadd.f32 %v8593_v25, %v8592_v24 }
 0x8cd   :  { %v8075_v0 = vadd.f32 %v8594_v50, %v8307_v6 }
 0x8cf   :  { %8079 = vst.msk [vmem:[#allocation5] sm:$0x3] %vm8078_vm13, %v8075_v0 }
 0x8d0   :  { %9884 = shalt.err (!%p9881_p4)
}
 0x8d1   :  { %8089 = dma.vmem_to_hbm [thread:$0]  %s8087_s19, 32, %s15167_s11, [#allocation6]  }
 0x8d2   :  { %9893 = dma.done.wait [#allocation6], 32  }
 0x8d3   :  { %9894 = vsyncadd [#allocation6], 4294967264 }
 0x8d4   :  { %8093 = vsyncpa [#allocation6], 1 }

</bundles_post_ra>
